<compile_context>
chip_gen: v6e
topology: v6e:2x2x1
jax: 0.10.0
libtpu: 0.0.40
codegen_flags: <defaults>
</compile_context>

<pallas_src>
import jax
import jax.numpy as jnp
from jax import lax
from jax.experimental import pallas as pl
from jax.experimental.pallas import tpu as pltpu

K_PARTS = 6          # self.K
NUM_FEATURES = 128   # SattentionNet num_features
BACKBONE_CH = 2048   # ResNet-50 stage-4 channel count
NUM_CLASSES = 11     # fc output


def _attention_reid_kernel(x_ref, wbb_ref, bbb_ref, wa_ref, ba_ref,
                           we_ref, be_ref, wfc_ref, bfc_ref,
                           out_ref, reg_ref, att_ref):
    """Processes a block of Bt batch elements per grid step.

    x_ref   : (Bt, HW, Cin) f32   input pixels (channels-last, spatial flat)
    wbb/bbb : (Cin, C) f32, (1, C) f32   backbone-stub 1x1 conv
    wa/ba   : (K, C) bf16, (K, 1) f32    attention 1x1 conv (spatial logits)
    we/be   : (C, F) bf16, (1, F) f32    per-part embedding 2048 -> 128
    wfc/bfc : (K, F, ncls) bf16, (1, ncls) f32   classifier Linear(K*F, ncls)
    out_ref : (Bt, 1, ncls) f32   classifier logits
    reg_ref : (Bt, 1, 1) f32      ||sqrt(A)sqrt(A)^T - I||_F
    att_ref : (Bt, K, HW) f32     spatial attention maps (softmax over HW)
    """
    bt_block = x_ref.shape[0]
    kp = wa_ref.shape[0]

    # Grid-invariant operands: load once per grid step (hoisted out of Bt loop).
    wbb = wbb_ref[...]
    bbb = bbb_ref[...]
    wa_t = wa_ref[...]
    ba = ba_ref[...]
    we = we_ref[...]
    be = be_ref[...]
    bfc = bfc_ref[...]

    for bt in range(bt_block):
        x = x_ref[bt]                                               # (HW, Cin)

        # --- backbone stub: 1x1 conv over channels + ReLU -> (HW, C) f32 ---
        f = jnp.dot(x, wbb, preferred_element_type=jnp.float32) + bbb
        f = jnp.maximum(f, 0.0)
        f_bf = f.astype(jnp.bfloat16)

        # --- attention logits in lane-dense (K, HW) layout ---
        logits = lax.dot_general(wa_t, f_bf, (((1,), (1,)), ((), ())),
                                 preferred_element_type=jnp.float32)
        logits = logits + ba                                        # (K, HW)

        # --- softmax over spatial (lane) axis, f32 ---
        m = jnp.max(logits, axis=-1, keepdims=True)                 # (K, 1)
        e = jnp.exp(logits - m)
        denom = jnp.sum(e, axis=-1, keepdims=True)
        att = e * pl.reciprocal(denom, approx=True)                 # (K, HW)

        # --- attention-weighted pooling: (K, C) = att @ f ---
        pooled = jnp.dot(att.astype(jnp.bfloat16), f_bf,
                         preferred_element_type=jnp.float32)

        # --- per-part embedding 2048 -> 128 ---
        emb = jnp.dot(pooled.astype(jnp.bfloat16), we,
                      preferred_element_type=jnp.float32) + be      # (K, F)

        # --- diversity regularization: || sqrt(A) sqrt(A)^T - I ||_F ---
        q = jnp.sqrt(att)                                           # (K, HW)
        gram = lax.dot_general(q, q, (((1,), (1,)), ((), ())),
                               preferred_element_type=jnp.float32)  # (K, K)
        row = lax.broadcasted_iota(jnp.int32, gram.shape, 0)
        col = lax.broadcasted_iota(jnp.int32, gram.shape, 1)
        r = gram - (row == col).astype(jnp.float32)
        reg_ref[bt] = jnp.sqrt(jnp.sum(r * r, keepdims=True))       # (1, 1)

        att_ref[bt] = att                                           # (K, HW)

        # --- fused classifier: fc(vec(emb)) = sum_k emb[k] @ Wfc[k] + b ---
        emb_bf = emb.astype(jnp.bfloat16)
        acc = bfc                                                   # (1, ncls)
        for k in range(kp):
            acc = acc + jnp.dot(emb_bf[k:k + 1, :], wfc_ref[k],
                                preferred_element_type=jnp.float32)
        out_ref[bt] = acc                                           # (1, ncls)


def _pick_block_batch(B, HW, C):
    """Batch-block size: amortize per-step overhead, keep >=2 grid steps for
    the second TensorCore on v7x, cap the f32 (HW, C) intermediate at ~8 MiB."""
    limit = 8 * 1024 * 1024
    best = 1
    for bt in range(1, B + 1):
        if B % bt:
            continue
        if B > 1 and B // bt < 2:
            continue
        if bt * HW * C * 4 > limit:
            continue
        best = bt
    return best


@jax.jit
def attention_reid_forward(x_nchw, params):
    B, Cin, H, W = x_nchw.shape
    HW = H * W
    x_flat = jnp.transpose(x_nchw, (0, 2, 3, 1)).reshape(B, HW, Cin)
    x_flat = x_flat.astype(jnp.float32)

    wbb = params["wbb"].astype(jnp.float32)                  # (Cin, C)
    bbb = params["bbb"].astype(jnp.float32)                  # (1, C)
    wa_t = params["wa"].T.astype(jnp.bfloat16)               # (K, C)
    ba_t = params["ba"].reshape(-1, 1).astype(jnp.float32)   # (K, 1)
    we = params["we"].astype(jnp.bfloat16)                   # (C, F)
    be = params["be"].astype(jnp.float32)                    # (1, F)

    C = wbb.shape[1]
    Kp = wa_t.shape[0]
    F = we.shape[1]
    ncls = params["wfc"].shape[1]
    wfc3 = params["wfc"].reshape(Kp, F, ncls).astype(jnp.bfloat16)
    bfc = params["bfc"].astype(jnp.float32)                  # (1, ncls)

    bt = _pick_block_batch(B, HW, C)
    grid = (B // bt,)

    out, reg, att = pl.pallas_call(
        _attention_reid_kernel,
        out_shape=(jax.ShapeDtypeStruct((B, 1, ncls), jnp.float32),
                   jax.ShapeDtypeStruct((B, 1, 1), jnp.float32),
                   jax.ShapeDtypeStruct((B, Kp, HW), jnp.float32)),
        grid_spec=pltpu.PrefetchScalarGridSpec(
            num_scalar_prefetch=0,
            grid=grid,
            in_specs=[pl.BlockSpec((bt, HW, Cin), lambda b: (b, 0, 0)),
                      pl.BlockSpec((Cin, C), lambda b: (0, 0)),
                      pl.BlockSpec((1, C), lambda b: (0, 0)),
                      pl.BlockSpec((Kp, C), lambda b: (0, 0)),
                      pl.BlockSpec((Kp, 1), lambda b: (0, 0)),
                      pl.BlockSpec((C, F), lambda b: (0, 0)),
                      pl.BlockSpec((1, F), lambda b: (0, 0)),
                      pl.BlockSpec((Kp, F, ncls), lambda b: (0, 0, 0)),
                      pl.BlockSpec((1, ncls), lambda b: (0, 0))],
            out_specs=(pl.BlockSpec((bt, 1, ncls), lambda b: (b, 0, 0)),
                       pl.BlockSpec((bt, 1, 1), lambda b: (b, 0, 0)),
                       pl.BlockSpec((bt, Kp, HW), lambda b: (b, 0, 0)))),
        compiler_params=pltpu.CompilerParams(
            dimension_semantics=("parallel",)),
    )(x_flat, wbb, bbb, wa_t, ba_t, we, be, wfc3, bfc)

    output = out.reshape(B, ncls)
    reg_out = reg.reshape(B)                    # per-batch Frobenius norm
    attmap = att.reshape(B, Kp, H, W)           # lane-dense layout: no transpose
    return output, reg_out, attmap


def init_params(key, cin):
    """Deterministic synthetic parameters (xavier-normal weights, zero biases)."""
    C, Kp, F = BACKBONE_CH, K_PARTS, NUM_FEATURES
    ks = jax.random.split(key, 4)

    def xavier(k, shape):
        std = (2.0 / (shape[0] + shape[1])) ** 0.5
        return std * jax.random.normal(k, shape, jnp.float32)

    return dict(
        wbb=xavier(ks[0], (cin, C)),              # backbone-stub 1x1 conv
        bbb=jnp.zeros((1, C), jnp.float32),
        wa=xavier(ks[1], (C, Kp)),                # attention 1x1 conv (2048 -> K)
        ba=jnp.zeros((1, Kp), jnp.float32),
        we=xavier(ks[2], (C, F)),                 # per-part embedding (2048 -> 128)
        be=jnp.zeros((1, F), jnp.float32),
        wfc=xavier(ks[3], (Kp * F, NUM_CLASSES)), # nn.Linear(128*K, 11), xavier_normal_
        bfc=jnp.zeros((1, NUM_CLASSES), jnp.float32),
    )


if __name__ == "__main__":
    key = jax.random.PRNGKey(0)
    kx, kp = jax.random.split(key)

    B, Cin, H, W = 2, 4, 16, 16
    x = jax.random.normal(kx, (B, Cin, H, W), jnp.float32)   # NCHW, like PyTorch
    params = init_params(kp, cin=Cin)

    output, reg, attmap = jax.block_until_ready(attention_reid_forward(x, params))

    assert output.shape == (B, NUM_CLASSES)
    assert reg.shape == (B,)
    assert attmap.shape == (B, K_PARTS, H, W)
    assert bool(jnp.all(jnp.isfinite(output)))
    assert bool(jnp.all(jnp.isfinite(reg)))
    # attention maps are softmax over spatial positions -> sum to ~1 per part
    # (approx-reciprocal normalization => slightly relaxed tolerance)
    assert bool(jnp.allclose(attmap.sum(axis=(2, 3)), 1.0, atol=2e-3))
    print("KERNEL_OK")
</pallas_src>

<mosaic_0001>
module attributes {stable_mosaic.version = 11 : i64} {
  func.func @_attention_reid_kernel(%arg0: i32, %arg1: memref<1x256x4xf32, #tpu.memory_space<vmem>>, %arg2: memref<4x2048xf32, #tpu.memory_space<vmem>>, %arg3: memref<1x2048xf32, #tpu.memory_space<vmem>>, %arg4: memref<6x2048xbf16, #tpu.memory_space<vmem>>, %arg5: memref<6x1xf32, #tpu.memory_space<vmem>>, %arg6: memref<2048x128xbf16, #tpu.memory_space<vmem>>, %arg7: memref<1x128xf32, #tpu.memory_space<vmem>>, %arg8: memref<6x128x11xbf16, #tpu.memory_space<vmem>>, %arg9: memref<1x11xf32, #tpu.memory_space<vmem>>, %arg10: memref<1x1x11xf32, #tpu.memory_space<vmem>>, %arg11: memref<1x1x1xf32, #tpu.memory_space<vmem>>, %arg12: memref<1x6x256xf32, #tpu.memory_space<vmem>>) attributes {dimension_semantics = [#tpu.dimension_semantics<parallel>], iteration_bounds = array<i64: 2>, scalar_prefetch = 0 : i64, scratch_operands = 0 : i64, tpu.core_type = #tpu.core_type<tc>, window_params = [{transform_indices = @transform_0, window_bounds = array<i64: 1, 256, 4>}, {pipeline_mode = #tpu.pipeline_mode<synchronous>, transform_indices = @transform_1, window_bounds = array<i64: 4, 2048>}, {pipeline_mode = #tpu.pipeline_mode<synchronous>, transform_indices = @transform_2, window_bounds = array<i64: 1, 2048>}, {pipeline_mode = #tpu.pipeline_mode<synchronous>, transform_indices = @transform_3, window_bounds = array<i64: 6, 2048>}, {pipeline_mode = #tpu.pipeline_mode<synchronous>, transform_indices = @transform_4, window_bounds = array<i64: 6, 1>}, {pipeline_mode = #tpu.pipeline_mode<synchronous>, transform_indices = @transform_5, window_bounds = array<i64: 2048, 128>}, {pipeline_mode = #tpu.pipeline_mode<synchronous>, transform_indices = @transform_6, window_bounds = array<i64: 1, 128>}, {pipeline_mode = #tpu.pipeline_mode<synchronous>, transform_indices = @transform_7, window_bounds = array<i64: 6, 128, 11>}, {pipeline_mode = #tpu.pipeline_mode<synchronous>, transform_indices = @transform_8, window_bounds = array<i64: 1, 11>}, {transform_indices = @transform_9, window_bounds = array<i64: 1, 1, 11>}, {transform_indices = @transform_10, window_bounds = array<i64: 1, 1, 1>}, {transform_indices = @transform_11, window_bounds = array<i64: 1, 6, 256>}]} {
    %c0 = arith.constant 0 : index
    %c0_0 = arith.constant 0 : index
    %0 = vector.load %arg2[%c0, %c0_0] : memref<4x2048xf32, #tpu.memory_space<vmem>>, vector<4x2048xf32>
    %c0_1 = arith.constant 0 : index
    %c0_2 = arith.constant 0 : index
    %1 = vector.load %arg3[%c0_1, %c0_2] : memref<1x2048xf32, #tpu.memory_space<vmem>>, vector<1x2048xf32>
    %c0_3 = arith.constant 0 : index
    %c0_4 = arith.constant 0 : index
    %2 = vector.load %arg4[%c0_3, %c0_4] : memref<6x2048xbf16, #tpu.memory_space<vmem>>, vector<6x2048xbf16>
    %c0_5 = arith.constant 0 : index
    %c0_6 = arith.constant 0 : index
    %3 = vector.load %arg5[%c0_5, %c0_6] : memref<6x1xf32, #tpu.memory_space<vmem>>, vector<6x1xf32>
    %c0_7 = arith.constant 0 : index
    %c0_8 = arith.constant 0 : index
    %4 = vector.load %arg6[%c0_7, %c0_8] : memref<2048x128xbf16, #tpu.memory_space<vmem>>, vector<2048x128xbf16>
    %c0_9 = arith.constant 0 : index
    %c0_10 = arith.constant 0 : index
    %5 = vector.load %arg7[%c0_9, %c0_10] : memref<1x128xf32, #tpu.memory_space<vmem>>, vector<1x128xf32>
    %c0_11 = arith.constant 0 : index
    %c0_12 = arith.constant 0 : index
    %6 = vector.load %arg9[%c0_11, %c0_12] : memref<1x11xf32, #tpu.memory_space<vmem>>, vector<1x11xf32>
    %c0_13 = arith.constant 0 : index
    %c0_14 = arith.constant 0 : index
    %c0_15 = arith.constant 0 : index
    %7 = vector.load %arg1[%c0_13, %c0_14, %c0_15] : memref<1x256x4xf32, #tpu.memory_space<vmem>>, vector<1x256x4xf32>
    %8 = vector.shape_cast %7 : vector<1x256x4xf32> to vector<256x4xf32>
    %cst = arith.constant dense<0.000000e+00> : vector<256x2048xf32>
    %9 = tpu.matmul %8, %0, %cst {dimension_numbers = #tpu.dot_dimension_numbers<[1], [0], [0], [1], [0, 0, 1, 1], [], []>} : vector<256x4xf32>, vector<4x2048xf32>, vector<256x2048xf32> -> vector<256x2048xf32>
    %10 = vector.broadcast %1 : vector<1x2048xf32> to vector<256x2048xf32>
    %11 = arith.addf %9, %10 : vector<256x2048xf32>
    %cst_16 = arith.constant 0.000000e+00 : f32
    %12 = vector.broadcast %cst_16 : f32 to vector<256x2048xf32>
    %13 = arith.maximumf %11, %12 : vector<256x2048xf32>
    %14 = arith.truncf %13 : vector<256x2048xf32> to vector<256x2048xbf16>
    %cst_17 = arith.constant dense<0.000000e+00> : vector<6x256xf32>
    %15 = tpu.matmul %2, %14, %cst_17 {dimension_numbers = #tpu.dot_dimension_numbers<[1], [1], [0], [0], [0, 0, 1, 0], [], []>} : vector<6x2048xbf16>, vector<256x2048xbf16>, vector<6x256xf32> -> vector<6x256xf32>
    %16 = vector.broadcast %3 : vector<6x1xf32> to vector<6x256xf32>
    %17 = arith.addf %15, %16 : vector<6x256xf32>
    %cst_18 = arith.constant dense<0xFF800000> : vector<6xf32>
    %18 = vector.multi_reduction <maximumf>, %17, %cst_18 [1] : vector<6x256xf32> to vector<6xf32>
    %19 = vector.shape_cast %18 : vector<6xf32> to vector<6x1xf32>
    %20 = vector.broadcast %19 : vector<6x1xf32> to vector<6x256xf32>
    %21 = arith.subf %17, %20 : vector<6x256xf32>
    %22 = math.exp %21 : vector<6x256xf32>
    %cst_19 = arith.constant dense<0.000000e+00> : vector<6xf32>
    %23 = vector.multi_reduction <add>, %22, %cst_19 [1] : vector<6x256xf32> to vector<6xf32>
    %24 = vector.shape_cast %23 : vector<6xf32> to vector<6x1xf32>
    %25 = tpu.reciprocal %24 {approx = true} : vector<6x1xf32> -> vector<6x1xf32>
    %26 = vector.broadcast %25 : vector<6x1xf32> to vector<6x256xf32>
    %27 = arith.mulf %22, %26 : vector<6x256xf32>
    %28 = arith.truncf %27 : vector<6x256xf32> to vector<6x256xbf16>
    %cst_20 = arith.constant dense<0.000000e+00> : vector<6x2048xf32>
    %29 = tpu.matmul %28, %14, %cst_20 {dimension_numbers = #tpu.dot_dimension_numbers<[1], [0], [0], [1], [0, 0, 1, 1], [], []>} : vector<6x256xbf16>, vector<256x2048xbf16>, vector<6x2048xf32> -> vector<6x2048xf32>
    %30 = arith.truncf %29 : vector<6x2048xf32> to vector<6x2048xbf16>
    %cst_21 = arith.constant dense<0.000000e+00> : vector<6x128xf32>
    %31 = tpu.matmul %30, %4, %cst_21 {dimension_numbers = #tpu.dot_dimension_numbers<[1], [0], [0], [1], [0, 0, 1, 1], [], []>} : vector<6x2048xbf16>, vector<2048x128xbf16>, vector<6x128xf32> -> vector<6x128xf32>
    %32 = vector.broadcast %5 : vector<1x128xf32> to vector<6x128xf32>
    %33 = arith.addf %31, %32 : vector<6x128xf32>
    %34 = math.sqrt %27 : vector<6x256xf32>
    %cst_22 = arith.constant dense<0.000000e+00> : vector<6x6xf32>
    %35 = tpu.matmul %34, %34, %cst_22 {dimension_numbers = #tpu.dot_dimension_numbers<[1], [1], [0], [0], [0, 0, 1, 0], [], []>} : vector<6x256xf32>, vector<6x256xf32>, vector<6x6xf32> -> vector<6x6xf32>
    %36 = tpu.iota {dimensions = array<i32: 0>} : vector<6x6xi32>
    %37 = tpu.iota {dimensions = array<i32: 1>} : vector<6x6xi32>
    %38 = arith.cmpi eq, %36, %37 : vector<6x6xi32>
    %39 = arith.extui %38 : vector<6x6xi1> to vector<6x6xi32>
    %40 = arith.sitofp %39 : vector<6x6xi32> to vector<6x6xf32>
    %41 = arith.subf %35, %40 : vector<6x6xf32>
    %42 = arith.mulf %41, %41 : vector<6x6xf32>
    %43 = vector.shape_cast %42 : vector<6x6xf32> to vector<1x6x6xf32>
    %cst_23 = arith.constant dense<0.000000e+00> : vector<1xf32>
    %44 = vector.multi_reduction <add>, %43, %cst_23 [1, 2] : vector<1x6x6xf32> to vector<1xf32>
    %45 = vector.shape_cast %44 : vector<1xf32> to vector<1x1x1xf32>
    %46 = vector.extract %45[0, 0, 0] : f32 from vector<1x1x1xf32>
    %47 = vector.broadcast %46 : f32 to vector<1x1xf32>
    %48 = math.sqrt %47 : vector<1x1xf32>
    %c0_24 = arith.constant 0 : index
    %c0_25 = arith.constant 0 : index
    %c0_26 = arith.constant 0 : index
    %49 = vector.load %arg11[%c0_24, %c0_25, %c0_26] : memref<1x1x1xf32, #tpu.memory_space<vmem>>, vector<1x1x1xf32>
    %50 = vector.shape_cast %49 : vector<1x1x1xf32> to vector<1x1xf32>
    %51 = vector.shape_cast %48 : vector<1x1xf32> to vector<1x1x1xf32>
    tpu.vector_store %arg11[%c0_24, %c0_25, %c0_26], %51 {strides = array<i32>} : memref<1x1x1xf32, #tpu.memory_space<vmem>>, vector<1x1x1xf32>,
    %c0_27 = arith.constant 0 : index
    %c0_28 = arith.constant 0 : index
    %c0_29 = arith.constant 0 : index
    %52 = vector.load %arg12[%c0_27, %c0_28, %c0_29] : memref<1x6x256xf32, #tpu.memory_space<vmem>>, vector<1x6x256xf32>
    %53 = vector.shape_cast %52 : vector<1x6x256xf32> to vector<6x256xf32>
    %54 = vector.shape_cast %27 : vector<6x256xf32> to vector<1x6x256xf32>
    tpu.vector_store %arg12[%c0_27, %c0_28, %c0_29], %54 {strides = array<i32>} : memref<1x6x256xf32, #tpu.memory_space<vmem>>, vector<1x6x256xf32>,
    %55 = arith.truncf %33 : vector<6x128xf32> to vector<6x128xbf16>
    %56 = vector.extract_strided_slice %55 {offsets = [0, 0], sizes = [1, 128], strides = [1, 1]} : vector<6x128xbf16> to vector<1x128xbf16>
    %c0_30 = arith.constant 0 : index
    %c0_31 = arith.constant 0 : index
    %c0_32 = arith.constant 0 : index
    %57 = vector.load %arg8[%c0_30, %c0_31, %c0_32] : memref<6x128x11xbf16, #tpu.memory_space<vmem>>, vector<1x128x11xbf16>
    %58 = vector.shape_cast %57 : vector<1x128x11xbf16> to vector<128x11xbf16>
    %cst_33 = arith.constant dense<0.000000e+00> : vector<1x11xf32>
    %59 = tpu.matmul %56, %58, %cst_33 {dimension_numbers = #tpu.dot_dimension_numbers<[1], [0], [0], [1], [0, 0, 1, 1], [], []>} : vector<1x128xbf16>, vector<128x11xbf16>, vector<1x11xf32> -> vector<1x11xf32>
    %60 = arith.addf %6, %59 : vector<1x11xf32>
    %61 = vector.extract_strided_slice %55 {offsets = [1, 0], sizes = [1, 128], strides = [1, 1]} : vector<6x128xbf16> to vector<1x128xbf16>
    %c1 = arith.constant 1 : index
    %c0_34 = arith.constant 0 : index
    %c0_35 = arith.constant 0 : index
    %62 = vector.load %arg8[%c1, %c0_34, %c0_35] : memref<6x128x11xbf16, #tpu.memory_space<vmem>>, vector<1x128x11xbf16>
    %63 = vector.shape_cast %62 : vector<1x128x11xbf16> to vector<128x11xbf16>
    %cst_36 = arith.constant dense<0.000000e+00> : vector<1x11xf32>
    %64 = tpu.matmul %61, %63, %cst_36 {dimension_numbers = #tpu.dot_dimension_numbers<[1], [0], [0], [1], [0, 0, 1, 1], [], []>} : vector<1x128xbf16>, vector<128x11xbf16>, vector<1x11xf32> -> vector<1x11xf32>
    %65 = arith.addf %60, %64 : vector<1x11xf32>
    %66 = vector.extract_strided_slice %55 {offsets = [2, 0], sizes = [1, 128], strides = [1, 1]} : vector<6x128xbf16> to vector<1x128xbf16>
    %c2 = arith.constant 2 : index
    %c0_37 = arith.constant 0 : index
    %c0_38 = arith.constant 0 : index
    %67 = vector.load %arg8[%c2, %c0_37, %c0_38] : memref<6x128x11xbf16, #tpu.memory_space<vmem>>, vector<1x128x11xbf16>
    %68 = vector.shape_cast %67 : vector<1x128x11xbf16> to vector<128x11xbf16>
    %cst_39 = arith.constant dense<0.000000e+00> : vector<1x11xf32>
    %69 = tpu.matmul %66, %68, %cst_39 {dimension_numbers = #tpu.dot_dimension_numbers<[1], [0], [0], [1], [0, 0, 1, 1], [], []>} : vector<1x128xbf16>, vector<128x11xbf16>, vector<1x11xf32> -> vector<1x11xf32>
    %70 = arith.addf %65, %69 : vector<1x11xf32>
    %71 = vector.extract_strided_slice %55 {offsets = [3, 0], sizes = [1, 128], strides = [1, 1]} : vector<6x128xbf16> to vector<1x128xbf16>
    %c3 = arith.constant 3 : index
    %c0_40 = arith.constant 0 : index
    %c0_41 = arith.constant 0 : index
    %72 = vector.load %arg8[%c3, %c0_40, %c0_41] : memref<6x128x11xbf16, #tpu.memory_space<vmem>>, vector<1x128x11xbf16>
    %73 = vector.shape_cast %72 : vector<1x128x11xbf16> to vector<128x11xbf16>
    %cst_42 = arith.constant dense<0.000000e+00> : vector<1x11xf32>
    %74 = tpu.matmul %71, %73, %cst_42 {dimension_numbers = #tpu.dot_dimension_numbers<[1], [0], [0], [1], [0, 0, 1, 1], [], []>} : vector<1x128xbf16>, vector<128x11xbf16>, vector<1x11xf32> -> vector<1x11xf32>
    %75 = arith.addf %70, %74 : vector<1x11xf32>
    %76 = vector.extract_strided_slice %55 {offsets = [4, 0], sizes = [1, 128], strides = [1, 1]} : vector<6x128xbf16> to vector<1x128xbf16>
    %c4 = arith.constant 4 : index
    %c0_43 = arith.constant 0 : index
    %c0_44 = arith.constant 0 : index
    %77 = vector.load %arg8[%c4, %c0_43, %c0_44] : memref<6x128x11xbf16, #tpu.memory_space<vmem>>, vector<1x128x11xbf16>
    %78 = vector.shape_cast %77 : vector<1x128x11xbf16> to vector<128x11xbf16>
    %cst_45 = arith.constant dense<0.000000e+00> : vector<1x11xf32>
    %79 = tpu.matmul %76, %78, %cst_45 {dimension_numbers = #tpu.dot_dimension_numbers<[1], [0], [0], [1], [0, 0, 1, 1], [], []>} : vector<1x128xbf16>, vector<128x11xbf16>, vector<1x11xf32> -> vector<1x11xf32>
    %80 = arith.addf %75, %79 : vector<1x11xf32>
    %81 = vector.extract_strided_slice %55 {offsets = [5, 0], sizes = [1, 128], strides = [1, 1]} : vector<6x128xbf16> to vector<1x128xbf16>
    %c5 = arith.constant 5 : index
    %c0_46 = arith.constant 0 : index
    %c0_47 = arith.constant 0 : index
    %82 = vector.load %arg8[%c5, %c0_46, %c0_47] : memref<6x128x11xbf16, #tpu.memory_space<vmem>>, vector<1x128x11xbf16>
    %83 = vector.shape_cast %82 : vector<1x128x11xbf16> to vector<128x11xbf16>
    %cst_48 = arith.constant dense<0.000000e+00> : vector<1x11xf32>
    %84 = tpu.matmul %81, %83, %cst_48 {dimension_numbers = #tpu.dot_dimension_numbers<[1], [0], [0], [1], [0, 0, 1, 1], [], []>} : vector<1x128xbf16>, vector<128x11xbf16>, vector<1x11xf32> -> vector<1x11xf32>
    %85 = arith.addf %80, %84 : vector<1x11xf32>
    %c0_49 = arith.constant 0 : index
    %c0_50 = arith.constant 0 : index
    %c0_51 = arith.constant 0 : index
    %86 = vector.load %arg10[%c0_49, %c0_50, %c0_51] : memref<1x1x11xf32, #tpu.memory_space<vmem>>, vector<1x1x11xf32>
    %87 = vector.shape_cast %86 : vector<1x1x11xf32> to vector<1x11xf32>
    %88 = vector.shape_cast %85 : vector<1x11xf32> to vector<1x1x11xf32>
    tpu.vector_store %arg10[%c0_49, %c0_50, %c0_51], %88 {strides = array<i32>} : memref<1x1x11xf32, #tpu.memory_space<vmem>>, vector<1x1x11xf32>,
    return
  }
  func.func @transform_0(%arg0: i32) -> (i32, i32, i32) {
    %c0_i32 = arith.constant 0 : i32
    %c0_i32_0 = arith.constant 0 : i32
    %c0_i32_1 = arith.constant 0 : i32
    return %arg0, %c0_i32, %c0_i32_0 : i32, i32, i32
  }
  func.func @transform_1(%arg0: i32) -> (i32, i32) {
    %c0_i32 = arith.constant 0 : i32
    %c0_i32_0 = arith.constant 0 : i32
    %c0_i32_1 = arith.constant 0 : i32
    return %c0_i32, %c0_i32_0 : i32, i32
  }
  func.func @transform_2(%arg0: i32) -> (i32, i32) {
    %c0_i32 = arith.constant 0 : i32
    %c0_i32_0 = arith.constant 0 : i32
    %c0_i32_1 = arith.constant 0 : i32
    return %c0_i32, %c0_i32_0 : i32, i32
  }
  func.func @transform_3(%arg0: i32) -> (i32, i32) {
    %c0_i32 = arith.constant 0 : i32
    %c0_i32_0 = arith.constant 0 : i32
    %c0_i32_1 = arith.constant 0 : i32
    return %c0_i32, %c0_i32_0 : i32, i32
  }
  func.func @transform_4(%arg0: i32) -> (i32, i32) {
    %c0_i32 = arith.constant 0 : i32
    %c0_i32_0 = arith.constant 0 : i32
    %c0_i32_1 = arith.constant 0 : i32
    return %c0_i32, %c0_i32_0 : i32, i32
  }
  func.func @transform_5(%arg0: i32) -> (i32, i32) {
    %c0_i32 = arith.constant 0 : i32
    %c0_i32_0 = arith.constant 0 : i32
    %c0_i32_1 = arith.constant 0 : i32
    return %c0_i32, %c0_i32_0 : i32, i32
  }
  func.func @transform_6(%arg0: i32) -> (i32, i32) {
    %c0_i32 = arith.constant 0 : i32
    %c0_i32_0 = arith.constant 0 : i32
    %c0_i32_1 = arith.constant 0 : i32
    return %c0_i32, %c0_i32_0 : i32, i32
  }
  func.func @transform_7(%arg0: i32) -> (i32, i32, i32) {
    %c0_i32 = arith.constant 0 : i32
    %c0_i32_0 = arith.constant 0 : i32
    %c0_i32_1 = arith.constant 0 : i32
    %c0_i32_2 = arith.constant 0 : i32
    return %c0_i32, %c0_i32_0, %c0_i32_1 : i32, i32, i32
  }
  func.func @transform_8(%arg0: i32) -> (i32, i32) {
    %c0_i32 = arith.constant 0 : i32
    %c0_i32_0 = arith.constant 0 : i32
    %c0_i32_1 = arith.constant 0 : i32
    return %c0_i32, %c0_i32_0 : i32, i32
  }
  func.func @transform_9(%arg0: i32) -> (i32, i32, i32) {
    %c0_i32 = arith.constant 0 : i32
    %c0_i32_0 = arith.constant 0 : i32
    %c0_i32_1 = arith.constant 0 : i32
    return %arg0, %c0_i32, %c0_i32_0 : i32, i32, i32
  }
  func.func @transform_10(%arg0: i32) -> (i32, i32, i32) {
    %c0_i32 = arith.constant 0 : i32
    %c0_i32_0 = arith.constant 0 : i32
    %c0_i32_1 = arith.constant 0 : i32
    return %arg0, %c0_i32, %c0_i32_0 : i32, i32, i32
  }
  func.func @transform_11(%arg0: i32) -> (i32, i32, i32) {
    %c0_i32 = arith.constant 0 : i32
    %c0_i32_0 = arith.constant 0 : i32
    %c0_i32_1 = arith.constant 0 : i32
    return %arg0, %c0_i32, %c0_i32_0 : i32, i32, i32
  }
}

</mosaic_0001>

<bundles_post_ra>
// kernel: attention_reid_forward.1
= control target key start
LH: loop header
LB: loop body
LE: loop exit
PB: predicated region body
PF: predicated region fallthrough
CT: control target
= control target key end

     0   :  { %s11427_s0 = inlined_call_operand.vmem [shape: f32[2,256,4], index: 0, kind: input, shape index: {}]   ;;  %s11428_s1 = inlined_call_operand.vmem [shape: f32[4,2048], index: 1, kind: input, shape index: {}]   ;;  %s11429_s2 = inlined_call_operand.vmem [shape: f32[1,2048], index: 2, kind: input, shape index: {}]   ;;  %s11430_s3 = inlined_call_operand.vmem [shape: bf16[6,2048], index: 3, kind: input, shape index: {}]   ;;  %s11431_s4 = inlined_call_operand.vmem [shape: f32[6,1], index: 4, kind: input, shape index: {}]   ;;  %s11432_s5 = inlined_call_operand.vmem [shape: bf16[2048,128], index: 5, kind: input, shape index: {}]   ;;  %s11433_s6 = inlined_call_operand.vmem [shape: f32[1,128], index: 6, kind: input, shape index: {}]   ;;  %s11434_s7 = inlined_call_operand.vmem [shape: bf16[6,128,11], index: 7, kind: input, shape index: {}]   ;;  %s11435_s8 = inlined_call_operand.vmem [shape: f32[1,11], index: 8, kind: input, shape index: {}]   ;;  %s11436_s9 = inlined_call_operand.hbm [shape: f32[2,1,11], index: 9, kind: output, shape index: {0}]   ;;  %s11437_s10 = inlined_call_operand.vmem [shape: f32[2,1,1], index: 10, kind: output, shape index: {1}]   ;;  %s11438_s11 = inlined_call_operand.vmem [shape: f32[2,6,256], index: 11, kind: output, shape index: {2}]  }
   0x1   :  { %11679 = sst [smem:[#allocation253_spill]] %s11427_s0 }
   0x2   :  { %17 = vsyncpa [#allocation3], 0 }
   0x3   :  { %19 = vsyncpa [#allocation3 + $0x1], 0  ;;  %s7870_s17 = smov 0   ;;  %s7872_s18 = smov 0  }
   0x4   :  { %s7874_s19 = smov 0   ;;  %s7876_s20 = smov 0  }
   0x5 LB: > { %s7891_s21 = sadd.s32 4294967295, %s7804_s20   ;;  %s6509_s22 = sadd.s32 4294967294, %s7804_s20   ;;  %s7804_s20 = sphi %s7876_s20, %s12351_s20   ;;  %s7800_s19 = sphi %s7874_s19, %s12350_s19   ;;  %s7796_s18 = sphi %s7872_s18, %s12349_s18   ;;  %s7792_s17 = sphi %s7870_s17, %s12348_s17  }
   0x6   : > { %s7895_s23 = sadd.s32 1, %s7804_s20   ;;  %s226_s24 = sadd.s32 1, %s7800_s19 }
   0x7   : > { %s223_s25 = ssub.s32 %s7804_s20, %s7895_s23  ;;  %p236_p0 = scmp.ne.s32.totalorder %s7800_s19, %s7796_s18 }
   0x8   : > { %p224_p1 = scmp.eq.s32.totalorder %s223_s25, 0  ;;  %p237_p2 = scmp.eq.s32.totalorder %s7891_s21, 1 }
   0x9   : > { %p242_p3 = scmp.ne.s32.totalorder %s7796_s18, %s7792_s17  ;;  %p243_p4 = scmp.eq.s32.totalorder %s6509_s22, 1 }
   0xa   : > { %s7906_s26 = scalar_select %p224_p1, %s7800_s19, %s226_s24  }
   0xb   : > { %p7908_p5 = por %p237_p2, %p236_p0  ;;  %p7912_p6 = por %p243_p4, %p242_p3 }
   0xc   : > { %p6512_p7 = scmp.ge.s32.totalorder %s7804_s20, 1  ;;  %p345_p8 = scmp.lt.s32.totalorder %s7804_s20, 3 }
   0xe   : > { %p346_p9 = pnand %p6512_p7, %p345_p8 }
  0x10   : > { %349 = sbr.rel (%p346_p9) target bundleno = 2315 (0x90b), region = 56 }
  0x15   : > { %v406_v0 = vld [vmem:[%s11428_s1] sm:$0xff]  ;;  %vm910_vm0 = vcmask 1043456   ;;  %v407_v1 = vld [vmem:[%s11428_s1 + $0x8] sm:$0xff]  ;;  %p392_p10 = scmp.lt.s32.totalorder %s7891_s21, 1  ;;  %v11445_v3 = vmov 0.0   ;;  %v408_v5 = vld [vmem:[%s11428_s1 + $0x10] sm:$0xff]  ;;  %v11439_v54 = vlaneseq }
  0x16   : > { %v805_v2 = vcombine.high %v406_v0, %v406_v0  ;;  %1007 = vmatprep.mubr.f32.mxu0 %v11445_v3  ;;  %1193 = vmatprep.mubr.f32.mxu1 %v11445_v3  ;;  %v806_v4 = vcombine.high %v407_v1, %v407_v1  ;;  %v409_v6 = vld [vmem:[%s11428_s1 + $0x18] sm:$0xff]  ;;  %v807_v7 = vcombine.high %v408_v5, %v408_v5  ;;  %vm813_vm1 = vcmask 31744   ;;  %s11682_s0 = sld [smem:[#allocation253_spill]]  ;;  %v7988_v14 = vld [vmem:[%s11428_s1 + $0x20] sm:$0xff]  ;;  %v7995_v16 = vld [vmem:[%s11428_s1 + $0x28] sm:$0xff]  ;;  %s7063_s29 = sshll.u32 %s7891_s21, 4 }
  0x17   : > { %s7931_s16 = scalar_select %p392_p10, %s7891_s21, 1  ;;  %v808_v8 = vcombine.high %v409_v6, %v409_v6  ;;  %v809_v15 = vcombine.high %v7988_v14, %v7988_v14  ;;  %v810_v18 = vcombine.high %v7995_v16, %v7995_v16  ;;  %v8267_v45 = vld [vmem:[%s11428_s1 + $0x30] sm:$0xff]  ;;  %v8284_v48 = vld [vmem:[%s11428_s1 + $0x38] sm:$0xff]  ;;  %v8376_v55 = vshrl.u32 %v11439_v54, 7  ;;  %v414_v57 = vld [vmem:[%s11429_s2] sm:$0xff] }
  0x18   : > { %7418 = vmatprep.subr.msk.mxu1 %vm910_vm0, %v805_v2  ;;  %6517 = vmatprep.subr.msk.mxu0 %vm910_vm0, %v805_v2  ;;  %v811_v46 = vcombine.high %v8267_v45, %v8267_v45  ;;  %v812_v49 = vcombine.high %v8284_v48, %v8284_v48  ;;  %vm4156_vm2 = vcmask 1045504   ;;  %vm7808_vm7 = vmmov 0   ;;  %s11386_s15 = scalar_lea.hbm %s11436_s9, %s7063_s29 }
  0x19   : > { %7419 = vmatpush1.msk.msra.mxu1 %vm910_vm0, %v406_v0  ;;  %6518 = vmatpush1.msk.msra.mxu0 %vm910_vm0, %v406_v0  ;;  %s7066_s25 = sshll.u32 %s7931_s16, 8  ;;  %11683 = vst [vmem:[#allocation5_spill] sm:$0xff] %v8376_v55  ;;  %v11443_v56 = vsub.s32 0, %v8376_v55  ;;  %v11442_v58 = vsub.s32 1, %v8376_v55  ;;  %v11441_v62 = vsub.s32 2, %v8376_v55  ;;  %s7067_s13 = sshll.u32 %s7931_s16, 4 }
  0x1a   : > { %6551 = vmatprep.subr.msk.mxu1 %vm910_vm0, %v806_v4  ;;  %6585 = vmatprep.subr.msk.mxu0 %vm910_vm0, %v807_v7  ;;  %v11440_v4 = vsub.s32 3, %v8376_v55  ;;  %s404_s22 = scalar_lea.vmem %s11438_s11, %s7067_s13  ;;  %vm5709_vm9 = vcmask 46080   ;;  %vm5728_vm11 = vcmask 0   ;;  %vm6381_vm13 = vcmask 81920  }
  0x1b   : > { %v8397_v59 = vrot.slane %v414_v57, %v11443_v56  ;;  %v8409_v0 = vrot.slane %v414_v57, %v11442_v58  ;;  %v8419_v7 = vrot.slane %v414_v57, %v11441_v62 }
  0x1c   : > { %s7945_s12 = scalar_lea.vmem %s11682_s0, %s7066_s25 }
  0x1d   : > { %v7949_v9 = vld [vmem:[%s7945_s12] sm:$0xff]  ;;  %v7952_v10 = vld [vmem:[%s7945_s12 + $0xf8] sm:$0xff]  ;;  %v7961_v11 = vld [vmem:[%s7945_s12 + $0x8] sm:$0xff] }
  0x1e   : > { %6519 = vmatmul.mubr.msk.f32.vlgmr.msra.gmra.mxu0 %vm813_vm1, %v7949_v9  ;;  %6550 = vmatmul.mubr.msk.f32.vlgmr.msra.gmra.mxu1 %vm813_vm1, %v7952_v10  ;;  %v7973_v12 = vld [vmem:[%s7945_s12 + $0x10] sm:$0xff]  ;;  %v7983_v13 = vld [vmem:[%s7945_s12 + $0x18] sm:$0xff]  ;;  %v7998_v17 = vld [vmem:[%s7945_s12 + $0x20] sm:$0xff] }
  0x1f   : > { %6552 = vmatpush1.msk.msra.mxu1 %vm910_vm0, %v407_v1  ;;  %1013 = vmatprep.mubr.f32.mxu0 %v11445_v3  ;;  %v8011_v19 = vld [vmem:[%s7945_s12 + $0x28] sm:$0xff]  ;;  %v8020_v20 = vld [vmem:[%s7945_s12 + $0x30] sm:$0xff]  ;;  %v8029_v21 = vld [vmem:[%s7945_s12 + $0x38] sm:$0xff] }
  0x20   : > { %1264 = vmatprep.mubr.f32.mxu1 %v11445_v3  ;;  %6619 = vmatprep.subr.msk.mxu1 %vm910_vm0, %v808_v8  ;;  %v8038_v22 = vld [vmem:[%s7945_s12 + $0x40] sm:$0xff]  ;;  %v8047_v23 = vld [vmem:[%s7945_s12 + $0x48] sm:$0xff]  ;;  %v8056_v24 = vld [vmem:[%s7945_s12 + $0x50] sm:$0xff] }
  0x21   : > { %6586 = vmatpush1.msk.msra.mxu0 %vm910_vm0, %v408_v5  ;;  %v8065_v25 = vld [vmem:[%s7945_s12 + $0x58] sm:$0xff]  ;;  %v8074_v26 = vld [vmem:[%s7945_s12 + $0x60] sm:$0xff]  ;;  %v8083_v27 = vld [vmem:[%s7945_s12 + $0x68] sm:$0xff] }
  0x22   : > { %6520 = vmatmul.mubr.msk.f32.gmra.mxu0 %vm813_vm1, %v7961_v11  ;;  %6553 = vmatmul.mubr.msk.f32.vlgmr.msra.gmra.mxu1 %vm813_vm1, %v7949_v9  ;;  %v8092_v28 = vld [vmem:[%s7945_s12 + $0x70] sm:$0xff]  ;;  %v8101_v29 = vld [vmem:[%s7945_s12 + $0x78] sm:$0xff]  ;;  %v8116_v30 = vld [vmem:[%s7945_s12 + $0x80] sm:$0xff] }
  0x23   : > { %6620 = vmatpush1.msk.msra.mxu1 %vm910_vm0, %v409_v6  ;;  %1019 = vmatprep.mubr.f32.mxu0 %v11445_v3  ;;  %v8125_v31 = vld [vmem:[%s7945_s12 + $0x88] sm:$0xff]  ;;  %v8128_v32 = vld [vmem:[%s7945_s12 + $0x90] sm:$0xff]  ;;  %v8137_v33 = vld [vmem:[%s7945_s12 + $0x98] sm:$0xff] }
  0x24   : > { %1270 = vmatprep.mubr.f32.mxu1 %v11445_v3  ;;  %6653 = vmatprep.subr.msk.mxu0 %vm910_vm0, %v809_v15  ;;  %v8146_v34 = vld [vmem:[%s7945_s12 + $0xa0] sm:$0xff]  ;;  %v8155_v35 = vld [vmem:[%s7945_s12 + $0xa8] sm:$0xff]  ;;  %v8164_v36 = vld [vmem:[%s7945_s12 + $0xb0] sm:$0xff] }
  0x25   : > { %6687 = vmatprep.subr.msk.mxu1 %vm910_vm0, %v810_v18  ;;  %v8173_v37 = vld [vmem:[%s7945_s12 + $0xb8] sm:$0xff]  ;;  %v8182_v38 = vld [vmem:[%s7945_s12 + $0xc0] sm:$0xff]  ;;  %v8191_v39 = vld [vmem:[%s7945_s12 + $0xc8] sm:$0xff] }
  0x26   : > { %6521 = vmatmul.mubr.msk.f32.gmra.mxu0 %vm813_vm1, %v7973_v12  ;;  %6554 = vmatmul.mubr.msk.f32.gmra.mxu1 %vm813_vm1, %v7961_v11  ;;  %v8200_v40 = vld [vmem:[%s7945_s12 + $0xd0] sm:$0xff]  ;;  %v8209_v41 = vld [vmem:[%s7945_s12 + $0xd8] sm:$0xff]  ;;  %v8218_v42 = vld [vmem:[%s7945_s12 + $0xe0] sm:$0xff] }
  0x27   : > { %1025 = vmatprep.mubr.f32.mxu0 %v11445_v3  ;;  %1276 = vmatprep.mubr.f32.mxu1 %v11445_v3  ;;  %v8227_v43 = vld [vmem:[%s7945_s12 + $0xe8] sm:$0xff]  ;;  %v8236_v44 = vld [vmem:[%s7945_s12 + $0xf0] sm:$0xff]  ;;  %v8274_v47 = vld [vmem:[%s7945_s12] sm:$0xff] }
  0x28   : > { %v8293_v50 = vld [vmem:[%s7945_s12 + $0x8] sm:$0xff]  ;;  %v8303_v51 = vld [vmem:[%s7945_s12 + $0x10] sm:$0xff]  ;;  %v8312_v52 = vld [vmem:[%s7945_s12 + $0x18] sm:$0xff] }
  0x29   : > { %v8321_v53 = vld [vmem:[%s7945_s12 + $0x20] sm:$0xff] }
  0x2a   : > { %6522 = vmatmul.mubr.msk.f32.gmra.mxu0 %vm813_vm1, %v7983_v13  ;;  %6555 = vmatmul.mubr.msk.f32.gmra.mxu1 %vm813_vm1, %v7973_v12 }
  0x2b   : > { %1031 = vmatprep.mubr.f32.mxu0 %v11445_v3  ;;  %1282 = vmatprep.mubr.f32.mxu1 %v11445_v3 }
  0x2e   : > { %6523 = vmatmul.mubr.msk.f32.gmra.mxu0 %vm813_vm1, %v7998_v17  ;;  %6556 = vmatmul.mubr.msk.f32.gmra.mxu1 %vm813_vm1, %v7983_v13 }
  0x2f   : > { %1037 = vmatprep.mubr.f32.mxu0 %v11445_v3  ;;  %1288 = vmatprep.mubr.f32.mxu1 %v11445_v3 }
  0x32   : > { %6524 = vmatmul.mubr.msk.f32.gmra.mxu0 %vm813_vm1, %v8011_v19  ;;  %6557 = vmatmul.mubr.msk.f32.gmra.mxu1 %vm813_vm1, %v7998_v17 }
  0x33   : > { %1043 = vmatprep.mubr.f32.mxu0 %v11445_v3  ;;  %1294 = vmatprep.mubr.f32.mxu1 %v11445_v3 }
  0x36   : > { %6525 = vmatmul.mubr.msk.f32.gmra.mxu0 %vm813_vm1, %v8020_v20  ;;  %6558 = vmatmul.mubr.msk.f32.gmra.mxu1 %vm813_vm1, %v8011_v19 }
  0x37   : > { %1049 = vmatprep.mubr.f32.mxu0 %v11445_v3  ;;  %1300 = vmatprep.mubr.f32.mxu1 %v11445_v3 }
  0x3a   : > { %6526 = vmatmul.mubr.msk.f32.gmra.mxu0 %vm813_vm1, %v8029_v21  ;;  %6559 = vmatmul.mubr.msk.f32.gmra.mxu1 %vm813_vm1, %v8020_v20 }
  0x3b   : > { %1055 = vmatprep.mubr.f32.mxu0 %v11445_v3  ;;  %1306 = vmatprep.mubr.f32.mxu1 %v11445_v3 }
  0x3e   : > { %6527 = vmatmul.mubr.msk.f32.gmra.mxu0 %vm813_vm1, %v8038_v22  ;;  %6560 = vmatmul.mubr.msk.f32.gmra.mxu1 %vm813_vm1, %v8029_v21 }
  0x3f   : > { %1061 = vmatprep.mubr.f32.mxu0 %v11445_v3  ;;  %1312 = vmatprep.mubr.f32.mxu1 %v11445_v3 }
  0x42   : > { %6528 = vmatmul.mubr.msk.f32.gmra.mxu0 %vm813_vm1, %v8047_v23  ;;  %6561 = vmatmul.mubr.msk.f32.gmra.mxu1 %vm813_vm1, %v8038_v22 }
  0x43   : > { %1067 = vmatprep.mubr.f32.mxu0 %v11445_v3  ;;  %1318 = vmatprep.mubr.f32.mxu1 %v11445_v3 }
  0x46   : > { %6529 = vmatmul.mubr.msk.f32.gmra.mxu0 %vm813_vm1, %v8056_v24  ;;  %6562 = vmatmul.mubr.msk.f32.gmra.mxu1 %vm813_vm1, %v8047_v23 }
  0x47   : > { %1073 = vmatprep.mubr.f32.mxu0 %v11445_v3  ;;  %1324 = vmatprep.mubr.f32.mxu1 %v11445_v3 }
  0x4a   : > { %6530 = vmatmul.mubr.msk.f32.gmra.mxu0 %vm813_vm1, %v8065_v25  ;;  %6563 = vmatmul.mubr.msk.f32.gmra.mxu1 %vm813_vm1, %v8056_v24 }
  0x4b   : > { %1079 = vmatprep.mubr.f32.mxu0 %v11445_v3  ;;  %1330 = vmatprep.mubr.f32.mxu1 %v11445_v3 }
  0x4e   : > { %6531 = vmatmul.mubr.msk.f32.gmra.mxu0 %vm813_vm1, %v8074_v26  ;;  %6564 = vmatmul.mubr.msk.f32.gmra.mxu1 %vm813_vm1, %v8065_v25 }
  0x4f   : > { %1085 = vmatprep.mubr.f32.mxu0 %v11445_v3  ;;  %1336 = vmatprep.mubr.f32.mxu1 %v11445_v3 }
  0x52   : > { %6532 = vmatmul.mubr.msk.f32.gmra.mxu0 %vm813_vm1, %v8083_v27  ;;  %6565 = vmatmul.mubr.msk.f32.gmra.mxu1 %vm813_vm1, %v8074_v26 }
  0x53   : > { %1091 = vmatprep.mubr.f32.mxu0 %v11445_v3  ;;  %1342 = vmatprep.mubr.f32.mxu1 %v11445_v3 }
  0x56   : > { %6533 = vmatmul.mubr.msk.f32.gmra.mxu0 %vm813_vm1, %v8092_v28  ;;  %6566 = vmatmul.mubr.msk.f32.gmra.mxu1 %vm813_vm1, %v8083_v27 }
  0x57   : > { %1097 = vmatprep.mubr.f32.mxu0 %v11445_v3  ;;  %1348 = vmatprep.mubr.f32.mxu1 %v11445_v3 }
  0x5a   : > { %6534 = vmatmul.mubr.msk.f32.gmra.mxu0 %vm813_vm1, %v8101_v29  ;;  %6567 = vmatmul.mubr.msk.f32.gmra.mxu1 %vm813_vm1, %v8092_v28 }
  0x5b   : > { %1103 = vmatprep.mubr.f32.mxu0 %v11445_v3  ;;  %1354 = vmatprep.mubr.f32.mxu1 %v11445_v3 }
  0x5e   : > { %6535 = vmatmul.mubr.msk.f32.gmra.mxu0 %vm813_vm1, %v8116_v30  ;;  %6568 = vmatmul.mubr.msk.f32.gmra.mxu1 %vm813_vm1, %v8101_v29 }
  0x5f   : > { %1109 = vmatprep.mubr.f32.mxu0 %v11445_v3  ;;  %1360 = vmatprep.mubr.f32.mxu1 %v11445_v3 }
  0x62   : > { %6536 = vmatmul.mubr.msk.f32.gmra.mxu0 %vm813_vm1, %v8125_v31  ;;  %6569 = vmatmul.mubr.msk.f32.gmra.mxu1 %vm813_vm1, %v8116_v30 }
  0x63   : > { %1115 = vmatprep.mubr.f32.mxu0 %v11445_v3  ;;  %1366 = vmatprep.mubr.f32.mxu1 %v11445_v3 }
  0x66   : > { %6537 = vmatmul.mubr.msk.f32.gmra.mxu0 %vm813_vm1, %v8128_v32  ;;  %6570 = vmatmul.mubr.msk.f32.gmra.mxu1 %vm813_vm1, %v8125_v31 }
  0x67   : > { %1121 = vmatprep.mubr.f32.mxu0 %v11445_v3  ;;  %1372 = vmatprep.mubr.f32.mxu1 %v11445_v3 }
  0x6a   : > { %6538 = vmatmul.mubr.msk.f32.gmra.mxu0 %vm813_vm1, %v8137_v33  ;;  %6571 = vmatmul.mubr.msk.f32.gmra.mxu1 %vm813_vm1, %v8128_v32 }
  0x6b   : > { %1127 = vmatprep.mubr.f32.mxu0 %v11445_v3  ;;  %1378 = vmatprep.mubr.f32.mxu1 %v11445_v3 }
  0x6e   : > { %6539 = vmatmul.mubr.msk.f32.gmra.mxu0 %vm813_vm1, %v8146_v34  ;;  %6572 = vmatmul.mubr.msk.f32.gmra.mxu1 %vm813_vm1, %v8137_v33 }
  0x6f   : > { %1133 = vmatprep.mubr.f32.mxu0 %v11445_v3  ;;  %1384 = vmatprep.mubr.f32.mxu1 %v11445_v3 }
  0x72   : > { %6540 = vmatmul.mubr.msk.f32.gmra.mxu0 %vm813_vm1, %v8155_v35  ;;  %6573 = vmatmul.mubr.msk.f32.gmra.mxu1 %vm813_vm1, %v8146_v34 }
  0x73   : > { %1139 = vmatprep.mubr.f32.mxu0 %v11445_v3  ;;  %1390 = vmatprep.mubr.f32.mxu1 %v11445_v3 }
  0x76   : > { %6541 = vmatmul.mubr.msk.f32.gmra.mxu0 %vm813_vm1, %v8164_v36  ;;  %6574 = vmatmul.mubr.msk.f32.gmra.mxu1 %vm813_vm1, %v8155_v35 }
  0x77   : > { %1145 = vmatprep.mubr.f32.mxu0 %v11445_v3  ;;  %1396 = vmatprep.mubr.f32.mxu1 %v11445_v3 }
  0x7a   : > { %6542 = vmatmul.mubr.msk.f32.gmra.mxu0 %vm813_vm1, %v8173_v37  ;;  %6575 = vmatmul.mubr.msk.f32.gmra.mxu1 %vm813_vm1, %v8164_v36 }
  0x7b   : > { %1151 = vmatprep.mubr.f32.mxu0 %v11445_v3  ;;  %1402 = vmatprep.mubr.f32.mxu1 %v11445_v3 }
  0x7e   : > { %6543 = vmatmul.mubr.msk.f32.gmra.mxu0 %vm813_vm1, %v8182_v38  ;;  %6576 = vmatmul.mubr.msk.f32.gmra.mxu1 %vm813_vm1, %v8173_v37 }
  0x7f   : > { %1157 = vmatprep.mubr.f32.mxu0 %v11445_v3  ;;  %1408 = vmatprep.mubr.f32.mxu1 %v11445_v3 }
  0x82   : > { %6544 = vmatmul.mubr.msk.f32.gmra.mxu0 %vm813_vm1, %v8191_v39  ;;  %6577 = vmatmul.mubr.msk.f32.gmra.mxu1 %vm813_vm1, %v8182_v38 }
  0x83   : > { %1163 = vmatprep.mubr.f32.mxu0 %v11445_v3  ;;  %1414 = vmatprep.mubr.f32.mxu1 %v11445_v3 }
  0x86   : > { %6545 = vmatmul.mubr.msk.f32.gmra.mxu0 %vm813_vm1, %v8200_v40  ;;  %6578 = vmatmul.mubr.msk.f32.gmra.mxu1 %vm813_vm1, %v8191_v39 }
  0x87   : > { %1169 = vmatprep.mubr.f32.mxu0 %v11445_v3  ;;  %1420 = vmatprep.mubr.f32.mxu1 %v11445_v3 }
  0x8a   : > { %6546 = vmatmul.mubr.msk.f32.gmra.mxu0 %vm813_vm1, %v8209_v41  ;;  %6579 = vmatmul.mubr.msk.f32.gmra.mxu1 %vm813_vm1, %v8200_v40 }
  0x8b   : > { %1175 = vmatprep.mubr.f32.mxu0 %v11445_v3  ;;  %1426 = vmatprep.mubr.f32.mxu1 %v11445_v3 }
  0x8e   : > { %6547 = vmatmul.mubr.msk.f32.gmra.mxu0 %vm813_vm1, %v8218_v42  ;;  %6580 = vmatmul.mubr.msk.f32.gmra.mxu1 %vm813_vm1, %v8209_v41 }
  0x8f   : > { %1181 = vmatprep.mubr.f32.mxu0 %v11445_v3  ;;  %1432 = vmatprep.mubr.f32.mxu1 %v11445_v3 }
  0x92   : > { %6548 = vmatmul.mubr.msk.f32.gmra.mxu0 %vm813_vm1, %v8227_v43  ;;  %6581 = vmatmul.mubr.msk.f32.gmra.mxu1 %vm813_vm1, %v8218_v42 }
  0x93   : > { %1187 = vmatprep.mubr.f32.mxu0 %v11445_v3  ;;  %1438 = vmatprep.mubr.f32.mxu1 %v11445_v3 }
  0x96   : > { %6549 = vmatmul.mubr.msk.f32.gmra.mxu0 %vm813_vm1, %v8236_v44  ;;  %6582 = vmatmul.mubr.msk.f32.gmra.mxu1 %vm813_vm1, %v8227_v43 }
  0x97   : > { %1444 = vmatprep.mubr.f32.mxu1 %v11445_v3  ;;  %1521 = vmatprep.mubr.f32.mxu0 %v11445_v3 }
  0x9a   : > { %6583 = vmatmul.mubr.msk.f32.gmra.mxu1 %vm813_vm1, %v8236_v44  ;;  %6587 = vmatmul.mubr.msk.f32.vlgmr.msra.gmra.mxu0 %vm813_vm1, %v7949_v9 }
  0x9b   : > { %1450 = vmatprep.mubr.f32.mxu1 %v11445_v3  ;;  %1527 = vmatprep.mubr.f32.mxu0 %v11445_v3 }
  0x9c   : > { %6654 = vmatpush1.msk.msra.mxu0 %vm910_vm0, %v7988_v14 }
  0x9d   : > { %6721 = vmatprep.subr.msk.mxu0 %vm910_vm0, %v811_v46 }
  0x9e   : > { %6584 = vmatmul.mubr.msk.f32.gmra.mxu1 %vm813_vm1, %v7952_v10  ;;  %6588 = vmatmul.mubr.msk.f32.gmra.mxu0 %vm813_vm1, %v7961_v11 }
  0x9f   : > { %1533 = vmatprep.mubr.f32.mxu0 %v11445_v3  ;;  %1778 = vmatprep.mubr.f32.mxu1 %v11445_v3 }
  0xa2   : > { %6589 = vmatmul.mubr.msk.f32.gmra.mxu0 %vm813_vm1, %v7973_v12  ;;  %6621 = vmatmul.mubr.msk.f32.vlgmr.msra.gmra.mxu1 %vm813_vm1, %v8274_v47  ;;  %v8430_v12 = vrot.slane %v414_v57, %v11440_v4 }
  0xa3   : > { %6688 = vmatpush1.msk.msra.mxu1 %vm910_vm0, %v7995_v16  ;;  %1539 = vmatprep.mubr.f32.mxu0 %v11445_v3 }
  0xa4   : > { %1784 = vmatprep.mubr.f32.mxu1 %v11445_v3  ;;  %6755 = vmatprep.subr.msk.mxu1 %vm910_vm0, %v812_v49 }
  0xa6   : > { %6590 = vmatmul.mubr.msk.f32.gmra.mxu0 %vm813_vm1, %v7983_v13  ;;  %6622 = vmatmul.mubr.msk.f32.gmra.mxu1 %vm813_vm1, %v8293_v50 }
  0xa7   : > { %1545 = vmatprep.mubr.f32.mxu0 %v11445_v3  ;;  %1790 = vmatprep.mubr.f32.mxu1 %v11445_v3 }
  0xaa   : > { %6591 = vmatmul.mubr.msk.f32.gmra.mxu0 %vm813_vm1, %v7998_v17  ;;  %6623 = vmatmul.mubr.msk.f32.gmra.mxu1 %vm813_vm1, %v8303_v51 }
  0xab   : > { %1551 = vmatprep.mubr.f32.mxu0 %v11445_v3  ;;  %1796 = vmatprep.mubr.f32.mxu1 %v11445_v3 }
  0xae   : > { %6592 = vmatmul.mubr.msk.f32.gmra.mxu0 %vm813_vm1, %v8011_v19  ;;  %6624 = vmatmul.mubr.msk.f32.gmra.mxu1 %vm813_vm1, %v8312_v52 }
  0xaf   : > { %1557 = vmatprep.mubr.f32.mxu0 %v11445_v3  ;;  %1802 = vmatprep.mubr.f32.mxu1 %v11445_v3 }
  0xb2   : > { %6593 = vmatmul.mubr.msk.f32.gmra.mxu0 %vm813_vm1, %v8020_v20  ;;  %6625 = vmatmul.mubr.msk.f32.gmra.mxu1 %vm813_vm1, %v8321_v53 }
  0xb3   : > { %1563 = vmatprep.mubr.f32.mxu0 %v11445_v3  ;;  %1808 = vmatprep.mubr.f32.mxu1 %v11445_v3 }
  0xb6   : > { %6594 = vmatmul.mubr.msk.f32.gmra.mxu0 %vm813_vm1, %v8029_v21  ;;  %6626 = vmatmul.mubr.msk.f32.gmra.mxu1 %vm813_vm1, %v8011_v19 }
  0xb7   : > { %1569 = vmatprep.mubr.f32.mxu0 %v11445_v3  ;;  %1814 = vmatprep.mubr.f32.mxu1 %v11445_v3 }
  0xba   : > { %6595 = vmatmul.mubr.msk.f32.gmra.mxu0 %vm813_vm1, %v8038_v22  ;;  %6627 = vmatmul.mubr.msk.f32.gmra.mxu1 %vm813_vm1, %v8020_v20 }
  0xbb   : > { %1575 = vmatprep.mubr.f32.mxu0 %v11445_v3  ;;  %1820 = vmatprep.mubr.f32.mxu1 %v11445_v3 }
  0xbe   : > { %6596 = vmatmul.mubr.msk.f32.gmra.mxu0 %vm813_vm1, %v8047_v23  ;;  %6628 = vmatmul.mubr.msk.f32.gmra.mxu1 %vm813_vm1, %v8029_v21 }
  0xbf   : > { %1581 = vmatprep.mubr.f32.mxu0 %v11445_v3  ;;  %1826 = vmatprep.mubr.f32.mxu1 %v11445_v3 }
  0xc2   : > { %6597 = vmatmul.mubr.msk.f32.gmra.mxu0 %vm813_vm1, %v8056_v24  ;;  %6629 = vmatmul.mubr.msk.f32.gmra.mxu1 %vm813_vm1, %v8038_v22 }
  0xc3   : > { %1587 = vmatprep.mubr.f32.mxu0 %v11445_v3  ;;  %1832 = vmatprep.mubr.f32.mxu1 %v11445_v3 }
  0xc6   : > { %6598 = vmatmul.mubr.msk.f32.gmra.mxu0 %vm813_vm1, %v8065_v25  ;;  %6630 = vmatmul.mubr.msk.f32.gmra.mxu1 %vm813_vm1, %v8047_v23 }
  0xc7   : > { %1593 = vmatprep.mubr.f32.mxu0 %v11445_v3  ;;  %1838 = vmatprep.mubr.f32.mxu1 %v11445_v3 }
  0xca   : > { %6599 = vmatmul.mubr.msk.f32.gmra.mxu0 %vm813_vm1, %v8074_v26  ;;  %6631 = vmatmul.mubr.msk.f32.gmra.mxu1 %vm813_vm1, %v8056_v24 }
  0xcb   : > { %1599 = vmatprep.mubr.f32.mxu0 %v11445_v3  ;;  %1844 = vmatprep.mubr.f32.mxu1 %v11445_v3 }
  0xce   : > { %6600 = vmatmul.mubr.msk.f32.gmra.mxu0 %vm813_vm1, %v8083_v27  ;;  %6632 = vmatmul.mubr.msk.f32.gmra.mxu1 %vm813_vm1, %v8065_v25 }
  0xcf   : > { %1605 = vmatprep.mubr.f32.mxu0 %v11445_v3  ;;  %1850 = vmatprep.mubr.f32.mxu1 %v11445_v3 }
  0xd2   : > { %6601 = vmatmul.mubr.msk.f32.gmra.mxu0 %vm813_vm1, %v8092_v28  ;;  %6633 = vmatmul.mubr.msk.f32.gmra.mxu1 %vm813_vm1, %v8074_v26 }
  0xd3   : > { %1611 = vmatprep.mubr.f32.mxu0 %v11445_v3  ;;  %1856 = vmatprep.mubr.f32.mxu1 %v11445_v3 }
  0xd6   : > { %6602 = vmatmul.mubr.msk.f32.gmra.mxu0 %vm813_vm1, %v8101_v29  ;;  %6634 = vmatmul.mubr.msk.f32.gmra.mxu1 %vm813_vm1, %v8083_v27 }
  0xd7   : > { %1617 = vmatprep.mubr.f32.mxu0 %v11445_v3  ;;  %1862 = vmatprep.mubr.f32.mxu1 %v11445_v3 }
  0xda   : > { %6603 = vmatmul.mubr.msk.f32.gmra.mxu0 %vm813_vm1, %v8116_v30  ;;  %6635 = vmatmul.mubr.msk.f32.gmra.mxu1 %vm813_vm1, %v8092_v28 }
  0xdb   : > { %1623 = vmatprep.mubr.f32.mxu0 %v11445_v3  ;;  %1868 = vmatprep.mubr.f32.mxu1 %v11445_v3 }
  0xde   : > { %v1009_v60 = vpop.f32.mrf.mxu0  ;;  %v8399_v61 = vpop.f32.mrf.mxu1  ;;  %6604 = vmatmul.mubr.msk.f32.gmra.mxu0 %vm813_vm1, %v8125_v31  ;;  %6636 = vmatmul.mubr.msk.f32.gmra.mxu1 %vm813_vm1, %v8101_v29 }
  0xdf   : > { %v1010_v63 = vadd.f32 %v1009_v60, %v8397_v59  ;;  %1629 = vmatprep.mubr.f32.mxu0 %v11445_v3  ;;  %1874 = vmatprep.mubr.f32.mxu1 %v11445_v3 }
  0xe0   : > { %v1011_v1 = vpop.f32.mrf.mxu0  ;;  %v8413_v2 = vpop.f32.mrf.mxu1 }
  0xe1   : > { %v1012_v5 = vadd.f32 %v1011_v1, %v8409_v0  ;;  %v2999_v9 = vmax.f32 %v1010_v63, 0.0 }
  0xe2   : > { %v1015_v6 = vpop.f32.mrf.mxu0  ;;  %v1266_v8 = vpop.f32.mrf.mxu1  ;;  %6605 = vmatmul.mubr.msk.f32.gmra.mxu0 %vm813_vm1, %v8128_v32  ;;  %6637 = vmatmul.mubr.msk.f32.gmra.mxu1 %vm813_vm1, %v8116_v30 }
  0xe3   : > { %v1016_v10 = vadd.f32 %v1015_v6, %v8397_v59  ;;  %1635 = vmatprep.mubr.f32.mxu0 %v11445_v3  ;;  %1880 = vmatprep.mubr.f32.mxu1 %v11445_v3  ;;  %v3000_v14 = vmax.f32 %v1012_v5, 0.0  ;;  %v1267_v17 = vadd.f32 %v1266_v8, %v8419_v7 }
  0xe4   : > { %v1017_v11 = vpop.f32.mrf.mxu0  ;;  %v1268_v13 = vpop.f32.mrf.mxu1 }
  0xe5   : > { %v3015_v15 = vmax.f32 %v1016_v10, 0.0  ;;  %v1018_v16 = vadd.f32 %v1017_v11, %v8409_v0  ;;  %v1269_v23 = vadd.f32 %v1268_v13, %v8430_v12  ;;  %v3001_v30 = vmax.f32 %v1267_v17, 0.0 }
  0xe6   : > { %v1021_v18 = vpop.f32.mrf.mxu0  ;;  %v1272_v19 = vpop.f32.mrf.mxu1  ;;  %6606 = vmatmul.mubr.msk.f32.gmra.mxu0 %vm813_vm1, %v8137_v33  ;;  %6638 = vmatmul.mubr.msk.f32.gmra.mxu1 %vm813_vm1, %v8125_v31 }
  0xe7   : > { %v8438_v20 = vpack.c.bf16 %v3015_v15, %v2999_v9  ;;  %v3016_v21 = vmax.f32 %v1018_v16, 0.0  ;;  %v1022_v22 = vadd.f32 %v1021_v18, %v8397_v59  ;;  %1641 = vmatprep.mubr.f32.mxu0 %v11445_v3  ;;  %1886 = vmatprep.mubr.f32.mxu1 %v11445_v3  ;;  %v1273_v24 = vadd.f32 %v1272_v19, %v8419_v7 }
  0xe8   : > { %v1023_v25 = vpop.f32.mrf.mxu0  ;;  %v1274_v26 = vpop.f32.mrf.mxu1  ;;  %v3002_v1 = vmax.f32 %v1269_v23, 0.0 }
  0xe9   : > { %11684 = vst [vmem:[#allocation6_spill] sm:$0xff] %v8438_v20  ;;  %v1024_v27 = vadd.f32 %v1023_v25, %v8409_v0  ;;  %v1275_v28 = vadd.f32 %v1274_v26, %v8430_v12  ;;  %v8447_v29 = vpack.c.bf16 %v3016_v21, %v3000_v14  ;;  %v3017_v31 = vmax.f32 %v1273_v24, 0.0 }
  0xea   : > { %v1027_v46 = vpop.f32.mrf.mxu0  ;;  %v1278_v49 = vpop.f32.mrf.mxu1  ;;  %6607 = vmatmul.mubr.msk.f32.gmra.mxu0 %vm813_vm1, %v8146_v34  ;;  %6639 = vmatmul.mubr.msk.f32.gmra.mxu1 %vm813_vm1, %v8128_v32  ;;  %v3031_v57 = vmax.f32 %v1022_v22, 0.0 }
  0xeb   : > { %11685 = vst [vmem:[#allocation7_spill] sm:$0xff] %v8447_v29  ;;  %v3018_v60 = vmax.f32 %v1275_v28, 0.0  ;;  %v1028_v63 = vadd.f32 %v1027_v46, %v8397_v59  ;;  %1647 = vmatprep.mubr.f32.mxu0 %v11445_v3  ;;  %1892 = vmatprep.mubr.f32.mxu1 %v11445_v3  ;;  %v8456_v5 = vpack.c.bf16 %v3017_v31, %v3001_v30  ;;  %v3032_v9 = vmax.f32 %v1024_v27, 0.0 }
  0xec   : > { %v1029_v6 = vpop.f32.mrf.mxu0  ;;  %v1280_v8 = vpop.f32.mrf.mxu1  ;;  %v1279_v13 = vadd.f32 %v1278_v49, %v8419_v7 }
  0xed   : > { %11686 = vst [vmem:[#allocation8_spill] sm:$0xff] %v8456_v5  ;;  %v3047_v10 = vmax.f32 %v1028_v63, 0.0  ;;  %v1030_v11 = vadd.f32 %v1029_v6, %v8409_v0  ;;  %v8464_v15 = vpack.c.bf16 %v3018_v60, %v3002_v1  ;;  %v1281_v19 = vadd.f32 %v1280_v8, %v8430_v12 }
  0xee   : > { %v1033_v32 = vpop.f32.mrf.mxu0  ;;  %v1284_v14 = vpop.f32.mrf.mxu1  ;;  %6608 = vmatmul.mubr.msk.f32.gmra.mxu0 %vm813_vm1, %v8155_v35  ;;  %6640 = vmatmul.mubr.msk.f32.gmra.mxu1 %vm813_vm1, %v8137_v33  ;;  %v3033_v26 = vmax.f32 %v1279_v13, 0.0 }
  0xef   : > { %11687 = vst [vmem:[#allocation9_spill] sm:$0xff] %v8464_v15  ;;  %v8466_v16 = vpack.c.bf16 %v3047_v10, %v3031_v57  ;;  %v3048_v17 = vmax.f32 %v1030_v11, 0.0  ;;  %v1034_v18 = vadd.f32 %v1033_v32, %v8397_v59  ;;  %1653 = vmatprep.mubr.f32.mxu0 %v11445_v3  ;;  %1898 = vmatprep.mubr.f32.mxu1 %v11445_v3  ;;  %v3034_v57 = vmax.f32 %v1281_v19, 0.0 }
  0xf0   : > { %v1285_v21 = vadd.f32 %v1284_v14, %v8419_v7  ;;  %v1035_v22 = vpop.f32.mrf.mxu0  ;;  %v1286_v23 = vpop.f32.mrf.mxu1 }
  0xf1   : > { %11688 = vst [vmem:[#allocation10_spill] sm:$0xff] %v8466_v16  ;;  %v1036_v24 = vadd.f32 %v1035_v22, %v8409_v0  ;;  %v1287_v33 = vadd.f32 %v1286_v23, %v8430_v12  ;;  %v8475_v25 = vpack.c.bf16 %v3048_v17, %v3032_v9  ;;  %v3063_v31 = vmax.f32 %v1034_v18, 0.0 }
  0xf2   : > { %v3049_v27 = vmax.f32 %v1285_v21, 0.0  ;;  %v1039_v28 = vpop.f32.mrf.mxu0  ;;  %v1290_v30 = vpop.f32.mrf.mxu1  ;;  %6609 = vmatmul.mubr.msk.f32.gmra.mxu0 %vm813_vm1, %v8164_v36  ;;  %6641 = vmatmul.mubr.msk.f32.gmra.mxu1 %vm813_vm1, %v8146_v34 }
  0xf3   : > { %11689 = vst [vmem:[#allocation11_spill] sm:$0xff] %v8475_v25  ;;  %v3050_v46 = vmax.f32 %v1287_v33, 0.0  ;;  %v1040_v49 = vadd.f32 %v1039_v28, %v8397_v59  ;;  %1659 = vmatprep.mubr.f32.mxu0 %v11445_v3  ;;  %1904 = vmatprep.mubr.f32.mxu1 %v11445_v3  ;;  %v3064_v6 = vmax.f32 %v1036_v24, 0.0  ;;  %v1291_v10 = vadd.f32 %v1290_v30, %v8419_v7 }
  0xf4   : > { %v8484_v60 = vpack.c.bf16 %v3049_v27, %v3033_v26  ;;  %v1041_v63 = vpop.f32.mrf.mxu0  ;;  %v1292_v1 = vpop.f32.mrf.mxu1 }
  0xf5   : > { %v3079_v8 = vmax.f32 %v1040_v49, 0.0  ;;  %v1042_v9 = vadd.f32 %v1041_v63, %v8409_v0  ;;  %v8492_v13 = vpack.c.bf16 %v3050_v46, %v3034_v57  ;;  %v1293_v18 = vadd.f32 %v1292_v1, %v8430_v12 }
  0xf6   : > { %11690 = vst [vmem:[#allocation12_spill] sm:$0xff] %v8484_v60  ;;  %v1045_v34 = vpop.f32.mrf.mxu0  ;;  %v1296_v11 = vpop.f32.mrf.mxu1  ;;  %6610 = vmatmul.mubr.msk.f32.gmra.mxu0 %vm813_vm1, %v8173_v37  ;;  %6642 = vmatmul.mubr.msk.f32.gmra.mxu1 %vm813_vm1, %v8155_v35  ;;  %v3065_v33 = vmax.f32 %v1291_v10, 0.0 }
  0xf7   : > { %11691 = vst [vmem:[#allocation13_spill] sm:$0xff] %v8492_v13  ;;  %v8494_v32 = vpack.c.bf16 %v3079_v8, %v3063_v31  ;;  %v3080_v14 = vmax.f32 %v1042_v9, 0.0  ;;  %v1046_v17 = vadd.f32 %v1045_v34, %v8397_v59  ;;  %1665 = vmatprep.mubr.f32.mxu0 %v11445_v3  ;;  %1910 = vmatprep.mubr.f32.mxu1 %v11445_v3  ;;  %v3066_v49 = vmax.f32 %v1293_v18, 0.0 }
  0xf8   : > { %v1297_v19 = vadd.f32 %v1296_v11, %v8419_v7  ;;  %v1047_v21 = vpop.f32.mrf.mxu0  ;;  %v1298_v22 = vpop.f32.mrf.mxu1 }
  0xf9   : > { %11692 = vst [vmem:[#allocation14_spill] sm:$0xff] %v8494_v32  ;;  %v1048_v23 = vadd.f32 %v1047_v21, %v8409_v0  ;;  %v1299_v35 = vadd.f32 %v1298_v22, %v8430_v12  ;;  %v8503_v24 = vpack.c.bf16 %v3080_v14, %v3064_v6  ;;  %v3095_v30 = vmax.f32 %v1046_v17, 0.0 }
  0xfa   : > { %v3081_v26 = vmax.f32 %v1297_v19, 0.0  ;;  %v1051_v27 = vpop.f32.mrf.mxu0  ;;  %v1302_v28 = vpop.f32.mrf.mxu1  ;;  %6611 = vmatmul.mubr.msk.f32.gmra.mxu0 %vm813_vm1, %v8182_v38  ;;  %6643 = vmatmul.mubr.msk.f32.gmra.mxu1 %vm813_vm1, %v8164_v36 }
  0xfb   : > { %11693 = vst [vmem:[#allocation15_spill] sm:$0xff] %v8503_v24  ;;  %v3082_v31 = vmax.f32 %v1299_v35, 0.0  ;;  %v1052_v46 = vadd.f32 %v1051_v27, %v8397_v59  ;;  %1671 = vmatprep.mubr.f32.mxu0 %v11445_v3  ;;  %1916 = vmatprep.mubr.f32.mxu1 %v11445_v3  ;;  %v3096_v6 = vmax.f32 %v1048_v23, 0.0  ;;  %v1303_v10 = vadd.f32 %v1302_v28, %v8419_v7 }
  0xfc   : > { %v8512_v57 = vpack.c.bf16 %v3081_v26, %v3065_v33  ;;  %v1053_v63 = vpop.f32.mrf.mxu0  ;;  %v1304_v1 = vpop.f32.mrf.mxu1 }
  0xfd   : > { %v3111_v8 = vmax.f32 %v1052_v46, 0.0  ;;  %v1054_v9 = vadd.f32 %v1053_v63, %v8409_v0  ;;  %v8520_v11 = vpack.c.bf16 %v3082_v31, %v3066_v49  ;;  %v1305_v19 = vadd.f32 %v1304_v1, %v8430_v12 }
  0xfe   : > { %11694 = vst [vmem:[#allocation16_spill] sm:$0xff] %v8512_v57  ;;  %v1057_v36 = vpop.f32.mrf.mxu0  ;;  %v1308_v34 = vpop.f32.mrf.mxu1  ;;  %6612 = vmatmul.mubr.msk.f32.gmra.mxu0 %vm813_vm1, %v8191_v39  ;;  %6644 = vmatmul.mubr.msk.f32.gmra.mxu1 %vm813_vm1, %v8173_v37  ;;  %v3097_v26 = vmax.f32 %v1303_v10, 0.0 }
  0xff   : > { %11695 = vst [vmem:[#allocation17_spill] sm:$0xff] %v8520_v11  ;;  %v8522_v14 = vpack.c.bf16 %v3111_v8, %v3095_v30  ;;  %v3112_v17 = vmax.f32 %v1054_v9, 0.0  ;;  %v1058_v18 = vadd.f32 %v1057_v36, %v8397_v59  ;;  %1677 = vmatprep.mubr.f32.mxu0 %v11445_v3  ;;  %1922 = vmatprep.mubr.f32.mxu1 %v11445_v3  ;;  %v3098_v63 = vmax.f32 %v1305_v19, 0.0 }
 0x100   : > { %v1309_v21 = vadd.f32 %v1308_v34, %v8419_v7  ;;  %v1059_v22 = vpop.f32.mrf.mxu0  ;;  %v1310_v23 = vpop.f32.mrf.mxu1 }
 0x101   : > { %11696 = vst [vmem:[#allocation18_spill] sm:$0xff] %v8522_v14  ;;  %v1060_v35 = vadd.f32 %v1059_v22, %v8409_v0  ;;  %v1311_v37 = vadd.f32 %v1310_v23, %v8430_v12  ;;  %v8531_v33 = vpack.c.bf16 %v3112_v17, %v3096_v6  ;;  %v3127_v31 = vmax.f32 %v1058_v18, 0.0 }
 0x102   : > { %v3113_v27 = vmax.f32 %v1309_v21, 0.0  ;;  %v1063_v28 = vpop.f32.mrf.mxu0  ;;  %v1314_v30 = vpop.f32.mrf.mxu1  ;;  %6613 = vmatmul.mubr.msk.f32.gmra.mxu0 %vm813_vm1, %v8200_v40  ;;  %6645 = vmatmul.mubr.msk.f32.gmra.mxu1 %vm813_vm1, %v8182_v38 }
 0x103   : > { %11697 = vst [vmem:[#allocation19_spill] sm:$0xff] %v8531_v33  ;;  %v3114_v46 = vmax.f32 %v1311_v37, 0.0  ;;  %v1064_v49 = vadd.f32 %v1063_v28, %v8397_v59  ;;  %1683 = vmatprep.mubr.f32.mxu0 %v11445_v3  ;;  %1928 = vmatprep.mubr.f32.mxu1 %v11445_v3  ;;  %v3128_v9 = vmax.f32 %v1060_v35, 0.0  ;;  %v1315_v34 = vadd.f32 %v1314_v30, %v8419_v7 }
 0x104   : > { %v8540_v1 = vpack.c.bf16 %v3113_v27, %v3097_v26  ;;  %v1065_v6 = vpop.f32.mrf.mxu0  ;;  %v1316_v8 = vpop.f32.mrf.mxu1 }
 0x105   : > { %v3143_v10 = vmax.f32 %v1064_v49, 0.0  ;;  %v1066_v36 = vadd.f32 %v1065_v6, %v8409_v0  ;;  %v8548_v18 = vpack.c.bf16 %v3114_v46, %v3098_v63  ;;  %v1317_v23 = vadd.f32 %v1316_v8, %v8430_v12 }
 0x106   : > { %11698 = vst [vmem:[#allocation20_spill] sm:$0xff] %v8540_v1  ;;  %v1069_v38 = vpop.f32.mrf.mxu0  ;;  %v1320_v17 = vpop.f32.mrf.mxu1  ;;  %6614 = vmatmul.mubr.msk.f32.gmra.mxu0 %vm813_vm1, %v8209_v41  ;;  %6646 = vmatmul.mubr.msk.f32.gmra.mxu1 %vm813_vm1, %v8191_v39  ;;  %v3129_v30 = vmax.f32 %v1315_v34, 0.0 }
 0x107   : > { %11699 = vst [vmem:[#allocation21_spill] sm:$0xff] %v8548_v18  ;;  %v8550_v19 = vpack.c.bf16 %v3143_v10, %v3127_v31  ;;  %v3144_v21 = vmax.f32 %v1066_v36, 0.0  ;;  %v1070_v22 = vadd.f32 %v1069_v38, %v8397_v59  ;;  %1689 = vmatprep.mubr.f32.mxu0 %v11445_v3  ;;  %1934 = vmatprep.mubr.f32.mxu1 %v11445_v3 }
 0x108   : > { %v1321_v35 = vadd.f32 %v1320_v17, %v8419_v7  ;;  %v1071_v37 = vpop.f32.mrf.mxu0  ;;  %v1322_v26 = vpop.f32.mrf.mxu1 }
 0x109   : > { %11700 = vst [vmem:[#allocation22_spill] sm:$0xff] %v8550_v19  ;;  %v1072_v27 = vadd.f32 %v1071_v37, %v8409_v0  ;;  %v1323_v39 = vadd.f32 %v1322_v26, %v8430_v12  ;;  %v8559_v28 = vpack.c.bf16 %v3144_v21, %v3128_v9  ;;  %v3159_v63 = vmax.f32 %v1070_v22, 0.0 }
 0x10a   : > { %v3145_v31 = vmax.f32 %v1321_v35, 0.0  ;;  %v1075_v46 = vpop.f32.mrf.mxu0  ;;  %v1326_v49 = vpop.f32.mrf.mxu1  ;;  %6615 = vmatmul.mubr.msk.f32.gmra.mxu0 %vm813_vm1, %v8218_v42  ;;  %6647 = vmatmul.mubr.msk.f32.gmra.mxu1 %vm813_vm1, %v8200_v40  ;;  %v3130_v9 = vmax.f32 %v1317_v23, 0.0 }
 0x10b   : > { %11701 = vst [vmem:[#allocation23_spill] sm:$0xff] %v8559_v28  ;;  %v3146_v6 = vmax.f32 %v1323_v39, 0.0  ;;  %v1076_v8 = vadd.f32 %v1075_v46, %v8397_v59  ;;  %1695 = vmatprep.mubr.f32.mxu0 %v11445_v3  ;;  %1940 = vmatprep.mubr.f32.mxu1 %v11445_v3  ;;  %v3160_v38 = vmax.f32 %v1072_v27, 0.0  ;;  %v1327_v35 = vadd.f32 %v1326_v49, %v8419_v7 }
 0x10c   : > { %v8568_v10 = vpack.c.bf16 %v3145_v31, %v3129_v30  ;;  %v1077_v36 = vpop.f32.mrf.mxu0  ;;  %v1328_v34 = vpop.f32.mrf.mxu1 }
 0x10d   : > { %v3175_v17 = vmax.f32 %v1076_v8, 0.0  ;;  %v1078_v21 = vadd.f32 %v1077_v36, %v8409_v0  ;;  %v8576_v37 = vpack.c.bf16 %v3146_v6, %v3130_v9  ;;  %v1329_v39 = vadd.f32 %v1328_v34, %v8430_v12 }
 0x10e   : > { %11702 = vst [vmem:[#allocation24_spill] sm:$0xff] %v8568_v10  ;;  %v1081_v40 = vpop.f32.mrf.mxu0  ;;  %v1332_v22 = vpop.f32.mrf.mxu1  ;;  %6616 = vmatmul.mubr.msk.f32.gmra.mxu0 %vm813_vm1, %v8227_v43  ;;  %6648 = vmatmul.mubr.msk.f32.gmra.mxu1 %vm813_vm1, %v8209_v41 }
 0x10f   : > { %11703 = vst [vmem:[#allocation25_spill] sm:$0xff] %v8576_v37  ;;  %v8578_v23 = vpack.c.bf16 %v3175_v17, %v3159_v63  ;;  %v3176_v26 = vmax.f32 %v1078_v21, 0.0  ;;  %v1082_v27 = vadd.f32 %v1081_v40, %v8397_v59  ;;  %1701 = vmatprep.mubr.f32.mxu0 %v11445_v3  ;;  %1946 = vmatprep.mubr.f32.mxu1 %v11445_v3  ;;  %v3161_v63 = vmax.f32 %v1327_v35, 0.0 }
 0x110   : > { %v1333_v30 = vadd.f32 %v1332_v22, %v8419_v7  ;;  %v1083_v31 = vpop.f32.mrf.mxu0  ;;  %v1334_v46 = vpop.f32.mrf.mxu1 }
 0x111   : > { %11704 = vst [vmem:[#allocation26_spill] sm:$0xff] %v8578_v23  ;;  %v1084_v49 = vadd.f32 %v1083_v31, %v8409_v0  ;;  %v1335_v41 = vadd.f32 %v1334_v46, %v8430_v12  ;;  %v8587_v6 = vpack.c.bf16 %v3176_v26, %v3160_v38  ;;  %v3191_v34 = vmax.f32 %v1082_v27, 0.0 }
 0x112   : > { %v3177_v8 = vmax.f32 %v1333_v30, 0.0  ;;  %v1087_v9 = vpop.f32.mrf.mxu0  ;;  %v1338_v36 = vpop.f32.mrf.mxu1  ;;  %6617 = vmatmul.mubr.msk.f32.gmra.mxu0 %vm813_vm1, %v8236_v44  ;;  %6649 = vmatmul.mubr.msk.f32.gmra.mxu1 %vm813_vm1, %v8218_v42  ;;  %v3162_v38 = vmax.f32 %v1329_v39, 0.0 }
 0x113   : > { %11705 = vst [vmem:[#allocation27_spill] sm:$0xff] %v8587_v6  ;;  %v3178_v17 = vmax.f32 %v1335_v41, 0.0  ;;  %v1088_v21 = vadd.f32 %v1087_v9, %v8397_v59  ;;  %1707 = vmatprep.mubr.f32.mxu0 %v11445_v3  ;;  %1952 = vmatprep.mubr.f32.mxu1 %v11445_v3  ;;  %v3192_v26 = vmax.f32 %v1084_v49, 0.0  ;;  %v1339_v42 = vadd.f32 %v1338_v36, %v8419_v7  ;;  %v7682_v41 = vld [vmem:[%s7945_s12 + $0xf8] sm:$0xff] }
 0x114   : > { %v8596_v35 = vpack.c.bf16 %v3177_v8, %v3161_v63  ;;  %v1089_v40 = vpop.f32.mrf.mxu0  ;;  %v1340_v22 = vpop.f32.mrf.mxu1 }
 0x115   : > { %v3207_v30 = vmax.f32 %v1088_v21, 0.0  ;;  %v1090_v31 = vadd.f32 %v1089_v40, %v8409_v0  ;;  %v8604_v9 = vpack.c.bf16 %v3178_v17, %v3162_v38  ;;  %v1341_v8 = vadd.f32 %v1340_v22, %v8430_v12 }
 0x116   : > { %11706 = vst [vmem:[#allocation28_spill] sm:$0xff] %v8596_v35  ;;  %v1093_v46 = vpop.f32.mrf.mxu0  ;;  %v1344_v27 = vpop.f32.mrf.mxu1  ;;  %6618 = vmatmul.mubr.msk.f32.gmra.mxu0 %vm813_vm1, %v7682_v41  ;;  %6650 = vmatmul.mubr.msk.f32.gmra.mxu1 %vm813_vm1, %v8227_v43 }
 0x117   : > { %11707 = vst [vmem:[#allocation29_spill] sm:$0xff] %v8604_v9  ;;  %v8606_v39 = vpack.c.bf16 %v3207_v30, %v3191_v34  ;;  %v3208_v63 = vmax.f32 %v1090_v31, 0.0  ;;  %v1094_v49 = vadd.f32 %v1093_v46, %v8397_v59  ;;  %1958 = vmatprep.mubr.f32.mxu1 %v11445_v3  ;;  %2035 = vmatprep.mubr.f32.mxu0 %v11445_v3  ;;  %v3193_v34 = vmax.f32 %v1339_v42, 0.0 }
 0x118   : > { %v1345_v36 = vadd.f32 %v1344_v27, %v8419_v7  ;;  %v1095_v21 = vpop.f32.mrf.mxu0  ;;  %v1346_v40 = vpop.f32.mrf.mxu1 }
 0x119   : > { %11708 = vst [vmem:[#allocation30_spill] sm:$0xff] %v8606_v39  ;;  %v1096_v54 = vadd.f32 %v1095_v21, %v8409_v0  ;;  %v1347_v43 = vadd.f32 %v1346_v40, %v8430_v12  ;;  %v8615_v17 = vpack.c.bf16 %v3208_v63, %v3192_v26  ;;  %v3223_v22 = vmax.f32 %v1094_v49, 0.0 }
 0x11a   : > { %v3209_v38 = vmax.f32 %v1345_v36, 0.0  ;;  %v1099_v30 = vpop.f32.mrf.mxu0  ;;  %v1350_v31 = vpop.f32.mrf.mxu1  ;;  %6651 = vmatmul.mubr.msk.f32.gmra.mxu1 %vm813_vm1, %v8236_v44  ;;  %6655 = vmatmul.mubr.msk.f32.vlgmr.msra.gmra.mxu0 %vm813_vm1, %v8274_v47  ;;  %v3194_v26 = vmax.f32 %v1341_v8, 0.0 }
 0x11b   : > { %11709 = vst [vmem:[#allocation31_spill] sm:$0xff] %v8615_v17  ;;  %v3210_v46 = vmax.f32 %v1347_v43, 0.0  ;;  %v1100_v27 = vadd.f32 %v1099_v30, %v8397_v59  ;;  %1964 = vmatprep.mubr.f32.mxu1 %v11445_v3  ;;  %2041 = vmatprep.mubr.f32.mxu0 %v11445_v3  ;;  %v3224_v44 = vmax.f32 %v1096_v54, 0.0  ;;  %v1351_v49 = vadd.f32 %v1350_v31, %v8419_v7 }
 0x11c   : > { %v8624_v63 = vpack.c.bf16 %v3209_v38, %v3193_v34  ;;  %v1101_v42 = vpop.f32.mrf.mxu0  ;;  %v1352_v36 = vpop.f32.mrf.mxu1  ;;  %6722 = vmatpush1.msk.msra.mxu0 %vm910_vm0, %v8267_v45 }
 0x11d   : > { %v3239_v21 = vmax.f32 %v1100_v27, 0.0  ;;  %v1102_v40 = vadd.f32 %v1101_v42, %v8409_v0  ;;  %v8633_v8 = vpack.c.bf16 %v3210_v46, %v3194_v26  ;;  %v1353_v54 = vadd.f32 %v1352_v36, %v8430_v12 }
 0x11e   : > { %11710 = vst [vmem:[#allocation32_spill] sm:$0xff] %v8624_v63  ;;  %v1105_v43 = vpop.f32.mrf.mxu0  ;;  %v1356_v30 = vpop.f32.mrf.mxu1  ;;  %6652 = vmatmul.mubr.msk.f32.gmra.mxu1 %vm813_vm1, %v7682_v41  ;;  %6656 = vmatmul.mubr.msk.f32.gmra.mxu0 %vm813_vm1, %v8293_v50 }
 0x11f   : > { %11711 = vst [vmem:[#allocation33_spill] sm:$0xff] %v8633_v8  ;;  %v8635_v34 = vpack.c.bf16 %v3239_v21, %v3223_v22  ;;  %v3240_v38 = vmax.f32 %v1102_v40, 0.0  ;;  %v1106_v45 = vadd.f32 %v1105_v43, %v8397_v59  ;;  %2047 = vmatprep.mubr.f32.mxu0 %v11445_v3  ;;  %2292 = vmatprep.mubr.f32.mxu1 %v11445_v3  ;;  %v3225_v22 = vmax.f32 %v1351_v49, 0.0 }
 0x120   : > { %v1357_v31 = vadd.f32 %v1356_v30, %v8419_v7  ;;  %v1107_v27 = vpop.f32.mrf.mxu0  ;;  %v1358_v41 = vpop.f32.mrf.mxu1 }
 0x121   : > { %11712 = vst [vmem:[#allocation34_spill] sm:$0xff] %v8635_v34  ;;  %v1108_v42 = vadd.f32 %v1107_v27, %v8409_v0  ;;  %v1359_v46 = vadd.f32 %v1358_v41, %v8430_v12  ;;  %v8644_v26 = vpack.c.bf16 %v3240_v38, %v3224_v44  ;;  %v3255_v36 = vmax.f32 %v1106_v45, 0.0 }
 0x122   : > { %v3241_v21 = vmax.f32 %v1357_v31, 0.0  ;;  %v1111_v40 = vpop.f32.mrf.mxu0  ;;  %v1362_v43 = vpop.f32.mrf.mxu1  ;;  %6657 = vmatmul.mubr.msk.f32.gmra.mxu0 %vm813_vm1, %v8303_v51  ;;  %6689 = vmatmul.mubr.msk.f32.vlgmr.msra.gmra.mxu1 %vm813_vm1, %v8274_v47  ;;  %v3226_v44 = vmax.f32 %v1353_v54, 0.0 }
 0x123   : > { %11713 = vst [vmem:[#allocation35_spill] sm:$0xff] %v8644_v26  ;;  %v3242_v30 = vmax.f32 %v1359_v46, 0.0  ;;  %v1112_v4 = vadd.f32 %v1111_v40, %v8397_v59  ;;  %6756 = vmatpush1.msk.msra.mxu1 %vm910_vm0, %v8284_v48  ;;  %3828 = vmatprep.subr.bf16.mxu0 %v8644_v26  ;;  %v3256_v27 = vmax.f32 %v1108_v42, 0.0  ;;  %v1363_v41 = vadd.f32 %v1362_v43, %v8419_v7 }
 0x124   : > { %v8654_v49 = vpack.c.bf16 %v3241_v21, %v3225_v22  ;;  %v1113_v38 = vpop.f32.mrf.mxu0  ;;  %v1364_v31 = vpop.f32.mrf.mxu1  ;;  %2053 = vmatprep.mubr.f32.mxu0 %v11445_v3  ;;  %2298 = vmatprep.mubr.f32.mxu1 %v11445_v3 }
 0x125   : > { %v3271_v47 = vmax.f32 %v1112_v4, 0.0  ;;  %v1114_v45 = vadd.f32 %v1113_v38, %v8409_v0  ;;  %v8664_v48 = vpack.c.bf16 %v3242_v30, %v3226_v44  ;;  %v1365_v4 = vadd.f32 %v1364_v31, %v8430_v12 }
 0x126   : > { %11714 = vst [vmem:[#allocation36_spill] sm:$0xff] %v8654_v49  ;;  %v1117_v46 = vpop.f32.mrf.mxu0  ;;  %v1368_v40 = vpop.f32.mrf.mxu1  ;;  %6658 = vmatmul.mubr.msk.f32.gmra.mxu0 %vm813_vm1, %v8312_v52  ;;  %6690 = vmatmul.mubr.msk.f32.gmra.mxu1 %vm813_vm1, %v8293_v50  ;;  %v3257_v44 = vmax.f32 %v1363_v41, 0.0 }
 0x127   : > { %11715 = vst [vmem:[#allocation37_spill] sm:$0xff] %v8664_v48  ;;  %v8666_v54 = vpack.c.bf16 %v3271_v47, %v3255_v36  ;;  %v3272_v22 = vmax.f32 %v1114_v45, 0.0  ;;  %v1118_v42 = vadd.f32 %v1117_v46, %v8397_v59  ;;  %2059 = vmatprep.mubr.f32.mxu0 %v11445_v3  ;;  %2304 = vmatprep.mubr.f32.mxu1 %v11445_v3 }
 0x128   : > { %v1369_v21 = vadd.f32 %v1368_v40, %v8419_v7  ;;  %3869 = vmatprep.subr.bf16.mxu1 %v8664_v48  ;;  %v1119_v43 = vpop.f32.mrf.mxu0  ;;  %v1370_v38 = vpop.f32.mrf.mxu1  ;;  %v7684_v48 = vld [vmem:[%s7945_s12 + $0x30] sm:$0xff] }
 0x129   : > { %11716 = vst [vmem:[#allocation38_spill] sm:$0xff] %v8666_v54  ;;  %v1120_v50 = vadd.f32 %v1119_v43, %v8409_v0  ;;  %v1371_v36 = vadd.f32 %v1370_v38, %v8430_v12  ;;  %v8676_v30 = vpack.c.bf16 %v3272_v22, %v3256_v27  ;;  %v3287_v31 = vmax.f32 %v1118_v42, 0.0 }
 0x12a   : > { %v3273_v47 = vmax.f32 %v1369_v21, 0.0  ;;  %v1123_v45 = vpop.f32.mrf.mxu0  ;;  %v1374_v46 = vpop.f32.mrf.mxu1  ;;  %6659 = vmatmul.mubr.msk.f32.gmra.mxu0 %vm813_vm1, %v8321_v53  ;;  %6691 = vmatmul.mubr.msk.f32.gmra.mxu1 %vm813_vm1, %v8303_v51  ;;  %v3258_v27 = vmax.f32 %v1365_v4, 0.0 }
 0x12b   : > { %11717 = vst [vmem:[#allocation39_spill] sm:$0xff] %v8676_v30  ;;  %v3274_v40 = vmax.f32 %v1371_v36, 0.0  ;;  %v1124_v62 = vadd.f32 %v1123_v45, %v8397_v59  ;;  %2065 = vmatprep.mubr.f32.mxu0 %v11445_v3  ;;  %2310 = vmatprep.mubr.f32.mxu1 %v11445_v3  ;;  %v3288_v43 = vmax.f32 %v1120_v50, 0.0  ;;  %v1375_v51 = vadd.f32 %v1374_v46, %v8419_v7  ;;  %v7683_v36 = vld [vmem:[%s7945_s12 + $0x28] sm:$0xff] }
 0x12c   : > { %v8685_v41 = vpack.c.bf16 %v3273_v47, %v3257_v44  ;;  %v1125_v22 = vpop.f32.mrf.mxu0  ;;  %v1376_v21 = vpop.f32.mrf.mxu1 }
 0x12d   : > { %v3303_v38 = vmax.f32 %v1124_v62, 0.0  ;;  %v1126_v58 = vadd.f32 %v1125_v22, %v8409_v0  ;;  %v8693_v45 = vpack.c.bf16 %v3274_v40, %v3258_v27  ;;  %v1377_v50 = vadd.f32 %v1376_v21, %v8430_v12 }
 0x12e   : > { %11718 = vst [vmem:[#allocation40_spill] sm:$0xff] %v8685_v41  ;;  %v1129_v56 = vpop.f32.mrf.mxu0  ;;  %v1380_v42 = vpop.f32.mrf.mxu1  ;;  %6660 = vmatmul.mubr.msk.f32.gmra.mxu0 %vm813_vm1, %v7683_v36  ;;  %6692 = vmatmul.mubr.msk.f32.gmra.mxu1 %vm813_vm1, %v8312_v52  ;;  %v3289_v27 = vmax.f32 %v1375_v51, 0.0 }
 0x12f   : > { %11719 = vst [vmem:[#allocation41_spill] sm:$0xff] %v8693_v45  ;;  %v8695_v4 = vpack.c.bf16 %v3303_v38, %v3287_v31  ;;  %v3304_v44 = vmax.f32 %v1126_v58, 0.0  ;;  %v1130_v62 = vadd.f32 %v1129_v56, %v8397_v59  ;;  %2071 = vmatprep.mubr.f32.mxu0 %v11445_v3  ;;  %2316 = vmatprep.mubr.f32.mxu1 %v11445_v3 }
 0x130   : > { %v1381_v47 = vadd.f32 %v1380_v42, %v8419_v7  ;;  %v1131_v46 = vpop.f32.mrf.mxu0  ;;  %v1382_v22 = vpop.f32.mrf.mxu1 }
 0x131   : > { %11720 = vst [vmem:[#allocation42_spill] sm:$0xff] %v8695_v4  ;;  %v1132_v52 = vadd.f32 %v1131_v46, %v8409_v0  ;;  %v1383_v40 = vadd.f32 %v1382_v22, %v8430_v12  ;;  %v8704_v31 = vpack.c.bf16 %v3304_v44, %v3288_v43  ;;  %v3319_v21 = vmax.f32 %v1130_v62, 0.0 }
 0x132   : > { %v3305_v58 = vmax.f32 %v1381_v47, 0.0  ;;  %v1135_v38 = vpop.f32.mrf.mxu0  ;;  %v1386_v56 = vpop.f32.mrf.mxu1  ;;  %6661 = vmatmul.mubr.msk.f32.gmra.mxu0 %vm813_vm1, %v7684_v48  ;;  %6693 = vmatmul.mubr.msk.f32.gmra.mxu1 %vm813_vm1, %v8321_v53  ;;  %v11722_v46 = vmov 0.0   ;;  %v3290_v43 = vmax.f32 %v1377_v50, 0.0 }
 0x133   : > { %11721 = vst [vmem:[#allocation43_spill] sm:$0xff] %v8704_v31  ;;  %v3306_v42 = vmax.f32 %v1383_v40, 0.0  ;;  %v1136_v3 = vadd.f32 %v1135_v38, %v8397_v59  ;;  %2077 = vmatprep.mubr.f32.mxu0 %v11722_v46  ;;  %2322 = vmatprep.mubr.f32.mxu1 %v11722_v46  ;;  %v3320_v22 = vmax.f32 %v1132_v52, 0.0  ;;  %v1387_v53 = vadd.f32 %v1386_v56, %v8419_v7  ;;  %v7685_v40 = vld [vmem:[%s7945_s12 + $0x38] sm:$0xff] }
 0x134   : > { %v8713_v51 = vpack.c.bf16 %v3305_v58, %v3289_v27  ;;  %v1137_v44 = vpop.f32.mrf.mxu0  ;;  %v1388_v47 = vpop.f32.mrf.mxu1 }
 0x135   : > { %v3335_v26 = vmax.f32 %v1136_v3, 0.0  ;;  %v1138_v41 = vadd.f32 %v1137_v44, %v8409_v0  ;;  %v8720_v38 = vpack.c.bf16 %v3306_v42, %v3290_v43  ;;  %v1389_v3 = vadd.f32 %v1388_v47, %v8430_v12 }
 0x136   : > { %11723 = vst [vmem:[#allocation44_spill] sm:$0xff] %v8713_v51  ;;  %v1141_v45 = vpop.f32.mrf.mxu0  ;;  %v1392_v62 = vpop.f32.mrf.mxu1  ;;  %6662 = vmatmul.mubr.msk.f32.gmra.mxu0 %vm813_vm1, %v7685_v40  ;;  %6694 = vmatmul.mubr.msk.f32.gmra.mxu1 %vm813_vm1, %v7683_v36  ;;  %v7686_v51 = vld [vmem:[%s7945_s12 + $0x40] sm:$0xff] }
 0x137   : > { %11724 = vst [vmem:[#allocation45_spill] sm:$0xff] %v8720_v38  ;;  %v8722_v50 = vpack.c.bf16 %v3335_v26, %v3319_v21  ;;  %v3336_v27 = vmax.f32 %v1138_v41, 0.0  ;;  %v1142_v52 = vadd.f32 %v1141_v45, %v8397_v59  ;;  %2083 = vmatprep.mubr.f32.mxu0 %v11722_v46  ;;  %2328 = vmatprep.mubr.f32.mxu1 %v11722_v46  ;;  %v3321_v21 = vmax.f32 %v1387_v53, 0.0 }
 0x138   : > { %v1393_v58 = vadd.f32 %v1392_v62, %v8419_v7  ;;  %v1143_v56 = vpop.f32.mrf.mxu0  ;;  %v1394_v44 = vpop.f32.mrf.mxu1 }
 0x139   : > { %11725 = vst [vmem:[#allocation46_spill] sm:$0xff] %v8722_v50  ;;  %v1144_v36 = vadd.f32 %v1143_v56, %v8409_v0  ;;  %v1395_v42 = vadd.f32 %v1394_v44, %v8430_v12  ;;  %v8731_v26 = vpack.c.bf16 %v3336_v27, %v3320_v22  ;;  %v3351_v47 = vmax.f32 %v1142_v52, 0.0 }
 0x13a   : > { %v3337_v41 = vmax.f32 %v1393_v58, 0.0  ;;  %v1147_v43 = vpop.f32.mrf.mxu0  ;;  %v1398_v45 = vpop.f32.mrf.mxu1  ;;  %6663 = vmatmul.mubr.msk.f32.gmra.mxu0 %vm813_vm1, %v7686_v51  ;;  %6695 = vmatmul.mubr.msk.f32.gmra.mxu1 %vm813_vm1, %v7684_v48  ;;  %v3322_v22 = vmax.f32 %v1389_v3, 0.0 }
 0x13b   : > { %11726 = vst [vmem:[#allocation47_spill] sm:$0xff] %v8731_v26  ;;  %v3338_v62 = vmax.f32 %v1395_v42, 0.0  ;;  %v1148_v54 = vadd.f32 %v1147_v43, %v8397_v59  ;;  %2089 = vmatprep.mubr.f32.mxu0 %v11722_v46  ;;  %2334 = vmatprep.mubr.f32.mxu1 %v11722_v46  ;;  %v3352_v56 = vmax.f32 %v1144_v36, 0.0  ;;  %v1399_v48 = vadd.f32 %v1398_v45, %v8419_v7  ;;  %v7687_v42 = vld [vmem:[%s7945_s12 + $0x48] sm:$0xff] }
 0x13c   : > { %v8739_v27 = vpack.c.bf16 %v3337_v41, %v3321_v21  ;;  %v1149_v53 = vpop.f32.mrf.mxu0  ;;  %v1400_v58 = vpop.f32.mrf.mxu1 }
 0x13d   : > { %v3367_v44 = vmax.f32 %v1148_v54, 0.0  ;;  %v1150_v38 = vadd.f32 %v1149_v53, %v8409_v0  ;;  %v8746_v43 = vpack.c.bf16 %v3338_v62, %v3322_v22  ;;  %v1401_v54 = vadd.f32 %v1400_v58, %v8430_v12 }
 0x13e   : > { %11727 = vst [vmem:[#allocation48_spill] sm:$0xff] %v8739_v27  ;;  %v1153_v30 = vpop.f32.mrf.mxu0  ;;  %v1404_v52 = vpop.f32.mrf.mxu1  ;;  %6664 = vmatmul.mubr.msk.f32.gmra.mxu0 %vm813_vm1, %v7687_v42  ;;  %6696 = vmatmul.mubr.msk.f32.gmra.mxu1 %vm813_vm1, %v7685_v40  ;;  %v3353_v22 = vmax.f32 %v1399_v48, 0.0  ;;  %v7688_v27 = vld [vmem:[%s7945_s12 + $0x50] sm:$0xff] }
 0x13f   : > { %11728 = vst [vmem:[#allocation49_spill] sm:$0xff] %v8746_v43  ;;  %v8748_v3 = vpack.c.bf16 %v3367_v44, %v3351_v47  ;;  %v3368_v21 = vmax.f32 %v1150_v38, 0.0  ;;  %v1154_v36 = vadd.f32 %v1153_v30, %v8397_v59  ;;  %2095 = vmatprep.mubr.f32.mxu0 %v11722_v46  ;;  %2340 = vmatprep.mubr.f32.mxu1 %v11722_v46 }
 0x140   : > { %v1405_v41 = vadd.f32 %v1404_v52, %v8419_v7  ;;  %v1155_v45 = vpop.f32.mrf.mxu0  ;;  %v1406_v53 = vpop.f32.mrf.mxu1 }
 0x141   : > { %11729 = vst [vmem:[#allocation50_spill] sm:$0xff] %v8748_v3  ;;  %v1156_v40 = vadd.f32 %v1155_v45, %v8409_v0  ;;  %v1407_v62 = vadd.f32 %v1406_v53, %v8430_v12  ;;  %v8757_v47 = vpack.c.bf16 %v3368_v21, %v3352_v56  ;;  %v3383_v58 = vmax.f32 %v1154_v36, 0.0 }
 0x142   : > { %v3369_v38 = vmax.f32 %v1405_v41, 0.0  ;;  %v1159_v44 = vpop.f32.mrf.mxu0  ;;  %v1410_v30 = vpop.f32.mrf.mxu1  ;;  %6665 = vmatmul.mubr.msk.f32.gmra.mxu0 %vm813_vm1, %v7688_v27  ;;  %6697 = vmatmul.mubr.msk.f32.gmra.mxu1 %vm813_vm1, %v7686_v51  ;;  %v3354_v56 = vmax.f32 %v1401_v54, 0.0 }
 0x143   : > { %11730 = vst [vmem:[#allocation51_spill] sm:$0xff] %v8757_v47  ;;  %v3370_v52 = vmax.f32 %v1407_v62, 0.0  ;;  %v1160_v4 = vadd.f32 %v1159_v44, %v8397_v59  ;;  %2101 = vmatprep.mubr.f32.mxu0 %v11722_v46  ;;  %2346 = vmatprep.mubr.f32.mxu1 %v11722_v46  ;;  %v3384_v45 = vmax.f32 %v1156_v40, 0.0  ;;  %v1411_v51 = vadd.f32 %v1410_v30, %v8419_v7  ;;  %v7689_v62 = vld [vmem:[%s7945_s12 + $0x58] sm:$0xff] }
 0x144   : > { %v8765_v21 = vpack.c.bf16 %v3369_v38, %v3353_v22  ;;  %v1161_v48 = vpop.f32.mrf.mxu0  ;;  %v1412_v41 = vpop.f32.mrf.mxu1 }
 0x145   : > { %v3399_v53 = vmax.f32 %v1160_v4, 0.0  ;;  %v1162_v43 = vadd.f32 %v1161_v48, %v8409_v0  ;;  %v8772_v44 = vpack.c.bf16 %v3370_v52, %v3354_v56  ;;  %v1413_v4 = vadd.f32 %v1412_v41, %v8430_v12 }
 0x146   : > { %11731 = vst [vmem:[#allocation52_spill] sm:$0xff] %v8765_v21  ;;  %v1165_v31 = vpop.f32.mrf.mxu0  ;;  %v1416_v36 = vpop.f32.mrf.mxu1  ;;  %6666 = vmatmul.mubr.msk.f32.gmra.mxu0 %vm813_vm1, %v7689_v62  ;;  %6698 = vmatmul.mubr.msk.f32.gmra.mxu1 %vm813_vm1, %v7687_v42  ;;  %v3385_v56 = vmax.f32 %v1411_v51, 0.0  ;;  %v7690_v21 = vld [vmem:[%s7945_s12 + $0x60] sm:$0xff] }
 0x147   : > { %11732 = vst [vmem:[#allocation53_spill] sm:$0xff] %v8772_v44  ;;  %v8774_v54 = vpack.c.bf16 %v3399_v53, %v3383_v58  ;;  %v3400_v22 = vmax.f32 %v1162_v43, 0.0  ;;  %v1166_v40 = vadd.f32 %v1165_v31, %v8397_v59  ;;  %2107 = vmatprep.mubr.f32.mxu0 %v11722_v46  ;;  %2352 = vmatprep.mubr.f32.mxu1 %v11722_v46 }
 0x148   : > { %v1417_v38 = vadd.f32 %v1416_v36, %v8419_v7  ;;  %v1167_v30 = vpop.f32.mrf.mxu0  ;;  %v1418_v48 = vpop.f32.mrf.mxu1 }
 0x149   : > { %11733 = vst [vmem:[#allocation54_spill] sm:$0xff] %v8774_v54  ;;  %v1168_v42 = vadd.f32 %v1167_v30, %v8409_v0  ;;  %v1419_v52 = vadd.f32 %v1418_v48, %v8430_v12  ;;  %v8783_v58 = vpack.c.bf16 %v3400_v22, %v3384_v45  ;;  %v3415_v41 = vmax.f32 %v1166_v40, 0.0  ;;  %v7693_v54 = vld [vmem:[%s7945_s12 + $0x78] sm:$0xff] }
 0x14a   : > { %v3401_v43 = vmax.f32 %v1417_v38, 0.0  ;;  %v1171_v53 = vpop.f32.mrf.mxu0  ;;  %v1422_v31 = vpop.f32.mrf.mxu1  ;;  %6667 = vmatmul.mubr.msk.f32.gmra.mxu0 %vm813_vm1, %v7690_v21  ;;  %6699 = vmatmul.mubr.msk.f32.gmra.mxu1 %vm813_vm1, %v7688_v27  ;;  %v3386_v45 = vmax.f32 %v1413_v4, 0.0 }
 0x14b   : > { %11734 = vst [vmem:[#allocation55_spill] sm:$0xff] %v8783_v58  ;;  %v3402_v36 = vmax.f32 %v1419_v52, 0.0  ;;  %v1172_v50 = vadd.f32 %v1171_v53, %v8397_v59  ;;  %2113 = vmatprep.mubr.f32.mxu0 %v11722_v46  ;;  %2358 = vmatprep.mubr.f32.mxu1 %v11722_v46  ;;  %v3416_v30 = vmax.f32 %v1168_v42, 0.0  ;;  %v1423_v27 = vadd.f32 %v1422_v31, %v8419_v7  ;;  %v7691_v52 = vld [vmem:[%s7945_s12 + $0x68] sm:$0xff]  ;;  %v7695_v58 = vld [vmem:[%s7945_s12 + $0x80] sm:$0xff] }
 0x14c   : > { %v8791_v22 = vpack.c.bf16 %v3401_v43, %v3385_v56  ;;  %v1173_v51 = vpop.f32.mrf.mxu0  ;;  %v1424_v38 = vpop.f32.mrf.mxu1 }
 0x14d   : > { %v3431_v48 = vmax.f32 %v1172_v50, 0.0  ;;  %v1174_v44 = vadd.f32 %v1173_v51, %v8409_v0  ;;  %v8798_v53 = vpack.c.bf16 %v3402_v36, %v3386_v45  ;;  %v1425_v50 = vadd.f32 %v1424_v38, %v8430_v12 }
 0x14e   : > { %11735 = vst [vmem:[#allocation56_spill] sm:$0xff] %v8791_v22  ;;  %v1177_v26 = vpop.f32.mrf.mxu0  ;;  %v1428_v40 = vpop.f32.mrf.mxu1  ;;  %6668 = vmatmul.mubr.msk.f32.gmra.mxu0 %vm813_vm1, %v7691_v52  ;;  %6700 = vmatmul.mubr.msk.f32.gmra.mxu1 %vm813_vm1, %v7689_v62  ;;  %v3417_v45 = vmax.f32 %v1423_v27, 0.0  ;;  %v7692_v22 = vld [vmem:[%s7945_s12 + $0x70] sm:$0xff] }
 0x14f   : > { %11736 = vst [vmem:[#allocation57_spill] sm:$0xff] %v8798_v53  ;;  %v8800_v4 = vpack.c.bf16 %v3431_v48, %v3415_v41  ;;  %v3432_v56 = vmax.f32 %v1174_v44, 0.0  ;;  %v1178_v42 = vadd.f32 %v1177_v26, %v8397_v59  ;;  %2119 = vmatprep.mubr.f32.mxu0 %v11722_v46  ;;  %2364 = vmatprep.mubr.f32.mxu1 %v11722_v46  ;;  %v3418_v27 = vmax.f32 %v1425_v50, 0.0 }
 0x150   : > { %v1429_v43 = vadd.f32 %v1428_v40, %v8419_v7  ;;  %v1179_v31 = vpop.f32.mrf.mxu0  ;;  %v1430_v51 = vpop.f32.mrf.mxu1  ;;  %v11740_v50 = vsub.s32 4, %v8376_v55 }
 0x151   : > { %11737 = vst [vmem:[#allocation58_spill] sm:$0xff] %v8800_v4  ;;  %v1180_v62 = vadd.f32 %v1179_v31, %v8409_v0  ;;  %v1431_v36 = vadd.f32 %v1430_v51, %v8430_v12  ;;  %v8809_v41 = vpack.c.bf16 %v3432_v56, %v3416_v30  ;;  %v3447_v40 = vmax.f32 %v1178_v42, 0.0 }
 0x152   : > { %v3433_v44 = vmax.f32 %v1429_v43, 0.0  ;;  %v1183_v48 = vpop.f32.mrf.mxu0  ;;  %v1434_v26 = vpop.f32.mrf.mxu1  ;;  %6669 = vmatmul.mubr.msk.f32.gmra.mxu0 %vm813_vm1, %v7692_v22  ;;  %6701 = vmatmul.mubr.msk.f32.gmra.mxu1 %vm813_vm1, %v7690_v21  ;;  %v1196_v30 = vadd.f32 %v8399_v61, %v8397_v59  ;;  %v8831_v61 = vld [vmem:[%s11429_s2] sm:$0xff] }
 0x153   : > { %11738 = vst [vmem:[#allocation59_spill] sm:$0xff] %v8809_v41  ;;  %v3434_v3 = vmax.f32 %v1431_v36, 0.0  ;;  %v1184_v31 = vadd.f32 %v1183_v48, %v8397_v59  ;;  %2125 = vmatprep.mubr.f32.mxu0 %v11722_v46  ;;  %2370 = vmatprep.mubr.f32.mxu1 %v11722_v46  ;;  %v3448_v38 = vmax.f32 %v1180_v62, 0.0  ;;  %v1435_v48 = vadd.f32 %v1434_v26, %v8419_v7 }
 0x154   : > { %v8820_v56 = vpack.c.bf16 %v3433_v44, %v3417_v45  ;;  %v1185_v43 = vpop.f32.mrf.mxu0  ;;  %v1436_v51 = vpop.f32.mrf.mxu1  ;;  %v8836_v62 = vrot.slane %v8831_v61, %v11740_v50  ;;  %v1198_v44 = vadd.f32 %v8413_v2, %v8409_v0 }
 0x155   : > { %v3463_v42 = vmax.f32 %v1184_v31, 0.0  ;;  %v1186_v36 = vadd.f32 %v1185_v43, %v8409_v0  ;;  %v8838_v45 = vpack.c.bf16 %v3434_v3, %v3418_v27  ;;  %v3495_v43 = vmax.f32 %v1196_v30, 0.0 }
 0x156   : > { %11739 = vst [vmem:[#allocation60_spill] sm:$0xff] %v8820_v56  ;;  %v1189_v53 = vpop.f32.mrf.mxu0  ;;  %v1440_v47 = vpop.f32.mrf.mxu1  ;;  %6670 = vmatmul.mubr.msk.f32.gmra.mxu0 %vm813_vm1, %v7693_v54  ;;  %6702 = vmatmul.mubr.msk.f32.gmra.mxu1 %vm813_vm1, %v7691_v52  ;;  %v1437_v21 = vadd.f32 %v1436_v51, %v8430_v12  ;;  %v11743_v56 = vsub.s32 5, %v8376_v55 }
 0x157   : > { %11741 = vst [vmem:[#allocation61_spill] sm:$0xff] %v8838_v45  ;;  %v8842_v26 = vpack.c.bf16 %v3463_v42, %v3447_v40  ;;  %v3464_v31 = vmax.f32 %v1186_v36, 0.0  ;;  %v1190_v52 = vadd.f32 %v1189_v53, %v8397_v59  ;;  %2131 = vmatprep.mubr.f32.mxu0 %v11722_v46  ;;  %2376 = vmatprep.mubr.f32.mxu1 %v11722_v46  ;;  %v3449_v36 = vmax.f32 %v1435_v48, 0.0 }
 0x158   : > { %v1441_v50 = vadd.f32 %v1440_v47, %v8419_v7  ;;  %v1191_v3 = vpop.f32.mrf.mxu0  ;;  %v1442_v27 = vpop.f32.mrf.mxu1  ;;  %v8852_v2 = vrot.slane %v8831_v61, %v11743_v56  ;;  %v11472_v47 = vsub.s32 6, %v8376_v55  ;;  %v3496_v56 = vmax.f32 %v1198_v44, 0.0 }
 0x159   : > { %11742 = vst [vmem:[#allocation62_spill] sm:$0xff] %v8842_v26  ;;  %v3479_v40 = vmax.f32 %v1190_v52, 0.0  ;;  %v1192_v59 = vadd.f32 %v1191_v3, %v8409_v0  ;;  %v1443_v53 = vadd.f32 %v1442_v27, %v8430_v12  ;;  %v8856_v42 = vpack.c.bf16 %v3464_v31, %v3448_v38 }
 0x15a   : > { %v3465_v30 = vmax.f32 %v1441_v50, 0.0  ;;  %v1446_v45 = vpop.f32.mrf.mxu1  ;;  %v1523_v51 = vpop.f32.mrf.mxu0  ;;  %6671 = vmatmul.mubr.msk.f32.gmra.mxu0 %vm813_vm1, %v7695_v58  ;;  %6703 = vmatmul.mubr.msk.f32.gmra.mxu1 %vm813_vm1, %v7692_v22  ;;  %v3450_v38 = vmax.f32 %v1437_v21, 0.0 }
 0x15b   : > { %11744 = vst [vmem:[#allocation63_spill] sm:$0xff] %v8856_v42  ;;  %v8862_v4 = vpack.c.bf16 %v3495_v43, %v3479_v40  ;;  %v3480_v0 = vmax.f32 %v1192_v59, 0.0  ;;  %v3466_v52 = vmax.f32 %v1443_v53, 0.0  ;;  %2137 = vmatprep.mubr.f32.mxu0 %v11722_v46  ;;  %2382 = vmatprep.mubr.f32.mxu1 %v11722_v46  ;;  %v1447_v31 = vadd.f32 %v1446_v45, %v8419_v7  ;;  %v7696_v53 = vld [vmem:[%s7945_s12 + $0x88] sm:$0xff] }
 0x15c   : > { %v8866_v48 = vpack.c.bf16 %v3465_v30, %v3449_v36  ;;  %v1524_v50 = vadd.f32 %v1523_v51, %v8836_v62  ;;  %v1448_v22 = vpop.f32.mrf.mxu1  ;;  %v1525_v3 = vpop.f32.mrf.mxu0 }
 0x15d   : > { %11745 = vst [vmem:[#allocation64_spill] sm:$0xff] %v8862_v4  ;;  %v1526_v44 = vadd.f32 %v1525_v3, %v8852_v2  ;;  %v8871_v43 = vpack.c.bf16 %v3496_v56, %v3480_v0  ;;  %v1449_v27 = vadd.f32 %v1448_v22, %v8430_v12  ;;  %v8878_v45 = vpack.c.bf16 %v3466_v52, %v3450_v38 }
 0x15e   : > { %11746 = vst [vmem:[#allocation65_spill] sm:$0xff] %v8866_v48  ;;  %v1452_v40 = vpop.f32.mrf.mxu1  ;;  %v1529_v59 = vpop.f32.mrf.mxu0  ;;  %6672 = vmatmul.mubr.msk.f32.gmra.mxu0 %vm813_vm1, %v7696_v53  ;;  %6704 = vmatmul.mubr.msk.f32.gmra.mxu1 %vm813_vm1, %v7693_v54  ;;  %v3003_v36 = vmax.f32 %v1524_v50, 0.0  ;;  %v3481_v56 = vmax.f32 %v1447_v31, 0.0  ;;  %v8887_v54 = vrot.slane %v8831_v61, %v11472_v47  ;;  %v7697_v48 = vld [vmem:[%s7945_s12 + $0x90] sm:$0xff]  ;;  %v11749_v31 = vsub.s32 7, %v8376_v55 }
 0x15f   : > { %11747 = vst [vmem:[#allocation66_spill] sm:$0xff] %v8871_v43  ;;  %11748 = vst [vmem:[#allocation67_spill] sm:$0xff] %v8878_v45  ;;  %v1453_v30 = vadd.f32 %v1452_v40, %v8419_v7  ;;  %v1530_v51 = vadd.f32 %v1529_v59, %v8836_v62  ;;  %2143 = vmatprep.mubr.f32.mxu0 %v11722_v46  ;;  %2388 = vmatprep.mubr.f32.mxu1 %v11722_v46  ;;  %v3004_v0 = vmax.f32 %v1526_v44, 0.0 }
 0x160   : > { %v1454_v22 = vpop.f32.mrf.mxu1  ;;  %v1531_v3 = vpop.f32.mrf.mxu0  ;;  %v3482_v40 = vmax.f32 %v1449_v27, 0.0  ;;  %v8897_v44 = vrot.slane %v8831_v61, %v11749_v31 }
 0x161   : > { %v3497_v52 = vmax.f32 %v1453_v30, 0.0  ;;  %v3019_v38 = vmax.f32 %v1530_v51, 0.0  ;;  %v1455_v7 = vadd.f32 %v1454_v22, %v8430_v12  ;;  %v1532_v50 = vadd.f32 %v1531_v3, %v8852_v2 }
 0x162   : > { %v1535_v59 = vpop.f32.mrf.mxu0  ;;  %v1780_v21 = vpop.f32.mrf.mxu1  ;;  %6673 = vmatmul.mubr.msk.f32.gmra.mxu0 %vm813_vm1, %v7697_v48  ;;  %6705 = vmatmul.mubr.msk.f32.gmra.mxu1 %vm813_vm1, %v7695_v58 }
 0x163   : > { %v8899_v47 = vpack.c.bf16 %v3497_v52, %v3481_v56  ;;  %v8901_v30 = vpack.c.bf16 %v3019_v38, %v3003_v36  ;;  %v3498_v12 = vmax.f32 %v1455_v7, 0.0  ;;  %v3020_v51 = vmax.f32 %v1532_v50, 0.0  ;;  %2149 = vmatprep.mubr.f32.mxu0 %v11722_v46  ;;  %2394 = vmatprep.mubr.f32.mxu1 %v11722_v46  ;;  %v7698_v7 = vld [vmem:[%s7945_s12 + $0x98] sm:$0xff] }
 0x164   : > { %v1536_v27 = vadd.f32 %v1535_v59, %v8836_v62  ;;  %v1781_v58 = vadd.f32 %v1780_v21, %v8887_v54  ;;  %v1537_v22 = vpop.f32.mrf.mxu0  ;;  %v1782_v3 = vpop.f32.mrf.mxu1 }
 0x165   : > { %11750 = vst [vmem:[#allocation68_spill] sm:$0xff] %v8899_v47  ;;  %11751 = vst [vmem:[#allocation69_spill] sm:$0xff] %v8901_v30  ;;  %v1538_v61 = vadd.f32 %v1537_v22, %v8852_v2  ;;  %v8908_v31 = vpack.c.bf16 %v3498_v12, %v3482_v40  ;;  %v8910_v56 = vpack.c.bf16 %v3020_v51, %v3004_v0 }
 0x166   : > { %v1783_v36 = vadd.f32 %v1782_v3, %v8897_v44  ;;  %v1541_v52 = vpop.f32.mrf.mxu0  ;;  %v1786_v38 = vpop.f32.mrf.mxu1  ;;  %6674 = vmatmul.mubr.msk.f32.gmra.mxu0 %vm813_vm1, %v7698_v7  ;;  %6706 = vmatmul.mubr.msk.f32.gmra.mxu1 %vm813_vm1, %v7696_v53  ;;  %v3035_v50 = vmax.f32 %v1536_v27, 0.0  ;;  %v3005_v0 = vmax.f32 %v1781_v58, 0.0 }
 0x167   : > { %11752 = vst [vmem:[#allocation70_spill] sm:$0xff] %v8908_v31  ;;  %11753 = vst [vmem:[#allocation71_spill] sm:$0xff] %v8910_v56  ;;  %v1542_v21 = vadd.f32 %v1541_v52, %v8836_v62  ;;  %v1787_v59 = vadd.f32 %v1786_v38, %v8887_v54  ;;  %2155 = vmatprep.mubr.f32.mxu0 %v11722_v46  ;;  %2400 = vmatprep.mubr.f32.mxu1 %v11722_v46  ;;  %v3036_v40 = vmax.f32 %v1538_v61, 0.0  ;;  %v7699_v52 = vld [vmem:[%s7945_s12 + $0xa0] sm:$0xff] }
 0x168   : > { %v1543_v12 = vpop.f32.mrf.mxu0  ;;  %v1788_v51 = vpop.f32.mrf.mxu1  ;;  %v3006_v27 = vmax.f32 %v1783_v36, 0.0 }
 0x169   : > { %v3051_v22 = vmax.f32 %v1542_v21, 0.0  ;;  %v3021_v3 = vmax.f32 %v1787_v59, 0.0  ;;  %v1544_v30 = vadd.f32 %v1543_v12, %v8852_v2  ;;  %v1789_v53 = vadd.f32 %v1788_v51, %v8897_v44 }
 0x16a   : > { %v1547_v56 = vpop.f32.mrf.mxu0  ;;  %v1792_v45 = vpop.f32.mrf.mxu1  ;;  %6675 = vmatmul.mubr.msk.f32.gmra.mxu0 %vm813_vm1, %v7699_v52  ;;  %6707 = vmatmul.mubr.msk.f32.gmra.mxu1 %vm813_vm1, %v7697_v48 }
 0x16b   : > { %v8925_v38 = vpack.c.bf16 %v3051_v22, %v3035_v50  ;;  %v8927_v58 = vpack.c.bf16 %v3021_v3, %v3005_v0  ;;  %v3052_v61 = vmax.f32 %v1544_v30, 0.0  ;;  %v3022_v21 = vmax.f32 %v1789_v53, 0.0  ;;  %2161 = vmatprep.mubr.f32.mxu0 %v11722_v46  ;;  %2406 = vmatprep.mubr.f32.mxu1 %v11722_v46  ;;  %v7700_v3 = vld [vmem:[%s7945_s12 + $0xa8] sm:$0xff] }
 0x16c   : > { %v1548_v36 = vadd.f32 %v1547_v56, %v8836_v62  ;;  %v1793_v59 = vadd.f32 %v1792_v45, %v8887_v54  ;;  %v1549_v12 = vpop.f32.mrf.mxu0  ;;  %v1794_v51 = vpop.f32.mrf.mxu1 }
 0x16d   : > { %11754 = vst [vmem:[#allocation72_spill] sm:$0xff] %v8925_v38  ;;  %11755 = vst [vmem:[#allocation73_spill] sm:$0xff] %v8927_v58  ;;  %v1550_v41 = vadd.f32 %v1549_v12, %v8852_v2  ;;  %v8934_v48 = vpack.c.bf16 %v3052_v61, %v3036_v40  ;;  %v8936_v50 = vpack.c.bf16 %v3022_v21, %v3006_v27 }
 0x16e   : > { %v1795_v0 = vadd.f32 %v1794_v51, %v8897_v44  ;;  %v1553_v30 = vpop.f32.mrf.mxu0  ;;  %v1798_v22 = vpop.f32.mrf.mxu1  ;;  %6676 = vmatmul.mubr.msk.f32.gmra.mxu0 %vm813_vm1, %v7700_v3  ;;  %6708 = vmatmul.mubr.msk.f32.gmra.mxu1 %vm813_vm1, %v7698_v7  ;;  %v3067_v56 = vmax.f32 %v1548_v36, 0.0  ;;  %v3037_v40 = vmax.f32 %v1793_v59, 0.0 }
 0x16f   : > { %11756 = vst [vmem:[#allocation74_spill] sm:$0xff] %v8934_v48  ;;  %11757 = vst [vmem:[#allocation75_spill] sm:$0xff] %v8936_v50  ;;  %v1554_v45 = vadd.f32 %v1553_v30, %v8836_v62  ;;  %v1799_v53 = vadd.f32 %v1798_v22, %v8887_v54  ;;  %2167 = vmatprep.mubr.f32.mxu0 %v11722_v46  ;;  %2412 = vmatprep.mubr.f32.mxu1 %v11722_v46  ;;  %v3068_v27 = vmax.f32 %v1550_v41, 0.0  ;;  %v7701_v30 = vld [vmem:[%s7945_s12 + $0xb0] sm:$0xff] }
 0x170   : > { %v1555_v61 = vpop.f32.mrf.mxu0  ;;  %v1800_v21 = vpop.f32.mrf.mxu1  ;;  %v3038_v36 = vmax.f32 %v1795_v0, 0.0 }
 0x171   : > { %v3083_v12 = vmax.f32 %v1554_v45, 0.0  ;;  %v3053_v51 = vmax.f32 %v1799_v53, 0.0  ;;  %v1556_v58 = vadd.f32 %v1555_v61, %v8852_v2  ;;  %v1801_v7 = vadd.f32 %v1800_v21, %v8897_v44 }
 0x172   : > { %v1559_v50 = vpop.f32.mrf.mxu0  ;;  %v1804_v38 = vpop.f32.mrf.mxu1  ;;  %6677 = vmatmul.mubr.msk.f32.gmra.mxu0 %vm813_vm1, %v7701_v30  ;;  %6709 = vmatmul.mubr.msk.f32.gmra.mxu1 %vm813_vm1, %v7699_v52 }
 0x173   : > { %v8951_v22 = vpack.c.bf16 %v3083_v12, %v3067_v56  ;;  %v8953_v41 = vpack.c.bf16 %v3053_v51, %v3037_v40  ;;  %v3084_v59 = vmax.f32 %v1556_v58, 0.0  ;;  %v3054_v45 = vmax.f32 %v1801_v7, 0.0  ;;  %2173 = vmatprep.mubr.f32.mxu0 %v11722_v46  ;;  %2418 = vmatprep.mubr.f32.mxu1 %v11722_v46  ;;  %v7702_v51 = vld [vmem:[%s7945_s12 + $0xb8] sm:$0xff] }
 0x174   : > { %v1560_v0 = vadd.f32 %v1559_v50, %v8836_v62  ;;  %v1805_v53 = vadd.f32 %v1804_v38, %v8887_v54  ;;  %v1561_v61 = vpop.f32.mrf.mxu0  ;;  %v1806_v21 = vpop.f32.mrf.mxu1 }
 0x175   : > { %11758 = vst [vmem:[#allocation76_spill] sm:$0xff] %v8951_v22  ;;  %11759 = vst [vmem:[#allocation77_spill] sm:$0xff] %v8953_v41  ;;  %v1562_v48 = vadd.f32 %v1561_v61, %v8852_v2  ;;  %v8960_v52 = vpack.c.bf16 %v3084_v59, %v3068_v27  ;;  %v8962_v56 = vpack.c.bf16 %v3054_v45, %v3038_v36 }
 0x176   : > { %v1807_v40 = vadd.f32 %v1806_v21, %v8897_v44  ;;  %v1565_v58 = vpop.f32.mrf.mxu0  ;;  %v1810_v12 = vpop.f32.mrf.mxu1  ;;  %6678 = vmatmul.mubr.msk.f32.gmra.mxu0 %vm813_vm1, %v7702_v51  ;;  %6710 = vmatmul.mubr.msk.f32.gmra.mxu1 %vm813_vm1, %v7700_v3  ;;  %v3099_v50 = vmax.f32 %v1560_v0, 0.0  ;;  %v3069_v27 = vmax.f32 %v1805_v53, 0.0 }
 0x177   : > { %11760 = vst [vmem:[#allocation78_spill] sm:$0xff] %v8960_v52  ;;  %11761 = vst [vmem:[#allocation79_spill] sm:$0xff] %v8962_v56  ;;  %v1566_v38 = vadd.f32 %v1565_v58, %v8836_v62  ;;  %v1811_v7 = vadd.f32 %v1810_v12, %v8887_v54  ;;  %2179 = vmatprep.mubr.f32.mxu0 %v11722_v46  ;;  %2424 = vmatprep.mubr.f32.mxu1 %v11722_v46  ;;  %v3100_v36 = vmax.f32 %v1562_v48, 0.0  ;;  %v7703_v58 = vld [vmem:[%s7945_s12 + $0xc0] sm:$0xff] }
 0x178   : > { %v1567_v59 = vpop.f32.mrf.mxu0  ;;  %v1812_v45 = vpop.f32.mrf.mxu1  ;;  %v3070_v0 = vmax.f32 %v1807_v40, 0.0 }
 0x179   : > { %v3115_v61 = vmax.f32 %v1566_v38, 0.0  ;;  %v3085_v21 = vmax.f32 %v1811_v7, 0.0  ;;  %v1568_v41 = vadd.f32 %v1567_v59, %v8852_v2  ;;  %v1813_v3 = vadd.f32 %v1812_v45, %v8897_v44 }
 0x17a   : > { %v1571_v56 = vpop.f32.mrf.mxu0  ;;  %v1816_v22 = vpop.f32.mrf.mxu1  ;;  %6679 = vmatmul.mubr.msk.f32.gmra.mxu0 %vm813_vm1, %v7703_v58  ;;  %6711 = vmatmul.mubr.msk.f32.gmra.mxu1 %vm813_vm1, %v7701_v30 }
 0x17b   : > { %v8977_v12 = vpack.c.bf16 %v3115_v61, %v3099_v50  ;;  %v8979_v48 = vpack.c.bf16 %v3085_v21, %v3069_v27  ;;  %v3116_v53 = vmax.f32 %v1568_v41, 0.0  ;;  %v3086_v38 = vmax.f32 %v1813_v3, 0.0  ;;  %2185 = vmatprep.mubr.f32.mxu0 %v11722_v46  ;;  %2430 = vmatprep.mubr.f32.mxu1 %v11722_v46  ;;  %v7704_v21 = vld [vmem:[%s7945_s12 + $0xc8] sm:$0xff] }
 0x17c   : > { %v1572_v40 = vadd.f32 %v1571_v56, %v8836_v62  ;;  %v1817_v7 = vadd.f32 %v1816_v22, %v8887_v54  ;;  %v1573_v59 = vpop.f32.mrf.mxu0  ;;  %v1818_v45 = vpop.f32.mrf.mxu1 }
 0x17d   : > { %11762 = vst [vmem:[#allocation80_spill] sm:$0xff] %v8977_v12  ;;  %11763 = vst [vmem:[#allocation81_spill] sm:$0xff] %v8979_v48  ;;  %v1574_v52 = vadd.f32 %v1573_v59, %v8852_v2  ;;  %v8986_v30 = vpack.c.bf16 %v3116_v53, %v3100_v36  ;;  %v8988_v50 = vpack.c.bf16 %v3086_v38, %v3070_v0 }
 0x17e   : > { %v1819_v27 = vadd.f32 %v1818_v45, %v8897_v44  ;;  %v1577_v41 = vpop.f32.mrf.mxu0  ;;  %v1822_v61 = vpop.f32.mrf.mxu1  ;;  %6680 = vmatmul.mubr.msk.f32.gmra.mxu0 %vm813_vm1, %v7704_v21  ;;  %6712 = vmatmul.mubr.msk.f32.gmra.mxu1 %vm813_vm1, %v7702_v51  ;;  %v3131_v56 = vmax.f32 %v1572_v40, 0.0  ;;  %v3101_v36 = vmax.f32 %v1817_v7, 0.0 }
 0x17f   : > { %11764 = vst [vmem:[#allocation82_spill] sm:$0xff] %v8986_v30  ;;  %11765 = vst [vmem:[#allocation83_spill] sm:$0xff] %v8988_v50  ;;  %v1578_v22 = vadd.f32 %v1577_v41, %v8836_v62  ;;  %v1823_v3 = vadd.f32 %v1822_v61, %v8887_v54  ;;  %2191 = vmatprep.mubr.f32.mxu0 %v11722_v46  ;;  %2436 = vmatprep.mubr.f32.mxu1 %v11722_v46  ;;  %v3132_v0 = vmax.f32 %v1574_v52, 0.0  ;;  %v7705_v41 = vld [vmem:[%s7945_s12 + $0xd0] sm:$0xff] }
 0x180   : > { %v1579_v53 = vpop.f32.mrf.mxu0  ;;  %v1824_v38 = vpop.f32.mrf.mxu1  ;;  %v3102_v40 = vmax.f32 %v1819_v27, 0.0 }
 0x181   : > { %v3147_v59 = vmax.f32 %v1578_v22, 0.0  ;;  %v3117_v45 = vmax.f32 %v1823_v3, 0.0  ;;  %v1580_v48 = vadd.f32 %v1579_v53, %v8852_v2  ;;  %v1825_v51 = vadd.f32 %v1824_v38, %v8897_v44 }
 0x182   : > { %v1583_v50 = vpop.f32.mrf.mxu0  ;;  %v1828_v12 = vpop.f32.mrf.mxu1  ;;  %6681 = vmatmul.mubr.msk.f32.gmra.mxu0 %vm813_vm1, %v7705_v41  ;;  %6713 = vmatmul.mubr.msk.f32.gmra.mxu1 %vm813_vm1, %v7703_v58 }
 0x183   : > { %v9003_v61 = vpack.c.bf16 %v3147_v59, %v3131_v56  ;;  %v9005_v52 = vpack.c.bf16 %v3117_v45, %v3101_v36  ;;  %v3148_v7 = vmax.f32 %v1580_v48, 0.0  ;;  %v3118_v22 = vmax.f32 %v1825_v51, 0.0  ;;  %2197 = vmatprep.mubr.f32.mxu0 %v11722_v46  ;;  %2442 = vmatprep.mubr.f32.mxu1 %v11722_v46  ;;  %v7706_v45 = vld [vmem:[%s7945_s12 + $0xd8] sm:$0xff] }
 0x184   : > { %v1584_v27 = vadd.f32 %v1583_v50, %v8836_v62  ;;  %v1829_v3 = vadd.f32 %v1828_v12, %v8887_v54  ;;  %v1585_v53 = vpop.f32.mrf.mxu0  ;;  %v1830_v38 = vpop.f32.mrf.mxu1 }
 0x185   : > { %11766 = vst [vmem:[#allocation84_spill] sm:$0xff] %v9003_v61  ;;  %11767 = vst [vmem:[#allocation85_spill] sm:$0xff] %v9005_v52  ;;  %v1586_v30 = vadd.f32 %v1585_v53, %v8852_v2  ;;  %v9012_v58 = vpack.c.bf16 %v3148_v7, %v3132_v0  ;;  %v9014_v56 = vpack.c.bf16 %v3118_v22, %v3102_v40 }
 0x186   : > { %v1831_v36 = vadd.f32 %v1830_v38, %v8897_v44  ;;  %v1589_v48 = vpop.f32.mrf.mxu0  ;;  %v1834_v59 = vpop.f32.mrf.mxu1  ;;  %6682 = vmatmul.mubr.msk.f32.gmra.mxu0 %vm813_vm1, %v7706_v45  ;;  %6714 = vmatmul.mubr.msk.f32.gmra.mxu1 %vm813_vm1, %v7704_v21  ;;  %v3163_v50 = vmax.f32 %v1584_v27, 0.0  ;;  %v3133_v0 = vmax.f32 %v1829_v3, 0.0 }
 0x187   : > { %11768 = vst [vmem:[#allocation86_spill] sm:$0xff] %v9012_v58  ;;  %11769 = vst [vmem:[#allocation87_spill] sm:$0xff] %v9014_v56  ;;  %v1590_v12 = vadd.f32 %v1589_v48, %v8836_v62  ;;  %v1835_v51 = vadd.f32 %v1834_v59, %v8887_v54  ;;  %2203 = vmatprep.mubr.f32.mxu0 %v11722_v46  ;;  %2448 = vmatprep.mubr.f32.mxu1 %v11722_v46  ;;  %v3164_v40 = vmax.f32 %v1586_v30, 0.0  ;;  %v7707_v48 = vld [vmem:[%s7945_s12 + $0xe0] sm:$0xff] }
 0x188   : > { %v1591_v7 = vpop.f32.mrf.mxu0  ;;  %v1836_v22 = vpop.f32.mrf.mxu1  ;;  %v3134_v27 = vmax.f32 %v1831_v36, 0.0 }
 0x189   : > { %v3179_v53 = vmax.f32 %v1590_v12, 0.0  ;;  %v3149_v38 = vmax.f32 %v1835_v51, 0.0  ;;  %v1592_v52 = vadd.f32 %v1591_v7, %v8852_v2  ;;  %v1837_v21 = vadd.f32 %v1836_v22, %v8897_v44 }
 0x18a   : > { %v1595_v56 = vpop.f32.mrf.mxu0  ;;  %v1840_v61 = vpop.f32.mrf.mxu1  ;;  %6683 = vmatmul.mubr.msk.f32.gmra.mxu0 %vm813_vm1, %v7707_v48  ;;  %6715 = vmatmul.mubr.msk.f32.gmra.mxu1 %vm813_vm1, %v7705_v41 }
 0x18b   : > { %v9029_v59 = vpack.c.bf16 %v3179_v53, %v3163_v50  ;;  %v9031_v30 = vpack.c.bf16 %v3149_v38, %v3133_v0  ;;  %v3180_v3 = vmax.f32 %v1592_v52, 0.0  ;;  %v3150_v12 = vmax.f32 %v1837_v21, 0.0  ;;  %2209 = vmatprep.mubr.f32.mxu0 %v11722_v46  ;;  %2454 = vmatprep.mubr.f32.mxu1 %v11722_v46  ;;  %v7708_v38 = vld [vmem:[%s7945_s12 + $0xe8] sm:$0xff] }
 0x18c   : > { %v1596_v36 = vadd.f32 %v1595_v56, %v8836_v62  ;;  %v1841_v51 = vadd.f32 %v1840_v61, %v8887_v54  ;;  %v1597_v7 = vpop.f32.mrf.mxu0  ;;  %v1842_v22 = vpop.f32.mrf.mxu1 }
 0x18d   : > { %11770 = vst [vmem:[#allocation88_spill] sm:$0xff] %v9029_v59  ;;  %11771 = vst [vmem:[#allocation89_spill] sm:$0xff] %v9031_v30  ;;  %v1598_v58 = vadd.f32 %v1597_v7, %v8852_v2  ;;  %v9038_v41 = vpack.c.bf16 %v3180_v3, %v3164_v40  ;;  %v9040_v50 = vpack.c.bf16 %v3150_v12, %v3134_v27 }
 0x18e   : > { %v1843_v0 = vadd.f32 %v1842_v22, %v8897_v44  ;;  %v1601_v52 = vpop.f32.mrf.mxu0  ;;  %v1846_v53 = vpop.f32.mrf.mxu1  ;;  %6684 = vmatmul.mubr.msk.f32.gmra.mxu0 %vm813_vm1, %v7708_v38  ;;  %6716 = vmatmul.mubr.msk.f32.gmra.mxu1 %vm813_vm1, %v7706_v45  ;;  %v3195_v56 = vmax.f32 %v1596_v36, 0.0  ;;  %v3165_v40 = vmax.f32 %v1841_v51, 0.0 }
 0x18f   : > { %11772 = vst [vmem:[#allocation90_spill] sm:$0xff] %v9038_v41  ;;  %11773 = vst [vmem:[#allocation91_spill] sm:$0xff] %v9040_v50  ;;  %v1602_v61 = vadd.f32 %v1601_v52, %v8836_v62  ;;  %v1847_v21 = vadd.f32 %v1846_v53, %v8887_v54  ;;  %2215 = vmatprep.mubr.f32.mxu0 %v11722_v46  ;;  %2460 = vmatprep.mubr.f32.mxu1 %v11722_v46  ;;  %v3196_v27 = vmax.f32 %v1598_v58, 0.0  ;;  %v7709_v52 = vld [vmem:[%s7945_s12 + $0xf0] sm:$0xff] }
 0x190   : > { %v1603_v3 = vpop.f32.mrf.mxu0  ;;  %v1848_v12 = vpop.f32.mrf.mxu1  ;;  %v3166_v36 = vmax.f32 %v1843_v0, 0.0 }
 0x191   : > { %v3211_v7 = vmax.f32 %v1602_v61, 0.0  ;;  %v3181_v22 = vmax.f32 %v1847_v21, 0.0  ;;  %v1604_v30 = vadd.f32 %v1603_v3, %v8852_v2  ;;  %v1849_v45 = vadd.f32 %v1848_v12, %v8897_v44 }
 0x192   : > { %v1607_v50 = vpop.f32.mrf.mxu0  ;;  %v1852_v59 = vpop.f32.mrf.mxu1  ;;  %6685 = vmatmul.mubr.msk.f32.gmra.mxu0 %vm813_vm1, %v7709_v52  ;;  %6717 = vmatmul.mubr.msk.f32.gmra.mxu1 %vm813_vm1, %v7707_v48 }
 0x193   : > { %v9055_v53 = vpack.c.bf16 %v3211_v7, %v3195_v56  ;;  %v9057_v58 = vpack.c.bf16 %v3181_v22, %v3165_v40  ;;  %v3212_v51 = vmax.f32 %v1604_v30, 0.0  ;;  %v3182_v61 = vmax.f32 %v1849_v45, 0.0  ;;  %2221 = vmatprep.mubr.f32.mxu0 %v11722_v46  ;;  %2466 = vmatprep.mubr.f32.mxu1 %v11722_v46  ;;  %v7710_v22 = vld [vmem:[%s7945_s12 + $0xf8] sm:$0xff] }
 0x194   : > { %v1608_v0 = vadd.f32 %v1607_v50, %v8836_v62  ;;  %v1853_v21 = vadd.f32 %v1852_v59, %v8887_v54  ;;  %v1609_v3 = vpop.f32.mrf.mxu0  ;;  %v1854_v12 = vpop.f32.mrf.mxu1 }
 0x195   : > { %11774 = vst [vmem:[#allocation92_spill] sm:$0xff] %v9055_v53  ;;  %11775 = vst [vmem:[#allocation93_spill] sm:$0xff] %v9057_v58  ;;  %v1610_v41 = vadd.f32 %v1609_v3, %v8852_v2  ;;  %v9064_v48 = vpack.c.bf16 %v3212_v51, %v3196_v27  ;;  %v9066_v56 = vpack.c.bf16 %v3182_v61, %v3166_v36 }
 0x196   : > { %v1855_v40 = vadd.f32 %v1854_v12, %v8897_v44  ;;  %v1613_v30 = vpop.f32.mrf.mxu0  ;;  %v1858_v7 = vpop.f32.mrf.mxu1  ;;  %6686 = vmatmul.mubr.msk.f32.gmra.mxu0 %vm813_vm1, %v7710_v22  ;;  %6718 = vmatmul.mubr.msk.f32.gmra.mxu1 %vm813_vm1, %v7708_v38  ;;  %v3227_v50 = vmax.f32 %v1608_v0, 0.0  ;;  %v3197_v27 = vmax.f32 %v1853_v21, 0.0 }
 0x197   : > { %11776 = vst [vmem:[#allocation94_spill] sm:$0xff] %v9064_v48  ;;  %11777 = vst [vmem:[#allocation95_spill] sm:$0xff] %v9066_v56  ;;  %v1614_v59 = vadd.f32 %v1613_v30, %v8836_v62  ;;  %v1859_v45 = vadd.f32 %v1858_v7, %v8887_v54  ;;  %2472 = vmatprep.mubr.f32.mxu1 %v11722_v46  ;;  %2549 = vmatprep.mubr.f32.mxu0 %v11722_v46  ;;  %v3228_v36 = vmax.f32 %v1610_v41, 0.0  ;;  %v7711_v7 = vld [vmem:[%s7945_s12] sm:$0xff] }
 0x198   : > { %v1615_v51 = vpop.f32.mrf.mxu0  ;;  %v1860_v61 = vpop.f32.mrf.mxu1  ;;  %v3198_v0 = vmax.f32 %v1855_v40, 0.0 }
 0x199   : > { %v3243_v3 = vmax.f32 %v1614_v59, 0.0  ;;  %v3213_v12 = vmax.f32 %v1859_v45, 0.0  ;;  %v1616_v58 = vadd.f32 %v1615_v51, %v8852_v2  ;;  %v1861_v38 = vadd.f32 %v1860_v61, %v8897_v44 }
 0x19a   : > { %v1619_v56 = vpop.f32.mrf.mxu0  ;;  %v1864_v30 = vpop.f32.mrf.mxu1  ;;  %6719 = vmatmul.mubr.msk.f32.gmra.mxu1 %vm813_vm1, %v7709_v52  ;;  %6723 = vmatmul.mubr.msk.f32.vlgmr.msra.gmra.mxu0 %vm813_vm1, %v7711_v7 }
 0x19b   : > { %v9081_v53 = vpack.c.bf16 %v3243_v3, %v3227_v50  ;;  %v9083_v21 = vpack.c.bf16 %v3213_v12, %v3197_v27  ;;  %v3244_v41 = vmax.f32 %v1616_v58, 0.0  ;;  %v3214_v48 = vmax.f32 %v1861_v38, 0.0  ;;  %3829 = vmatpush1.bf16.xpose.msra.mxu0 %v8635_v34  ;;  %2478 = vmatprep.mubr.f32.mxu1 %v11722_v46 }
 0x19c   : > { %v1620_v40 = vadd.f32 %v1619_v56, %v8836_v62  ;;  %v1865_v59 = vadd.f32 %v1864_v30, %v8887_v54  ;;  %3830 = vmatprep.subr.bf16.mxu0 %v8615_v17  ;;  %v1621_v52 = vpop.f32.mrf.mxu0  ;;  %v1866_v45 = vpop.f32.mrf.mxu1  ;;  %2555 = vmatprep.mubr.f32.mxu0 %v11722_v46  ;;  %v7712_v56 = vld [vmem:[%s7945_s12 + $0x8] sm:$0xff] }
 0x19d   : > { %11778 = vst [vmem:[#allocation96_spill] sm:$0xff] %v9081_v53  ;;  %11779 = vst [vmem:[#allocation97_spill] sm:$0xff] %v9083_v21  ;;  %v9091_v50 = vpack.c.bf16 %v3244_v41, %v3228_v36  ;;  %v9093_v27 = vpack.c.bf16 %v3214_v48, %v3198_v0  ;;  %v1622_v58 = vadd.f32 %v1621_v52, %v8852_v2 }
 0x19e   : > { %v1867_v51 = vadd.f32 %v1866_v45, %v8897_v44  ;;  %v1625_v61 = vpop.f32.mrf.mxu0  ;;  %v1870_v3 = vpop.f32.mrf.mxu1  ;;  %6720 = vmatmul.mubr.msk.f32.gmra.mxu1 %vm813_vm1, %v7710_v22  ;;  %6724 = vmatmul.mubr.msk.f32.gmra.mxu0 %vm813_vm1, %v7712_v56  ;;  %v3259_v12 = vmax.f32 %v1620_v40, 0.0  ;;  %v3229_v48 = vmax.f32 %v1865_v59, 0.0 }
 0x19f   : > { %11780 = vst [vmem:[#allocation98_spill] sm:$0xff] %v9091_v50  ;;  %11781 = vst [vmem:[#allocation99_spill] sm:$0xff] %v9093_v27  ;;  %v1626_v38 = vadd.f32 %v1625_v61, %v8836_v62  ;;  %v1871_v36 = vadd.f32 %v1870_v3, %v8887_v54  ;;  %2561 = vmatprep.mubr.f32.mxu0 %v11722_v46  ;;  %2806 = vmatprep.mubr.f32.mxu1 %v11722_v46  ;;  %v3260_v17 = vmax.f32 %v1622_v58, 0.0  ;;  %v7713_v61 = vld [vmem:[%s7945_s12 + $0x10] sm:$0xff] }
 0x1a0   : > { %v1627_v0 = vpop.f32.mrf.mxu0  ;;  %v1872_v30 = vpop.f32.mrf.mxu1  ;;  %v3230_v40 = vmax.f32 %v1867_v51, 0.0 }
 0x1a1   : > { %v3275_v41 = vmax.f32 %v1626_v38, 0.0  ;;  %v3245_v52 = vmax.f32 %v1871_v36, 0.0  ;;  %v1628_v22 = vadd.f32 %v1627_v0, %v8852_v2  ;;  %v1873_v45 = vadd.f32 %v1872_v30, %v8897_v44 }
 0x1a2   : > { %v1631_v34 = vpop.f32.mrf.mxu0  ;;  %v1876_v21 = vpop.f32.mrf.mxu1  ;;  %6725 = vmatmul.mubr.msk.f32.gmra.mxu0 %vm813_vm1, %v7713_v61  ;;  %6757 = vmatmul.mubr.msk.f32.vlgmr.msra.gmra.mxu1 %vm813_vm1, %v7711_v7 }
 0x1a3   : > { %v9109_v3 = vpack.c.bf16 %v3275_v41, %v3259_v12  ;;  %v9111_v59 = vpack.c.bf16 %v3245_v52, %v3229_v48  ;;  %v3276_v27 = vmax.f32 %v1628_v22, 0.0  ;;  %v3246_v38 = vmax.f32 %v1873_v45, 0.0  ;;  %3831 = vmatpush1.bf16.xpose.msra.mxu0 %v8606_v39  ;;  %3870 = vmatpush1.bf16.xpose.msra.mxu1 %v8654_v49  ;;  %v7714_v41 = vld [vmem:[%s7945_s12 + $0x18] sm:$0xff]  ;;  %v7727_v39 = vld [vmem:[%s7945_s12 + $0x80] sm:$0xff] }
 0x1a4   : > { %v1632_v58 = vadd.f32 %v1631_v34, %v8836_v62  ;;  %v1877_v51 = vadd.f32 %v1876_v21, %v8887_v54  ;;  %3832 = vmatprep.subr.bf16.mxu0 %v8587_v6  ;;  %3871 = vmatprep.subr.bf16.mxu1 %v8633_v8  ;;  %v1633_v7 = vpop.f32.mrf.mxu0  ;;  %v1878_v12 = vpop.f32.mrf.mxu1  ;;  %v7715_v6 = vld [vmem:[%s7945_s12 + $0x20] sm:$0xff] }
 0x1a5   : > { %11782 = vst [vmem:[#allocation100_spill] sm:$0xff] %v9109_v3  ;;  %11783 = vst [vmem:[#allocation101_spill] sm:$0xff] %v9111_v59  ;;  %v1634_v36 = vadd.f32 %v1633_v7, %v8852_v2  ;;  %2567 = vmatprep.mubr.f32.mxu0 %v11722_v46  ;;  %2812 = vmatprep.mubr.f32.mxu1 %v11722_v46  ;;  %v9122_v48 = vpack.c.bf16 %v3246_v38, %v3230_v40 }
 0x1a6   : > { %v1637_v0 = vpop.f32.mrf.mxu0  ;;  %v1882_v30 = vpop.f32.mrf.mxu1  ;;  %6726 = vmatmul.mubr.msk.f32.gmra.mxu0 %vm813_vm1, %v7714_v41  ;;  %6758 = vmatmul.mubr.msk.f32.gmra.mxu1 %vm813_vm1, %v7712_v56  ;;  %v9127_v34 = vpack.c.bf16 %v3276_v27, %v3260_v17  ;;  %v3291_v21 = vmax.f32 %v1632_v58, 0.0  ;;  %v3261_v45 = vmax.f32 %v1877_v51, 0.0  ;;  %v1879_v38 = vadd.f32 %v1878_v12, %v8897_v44 }
 0x1a7   : > { %11784 = vst [vmem:[#allocation102_spill] sm:$0xff] %v9122_v48  ;;  %v1638_v52 = vadd.f32 %v1637_v0, %v8836_v62  ;;  %v1883_v22 = vadd.f32 %v1882_v30, %v8887_v54  ;;  %2573 = vmatprep.mubr.f32.mxu0 %v11722_v46  ;;  %2818 = vmatprep.mubr.f32.mxu1 %v11722_v46  ;;  %v3292_v40 = vmax.f32 %v1634_v36, 0.0 }
 0x1a8   : > { %11785 = vst [vmem:[#allocation103_spill] sm:$0xff] %v9127_v34  ;;  %v1639_v7 = vpop.f32.mrf.mxu0  ;;  %v1884_v8 = vpop.f32.mrf.mxu1 }
 0x1a9   : > { %v3307_v49 = vmax.f32 %v1638_v52, 0.0  ;;  %v3277_v56 = vmax.f32 %v1883_v22, 0.0  ;;  %v1640_v17 = vadd.f32 %v1639_v7, %v8852_v2  ;;  %v1885_v27 = vadd.f32 %v1884_v8, %v8897_v44 }
 0x1aa   : > { %v1643_v58 = vpop.f32.mrf.mxu0  ;;  %v1888_v0 = vpop.f32.mrf.mxu1  ;;  %6727 = vmatmul.mubr.msk.f32.gmra.mxu0 %vm813_vm1, %v7715_v6  ;;  %6759 = vmatmul.mubr.msk.f32.gmra.mxu1 %vm813_vm1, %v7713_v61  ;;  %v3262_v52 = vmax.f32 %v1879_v38, 0.0 }
 0x1ab   : > { %v9139_v30 = vpack.c.bf16 %v3307_v49, %v3291_v21  ;;  %v9141_v51 = vpack.c.bf16 %v3277_v56, %v3261_v45  ;;  %v3308_v12 = vmax.f32 %v1640_v17, 0.0  ;;  %v3278_v36 = vmax.f32 %v1885_v27, 0.0  ;;  %3833 = vmatpush1.bf16.xpose.msra.mxu0 %v8578_v23  ;;  %3872 = vmatpush1.bf16.xpose.msra.mxu1 %v8624_v63  ;;  %v7716_v56 = vld [vmem:[%s7945_s12 + $0x28] sm:$0xff]  ;;  %v7717_v23 = vld [vmem:[%s7945_s12 + $0x30] sm:$0xff] }
 0x1ac   : > { %v1644_v8 = vadd.f32 %v1643_v58, %v8836_v62  ;;  %v1889_v22 = vadd.f32 %v1888_v0, %v8887_v54  ;;  %3834 = vmatprep.subr.bf16.mxu0 %v8559_v28  ;;  %3873 = vmatprep.subr.bf16.mxu1 %v8604_v9  ;;  %v1645_v49 = vpop.f32.mrf.mxu0  ;;  %v1890_v61 = vpop.f32.mrf.mxu1 }
 0x1ad   : > { %11786 = vst [vmem:[#allocation104_spill] sm:$0xff] %v9139_v30  ;;  %11787 = vst [vmem:[#allocation105_spill] sm:$0xff] %v9141_v51  ;;  %v1646_v21 = vadd.f32 %v1645_v49, %v8852_v2  ;;  %2579 = vmatprep.mubr.f32.mxu0 %v11722_v46  ;;  %2824 = vmatprep.mubr.f32.mxu1 %v11722_v46  ;;  %v9152_v45 = vpack.c.bf16 %v3308_v12, %v3292_v40 }
 0x1ae   : > { %v1649_v7 = vpop.f32.mrf.mxu0  ;;  %v1894_v38 = vpop.f32.mrf.mxu1  ;;  %6728 = vmatmul.mubr.msk.f32.gmra.mxu0 %vm813_vm1, %v7716_v56  ;;  %6760 = vmatmul.mubr.msk.f32.gmra.mxu1 %vm813_vm1, %v7714_v41  ;;  %v9157_v17 = vpack.c.bf16 %v3278_v36, %v3262_v52  ;;  %v3323_v27 = vmax.f32 %v1644_v8, 0.0  ;;  %v3293_v40 = vmax.f32 %v1889_v22, 0.0  ;;  %v1891_v49 = vadd.f32 %v1890_v61, %v8897_v44 }
 0x1af   : > { %11788 = vst [vmem:[#allocation106_spill] sm:$0xff] %v9152_v45  ;;  %v1650_v58 = vadd.f32 %v1649_v7, %v8836_v62  ;;  %v1895_v0 = vadd.f32 %v1894_v38, %v8887_v54  ;;  %2585 = vmatprep.mubr.f32.mxu0 %v11722_v46  ;;  %2830 = vmatprep.mubr.f32.mxu1 %v11722_v46  ;;  %v3324_v12 = vmax.f32 %v1646_v21, 0.0 }
 0x1b0   : > { %11789 = vst [vmem:[#allocation107_spill] sm:$0xff] %v9157_v17  ;;  %v1651_v9 = vpop.f32.mrf.mxu0  ;;  %v1896_v63 = vpop.f32.mrf.mxu1  ;;  %v11829_v17 = vld [vmem:[#allocation61_spill] sm:$0xff] }
 0x1b1   : > { %v3339_v28 = vmax.f32 %v1650_v58, 0.0  ;;  %v3309_v41 = vmax.f32 %v1895_v0, 0.0  ;;  %v1652_v36 = vadd.f32 %v1651_v9, %v8852_v2  ;;  %v1897_v52 = vadd.f32 %v1896_v63, %v8897_v44 }
 0x1b2   : > { %v1655_v8 = vpop.f32.mrf.mxu0  ;;  %v1900_v7 = vpop.f32.mrf.mxu1  ;;  %6729 = vmatmul.mubr.msk.f32.gmra.mxu0 %vm813_vm1, %v7717_v23  ;;  %6761 = vmatmul.mubr.msk.f32.gmra.mxu1 %vm813_vm1, %v7715_v6  ;;  %v3294_v9 = vmax.f32 %v1891_v49, 0.0 }
 0x1b3   : > { %v9169_v38 = vpack.c.bf16 %v3339_v28, %v3323_v27  ;;  %v9171_v22 = vpack.c.bf16 %v3309_v41, %v3293_v40  ;;  %v3340_v61 = vmax.f32 %v1652_v36, 0.0  ;;  %v3310_v21 = vmax.f32 %v1897_v52, 0.0  ;;  %3835 = vmatpush1.bf16.xpose.msra.mxu0 %v8550_v19  ;;  %3874 = vmatpush1.bf16.xpose.msra.mxu1 %v8596_v35  ;;  %v7718_v41 = vld [vmem:[%s7945_s12 + $0x38] sm:$0xff]  ;;  %v7719_v19 = vld [vmem:[%s7945_s12 + $0x40] sm:$0xff] }
 0x1b4   : > { %v1656_v63 = vadd.f32 %v1655_v8, %v8836_v62  ;;  %v1901_v58 = vadd.f32 %v1900_v7, %v8887_v54  ;;  %3836 = vmatprep.subr.bf16.mxu0 %v8531_v33  ;;  %3875 = vmatprep.subr.bf16.mxu1 %v8576_v37  ;;  %v1657_v28 = vpop.f32.mrf.mxu0  ;;  %v1902_v6 = vpop.f32.mrf.mxu1 }
 0x1b5   : > { %11790 = vst [vmem:[#allocation108_spill] sm:$0xff] %v9169_v38  ;;  %11791 = vst [vmem:[#allocation109_spill] sm:$0xff] %v9171_v22  ;;  %v1658_v27 = vadd.f32 %v1657_v28, %v8852_v2  ;;  %2591 = vmatprep.mubr.f32.mxu0 %v11722_v46  ;;  %2836 = vmatprep.mubr.f32.mxu1 %v11722_v46  ;;  %v9182_v0 = vpack.c.bf16 %v3340_v61, %v3324_v12 }
 0x1b6   : > { %v1661_v40 = vpop.f32.mrf.mxu0  ;;  %v1906_v49 = vpop.f32.mrf.mxu1  ;;  %6730 = vmatmul.mubr.msk.f32.gmra.mxu0 %vm813_vm1, %v7718_v41  ;;  %6762 = vmatmul.mubr.msk.f32.gmra.mxu1 %vm813_vm1, %v7716_v56  ;;  %v9187_v36 = vpack.c.bf16 %v3310_v21, %v3294_v9  ;;  %v3355_v52 = vmax.f32 %v1656_v63, 0.0  ;;  %v3325_v12 = vmax.f32 %v1901_v58, 0.0  ;;  %v1903_v28 = vadd.f32 %v1902_v6, %v8897_v44 }
 0x1b7   : > { %11792 = vst [vmem:[#allocation110_spill] sm:$0xff] %v9182_v0  ;;  %v1662_v8 = vadd.f32 %v1661_v40, %v8836_v62  ;;  %v1907_v7 = vadd.f32 %v1906_v49, %v8887_v54  ;;  %2597 = vmatprep.mubr.f32.mxu0 %v11722_v46  ;;  %2842 = vmatprep.mubr.f32.mxu1 %v11722_v46  ;;  %v3356_v61 = vmax.f32 %v1658_v27, 0.0 }
 0x1b8   : > { %11793 = vst [vmem:[#allocation111_spill] sm:$0xff] %v9187_v36  ;;  %v1663_v37 = vpop.f32.mrf.mxu0  ;;  %v1908_v35 = vpop.f32.mrf.mxu1 }
 0x1b9   : > { %v3371_v33 = vmax.f32 %v1662_v8, 0.0  ;;  %v3341_v56 = vmax.f32 %v1907_v7, 0.0  ;;  %v1664_v21 = vadd.f32 %v1663_v37, %v8852_v2  ;;  %v1909_v9 = vadd.f32 %v1908_v35, %v8897_v44 }
 0x1ba   : > { %v1667_v63 = vpop.f32.mrf.mxu0  ;;  %v1912_v40 = vpop.f32.mrf.mxu1  ;;  %6731 = vmatmul.mubr.msk.f32.gmra.mxu0 %vm813_vm1, %v7719_v19  ;;  %6763 = vmatmul.mubr.msk.f32.gmra.mxu1 %vm813_vm1, %v7717_v23  ;;  %v3326_v37 = vmax.f32 %v1903_v28, 0.0 }
 0x1bb   : > { %v9199_v49 = vpack.c.bf16 %v3371_v33, %v3355_v52  ;;  %v9201_v58 = vpack.c.bf16 %v3341_v56, %v3325_v12  ;;  %v3372_v6 = vmax.f32 %v1664_v21, 0.0  ;;  %v3342_v27 = vmax.f32 %v1909_v9, 0.0  ;;  %3837 = vmatpush1.bf16.xpose.msra.mxu0 %v8522_v14  ;;  %3876 = vmatpush1.bf16.xpose.msra.mxu1 %v8568_v10  ;;  %v7720_v56 = vld [vmem:[%s7945_s12 + $0x48] sm:$0xff]  ;;  %v7721_v14 = vld [vmem:[%s7945_s12 + $0x50] sm:$0xff] }
 0x1bc   : > { %v1668_v35 = vadd.f32 %v1667_v63, %v8836_v62  ;;  %v1913_v8 = vadd.f32 %v1912_v40, %v8887_v54  ;;  %3838 = vmatprep.subr.bf16.mxu0 %v8503_v24  ;;  %3877 = vmatprep.subr.bf16.mxu1 %v8548_v18  ;;  %v1669_v33 = vpop.f32.mrf.mxu0  ;;  %v1914_v23 = vpop.f32.mrf.mxu1 }
 0x1bd   : > { %11794 = vst [vmem:[#allocation112_spill] sm:$0xff] %v9199_v49  ;;  %11795 = vst [vmem:[#allocation113_spill] sm:$0xff] %v9201_v58  ;;  %v1670_v52 = vadd.f32 %v1669_v33, %v8852_v2  ;;  %2603 = vmatprep.mubr.f32.mxu0 %v11722_v46  ;;  %2848 = vmatprep.mubr.f32.mxu1 %v11722_v46  ;;  %v9212_v7 = vpack.c.bf16 %v3372_v6, %v3356_v61 }
 0x1be   : > { %v1673_v12 = vpop.f32.mrf.mxu0  ;;  %v1918_v28 = vpop.f32.mrf.mxu1  ;;  %6732 = vmatmul.mubr.msk.f32.gmra.mxu0 %vm813_vm1, %v7720_v56  ;;  %6764 = vmatmul.mubr.msk.f32.gmra.mxu1 %vm813_vm1, %v7718_v41  ;;  %v9217_v21 = vpack.c.bf16 %v3342_v27, %v3326_v37  ;;  %v3387_v9 = vmax.f32 %v1668_v35, 0.0  ;;  %v3357_v61 = vmax.f32 %v1913_v8, 0.0  ;;  %v1915_v33 = vadd.f32 %v1914_v23, %v8897_v44 }
 0x1bf   : > { %11796 = vst [vmem:[#allocation114_spill] sm:$0xff] %v9212_v7  ;;  %v1674_v63 = vadd.f32 %v1673_v12, %v8836_v62  ;;  %v1919_v40 = vadd.f32 %v1918_v28, %v8887_v54  ;;  %2609 = vmatprep.mubr.f32.mxu0 %v11722_v46  ;;  %2854 = vmatprep.mubr.f32.mxu1 %v11722_v46  ;;  %v3388_v6 = vmax.f32 %v1670_v52, 0.0 }
 0x1c0   : > { %11797 = vst [vmem:[#allocation115_spill] sm:$0xff] %v9217_v21  ;;  %v1675_v18 = vpop.f32.mrf.mxu0  ;;  %v1920_v10 = vpop.f32.mrf.mxu1 }
 0x1c1   : > { %v3403_v24 = vmax.f32 %v1674_v63, 0.0  ;;  %v3373_v41 = vmax.f32 %v1919_v40, 0.0  ;;  %v1676_v27 = vadd.f32 %v1675_v18, %v8852_v2  ;;  %v1921_v37 = vadd.f32 %v1920_v10, %v8897_v44 }
 0x1c2   : > { %v1679_v35 = vpop.f32.mrf.mxu0  ;;  %v1924_v12 = vpop.f32.mrf.mxu1  ;;  %6733 = vmatmul.mubr.msk.f32.gmra.mxu0 %vm813_vm1, %v7721_v14  ;;  %6765 = vmatmul.mubr.msk.f32.gmra.mxu1 %vm813_vm1, %v7719_v19  ;;  %v3358_v18 = vmax.f32 %v1915_v33, 0.0 }
 0x1c3   : > { %v9229_v28 = vpack.c.bf16 %v3403_v24, %v3387_v9  ;;  %v9231_v8 = vpack.c.bf16 %v3373_v41, %v3357_v61  ;;  %v3404_v23 = vmax.f32 %v1676_v27, 0.0  ;;  %v3374_v52 = vmax.f32 %v1921_v37, 0.0  ;;  %3839 = vmatpush1.bf16.xpose.msra.mxu0 %v8494_v32  ;;  %3878 = vmatpush1.bf16.xpose.msra.mxu1 %v8540_v1  ;;  %v7722_v41 = vld [vmem:[%s7945_s12 + $0x58] sm:$0xff]  ;;  %v7723_v32 = vld [vmem:[%s7945_s12 + $0x60] sm:$0xff] }
 0x1c4   : > { %v1680_v10 = vadd.f32 %v1679_v35, %v8836_v62  ;;  %v1925_v63 = vadd.f32 %v1924_v12, %v8887_v54  ;;  %3840 = vmatprep.subr.bf16.mxu0 %v8475_v25  ;;  %3879 = vmatprep.subr.bf16.mxu1 %v8520_v11  ;;  %v1681_v24 = vpop.f32.mrf.mxu0  ;;  %v1926_v19 = vpop.f32.mrf.mxu1 }
 0x1c5   : > { %11798 = vst [vmem:[#allocation116_spill] sm:$0xff] %v9229_v28  ;;  %11799 = vst [vmem:[#allocation117_spill] sm:$0xff] %v9231_v8  ;;  %v1682_v9 = vadd.f32 %v1681_v24, %v8852_v2  ;;  %2615 = vmatprep.mubr.f32.mxu0 %v11722_v46  ;;  %2860 = vmatprep.mubr.f32.mxu1 %v11722_v46  ;;  %v9242_v40 = vpack.c.bf16 %v3404_v23, %v3388_v6 }
 0x1c6   : > { %v1685_v61 = vpop.f32.mrf.mxu0  ;;  %v1930_v33 = vpop.f32.mrf.mxu1  ;;  %6734 = vmatmul.mubr.msk.f32.gmra.mxu0 %vm813_vm1, %v7722_v41  ;;  %6766 = vmatmul.mubr.msk.f32.gmra.mxu1 %vm813_vm1, %v7720_v56  ;;  %v9247_v27 = vpack.c.bf16 %v3374_v52, %v3358_v18  ;;  %v3419_v37 = vmax.f32 %v1680_v10, 0.0  ;;  %v3389_v6 = vmax.f32 %v1925_v63, 0.0  ;;  %v1927_v24 = vadd.f32 %v1926_v19, %v8897_v44 }
 0x1c7   : > { %11800 = vst [vmem:[#allocation118_spill] sm:$0xff] %v9242_v40  ;;  %v1686_v35 = vadd.f32 %v1685_v61, %v8836_v62  ;;  %v1931_v12 = vadd.f32 %v1930_v33, %v8887_v54  ;;  %2621 = vmatprep.mubr.f32.mxu0 %v11722_v46  ;;  %2866 = vmatprep.mubr.f32.mxu1 %v11722_v46  ;;  %v3420_v23 = vmax.f32 %v1682_v9, 0.0 }
 0x1c8   : > { %11801 = vst [vmem:[#allocation119_spill] sm:$0xff] %v9247_v27  ;;  %v1687_v11 = vpop.f32.mrf.mxu0  ;;  %v1932_v1 = vpop.f32.mrf.mxu1 }
 0x1c9   : > { %v3435_v25 = vmax.f32 %v1686_v35, 0.0  ;;  %v3405_v56 = vmax.f32 %v1931_v12, 0.0  ;;  %v1688_v52 = vadd.f32 %v1687_v11, %v8852_v2  ;;  %v1933_v18 = vadd.f32 %v1932_v1, %v8897_v44 }
 0x1ca   : > { %v1691_v10 = vpop.f32.mrf.mxu0  ;;  %v1936_v61 = vpop.f32.mrf.mxu1  ;;  %6735 = vmatmul.mubr.msk.f32.gmra.mxu0 %vm813_vm1, %v7723_v32  ;;  %6767 = vmatmul.mubr.msk.f32.gmra.mxu1 %vm813_vm1, %v7721_v14  ;;  %v3390_v11 = vmax.f32 %v1927_v24, 0.0 }
 0x1cb   : > { %v9259_v33 = vpack.c.bf16 %v3435_v25, %v3419_v37  ;;  %v9261_v63 = vpack.c.bf16 %v3405_v56, %v3389_v6  ;;  %v3436_v19 = vmax.f32 %v1688_v52, 0.0  ;;  %v3406_v9 = vmax.f32 %v1933_v18, 0.0  ;;  %3841 = vmatpush1.bf16.xpose.msra.mxu0 %v8466_v16  ;;  %3880 = vmatpush1.bf16.xpose.msra.mxu1 %v8512_v57  ;;  %v7724_v56 = vld [vmem:[%s7945_s12 + $0x68] sm:$0xff]  ;;  %v7725_v16 = vld [vmem:[%s7945_s12 + $0x70] sm:$0xff] }
 0x1cc   : > { %v1692_v1 = vadd.f32 %v1691_v10, %v8836_v62  ;;  %v1937_v35 = vadd.f32 %v1936_v61, %v8887_v54  ;;  %3842 = vmatprep.subr.bf16.mxu0 %v8447_v29  ;;  %3881 = vmatprep.subr.bf16.mxu1 %v8492_v13  ;;  %v1693_v25 = vpop.f32.mrf.mxu0  ;;  %v1938_v14 = vpop.f32.mrf.mxu1 }
 0x1cd   : > { %11802 = vst [vmem:[#allocation120_spill] sm:$0xff] %v9259_v33  ;;  %11803 = vst [vmem:[#allocation121_spill] sm:$0xff] %v9261_v63  ;;  %v1694_v37 = vadd.f32 %v1693_v25, %v8852_v2  ;;  %2627 = vmatprep.mubr.f32.mxu0 %v11722_v46  ;;  %2872 = vmatprep.mubr.f32.mxu1 %v11722_v46  ;;  %v9272_v12 = vpack.c.bf16 %v3436_v19, %v3420_v23 }
 0x1ce   : > { %v1697_v6 = vpop.f32.mrf.mxu0  ;;  %v1942_v24 = vpop.f32.mrf.mxu1  ;;  %6736 = vmatmul.mubr.msk.f32.gmra.mxu0 %vm813_vm1, %v7724_v56  ;;  %6768 = vmatmul.mubr.msk.f32.gmra.mxu1 %vm813_vm1, %v7722_v41  ;;  %v9277_v52 = vpack.c.bf16 %v3406_v9, %v3390_v11  ;;  %v3451_v18 = vmax.f32 %v1692_v1, 0.0  ;;  %v3421_v23 = vmax.f32 %v1937_v35, 0.0  ;;  %v1939_v25 = vadd.f32 %v1938_v14, %v8897_v44 }
 0x1cf   : > { %11804 = vst [vmem:[#allocation122_spill] sm:$0xff] %v9272_v12  ;;  %v1698_v10 = vadd.f32 %v1697_v6, %v8836_v62  ;;  %v1943_v61 = vadd.f32 %v1942_v24, %v8887_v54  ;;  %2633 = vmatprep.mubr.f32.mxu0 %v11722_v46  ;;  %2878 = vmatprep.mubr.f32.mxu1 %v11722_v46  ;;  %v3452_v19 = vmax.f32 %v1694_v37, 0.0 }
 0x1d0   : > { %11805 = vst [vmem:[#allocation123_spill] sm:$0xff] %v9277_v52  ;;  %v1699_v13 = vpop.f32.mrf.mxu0  ;;  %v1944_v57 = vpop.f32.mrf.mxu1 }
 0x1d1   : > { %v3467_v29 = vmax.f32 %v1698_v10, 0.0  ;;  %v3437_v41 = vmax.f32 %v1943_v61, 0.0  ;;  %v1700_v9 = vadd.f32 %v1699_v13, %v8852_v2  ;;  %v1945_v11 = vadd.f32 %v1944_v57, %v8897_v44  ;;  %v9305_v61 = vld [vmem:[%s11429_s2 + $0x8] sm:$0xff] }
 0x1d2   : > { %v1703_v1 = vpop.f32.mrf.mxu0  ;;  %v1948_v6 = vpop.f32.mrf.mxu1  ;;  %6737 = vmatmul.mubr.msk.f32.gmra.mxu0 %vm813_vm1, %v7725_v16  ;;  %6769 = vmatmul.mubr.msk.f32.gmra.mxu1 %vm813_vm1, %v7723_v32  ;;  %v3422_v13 = vmax.f32 %v1939_v25, 0.0 }
 0x1d3   : > { %v9289_v24 = vpack.c.bf16 %v3467_v29, %v3451_v18  ;;  %v9291_v35 = vpack.c.bf16 %v3437_v41, %v3421_v23  ;;  %v3468_v14 = vmax.f32 %v1700_v9, 0.0  ;;  %v3438_v37 = vmax.f32 %v1945_v11, 0.0  ;;  %3843 = vmatpush1.bf16.xpose.msra.mxu0 %v8438_v20  ;;  %3882 = vmatpush1.bf16.xpose.msra.mxu1 %v8484_v60  ;;  %v7726_v9 = vld [vmem:[%s7945_s12 + $0x78] sm:$0xff] }
 0x1d4   : > { %v1704_v57 = vadd.f32 %v1703_v1, %v8836_v62  ;;  %v1949_v10 = vadd.f32 %v1948_v6, %v8887_v54  ;;  %3844 = vmatprep.subr.bf16.mxu0 %v8871_v43  ;;  %3883 = vmatprep.subr.bf16.mxu1 %v8464_v15  ;;  %v1705_v29 = vpop.f32.mrf.mxu0  ;;  %v1950_v32 = vpop.f32.mrf.mxu1 }
 0x1d5   : > { %11806 = vst [vmem:[#allocation124_spill] sm:$0xff] %v9289_v24  ;;  %11807 = vst [vmem:[#allocation125_spill] sm:$0xff] %v9291_v35  ;;  %v1706_v18 = vadd.f32 %v1705_v29, %v8852_v2  ;;  %2639 = vmatprep.mubr.f32.mxu0 %v11722_v46  ;;  %2884 = vmatprep.mubr.f32.mxu1 %v11722_v46  ;;  %v9307_v23 = vpack.c.bf16 %v3468_v14, %v3452_v19 }
 0x1d6   : > { %v1709_v25 = vpop.f32.mrf.mxu0  ;;  %v1954_v41 = vpop.f32.mrf.mxu1  ;;  %6738 = vmatmul.mubr.msk.f32.gmra.mxu0 %vm813_vm1, %v7726_v9  ;;  %6770 = vmatmul.mubr.msk.f32.gmra.mxu1 %vm813_vm1, %v7724_v56  ;;  %v9312_v11 = vpack.c.bf16 %v3438_v37, %v3422_v13  ;;  %v3483_v1 = vmax.f32 %v1704_v57, 0.0  ;;  %v3453_v19 = vmax.f32 %v1949_v10, 0.0  ;;  %v1951_v15 = vadd.f32 %v1950_v32, %v8897_v44 }
 0x1d7   : > { %11808 = vst [vmem:[#allocation126_spill] sm:$0xff] %v9307_v23  ;;  %v1710_v6 = vadd.f32 %v1709_v25, %v8836_v62  ;;  %v1955_v29 = vadd.f32 %v1954_v41, %v8887_v54  ;;  %2645 = vmatprep.mubr.f32.mxu0 %v11722_v46  ;;  %2890 = vmatprep.mubr.f32.mxu1 %v11722_v46  ;;  %v3484_v14 = vmax.f32 %v1706_v18, 0.0  ;;  %v11810_v56 = vsub.s32 0, %v8376_v55 }
 0x1d8   : > { %11809 = vst [vmem:[#allocation127_spill] sm:$0xff] %v9312_v11  ;;  %v1711_v60 = vpop.f32.mrf.mxu0  ;;  %v1956_v43 = vpop.f32.mrf.mxu1  ;;  %v11811_v10 = vsub.s32 1, %v8376_v55 }
 0x1d9   : > { %v9322_v37 = vrot.slane %v9305_v61, %v11810_v56  ;;  %v3499_v13 = vmax.f32 %v1710_v6, 0.0  ;;  %v3469_v62 = vmax.f32 %v1955_v29, 0.0  ;;  %v1712_v57 = vadd.f32 %v1711_v60, %v8852_v2 }
 0x1da   : > { %v1957_v25 = vadd.f32 %v1956_v43, %v8897_v44  ;;  %v1960_v41 = vpop.f32.mrf.mxu1  ;;  %v2037_v20 = vpop.f32.mrf.mxu0  ;;  %6739 = vmatmul.mubr.msk.f32.gmra.mxu0 %vm813_vm1, %v7727_v39  ;;  %6771 = vmatmul.mubr.msk.f32.gmra.mxu1 %vm813_vm1, %v7725_v16  ;;  %v9332_v32 = vrot.slane %v9305_v61, %v11811_v10  ;;  %v3454_v2 = vmax.f32 %v1951_v15, 0.0 }
 0x1db   : > { %v9334_v18 = vpack.c.bf16 %v3499_v13, %v3483_v1  ;;  %v9336_v6 = vpack.c.bf16 %v3469_v62, %v3453_v19  ;;  %v3500_v29 = vmax.f32 %v1712_v57, 0.0  ;;  %3845 = vmatpush2.bf16.xpose.msra.mxu0 %v8862_v4  ;;  %3884 = vmatpush1.bf16.xpose.msra.mxu1 %v8456_v5  ;;  %v1961_v43 = vadd.f32 %v1960_v41, %v8887_v54  ;;  %v7729_v4 = vld [vmem:[%s7945_s12 + $0x90] sm:$0xff] }
 0x1dc   : > { %v3470_v60 = vmax.f32 %v1957_v25, 0.0  ;;  %v2038_v16 = vadd.f32 %v2037_v20, %v9322_v37  ;;  %3846 = vmatprep.subr.bf16.mxu0 %v8856_v42  ;;  %3885 = vmatprep.subr.bf16.mxu1 %v8908_v31  ;;  %v1962_v1 = vpop.f32.mrf.mxu1  ;;  %v2039_v56 = vpop.f32.mrf.mxu0  ;;  %v7728_v25 = vld [vmem:[%s7945_s12 + $0x88] sm:$0xff]  ;;  %v11816_v31 = vsub.s32 2, %v8376_v55 }
 0x1dd   : > { %11812 = vst [vmem:[#allocation128_spill] sm:$0xff] %v9334_v18  ;;  %11813 = vst [vmem:[#allocation129_spill] sm:$0xff] %v9336_v6  ;;  %2651 = vmatprep.mubr.f32.mxu0 %v11722_v46  ;;  %2896 = vmatprep.mubr.f32.mxu1 %v11722_v46  ;;  %v9346_v19 = vpack.c.bf16 %v3500_v29, %v3484_v14  ;;  %v1963_v13 = vadd.f32 %v1962_v1, %v8897_v44  ;;  %v3485_v29 = vmax.f32 %v1961_v43, 0.0 }
 0x1de   : > { %v2040_v15 = vadd.f32 %v2039_v56, %v9332_v32  ;;  %v1966_v62 = vpop.f32.mrf.mxu1  ;;  %v2043_v57 = vpop.f32.mrf.mxu0  ;;  %6740 = vmatmul.mubr.msk.f32.gmra.mxu0 %vm813_vm1, %v7728_v25  ;;  %6772 = vmatmul.mubr.msk.f32.gmra.mxu1 %vm813_vm1, %v7726_v9  ;;  %v9353_v20 = vpack.c.bf16 %v3470_v60, %v3454_v2  ;;  %v3007_v41 = vmax.f32 %v2038_v16, 0.0  ;;  %v9362_v5 = vrot.slane %v9305_v61, %v11816_v31 }
 0x1df   : > { %11814 = vst [vmem:[#allocation130_spill] sm:$0xff] %v9346_v19  ;;  %v1967_v10 = vadd.f32 %v1966_v62, %v8887_v54  ;;  %v2044_v14 = vadd.f32 %v2043_v57, %v9322_v37  ;;  %2657 = vmatprep.mubr.f32.mxu0 %v11722_v46  ;;  %2902 = vmatprep.mubr.f32.mxu1 %v11722_v46  ;;  %v3486_v16 = vmax.f32 %v1963_v13, 0.0 }
 0x1e0   : > { %11815 = vst [vmem:[#allocation131_spill] sm:$0xff] %v9353_v20  ;;  %v1968_v1 = vpop.f32.mrf.mxu1  ;;  %v2045_v56 = vpop.f32.mrf.mxu0  ;;  %v3008_v62 = vmax.f32 %v2040_v15, 0.0  ;;  %v11819_v15 = vld [vmem:[#allocation59_spill] sm:$0xff] }
 0x1e1   : > { %v3501_v9 = vmax.f32 %v1967_v10, 0.0  ;;  %v3023_v60 = vmax.f32 %v2044_v14, 0.0  ;;  %v1969_v2 = vadd.f32 %v1968_v1, %v8897_v44  ;;  %v2046_v54 = vadd.f32 %v2045_v56, %v9332_v32  ;;  %v11820_v14 = vld [vmem:[#allocation67_spill] sm:$0xff] }
 0x1e2   : > { %v2049_v57 = vpop.f32.mrf.mxu0  ;;  %v2294_v42 = vpop.f32.mrf.mxu1  ;;  %6741 = vmatmul.mubr.msk.f32.gmra.mxu0 %vm813_vm1, %v7729_v4  ;;  %6773 = vmatmul.mubr.msk.f32.gmra.mxu1 %vm813_vm1, %v7727_v39 }
 0x1e3   : > { %v9369_v43 = vpack.c.bf16 %v3501_v9, %v3485_v29  ;;  %v9371_v51 = vpack.c.bf16 %v3023_v60, %v3007_v41  ;;  %v3502_v31 = vmax.f32 %v1969_v2, 0.0  ;;  %v3024_v10 = vmax.f32 %v2046_v54, 0.0  ;;  %3847 = vmatpush2.bf16.xpose.msra.mxu0 %v8842_v26  ;;  %3886 = vmatpush2.bf16.xpose.msra.mxu1 %v8899_v47  ;;  %v7730_v2 = vld [vmem:[%s7945_s12 + $0x98] sm:$0xff] }
 0x1e4   : > { %v2050_v44 = vadd.f32 %v2049_v57, %v9322_v37  ;;  %v2295_v13 = vadd.f32 %v2294_v42, %v9362_v5  ;;  %3848 = vmatprep.subr.bf16.mxu0 %v11819_v15  ;;  %3887 = vmatprep.subr.bf16.mxu1 %v11820_v14  ;;  %v2051_v39 = vpop.f32.mrf.mxu0  ;;  %v11821_v29 = vsub.s32 3, %v8376_v55  ;;  %v2296_v1 = vpop.f32.mrf.mxu1  ;;  %v7807_v15 = vmov 0  }
 0x1e5   : > { %11817 = vst [vmem:[#allocation132_spill] sm:$0xff] %v9369_v43  ;;  %11818 = vst [vmem:[#allocation133_spill] sm:$0xff] %v9371_v51  ;;  %v2052_v56 = vadd.f32 %v2051_v39, %v9332_v32  ;;  %2663 = vmatprep.mubr.f32.mxu0 %v11722_v46  ;;  %2908 = vmatprep.mubr.f32.mxu1 %v11722_v46  ;;  %v9387_v9 = vpack.c.bf16 %v3502_v31, %v3486_v16  ;;  %v7731_v51 = vld [vmem:[%s7945_s12 + $0xa0] sm:$0xff] }
 0x1e6   : > { %v9382_v41 = vrot.slane %v9305_v61, %v11821_v29  ;;  %v2055_v42 = vpop.f32.mrf.mxu0  ;;  %v2300_v60 = vpop.f32.mrf.mxu1  ;;  %6742 = vmatmul.mubr.msk.f32.gmra.mxu0 %vm813_vm1, %v7730_v2  ;;  %6774 = vmatmul.mubr.msk.f32.gmra.mxu1 %vm813_vm1, %v7728_v25  ;;  %v424_v61 = vld [vmem:[%s11431_s4] sm:$0x3f]  ;;  %v9395_v54 = vpack.c.bf16 %v3024_v10, %v3008_v62  ;;  %v3039_v57 = vmax.f32 %v2050_v44, 0.0  ;;  %v3009_v16 = vmax.f32 %v2295_v13, 0.0 }
 0x1e7   : > { %11822 = vst [vmem:[#allocation134_spill] sm:$0xff] %v9387_v9  ;;  %v2056_v39 = vadd.f32 %v2055_v42, %v9322_v37  ;;  %v2301_v29 = vadd.f32 %v2300_v60, %v9362_v5  ;;  %2669 = vmatprep.mubr.f32.mxu0 %v11722_v46  ;;  %2914 = vmatprep.mubr.f32.mxu1 %v11722_v46  ;;  %v3040_v31 = vmax.f32 %v2052_v56, 0.0 }
 0x1e8   : > { %11823 = vst [vmem:[#allocation135_spill] sm:$0xff] %v9395_v54  ;;  %v2297_v25 = vadd.f32 %v2296_v1, %v9382_v41  ;;  %v2057_v14 = vpop.f32.mrf.mxu0  ;;  %v2302_v47 = vpop.f32.mrf.mxu1  ;;  %7464 = vset.pattern.permute.xlu0 %v7807_v15  ;;  %v11828_v54 = vld [vmem:[#allocation55_spill] sm:$0xff] }
 0x1e9   : > { %v3055_v62 = vmax.f32 %v2056_v39, 0.0  ;;  %v3025_v10 = vmax.f32 %v2301_v29, 0.0  ;;  %v2058_v44 = vadd.f32 %v2057_v14, %v9332_v32  ;;  %v2303_v42 = vadd.f32 %v2302_v47, %v9382_v41  ;;  %3769 = vperm.xlu0 %7464, %v424_v61   ;;  %v11826_v39 = vld [vmem:[#allocation58_spill] sm:$0xff]  ;;  %v11827_v14 = vld [vmem:[#allocation65_spill] sm:$0xff] }
 0x1ea   : > { %v2061_v60 = vpop.f32.mrf.mxu0  ;;  %v2306_v26 = vpop.f32.mrf.mxu1  ;;  %6743 = vmatmul.mubr.msk.f32.gmra.mxu0 %vm813_vm1, %v7731_v51  ;;  %6775 = vmatmul.mubr.msk.f32.gmra.mxu1 %vm813_vm1, %v7729_v4  ;;  %v3010_v47 = vmax.f32 %v2297_v25, 0.0 }
 0x1eb   : > { %v9407_v13 = vpack.c.bf16 %v3055_v62, %v3039_v57  ;;  %v9409_v1 = vpack.c.bf16 %v3025_v10, %v3009_v16  ;;  %v3056_v56 = vmax.f32 %v2058_v44, 0.0  ;;  %v3026_v15 = vmax.f32 %v2303_v42, 0.0  ;;  %3849 = vmatpush2.bf16.xpose.msra.mxu0 %v11826_v39  ;;  %3888 = vmatpush2.bf16.xpose.msra.mxu1 %v11827_v14  ;;  %v7732_v44 = vld [vmem:[%s7945_s12 + $0xa8] sm:$0xff] }
 0x1ec   : > { %v2062_v61 = vadd.f32 %v2061_v60, %v9322_v37  ;;  %v2307_v29 = vadd.f32 %v2306_v26, %v9362_v5  ;;  %3850 = vmatprep.subr.bf16.mxu0 %v11828_v54  ;;  %3889 = vmatprep.subr.bf16.mxu1 %v11829_v17  ;;  %v2063_v4 = vpop.f32.mrf.mxu0  ;;  %v2308_v57 = vpop.f32.mrf.mxu1 }
 0x1ed   : > { %11824 = vst [vmem:[#allocation136_spill] sm:$0xff] %v9407_v13  ;;  %11825 = vst [vmem:[#allocation137_spill] sm:$0xff] %v9409_v1  ;;  %v2064_v16 = vadd.f32 %v2063_v4, %v9332_v32  ;;  %2675 = vmatprep.mubr.f32.mxu0 %v11722_v46  ;;  %2920 = vmatprep.mubr.f32.mxu1 %v11722_v46  ;;  %v9420_v62 = vpack.c.bf16 %v3056_v56, %v3040_v31  ;;  %v7733_v1 = vld [vmem:[%s7945_s12 + $0xb0] sm:$0xff] }
 0x1ee   : > { %v2067_v10 = vpop.f32.mrf.mxu0  ;;  %v2312_v25 = vpop.f32.mrf.mxu1  ;;  %6744 = vmatmul.mubr.msk.f32.gmra.mxu0 %vm813_vm1, %v7732_v44  ;;  %6776 = vmatmul.mubr.msk.f32.gmra.mxu1 %vm813_vm1, %v7730_v2  ;;  %v9425_v26 = vpack.c.bf16 %v3026_v15, %v3010_v47  ;;  %v3071_v42 = vmax.f32 %v2062_v61, 0.0  ;;  %v3041_v31 = vmax.f32 %v2307_v29, 0.0  ;;  %v2309_v17 = vadd.f32 %v2308_v57, %v9382_v41  ;;  %v11836_v13 = vld [vmem:[#allocation51_spill] sm:$0xff] }
 0x1ef   : > { %11830 = vst [vmem:[#allocation138_spill] sm:$0xff] %v9420_v62  ;;  %v2068_v60 = vadd.f32 %v2067_v10, %v9322_v37  ;;  %v2313_v4 = vadd.f32 %v2312_v25, %v9362_v5  ;;  %2681 = vmatprep.mubr.f32.mxu0 %v11722_v46  ;;  %2926 = vmatprep.mubr.f32.mxu1 %v11722_v46  ;;  %v3072_v56 = vmax.f32 %v2064_v16, 0.0  ;;  %v11837_v62 = vld [vmem:[#allocation57_spill] sm:$0xff] }
 0x1f0   : > { %11831 = vst [vmem:[#allocation139_spill] sm:$0xff] %v9425_v26  ;;  %v2069_v14 = vpop.f32.mrf.mxu0  ;;  %v2314_v54 = vpop.f32.mrf.mxu1  ;;  %v11834_v26 = vld [vmem:[#allocation54_spill] sm:$0xff] }
 0x1f1   : > { %v3087_v39 = vmax.f32 %v2068_v60, 0.0  ;;  %v3057_v2 = vmax.f32 %v2313_v4, 0.0  ;;  %v2070_v15 = vadd.f32 %v2069_v14, %v9332_v32  ;;  %v2315_v47 = vadd.f32 %v2314_v54, %v9382_v41  ;;  %v11835_v60 = vld [vmem:[#allocation60_spill] sm:$0xff] }
 0x1f2   : > { %v2073_v61 = vpop.f32.mrf.mxu0  ;;  %v2318_v10 = vpop.f32.mrf.mxu1  ;;  %6745 = vmatmul.mubr.msk.f32.gmra.mxu0 %vm813_vm1, %v7733_v1  ;;  %6777 = vmatmul.mubr.msk.f32.gmra.mxu1 %vm813_vm1, %v7731_v51  ;;  %v3042_v14 = vmax.f32 %v2309_v17, 0.0 }
 0x1f3   : > { %v9437_v25 = vpack.c.bf16 %v3087_v39, %v3071_v42  ;;  %v9439_v29 = vpack.c.bf16 %v3057_v2, %v3041_v31  ;;  %v3088_v57 = vmax.f32 %v2070_v15, 0.0  ;;  %v3058_v16 = vmax.f32 %v2315_v47, 0.0  ;;  %3851 = vmatpush2.bf16.xpose.msra.mxu0 %v11834_v26  ;;  %3890 = vmatpush2.bf16.xpose.msra.mxu1 %v11835_v60  ;;  %v7734_v15 = vld [vmem:[%s7945_s12 + $0xb8] sm:$0xff] }
 0x1f4   : > { %v2074_v54 = vadd.f32 %v2073_v61, %v9322_v37  ;;  %v2319_v4 = vadd.f32 %v2318_v10, %v9362_v5  ;;  %3852 = vmatprep.subr.bf16.mxu0 %v11836_v13  ;;  %3891 = vmatprep.subr.bf16.mxu1 %v11837_v62  ;;  %v2075_v51 = vpop.f32.mrf.mxu0  ;;  %v2320_v39 = vpop.f32.mrf.mxu1 }
 0x1f5   : > { %11832 = vst [vmem:[#allocation140_spill] sm:$0xff] %v9437_v25  ;;  %11833 = vst [vmem:[#allocation141_spill] sm:$0xff] %v9439_v29  ;;  %v2076_v42 = vadd.f32 %v2075_v51, %v9332_v32  ;;  %2687 = vmatprep.mubr.f32.mxu0 %v11722_v46  ;;  %2932 = vmatprep.mubr.f32.mxu1 %v11722_v46  ;;  %v9450_v31 = vpack.c.bf16 %v3088_v57, %v3072_v56  ;;  %v7735_v29 = vld [vmem:[%s7945_s12 + $0xc0] sm:$0xff]  ;;  %v11844_v25 = vld [vmem:[#allocation47_spill] sm:$0xff] }
 0x1f6   : > { %v2079_v2 = vpop.f32.mrf.mxu0  ;;  %v2324_v17 = vpop.f32.mrf.mxu1  ;;  %6746 = vmatmul.mubr.msk.f32.gmra.mxu0 %vm813_vm1, %v7734_v15  ;;  %6778 = vmatmul.mubr.msk.f32.gmra.mxu1 %vm813_vm1, %v7732_v44  ;;  %v9455_v47 = vpack.c.bf16 %v3058_v16, %v3042_v14  ;;  %v3103_v61 = vmax.f32 %v2074_v54, 0.0  ;;  %v3073_v56 = vmax.f32 %v2319_v4, 0.0  ;;  %v2321_v62 = vadd.f32 %v2320_v39, %v9382_v41 }
 0x1f7   : > { %11838 = vst [vmem:[#allocation142_spill] sm:$0xff] %v9450_v31  ;;  %v2080_v10 = vadd.f32 %v2079_v2, %v9322_v37  ;;  %v2325_v51 = vadd.f32 %v2324_v17, %v9362_v5  ;;  %2693 = vmatprep.mubr.f32.mxu0 %v11722_v46  ;;  %2938 = vmatprep.mubr.f32.mxu1 %v11722_v46  ;;  %v3104_v57 = vmax.f32 %v2076_v42, 0.0  ;;  %v11845_v31 = vld [vmem:[#allocation53_spill] sm:$0xff] }
 0x1f8   : > { %11839 = vst [vmem:[#allocation143_spill] sm:$0xff] %v9455_v47  ;;  %v2081_v60 = vpop.f32.mrf.mxu0  ;;  %v2326_v13 = vpop.f32.mrf.mxu1  ;;  %v11842_v47 = vld [vmem:[#allocation50_spill] sm:$0xff] }
 0x1f9   : > { %v3119_v26 = vmax.f32 %v2080_v10, 0.0  ;;  %v3089_v44 = vmax.f32 %v2325_v51, 0.0  ;;  %v2082_v16 = vadd.f32 %v2081_v60, %v9332_v32  ;;  %v2327_v14 = vadd.f32 %v2326_v13, %v9382_v41  ;;  %v11843_v10 = vld [vmem:[#allocation56_spill] sm:$0xff] }
 0x1fa   : > { %v2085_v54 = vpop.f32.mrf.mxu0  ;;  %v2330_v2 = vpop.f32.mrf.mxu1  ;;  %6747 = vmatmul.mubr.msk.f32.gmra.mxu0 %vm813_vm1, %v7735_v29  ;;  %6779 = vmatmul.mubr.msk.f32.gmra.mxu1 %vm813_vm1, %v7733_v1  ;;  %v3074_v60 = vmax.f32 %v2321_v62, 0.0 }
 0x1fb   : > { %v9467_v17 = vpack.c.bf16 %v3119_v26, %v3103_v61  ;;  %v9469_v4 = vpack.c.bf16 %v3089_v44, %v3073_v56  ;;  %v3120_v39 = vmax.f32 %v2082_v16, 0.0  ;;  %v3090_v42 = vmax.f32 %v2327_v14, 0.0  ;;  %3853 = vmatpush2.bf16.xpose.msra.mxu0 %v11842_v47  ;;  %3892 = vmatpush2.bf16.xpose.msra.mxu1 %v11843_v10  ;;  %v7736_v16 = vld [vmem:[%s7945_s12 + $0xc8] sm:$0xff] }
 0x1fc   : > { %v2086_v13 = vadd.f32 %v2085_v54, %v9322_v37  ;;  %v2331_v51 = vadd.f32 %v2330_v2, %v9362_v5  ;;  %3854 = vmatprep.subr.bf16.mxu0 %v11844_v25  ;;  %3893 = vmatprep.subr.bf16.mxu1 %v11845_v31  ;;  %v2087_v1 = vpop.f32.mrf.mxu0  ;;  %v2332_v26 = vpop.f32.mrf.mxu1 }
 0x1fd   : > { %11840 = vst [vmem:[#allocation144_spill] sm:$0xff] %v9467_v17  ;;  %11841 = vst [vmem:[#allocation145_spill] sm:$0xff] %v9469_v4  ;;  %v2088_v61 = vadd.f32 %v2087_v1, %v9332_v32  ;;  %2699 = vmatprep.mubr.f32.mxu0 %v11722_v46  ;;  %2944 = vmatprep.mubr.f32.mxu1 %v11722_v46  ;;  %v9480_v56 = vpack.c.bf16 %v3120_v39, %v3104_v57  ;;  %v7737_v4 = vld [vmem:[%s7945_s12 + $0xd0] sm:$0xff]  ;;  %v11853_v17 = vld [vmem:[#allocation49_spill] sm:$0xff] }
 0x1fe   : > { %v2091_v44 = vpop.f32.mrf.mxu0  ;;  %v2336_v62 = vpop.f32.mrf.mxu1  ;;  %6748 = vmatmul.mubr.msk.f32.gmra.mxu0 %vm813_vm1, %v7736_v16  ;;  %6780 = vmatmul.mubr.msk.f32.gmra.mxu1 %vm813_vm1, %v7734_v15  ;;  %v9485_v14 = vpack.c.bf16 %v3090_v42, %v3074_v60  ;;  %v3135_v54 = vmax.f32 %v2086_v13, 0.0  ;;  %v3105_v57 = vmax.f32 %v2331_v51, 0.0  ;;  %v2333_v31 = vadd.f32 %v2332_v26, %v9382_v41 }
 0x1ff   : > { %11846 = vst [vmem:[#allocation146_spill] sm:$0xff] %v9480_v56  ;;  %v2092_v2 = vadd.f32 %v2091_v44, %v9322_v37  ;;  %v2337_v1 = vadd.f32 %v2336_v62, %v9362_v5  ;;  %2705 = vmatprep.mubr.f32.mxu0 %v11722_v46  ;;  %2950 = vmatprep.mubr.f32.mxu1 %v11722_v46  ;;  %v3136_v39 = vmax.f32 %v2088_v61, 0.0 }
 0x200   : > { %11847 = vst [vmem:[#allocation147_spill] sm:$0xff] %v9485_v14  ;;  %v2093_v10 = vpop.f32.mrf.mxu0  ;;  %v2338_v25 = vpop.f32.mrf.mxu1  ;;  %v11852_v14 = vld [vmem:[#allocation43_spill] sm:$0xff] }
 0x201   : > { %v3151_v47 = vmax.f32 %v2092_v2, 0.0  ;;  %v3121_v15 = vmax.f32 %v2337_v1, 0.0  ;;  %v2094_v42 = vadd.f32 %v2093_v10, %v9332_v32  ;;  %v2339_v60 = vadd.f32 %v2338_v25, %v9382_v41  ;;  %v11850_v2 = vld [vmem:[#allocation46_spill] sm:$0xff]  ;;  %v11851_v1 = vld [vmem:[#allocation52_spill] sm:$0xff] }
 0x202   : > { %v2097_v13 = vpop.f32.mrf.mxu0  ;;  %v2342_v44 = vpop.f32.mrf.mxu1  ;;  %6749 = vmatmul.mubr.msk.f32.gmra.mxu0 %vm813_vm1, %v7737_v4  ;;  %6781 = vmatmul.mubr.msk.f32.gmra.mxu1 %vm813_vm1, %v7735_v29  ;;  %v3106_v10 = vmax.f32 %v2333_v31, 0.0  ;;  %v7738_v31 = vld [vmem:[%s7945_s12 + $0xd8] sm:$0xff] }
 0x203   : > { %v9497_v62 = vpack.c.bf16 %v3151_v47, %v3135_v54  ;;  %v9499_v51 = vpack.c.bf16 %v3121_v15, %v3105_v57  ;;  %v3152_v26 = vmax.f32 %v2094_v42, 0.0  ;;  %v3122_v61 = vmax.f32 %v2339_v60, 0.0  ;;  %3855 = vmatpush2.bf16.xpose.msra.mxu0 %v11850_v2  ;;  %3894 = vmatpush2.bf16.xpose.msra.mxu1 %v11851_v1  ;;  %v7739_v2 = vld [vmem:[%s7945_s12 + $0xe0] sm:$0xff] }
 0x204   : > { %v2098_v25 = vadd.f32 %v2097_v13, %v9322_v37  ;;  %3856 = vmatprep.subr.bf16.mxu0 %v11852_v14  ;;  %3895 = vmatprep.subr.bf16.mxu1 %v11853_v17  ;;  %v9506_v56 = vpop.f32.mrf.mxu0  ;;  %v2344_v29 = vpop.f32.mrf.mxu1  ;;  %v2343_v47 = vadd.f32 %v2342_v44, %v9362_v5 }
 0x205   : > { %11848 = vst [vmem:[#allocation148_spill] sm:$0xff] %v9497_v62  ;;  %11849 = vst [vmem:[#allocation149_spill] sm:$0xff] %v9499_v51  ;;  %2711 = vmatprep.mubr.f32.mxu0 %v11722_v46  ;;  %2956 = vmatprep.mubr.f32.mxu1 %v11722_v46  ;;  %v9511_v54 = vpack.c.bf16 %v3152_v26, %v3136_v39  ;;  %v9516_v42 = vpack.c.bf16 %v3122_v61, %v3106_v10  ;;  %v11859_v51 = vld [vmem:[#allocation42_spill] sm:$0xff] }
 0x206   : > { %v2103_v57 = vpop.f32.mrf.mxu0  ;;  %v2348_v15 = vpop.f32.mrf.mxu1  ;;  %6750 = vmatmul.mubr.msk.f32.gmra.mxu0 %vm813_vm1, %v7738_v31  ;;  %6782 = vmatmul.mubr.msk.f32.gmra.mxu1 %vm813_vm1, %v7736_v16  ;;  %v3167_v60 = vmax.f32 %v2098_v25, 0.0  ;;  %v2345_v39 = vadd.f32 %v2344_v29, %v9382_v41  ;;  %v3137_v1 = vmax.f32 %v2343_v47, 0.0  ;;  %v11860_v47 = vld [vmem:[#allocation48_spill] sm:$0xff] }
 0x207   : > { %11854 = vst [vmem:[#allocation150_spill] sm:$0xff] %v9511_v54  ;;  %11855 = vst [vmem:[#allocation151_spill] sm:$0xff] %v9516_v42  ;;  %v2104_v13 = vadd.f32 %v2103_v57, %v9322_v37  ;;  %v2349_v44 = vadd.f32 %v2348_v15, %v9362_v5  ;;  %2717 = vmatprep.mubr.f32.mxu0 %v11722_v46  ;;  %2962 = vmatprep.mubr.f32.mxu1 %v11722_v46  ;;  %v11862_v42 = vld [vmem:[#allocation45_spill] sm:$0xff]  ;;  %v11869_v54 = vld [vmem:[#allocation44_spill] sm:$0xff] }
 0x208   : > { %v9523_v26 = vpop.f32.mrf.mxu0  ;;  %v2350_v17 = vpop.f32.mrf.mxu1 }
 0x209   : > { %11856 = vst [vmem:[#allocation152_spill] sm:$0xff] %v9523_v26  ;;  %v3183_v14 = vmax.f32 %v2104_v13, 0.0  ;;  %v3153_v16 = vmax.f32 %v2349_v44, 0.0  ;;  %v2351_v61 = vadd.f32 %v2350_v17, %v9382_v41  ;;  %v3138_v13 = vmax.f32 %v2345_v39, 0.0  ;;  %v11861_v44 = vld [vmem:[#allocation39_spill] sm:$0xff] }
 0x20a   : > { %v2109_v10 = vpop.f32.mrf.mxu0  ;;  %v2354_v25 = vpop.f32.mrf.mxu1  ;;  %6751 = vmatmul.mubr.msk.f32.gmra.mxu0 %vm813_vm1, %v7739_v2  ;;  %6783 = vmatmul.mubr.msk.f32.gmra.mxu1 %vm813_vm1, %v7737_v4 }
 0x20b   : > { %v9529_v57 = vpack.c.bf16 %v3183_v14, %v3167_v60  ;;  %v9531_v15 = vpack.c.bf16 %v3153_v16, %v3137_v1  ;;  %v3154_v29 = vmax.f32 %v2351_v61, 0.0  ;;  %3857 = vmatpush2.bf16.xpose.msra.mxu0 %v11859_v51  ;;  %3896 = vmatpush2.bf16.xpose.msra.mxu1 %v11860_v47  ;;  %v2110_v17 = vadd.f32 %v2109_v10, %v9322_v37  ;;  %v7740_v16 = vld [vmem:[%s7945_s12 + $0xe8] sm:$0xff] }
 0x20c   : > { %3858 = vmatprep.subr.bf16.mxu0 %v11861_v44  ;;  %3897 = vmatprep.subr.bf16.mxu1 %v11862_v42  ;;  %v9538_v62 = vpop.f32.mrf.mxu0  ;;  %v9540_v4 = vpop.f32.mrf.mxu1  ;;  %v2355_v14 = vadd.f32 %v2354_v25, %v9362_v5  ;;  %v416_v44 = vld [vmem:[%s11430_s3] sm:$0x77] }
 0x20d   : > { %11857 = vst [vmem:[#allocation153_spill] sm:$0xff] %v9529_v57  ;;  %11858 = vst [vmem:[#allocation154_spill] sm:$0xff] %v9531_v15  ;;  %2723 = vmatprep.mubr.f32.mxu0 %v11722_v46  ;;  %2968 = vmatprep.mubr.f32.mxu1 %v11722_v46  ;;  %v9548_v39 = vpack.c.bf16 %v3154_v29, %v3138_v13  ;;  %v3199_v61 = vmax.f32 %v2110_v17, 0.0  ;;  %v6790_v57 = vcombine.high %v416_v44, %v416_v44 }
 0x20e   : > { %11863 = vst [vmem:[#allocation155_spill] sm:$0xff] %v9540_v4  ;;  %v2115_v1 = vpop.f32.mrf.mxu0  ;;  %v2360_v60 = vpop.f32.mrf.mxu1  ;;  %6752 = vmatmul.mubr.msk.f32.gmra.mxu0 %vm813_vm1, %v7740_v16  ;;  %6784 = vmatmul.mubr.msk.f32.gmra.mxu1 %vm813_vm1, %v7738_v31  ;;  %v3169_v31 = vmax.f32 %v2355_v14, 0.0 }
 0x20f   : > { %11864 = vst [vmem:[#allocation156_spill] sm:$0xff] %v9548_v39  ;;  %v2116_v10 = vadd.f32 %v2115_v1, %v9322_v37  ;;  %v2361_v42 = vadd.f32 %v2360_v60, %v9362_v5  ;;  %2729 = vmatprep.mubr.f32.mxu0 %v11722_v46  ;;  %2974 = vmatprep.mubr.f32.mxu1 %v11722_v46  ;;  %v7741_v1 = vld [vmem:[%s7945_s12 + $0xf0] sm:$0xff] }
 0x210   : > { %v9554_v25 = vpop.f32.mrf.mxu0  ;;  %v9556_v47 = vpop.f32.mrf.mxu1  ;;  %v11868_v39 = vld [vmem:[#allocation38_spill] sm:$0xff] }
 0x211   : > { %11865 = vst [vmem:[#allocation157_spill] sm:$0xff] %v9556_v47  ;;  %v3215_v29 = vmax.f32 %v2116_v10, 0.0  ;;  %v3185_v13 = vmax.f32 %v2361_v42, 0.0  ;;  %v11870_v42 = vld [vmem:[#allocation41_spill] sm:$0xff] }
 0x212   : > { %v2121_v17 = vpop.f32.mrf.mxu0  ;;  %v2366_v51 = vpop.f32.mrf.mxu1  ;;  %6753 = vmatmul.mubr.msk.f32.gmra.mxu0 %vm813_vm1, %v7741_v1  ;;  %6785 = vmatmul.mubr.msk.f32.gmra.mxu1 %vm813_vm1, %v7739_v2 }
 0x213   : > { %v9564_v60 = vpack.c.bf16 %v3215_v29, %v3199_v61  ;;  %v9566_v15 = vpack.c.bf16 %v3185_v13, %v3169_v31  ;;  %3859 = vmatpush2.bf16.xpose.msra.mxu0 %v11868_v39  ;;  %3898 = vmatpush2.bf16.xpose.msra.mxu1 %v11869_v54  ;;  %v2122_v14 = vadd.f32 %v2121_v17, %v9322_v37  ;;  %v7742_v29 = vld [vmem:[%s7945_s12 + $0xf8] sm:$0xff]  ;;  %v9586_v17 = vld [vmem:[%s11430_s3 + $0x10] sm:$0x77]  ;;  %s399_s12 = scalar_lea.vmem %s11437_s10, %s7931_s16  ;;  %s378_s16 = sand.u32 1, %s7796_s18  }
 0x214   : > { %3899 = vmatprep.subr.bf16.mxu1 %v11870_v42  ;;  %3910 = vmatprep.subr.bf16.mxu0 %v9091_v50  ;;  %v9573_v10 = vpop.f32.mrf.mxu0  ;;  %v9575_v4 = vpop.f32.mrf.mxu1  ;;  %v2367_v2 = vadd.f32 %v2366_v51, %v9362_v5  ;;  %v6789_v13 = vcombine.low %v416_v44, %v416_v44  ;;  %v417_v44 = vld [vmem:[%s11430_s3 + $0x8] sm:$0x77]  ;;  %s379_s30 = scalar_lea.vmem [#allocation2], %s378_s16  ;;  %s6384_s21 = scalar_lea.sflag [#allocation3], %s378_s16 }
 0x215   : > { %11866 = vst [vmem:[#allocation158_spill] sm:$0xff] %v9564_v60  ;;  %11867 = vst [vmem:[#allocation159_spill] sm:$0xff] %v9566_v15  ;;  %2735 = vmatprep.mubr.f32.mxu0 %v11722_v46  ;;  %2980 = vmatprep.mubr.f32.mxu1 %v11722_v46  ;;  %v3231_v42 = vmax.f32 %v2122_v14, 0.0  ;;  %v6794_v14 = vcombine.high %v9586_v17, %v9586_v17  ;;  %s6404_s13 = sshll.u32 %s379_s30, 4  ;;  %s11388_s13 = int_to_ptr.vmem [resolvable:$true] %s6404_s13 }
 0x216   : > { %11871 = vst [vmem:[#allocation160_spill] sm:$0xff] %v9575_v4  ;;  %v2127_v61 = vpop.f32.mrf.mxu0  ;;  %v2372_v31 = vpop.f32.mrf.mxu1  ;;  %6754 = vmatmul.mubr.msk.f32.gmra.mxu0 %vm813_vm1, %v7742_v29  ;;  %6786 = vmatmul.mubr.msk.f32.gmra.mxu1 %vm813_vm1, %v7740_v16  ;;  %v3201_v16 = vmax.f32 %v2367_v2, 0.0  ;;  %v11875_v4 = vld [vmem:[#allocation40_spill] sm:$0xff] }
 0x217   : > { %v2128_v51 = vadd.f32 %v2127_v61, %v9322_v37  ;;  %v2373_v54 = vadd.f32 %v2372_v31, %v9362_v5  ;;  %2986 = vmatprep.mubr.f32.mxu1 %v11722_v46  ;;  %3860 = vmatprep.mubr.bf16.mxu0 %v6790_v57 }
 0x218   : > { %v9591_v50 = vpop.f32.mrf.mxu0  ;;  %v9593_v39 = vpop.f32.mrf.mxu1 }
 0x219   : > { %11872 = vst [vmem:[#allocation161_spill] sm:$0xff] %v9593_v39  ;;  %v3247_v15 = vmax.f32 %v2128_v51, 0.0  ;;  %v3217_v60 = vmax.f32 %v2373_v54, 0.0  ;;  %v6792_v39 = vcombine.high %v417_v44, %v417_v44  ;;  %v11876_v54 = vld [vmem:[#allocation94_spill] sm:$0xff] }
 0x21a   : > { %v2133_v61 = vpop.f32.mrf.mxu0  ;;  %v2378_v47 = vpop.f32.mrf.mxu1  ;;  %6787 = vmatmul.mubr.msk.f32.gmra.mxu1 %vm813_vm1, %v7741_v1  ;;  %3861 = vmatmul.mubr.bf16.vlgmr.msra.gmra.mxu0 %v6789_v13  ;;  %v9620_v13 = vld [vmem:[%s11430_s3 + $0x18] sm:$0x77] }
 0x21b   : > { %v9601_v57 = vpack.c.bf16 %v3247_v15, %v3231_v42  ;;  %v9603_v31 = vpack.c.bf16 %v3217_v60, %v3201_v16  ;;  %3900 = vmatpush2.bf16.xpose.msra.mxu1 %v11875_v4  ;;  %3911 = vmatpush1.bf16.xpose.msra.mxu0 %v9081_v53  ;;  %v2134_v2 = vadd.f32 %v2133_v61, %v9322_v37 }
 0x21c   : > { %3912 = vmatprep.subr.bf16.mxu0 %v11876_v54  ;;  %3951 = vmatprep.subr.bf16.mxu1 %v9122_v48  ;;  %v9610_v51 = vpop.f32.mrf.mxu0  ;;  %v9612_v26 = vpop.f32.mrf.mxu1  ;;  %v2379_v15 = vadd.f32 %v2378_v47, %v9362_v5  ;;  %v6791_v42 = vcombine.low %v417_v44, %v417_v44 }
 0x21d   : > { %11873 = vst [vmem:[#allocation162_spill] sm:$0xff] %v9601_v57  ;;  %11874 = vst [vmem:[#allocation163_spill] sm:$0xff] %v9603_v31  ;;  %2992 = vmatprep.mubr.f32.mxu1 %v11722_v46  ;;  %3942 = vmatprep.mubr.bf16.mxu0 %v6794_v14  ;;  %v3263_v16 = vmax.f32 %v2134_v2, 0.0 }
 0x21e   : > { %11877 = vst [vmem:[#allocation164_spill] sm:$0xff] %v9610_v51  ;;  %v2139_v1 = vpop.f32.mrf.mxu0  ;;  %v2384_v60 = vpop.f32.mrf.mxu1  ;;  %6788 = vmatmul.mubr.msk.f32.gmra.mxu1 %vm813_vm1, %v7742_v29  ;;  %v3233_v14 = vmax.f32 %v2379_v15, 0.0  ;;  %v6796_v29 = vcombine.high %v9620_v13, %v9620_v13  ;;  %v11883_v15 = vld [vmem:[#allocation99_spill] sm:$0xff] }
 0x21f   : > { %v2140_v61 = vadd.f32 %v2139_v1, %v9322_v37  ;;  %v2385_v54 = vadd.f32 %v2384_v60, %v9362_v5  ;;  %3901 = vmatprep.mubr.bf16.mxu1 %v6792_v39  ;;  %v11881_v1 = vld [vmem:[#allocation92_spill] sm:$0xff]  ;;  %v11882_v60 = vld [vmem:[#allocation90_spill] sm:$0xff] }
 0x220   : > { %v9624_v47 = vpop.f32.mrf.mxu0  ;;  %v9626_v46 = vpop.f32.mrf.mxu1 }
 0x221   : > { %11878 = vst [vmem:[#allocation165_spill] sm:$0xff] %v9624_v47  ;;  %v3279_v53 = vmax.f32 %v2140_v61, 0.0  ;;  %v3249_v48 = vmax.f32 %v2385_v54, 0.0 }
 0x222   : > { %v2145_v44 = vpop.f32.mrf.mxu0  ;;  %v2390_v4 = vpop.f32.mrf.mxu1  ;;  %3902 = vmatmul.mubr.bf16.vlgmr.msra.gmra.mxu1 %v6791_v42 }
 0x223   : > { %v9630_v51 = vpack.c.bf16 %v3279_v53, %v3263_v16  ;;  %v9632_v2 = vpack.c.bf16 %v3249_v48, %v3233_v14  ;;  %3913 = vmatpush1.bf16.xpose.msra.mxu0 %v11881_v1  ;;  %3952 = vmatpush1.bf16.xpose.msra.mxu1 %v9111_v59  ;;  %v2146_v39 = vadd.f32 %v2145_v44, %v9322_v37 }
 0x224   : > { %3914 = vmatprep.subr.bf16.mxu0 %v11882_v60  ;;  %3953 = vmatprep.subr.bf16.mxu1 %v11883_v15  ;;  %v9639_v54 = vpop.f32.mrf.mxu0  ;;  %v9641_v61 = vpop.f32.mrf.mxu1  ;;  %v2391_v42 = vadd.f32 %v2390_v4, %v9362_v5 }
 0x225   : > { %11879 = vst [vmem:[#allocation166_spill] sm:$0xff] %v9630_v51  ;;  %11880 = vst [vmem:[#allocation167_spill] sm:$0xff] %v9632_v2  ;;  %3983 = vmatprep.mubr.bf16.mxu1 %v6796_v29  ;;  %v3295_v16 = vmax.f32 %v2146_v39, 0.0  ;;  %v11890_v29 = vld [vmem:[#allocation88_spill] sm:$0xff]  ;;  %v11891_v39 = vld [vmem:[#allocation97_spill] sm:$0xff] }
 0x226   : > { %11884 = vst [vmem:[#allocation168_spill] sm:$0xff] %v9639_v54  ;;  %11885 = vst [vmem:[#allocation169_spill] sm:$0xff] %v9641_v61  ;;  %v2151_v53 = vpop.f32.mrf.mxu0  ;;  %v2396_v48 = vpop.f32.mrf.mxu1  ;;  %v3265_v60 = vmax.f32 %v2391_v42, 0.0 }
 0x227   : > { %v2152_v14 = vadd.f32 %v2151_v53, %v9322_v37  ;;  %v2397_v1 = vadd.f32 %v2396_v48, %v9362_v5  ;;  %v11892_v48 = vld [vmem:[#allocation86_spill] sm:$0xff] }
 0x228   : > { %v9646_v59 = vpop.f32.mrf.mxu0  ;;  %v9648_v44 = vpop.f32.mrf.mxu1 }
 0x229   : > { %11886 = vst [vmem:[#allocation170_spill] sm:$0xff] %v9646_v59  ;;  %11887 = vst [vmem:[#allocation171_spill] sm:$0xff] %v9648_v44  ;;  %v3311_v15 = vmax.f32 %v2152_v14, 0.0  ;;  %v3281_v51 = vmax.f32 %v2397_v1, 0.0  ;;  %v11893_v59 = vld [vmem:[#allocation95_spill] sm:$0xff] }
 0x22a   : > { %v2157_v47 = vpop.f32.mrf.mxu0  ;;  %v2402_v54 = vpop.f32.mrf.mxu1 }
 0x22b   : > { %v9650_v61 = vpack.c.bf16 %v3311_v15, %v3295_v16  ;;  %v9652_v4 = vpack.c.bf16 %v3281_v51, %v3265_v60  ;;  %3915 = vmatpush1.bf16.xpose.msra.mxu0 %v11890_v29  ;;  %3954 = vmatpush1.bf16.xpose.msra.mxu1 %v11891_v39  ;;  %v2158_v53 = vadd.f32 %v2157_v47, %v9322_v37 }
 0x22c   : > { %3916 = vmatprep.subr.bf16.mxu0 %v11892_v48  ;;  %3955 = vmatprep.subr.bf16.mxu1 %v11893_v59  ;;  %v9659_v44 = vpop.f32.mrf.mxu0  ;;  %v9661_v42 = vpop.f32.mrf.mxu1  ;;  %v2403_v1 = vadd.f32 %v2402_v54, %v9362_v5  ;;  %v11900_v54 = vld [vmem:[#allocation84_spill] sm:$0xff] }
 0x22d   : > { %11888 = vst [vmem:[#allocation172_spill] sm:$0xff] %v9650_v61  ;;  %11889 = vst [vmem:[#allocation173_spill] sm:$0xff] %v9652_v4  ;;  %v3327_v51 = vmax.f32 %v2158_v53, 0.0  ;;  %v11901_v53 = vld [vmem:[#allocation93_spill] sm:$0xff] }
 0x22e   : > { %11894 = vst [vmem:[#allocation174_spill] sm:$0xff] %v9659_v44  ;;  %11895 = vst [vmem:[#allocation175_spill] sm:$0xff] %v9661_v42  ;;  %v2163_v15 = vpop.f32.mrf.mxu0  ;;  %v2408_v16 = vpop.f32.mrf.mxu1  ;;  %v3297_v48 = vmax.f32 %v2403_v1, 0.0 }
 0x22f   : > { %v2164_v60 = vadd.f32 %v2163_v15, %v9322_v37  ;;  %v2409_v14 = vadd.f32 %v2408_v16, %v9362_v5  ;;  %v11902_v16 = vld [vmem:[#allocation82_spill] sm:$0xff] }
 0x230   : > { %v9666_v29 = vpop.f32.mrf.mxu0  ;;  %v9668_v47 = vpop.f32.mrf.mxu1 }
 0x231   : > { %11896 = vst [vmem:[#allocation176_spill] sm:$0xff] %v9666_v29  ;;  %11897 = vst [vmem:[#allocation177_spill] sm:$0xff] %v9668_v47  ;;  %v3343_v39 = vmax.f32 %v2164_v60, 0.0  ;;  %v3313_v59 = vmax.f32 %v2409_v14, 0.0  ;;  %v11903_v29 = vld [vmem:[#allocation91_spill] sm:$0xff] }
 0x232   : > { %v2169_v4 = vpop.f32.mrf.mxu0  ;;  %v2414_v61 = vpop.f32.mrf.mxu1 }
 0x233   : > { %v9670_v44 = vpack.c.bf16 %v3343_v39, %v3327_v51  ;;  %v9672_v42 = vpack.c.bf16 %v3313_v59, %v3297_v48  ;;  %3917 = vmatpush1.bf16.xpose.msra.mxu0 %v11900_v54  ;;  %3956 = vmatpush1.bf16.xpose.msra.mxu1 %v11901_v53  ;;  %v2170_v15 = vadd.f32 %v2169_v4, %v9322_v37 }
 0x234   : > { %3918 = vmatprep.subr.bf16.mxu0 %v11902_v16  ;;  %3957 = vmatprep.subr.bf16.mxu1 %v11903_v29  ;;  %v9679_v47 = vpop.f32.mrf.mxu0  ;;  %v9681_v1 = vpop.f32.mrf.mxu1  ;;  %v2415_v60 = vadd.f32 %v2414_v61, %v9362_v5  ;;  %v11910_v61 = vld [vmem:[#allocation80_spill] sm:$0xff] }
 0x235   : > { %11898 = vst [vmem:[#allocation178_spill] sm:$0xff] %v9670_v44  ;;  %11899 = vst [vmem:[#allocation179_spill] sm:$0xff] %v9672_v42  ;;  %v3359_v59 = vmax.f32 %v2170_v15, 0.0  ;;  %v11911_v15 = vld [vmem:[#allocation89_spill] sm:$0xff] }
 0x236   : > { %11904 = vst [vmem:[#allocation180_spill] sm:$0xff] %v9679_v47  ;;  %11905 = vst [vmem:[#allocation181_spill] sm:$0xff] %v9681_v1  ;;  %v2175_v39 = vpop.f32.mrf.mxu0  ;;  %v2420_v51 = vpop.f32.mrf.mxu1  ;;  %v3329_v16 = vmax.f32 %v2415_v60, 0.0 }
 0x237   : > { %v2176_v48 = vadd.f32 %v2175_v39, %v9322_v37  ;;  %v2421_v14 = vadd.f32 %v2420_v51, %v9362_v5  ;;  %v11912_v51 = vld [vmem:[#allocation78_spill] sm:$0xff] }
 0x238   : > { %v9686_v54 = vpop.f32.mrf.mxu0  ;;  %v9688_v4 = vpop.f32.mrf.mxu1 }
 0x239   : > { %11906 = vst [vmem:[#allocation182_spill] sm:$0xff] %v9686_v54  ;;  %11907 = vst [vmem:[#allocation183_spill] sm:$0xff] %v9688_v4  ;;  %v3375_v53 = vmax.f32 %v2176_v48, 0.0  ;;  %v3345_v29 = vmax.f32 %v2421_v14, 0.0  ;;  %v11913_v54 = vld [vmem:[#allocation87_spill] sm:$0xff] }
 0x23a   : > { %v2181_v42 = vpop.f32.mrf.mxu0  ;;  %v2426_v44 = vpop.f32.mrf.mxu1 }
 0x23b   : > { %v9690_v47 = vpack.c.bf16 %v3375_v53, %v3359_v59  ;;  %v9692_v1 = vpack.c.bf16 %v3345_v29, %v3329_v16  ;;  %3919 = vmatpush1.bf16.xpose.msra.mxu0 %v11910_v61  ;;  %3958 = vmatpush1.bf16.xpose.msra.mxu1 %v11911_v15  ;;  %v2182_v39 = vadd.f32 %v2181_v42, %v9322_v37 }
 0x23c   : > { %3920 = vmatprep.subr.bf16.mxu0 %v11912_v51  ;;  %3959 = vmatprep.subr.bf16.mxu1 %v11913_v54  ;;  %v9699_v4 = vpop.f32.mrf.mxu0  ;;  %v9701_v60 = vpop.f32.mrf.mxu1  ;;  %v2427_v48 = vadd.f32 %v2426_v44, %v9362_v5  ;;  %v11920_v44 = vld [vmem:[#allocation76_spill] sm:$0xff] }
 0x23d   : > { %11908 = vst [vmem:[#allocation184_spill] sm:$0xff] %v9690_v47  ;;  %11909 = vst [vmem:[#allocation185_spill] sm:$0xff] %v9692_v1  ;;  %v3391_v29 = vmax.f32 %v2182_v39, 0.0  ;;  %v11921_v39 = vld [vmem:[#allocation85_spill] sm:$0xff] }
 0x23e   : > { %11914 = vst [vmem:[#allocation186_spill] sm:$0xff] %v9699_v4  ;;  %11915 = vst [vmem:[#allocation187_spill] sm:$0xff] %v9701_v60  ;;  %v2187_v53 = vpop.f32.mrf.mxu0  ;;  %v2432_v59 = vpop.f32.mrf.mxu1  ;;  %v3361_v51 = vmax.f32 %v2427_v48, 0.0 }
 0x23f   : > { %v2188_v16 = vadd.f32 %v2187_v53, %v9322_v37  ;;  %v2433_v14 = vadd.f32 %v2432_v59, %v9362_v5  ;;  %v11922_v59 = vld [vmem:[#allocation74_spill] sm:$0xff] }
 0x240   : > { %v9706_v61 = vpop.f32.mrf.mxu0  ;;  %v9708_v42 = vpop.f32.mrf.mxu1 }
 0x241   : > { %11916 = vst [vmem:[#allocation188_spill] sm:$0xff] %v9706_v61  ;;  %11917 = vst [vmem:[#allocation189_spill] sm:$0xff] %v9708_v42  ;;  %v3407_v15 = vmax.f32 %v2188_v16, 0.0  ;;  %v3377_v54 = vmax.f32 %v2433_v14, 0.0  ;;  %v11923_v61 = vld [vmem:[#allocation83_spill] sm:$0xff] }
 0x242   : > { %v2193_v1 = vpop.f32.mrf.mxu0  ;;  %v2438_v47 = vpop.f32.mrf.mxu1 }
 0x243   : > { %v9710_v4 = vpack.c.bf16 %v3407_v15, %v3391_v29  ;;  %v9712_v60 = vpack.c.bf16 %v3377_v54, %v3361_v51  ;;  %3921 = vmatpush1.bf16.xpose.msra.mxu0 %v11920_v44  ;;  %3960 = vmatpush1.bf16.xpose.msra.mxu1 %v11921_v39  ;;  %v2194_v53 = vadd.f32 %v2193_v1, %v9322_v37 }
 0x244   : > { %3922 = vmatprep.subr.bf16.mxu0 %v11922_v59  ;;  %3961 = vmatprep.subr.bf16.mxu1 %v11923_v61  ;;  %v9719_v42 = vpop.f32.mrf.mxu0  ;;  %v9721_v48 = vpop.f32.mrf.mxu1  ;;  %v2439_v16 = vadd.f32 %v2438_v47, %v9362_v5  ;;  %v11930_v47 = vld [vmem:[#allocation72_spill] sm:$0xff] }
 0x245   : > { %11918 = vst [vmem:[#allocation190_spill] sm:$0xff] %v9710_v4  ;;  %11919 = vst [vmem:[#allocation191_spill] sm:$0xff] %v9712_v60  ;;  %v3423_v54 = vmax.f32 %v2194_v53, 0.0  ;;  %v11931_v53 = vld [vmem:[#allocation81_spill] sm:$0xff] }
 0x246   : > { %11924 = vst [vmem:[#allocation192_spill] sm:$0xff] %v9719_v42  ;;  %11925 = vst [vmem:[#allocation193_spill] sm:$0xff] %v9721_v48  ;;  %v2199_v15 = vpop.f32.mrf.mxu0  ;;  %v2444_v29 = vpop.f32.mrf.mxu1  ;;  %v3393_v59 = vmax.f32 %v2439_v16, 0.0 }
 0x247   : > { %v2200_v51 = vadd.f32 %v2199_v15, %v9322_v37  ;;  %v2445_v14 = vadd.f32 %v2444_v29, %v9362_v5  ;;  %v11932_v29 = vld [vmem:[#allocation71_spill] sm:$0xff] }
 0x248   : > { %v9726_v44 = vpop.f32.mrf.mxu0  ;;  %v9728_v1 = vpop.f32.mrf.mxu1 }
 0x249   : > { %11926 = vst [vmem:[#allocation194_spill] sm:$0xff] %v9726_v44  ;;  %11927 = vst [vmem:[#allocation195_spill] sm:$0xff] %v9728_v1  ;;  %v3439_v39 = vmax.f32 %v2200_v51, 0.0  ;;  %v3409_v61 = vmax.f32 %v2445_v14, 0.0  ;;  %v11933_v44 = vld [vmem:[#allocation79_spill] sm:$0xff] }
 0x24a   : > { %v2205_v60 = vpop.f32.mrf.mxu0  ;;  %v2450_v4 = vpop.f32.mrf.mxu1 }
 0x24b   : > { %v9730_v42 = vpack.c.bf16 %v3439_v39, %v3423_v54  ;;  %v9732_v48 = vpack.c.bf16 %v3409_v61, %v3393_v59  ;;  %3923 = vmatpush1.bf16.xpose.msra.mxu0 %v11930_v47  ;;  %3962 = vmatpush1.bf16.xpose.msra.mxu1 %v11931_v53  ;;  %v2206_v15 = vadd.f32 %v2205_v60, %v9322_v37 }
 0x24c   : > { %3924 = vmatprep.subr.bf16.mxu0 %v11932_v29  ;;  %3963 = vmatprep.subr.bf16.mxu1 %v11933_v44  ;;  %v9739_v1 = vpop.f32.mrf.mxu0  ;;  %v9741_v16 = vpop.f32.mrf.mxu1  ;;  %v2451_v51 = vadd.f32 %v2450_v4, %v9362_v5  ;;  %v11939_v4 = vld [vmem:[#allocation69_spill] sm:$0xff] }
 0x24d   : > { %11928 = vst [vmem:[#allocation196_spill] sm:$0xff] %v9730_v42  ;;  %11929 = vst [vmem:[#allocation197_spill] sm:$0xff] %v9732_v48  ;;  %v3455_v61 = vmax.f32 %v2206_v15, 0.0  ;;  %v11940_v15 = vld [vmem:[#allocation77_spill] sm:$0xff] }
 0x24e   : > { %11934 = vst [vmem:[#allocation198_spill] sm:$0xff] %v9739_v1  ;;  %11935 = vst [vmem:[#allocation199_spill] sm:$0xff] %v9741_v16  ;;  %v2211_v39 = vpop.f32.mrf.mxu0  ;;  %v2456_v54 = vpop.f32.mrf.mxu1  ;;  %v3425_v29 = vmax.f32 %v2451_v51, 0.0 }
 0x24f   : > { %v2212_v59 = vadd.f32 %v2211_v39, %v9322_v37  ;;  %v2457_v14 = vadd.f32 %v2456_v54, %v9362_v5  ;;  %v11941_v54 = vld [vmem:[#allocation75_spill] sm:$0xff] }
 0x250   : > { %v9746_v47 = vpop.f32.mrf.mxu0  ;;  %v9748_v60 = vpop.f32.mrf.mxu1 }
 0x251   : > { %11936 = vst [vmem:[#allocation200_spill] sm:$0xff] %v9748_v60  ;;  %v3471_v53 = vmax.f32 %v2212_v59, 0.0  ;;  %v3441_v44 = vmax.f32 %v2457_v14, 0.0 }
 0x252   : > { %v2217_v48 = vpop.f32.mrf.mxu0  ;;  %v2462_v42 = vpop.f32.mrf.mxu1 }
 0x253   : > { %v9750_v1 = vpack.c.bf16 %v3471_v53, %v3455_v61  ;;  %v9752_v16 = vpack.c.bf16 %v3441_v44, %v3425_v29  ;;  %3925 = vmatpush1.bf16.xpose.msra.mxu0 %v11939_v4  ;;  %3964 = vmatpush1.bf16.xpose.msra.mxu1 %v11940_v15  ;;  %v2218_v39 = vadd.f32 %v2217_v48, %v9322_v37 }
 0x254   : > { %3926 = vmatprep.subr.bf16.mxu0 %v9346_v19  ;;  %3965 = vmatprep.subr.bf16.mxu1 %v11941_v54  ;;  %v9759_v60 = vpop.f32.mrf.mxu0  ;;  %v9761_v51 = vpop.f32.mrf.mxu1  ;;  %v2463_v59 = vadd.f32 %v2462_v42, %v9362_v5  ;;  %v9773_v19 = vld [vmem:[%s11429_s2 + $0x8] sm:$0xff]  ;;  %v11944_v54 = vsub.s32 4, %v8376_v55 }
 0x255   : > { %11937 = vst [vmem:[#allocation201_spill] sm:$0xff] %v9750_v1  ;;  %11938 = vst [vmem:[#allocation202_spill] sm:$0xff] %v9752_v16  ;;  %v3487_v44 = vmax.f32 %v2218_v39, 0.0 }
 0x256   : > { %11942 = vst [vmem:[#allocation203_spill] sm:$0xff] %v9761_v51  ;;  %v2223_v53 = vpop.f32.mrf.mxu0  ;;  %v2468_v61 = vpop.f32.mrf.mxu1  ;;  %v9778_v42 = vrot.slane %v9773_v19, %v11944_v54  ;;  %v3457_v15 = vmax.f32 %v2463_v59, 0.0  ;;  %v11947_v51 = vld [vmem:[#allocation73_spill] sm:$0xff] }
 0x257   : > { %v2224_v29 = vadd.f32 %v2223_v53, %v9322_v37  ;;  %v2469_v14 = vadd.f32 %v2468_v61, %v9362_v5 }
 0x258   : > { %v9766_v4 = vpop.f32.mrf.mxu0  ;;  %v9768_v48 = vpop.f32.mrf.mxu1 }
 0x259   : > { %11943 = vst [vmem:[#allocation204_spill] sm:$0xff] %v9768_v48  ;;  %v3503_v39 = vmax.f32 %v2224_v29, 0.0  ;;  %v3473_v16 = vmax.f32 %v2469_v14, 0.0 }
 0x25a   : > { %v2474_v37 = vpop.f32.mrf.mxu1  ;;  %v2551_v53 = vpop.f32.mrf.mxu0 }
 0x25b   : > { %v9780_v61 = vpack.c.bf16 %v3503_v39, %v3487_v44  ;;  %v9782_v1 = vpack.c.bf16 %v3473_v16, %v3457_v15  ;;  %3927 = vmatpush2.bf16.xpose.msra.mxu0 %v9334_v18  ;;  %3966 = vmatpush1.bf16.xpose.msra.mxu1 %v11947_v51  ;;  %v2552_v48 = vadd.f32 %v2551_v53, %v9778_v42 }
 0x25c   : > { %3928 = vmatprep.subr.bf16.mxu0 %v9307_v23  ;;  %3967 = vmatprep.subr.bf16.mxu1 %v9387_v9  ;;  %v9789_v54 = vpop.f32.mrf.mxu1  ;;  %v9791_v59 = vpop.f32.mrf.mxu0  ;;  %v2475_v29 = vadd.f32 %v2474_v37, %v9362_v5 }
 0x25d   : > { %11945 = vst [vmem:[#allocation205_spill] sm:$0xff] %v9780_v61  ;;  %11946 = vst [vmem:[#allocation206_spill] sm:$0xff] %v9782_v1  ;;  %v3011_v16 = vmax.f32 %v2552_v48, 0.0  ;;  %v11951_v1 = vsub.s32 6, %v8376_v55 }
 0x25e   : > { %11948 = vst [vmem:[#allocation207_spill] sm:$0xff] %v9789_v54  ;;  %11949 = vst [vmem:[#allocation208_spill] sm:$0xff] %v9791_v59  ;;  %v2480_v44 = vpop.f32.mrf.mxu1  ;;  %v2557_v14 = vpop.f32.mrf.mxu0  ;;  %v3489_v23 = vmax.f32 %v2475_v29, 0.0 }
 0x25f   : > { %v2481_v15 = vadd.f32 %v2480_v44, %v9362_v5  ;;  %v2558_v39 = vadd.f32 %v2557_v14, %v9778_v42  ;;  %v9803_v59 = vrot.slane %v9773_v19, %v11951_v1 }
 0x260   : > { %v9796_v18 = vpop.f32.mrf.mxu1  ;;  %v9798_v53 = vpop.f32.mrf.mxu0 }
 0x261   : > { %11950 = vst [vmem:[#allocation209_spill] sm:$0xff] %v9798_v53  ;;  %v3505_v51 = vmax.f32 %v2481_v15, 0.0  ;;  %v3027_v9 = vmax.f32 %v2558_v39, 0.0 }
 0x262   : > { %v2563_v37 = vpop.f32.mrf.mxu0  ;;  %v2808_v61 = vpop.f32.mrf.mxu1 }
 0x263   : > { %v9805_v54 = vpack.c.bf16 %v3505_v51, %v3489_v23  ;;  %v9807_v48 = vpack.c.bf16 %v3027_v9, %v3011_v16  ;;  %3929 = vmatpush2.bf16.xpose.msra.mxu0 %v9289_v24  ;;  %3968 = vmatpush2.bf16.xpose.msra.mxu1 %v9369_v43  ;;  %v2564_v5 = vadd.f32 %v2563_v37, %v9778_v42 }
 0x264   : > { %3930 = vmatprep.subr.bf16.mxu0 %v9272_v12  ;;  %3969 = vmatprep.subr.bf16.mxu1 %v9353_v20  ;;  %v9814_v29 = vpop.f32.mrf.mxu0  ;;  %v9816_v1 = vpop.f32.mrf.mxu1  ;;  %v2809_v44 = vadd.f32 %v2808_v61, %v9803_v59 }
 0x265   : > { %11952 = vst [vmem:[#allocation210_spill] sm:$0xff] %v9807_v48  ;;  %11953 = vst [vmem:[#allocation211_spill] sm:$0xff] %v9816_v1  ;;  %v3043_v9 = vmax.f32 %v2564_v5, 0.0 }
 0x266   : > { %v2569_v23 = vpop.f32.mrf.mxu0  ;;  %v2814_v51 = vpop.f32.mrf.mxu1  ;;  %v3013_v37 = vmax.f32 %v2809_v44, 0.0 }
 0x267   : > { %v2570_v14 = vadd.f32 %v2569_v23, %v9778_v42  ;;  %v2815_v16 = vadd.f32 %v2814_v51, %v9803_v59 }
 0x268   : > { %v9821_v15 = vpop.f32.mrf.mxu0  ;;  %v9823_v39 = vpop.f32.mrf.mxu1 }
 0x269   : > { %11954 = vst [vmem:[#allocation212_spill] sm:$0xff] %v9823_v39  ;;  %v3059_v12 = vmax.f32 %v2570_v14, 0.0  ;;  %v3029_v24 = vmax.f32 %v2815_v16, 0.0 }
 0x26a   : > { %v2575_v20 = vpop.f32.mrf.mxu0  ;;  %v2820_v43 = vpop.f32.mrf.mxu1 }
 0x26b   : > { %v9825_v48 = vpack.c.bf16 %v3059_v12, %v3043_v9  ;;  %v9827_v1 = vpack.c.bf16 %v3029_v24, %v3013_v37  ;;  %3931 = vmatpush2.bf16.xpose.msra.mxu0 %v9259_v33  ;;  %3970 = vmatpush2.bf16.xpose.msra.mxu1 %v9336_v6  ;;  %v2576_v61 = vadd.f32 %v2575_v20, %v9778_v42 }
 0x26c   : > { %3932 = vmatprep.subr.bf16.mxu0 %v9242_v40  ;;  %3971 = vmatprep.subr.bf16.mxu1 %v9312_v11  ;;  %v9834_v5 = vpop.f32.mrf.mxu0  ;;  %v9836_v44 = vpop.f32.mrf.mxu1  ;;  %v2821_v23 = vadd.f32 %v2820_v43, %v9803_v59 }
 0x26d   : > { %11955 = vst [vmem:[#allocation213_spill] sm:$0xff] %v9825_v48  ;;  %11956 = vst [vmem:[#allocation214_spill] sm:$0xff] %v9827_v1  ;;  %v3075_v24 = vmax.f32 %v2576_v61, 0.0 }
 0x26e   : > { %11957 = vst [vmem:[#allocation215_spill] sm:$0xff] %v9836_v44  ;;  %v2581_v12 = vpop.f32.mrf.mxu0  ;;  %v2826_v51 = vpop.f32.mrf.mxu1  ;;  %v3045_v37 = vmax.f32 %v2821_v23, 0.0 }
 0x26f   : > { %v2582_v9 = vadd.f32 %v2581_v12, %v9778_v42  ;;  %v2827_v14 = vadd.f32 %v2826_v51, %v9803_v59 }
 0x270   : > { %v9841_v16 = vpop.f32.mrf.mxu0  ;;  %v9843_v20 = vpop.f32.mrf.mxu1 }
 0x271   : > { %11958 = vst [vmem:[#allocation216_spill] sm:$0xff] %v9843_v20  ;;  %v3091_v40 = vmax.f32 %v2582_v9, 0.0  ;;  %v3061_v33 = vmax.f32 %v2827_v14, 0.0 }
 0x272   : > { %v2587_v11 = vpop.f32.mrf.mxu0  ;;  %v2832_v6 = vpop.f32.mrf.mxu1 }
 0x273   : > { %v9845_v1 = vpack.c.bf16 %v3091_v40, %v3075_v24  ;;  %v9847_v48 = vpack.c.bf16 %v3061_v33, %v3045_v37  ;;  %3933 = vmatpush2.bf16.xpose.msra.mxu0 %v9229_v28  ;;  %3972 = vmatpush2.bf16.xpose.msra.mxu1 %v9291_v35  ;;  %v2588_v43 = vadd.f32 %v2587_v11, %v9778_v42 }
 0x274   : > { %3934 = vmatprep.subr.bf16.mxu0 %v9212_v7  ;;  %3973 = vmatprep.subr.bf16.mxu1 %v9277_v52  ;;  %v9854_v61 = vpop.f32.mrf.mxu0  ;;  %v9856_v23 = vpop.f32.mrf.mxu1  ;;  %v2833_v12 = vadd.f32 %v2832_v6, %v9803_v59 }
 0x275   : > { %11959 = vst [vmem:[#allocation217_spill] sm:$0xff] %v9845_v1  ;;  %11960 = vst [vmem:[#allocation218_spill] sm:$0xff] %v9847_v48  ;;  %v3107_v33 = vmax.f32 %v2588_v43, 0.0  ;;  %v11962_v48 = vsub.s32 5, %v8376_v55 }
 0x276   : > { %11961 = vst [vmem:[#allocation219_spill] sm:$0xff] %v9856_v23  ;;  %v2593_v40 = vpop.f32.mrf.mxu0  ;;  %v2838_v51 = vpop.f32.mrf.mxu1  ;;  %v3077_v37 = vmax.f32 %v2833_v12, 0.0 }
 0x277   : > { %v2594_v24 = vadd.f32 %v2593_v40, %v9778_v42  ;;  %v2839_v9 = vadd.f32 %v2838_v51, %v9803_v59  ;;  %v9868_v6 = vrot.slane %v9773_v19, %v11962_v48  ;;  %v11965_v40 = vsub.s32 7, %v8376_v55 }
 0x278   : > { %v9861_v14 = vpop.f32.mrf.mxu0  ;;  %v9863_v11 = vpop.f32.mrf.mxu1 }
 0x279   : > { %v3123_v7 = vmax.f32 %v2594_v24, 0.0  ;;  %v3093_v28 = vmax.f32 %v2839_v9, 0.0  ;;  %v9879_v12 = vrot.slane %v9773_v19, %v11965_v40 }
 0x27a   : > { %v2599_v52 = vpop.f32.mrf.mxu0  ;;  %v2844_v35 = vpop.f32.mrf.mxu1 }
 0x27b   : > { %v9870_v39 = vpack.c.bf16 %v3123_v7, %v3107_v33  ;;  %v9872_v43 = vpack.c.bf16 %v3093_v28, %v3077_v37  ;;  %3935 = vmatpush2.bf16.xpose.msra.mxu0 %v9199_v49  ;;  %3974 = vmatpush2.bf16.xpose.msra.mxu1 %v9261_v63  ;;  %v2600_v51 = vadd.f32 %v2599_v52, %v9778_v42 }
 0x27c   : > { %v2845_v24 = vadd.f32 %v2844_v35, %v9803_v59  ;;  %3936 = vmatprep.subr.bf16.mxu0 %v9182_v0  ;;  %3975 = vmatprep.subr.bf16.mxu1 %v9247_v27  ;;  %v2601_v7 = vpop.f32.mrf.mxu0  ;;  %v2846_v28 = vpop.f32.mrf.mxu1 }
 0x27d   : > { %11963 = vst [vmem:[#allocation220_spill] sm:$0xff] %v9870_v39  ;;  %11964 = vst [vmem:[#allocation221_spill] sm:$0xff] %v9872_v43  ;;  %v2602_v48 = vadd.f32 %v2601_v7, %v9868_v6  ;;  %v2847_v33 = vadd.f32 %v2846_v28, %v9879_v12  ;;  %v3139_v55 = vmax.f32 %v2600_v51, 0.0 }
 0x27e   : > { %v2605_v9 = vpop.f32.mrf.mxu0  ;;  %v2850_v37 = vpop.f32.mrf.mxu1  ;;  %v3109_v52 = vmax.f32 %v2845_v24, 0.0 }
 0x27f   : > { %v2606_v19 = vadd.f32 %v2605_v9, %v9778_v42  ;;  %v2851_v40 = vadd.f32 %v2850_v37, %v9803_v59  ;;  %v3140_v49 = vmax.f32 %v2602_v48, 0.0  ;;  %v3110_v7 = vmax.f32 %v2847_v33, 0.0 }
 0x280   : > { %v2607_v35 = vpop.f32.mrf.mxu0  ;;  %v2852_v63 = vpop.f32.mrf.mxu1 }
 0x281   : > { %v3155_v0 = vmax.f32 %v2606_v19, 0.0  ;;  %v3125_v43 = vmax.f32 %v2851_v40, 0.0  ;;  %v2608_v27 = vadd.f32 %v2607_v35, %v9868_v6  ;;  %v2853_v44 = vadd.f32 %v2852_v63, %v9879_v12 }
 0x282   : > { %v2611_v1 = vpop.f32.mrf.mxu0  ;;  %v2856_v28 = vpop.f32.mrf.mxu1 }
 0x283   : > { %v9891_v20 = vpack.c.bf16 %v3155_v0, %v3139_v55  ;;  %v9893_v51 = vpack.c.bf16 %v3125_v43, %v3109_v52  ;;  %v3156_v9 = vmax.f32 %v2608_v27, 0.0  ;;  %v3126_v53 = vmax.f32 %v2853_v44, 0.0  ;;  %3937 = vmatpush2.bf16.xpose.msra.mxu0 %v9169_v38  ;;  %3976 = vmatpush2.bf16.xpose.msra.mxu1 %v9231_v8 }
 0x284   : > { %v2612_v24 = vadd.f32 %v2611_v1, %v9778_v42  ;;  %v2857_v48 = vadd.f32 %v2856_v28, %v9803_v59  ;;  %3938 = vmatprep.subr.bf16.mxu0 %v9152_v45  ;;  %3977 = vmatprep.subr.bf16.mxu1 %v9217_v21  ;;  %v2613_v63 = vpop.f32.mrf.mxu0  ;;  %v2858_v33 = vpop.f32.mrf.mxu1 }
 0x285   : > { %11966 = vst [vmem:[#allocation222_spill] sm:$0xff] %v9893_v51  ;;  %v9901_v55 = vpack.c.bf16 %v3156_v9, %v3140_v49  ;;  %v9903_v0 = vpack.c.bf16 %v3126_v53, %v3110_v7  ;;  %v2614_v27 = vadd.f32 %v2613_v63, %v9868_v6  ;;  %v2859_v44 = vadd.f32 %v2858_v33, %v9879_v12 }
 0x286   : > { %v2617_v43 = vpop.f32.mrf.mxu0  ;;  %v2862_v37 = vpop.f32.mrf.mxu1  ;;  %v3171_v19 = vmax.f32 %v2612_v24, 0.0  ;;  %v3141_v52 = vmax.f32 %v2857_v48, 0.0  ;;  %v2124_v9 = vadd.f32 %v9573_v10, %v9332_v32  ;;  %v2130_v24 = vadd.f32 %v9591_v50, %v9332_v32 }
 0x287   : > { %11967 = vst [vmem:[#allocation223_spill] sm:$0xff] %v9903_v0  ;;  %v2618_v1 = vadd.f32 %v2617_v43, %v9778_v42  ;;  %v2863_v40 = vadd.f32 %v2862_v37, %v9803_v59  ;;  %v3172_v35 = vmax.f32 %v2614_v27, 0.0  ;;  %v3142_v63 = vmax.f32 %v2859_v44, 0.0 }
 0x288   : > { %v2619_v28 = vpop.f32.mrf.mxu0  ;;  %v2864_v45 = vpop.f32.mrf.mxu1 }
 0x289   : > { %v3187_v38 = vmax.f32 %v2618_v1, 0.0  ;;  %v3157_v49 = vmax.f32 %v2863_v40, 0.0  ;;  %v2620_v53 = vadd.f32 %v2619_v28, %v9868_v6  ;;  %v2865_v7 = vadd.f32 %v2864_v45, %v9879_v12 }
 0x28a   : > { %v2623_v33 = vpop.f32.mrf.mxu0  ;;  %v2868_v43 = vpop.f32.mrf.mxu1  ;;  %v3248_v28 = vmax.f32 %v2130_v24, 0.0 }
 0x28b   : > { %v9915_v37 = vpack.c.bf16 %v3187_v38, %v3171_v19  ;;  %v9917_v48 = vpack.c.bf16 %v3157_v49, %v3141_v52  ;;  %v3188_v27 = vmax.f32 %v2620_v53, 0.0  ;;  %v3158_v1 = vmax.f32 %v2865_v7, 0.0  ;;  %3939 = vmatpush2.bf16.xpose.msra.mxu0 %v9139_v30  ;;  %3978 = vmatpush2.bf16.xpose.msra.mxu1 %v9201_v58 }
 0x28c   : > { %v2624_v45 = vadd.f32 %v2623_v33, %v9778_v42  ;;  %v2869_v10 = vadd.f32 %v2868_v43, %v9803_v59  ;;  %3940 = vmatprep.subr.bf16.mxu0 %v9127_v34  ;;  %3979 = vmatprep.subr.bf16.mxu1 %v9187_v36  ;;  %v2625_v50 = vpop.f32.mrf.mxu0  ;;  %v2870_v44 = vpop.f32.mrf.mxu1  ;;  %v3232_v52 = vmax.f32 %v2124_v9, 0.0  ;;  %v9935_v30 = vadd.f32 %v9506_v56, %v9332_v32 }
 0x28d   : > { %11968 = vst [vmem:[#allocation224_spill] sm:$0xff] %v9917_v48  ;;  %v9925_v38 = vpack.c.bf16 %v3188_v27, %v3172_v35  ;;  %v9927_v19 = vpack.c.bf16 %v3158_v1, %v3142_v63  ;;  %v2626_v40 = vadd.f32 %v2625_v50, %v9868_v6  ;;  %v2871_v49 = vadd.f32 %v2870_v44, %v9879_v12 }
 0x28e   : > { %v2629_v53 = vpop.f32.mrf.mxu0  ;;  %v2874_v7 = vpop.f32.mrf.mxu1  ;;  %v3203_v33 = vmax.f32 %v2624_v45, 0.0  ;;  %v2112_v35 = vadd.f32 %v9538_v62, %v9332_v32  ;;  %v3173_v63 = vmax.f32 %v2869_v10, 0.0  ;;  %v2387_v56 = vadd.f32 %v9626_v46, %v9382_v41 }
 0x28f   : > { %v2630_v43 = vadd.f32 %v2629_v53, %v9778_v42  ;;  %v2875_v34 = vadd.f32 %v2874_v7, %v9803_v59  ;;  %v3204_v27 = vmax.f32 %v2626_v40, 0.0  ;;  %v2118_v53 = vadd.f32 %v9554_v25, %v9332_v32 }
 0x290   : > { %v2631_v9 = vpop.f32.mrf.mxu0  ;;  %v2876_v24 = vpop.f32.mrf.mxu1  ;;  %v3174_v7 = vmax.f32 %v2871_v49, 0.0  ;;  %v9945_v62 = vpack.c.bf16 %v3248_v28, %v3232_v52  ;;  %v2381_v25 = vadd.f32 %v9612_v26, %v9382_v41  ;;  %v9967_v26 = vld [vmem:[%s11430_s3 + $0x20] sm:$0x77] }
 0x291   : > { %v3219_v1 = vmax.f32 %v2630_v43, 0.0  ;;  %v3189_v50 = vmax.f32 %v2875_v34, 0.0  ;;  %v2632_v44 = vadd.f32 %v2631_v9, %v9868_v6  ;;  %v2877_v45 = vadd.f32 %v2876_v24, %v9879_v12  ;;  %v11970_v9 = vld [vmem:[#allocation107_spill] sm:$0xff] }
 0x292   : > { %v2635_v36 = vpop.f32.mrf.mxu0  ;;  %v2880_v58 = vpop.f32.mrf.mxu1  ;;  %11969 = vst [vmem:[#allocation225_spill] sm:$0xff] %v9945_v62 }
 0x293   : > { %v9947_v10 = vpack.c.bf16 %v3219_v1, %v3203_v33  ;;  %v9949_v40 = vpack.c.bf16 %v3189_v50, %v3173_v63  ;;  %v3220_v34 = vmax.f32 %v2632_v44, 0.0  ;;  %v3190_v43 = vmax.f32 %v2877_v45, 0.0  ;;  %3941 = vmatpush2.bf16.xpose.msra.mxu0 %v9109_v3  ;;  %3980 = vmatpush2.bf16.xpose.msra.mxu1 %v9171_v22 }
 0x294   : > { %v2636_v46 = vadd.f32 %v2635_v36, %v9778_v42  ;;  %v2881_v49 = vadd.f32 %v2880_v58, %v9803_v59  ;;  %3981 = vmatprep.subr.bf16.mxu1 %v11970_v9  ;;  %3992 = vmatprep.subr.bf16.mxu0 %v9945_v62  ;;  %v2637_v52 = vpop.f32.mrf.mxu0  ;;  %v2882_v28 = vpop.f32.mrf.mxu1  ;;  %v3200_v33 = vmax.f32 %v2112_v35, 0.0  ;;  %v3216_v36 = vmax.f32 %v2118_v53, 0.0 }
 0x295   : > { %v9959_v63 = vpack.c.bf16 %v3220_v34, %v3204_v27  ;;  %v9961_v24 = vpack.c.bf16 %v3190_v43, %v3174_v7  ;;  %v2638_v1 = vadd.f32 %v2637_v52, %v9868_v6  ;;  %v3250_v58 = vmax.f32 %v2387_v56, 0.0  ;;  %v11971_v27 = vld [vmem:[#allocation152_spill] sm:$0xff] }
 0x296   : > { %v2883_v50 = vadd.f32 %v2882_v28, %v9879_v12  ;;  %v2641_v44 = vpop.f32.mrf.mxu0  ;;  %v2886_v45 = vpop.f32.mrf.mxu1  ;;  %v6793_v35 = vcombine.low %v9586_v17, %v9586_v17  ;;  %v9974_v7 = vadd.f32 %v11971_v27, %v9332_v32  ;;  %v3235_v34 = vmax.f32 %v2636_v46, 0.0  ;;  %v11972_v46 = vld [vmem:[#allocation161_spill] sm:$0xff] }
 0x297   : > { %v2642_v43 = vadd.f32 %v2641_v44, %v9778_v42  ;;  %v2887_v52 = vadd.f32 %v2886_v45, %v9803_v59  ;;  %v3234_v62 = vmax.f32 %v2381_v25, 0.0  ;;  %v3205_v3 = vmax.f32 %v2881_v49, 0.0 }
 0x298   : > { %v3236_v53 = vmax.f32 %v2638_v1, 0.0  ;;  %v2643_v56 = vpop.f32.mrf.mxu0  ;;  %v2888_v9 = vpop.f32.mrf.mxu1  ;;  %v6798_v28 = vcombine.high %v9967_v26, %v9967_v26  ;;  %v2375_v8 = vadd.f32 %v11972_v46, %v9382_v41  ;;  %v3206_v44 = vmax.f32 %v2883_v50, 0.0 }
 0x299   : > { %v3251_v22 = vmax.f32 %v2642_v43, 0.0  ;;  %v3221_v21 = vmax.f32 %v2887_v52, 0.0  ;;  %v2644_v17 = vadd.f32 %v2643_v56, %v9868_v6  ;;  %v2889_v27 = vadd.f32 %v2888_v9, %v9879_v12  ;;  %v11975_v56 = vld [vmem:[#allocation105_spill] sm:$0xff]  ;;  %v11976_v9 = vld [vmem:[#allocation160_spill] sm:$0xff] }
 0x29a   : > { %3943 = vmatmul.mubr.bf16.vlgmr.msra.gmra.mxu0 %v6793_v35  ;;  %v2647_v45 = vpop.f32.mrf.mxu0  ;;  %v2892_v25 = vpop.f32.mrf.mxu1  ;;  %v9984_v49 = vpack.c.bf16 %v3216_v36, %v3200_v33  ;;  %v9986_v1 = vpack.c.bf16 %v3250_v58, %v3234_v62  ;;  %v2369_v50 = vadd.f32 %v11976_v9, %v9382_v41 }
 0x29b   : > { %v9988_v51 = vpack.c.bf16 %v3251_v22, %v3235_v34  ;;  %v9990_v0 = vpack.c.bf16 %v3221_v21, %v3205_v3  ;;  %v3252_v43 = vmax.f32 %v2644_v17, 0.0  ;;  %v3222_v52 = vmax.f32 %v2889_v27, 0.0  ;;  %3982 = vmatpush2.bf16.xpose.msra.mxu1 %v11975_v56  ;;  %3993 = vmatpush1.bf16.xpose.msra.mxu0 %v9601_v57  ;;  %v10009_v34 = vld [vmem:[%s11430_s3 + $0x28] sm:$0x77] }
 0x29c   : > { %11973 = vst [vmem:[#allocation152_spill] sm:$0xff] %v9984_v49  ;;  %11974 = vst [vmem:[#allocation161_spill] sm:$0xff] %v9986_v1  ;;  %v2648_v35 = vadd.f32 %v2647_v45, %v9778_v42  ;;  %v2893_v33 = vadd.f32 %v2892_v25, %v9803_v59  ;;  %3994 = vmatprep.subr.bf16.mxu0 %v9984_v49  ;;  %4033 = vmatprep.subr.bf16.mxu1 %v9986_v1  ;;  %v2649_v22 = vpop.f32.mrf.mxu0  ;;  %v2894_v3 = vpop.f32.mrf.mxu1  ;;  %v3168_v21 = vmax.f32 %v9935_v30, 0.0 }
 0x29d   : > { %v10001_v62 = vpack.c.bf16 %v3252_v43, %v3236_v53  ;;  %v10003_v36 = vpack.c.bf16 %v3222_v52, %v3206_v44  ;;  %v2650_v58 = vadd.f32 %v2649_v22, %v9868_v6  ;;  %4024 = vmatprep.mubr.bf16.mxu0 %v6798_v28  ;;  %v3184_v17 = vmax.f32 %v9974_v7, 0.0 }
 0x29e   : > { %v3218_v27 = vmax.f32 %v2375_v8, 0.0  ;;  %v2895_v46 = vadd.f32 %v2894_v3, %v9879_v12  ;;  %v2653_v45 = vpop.f32.mrf.mxu0  ;;  %v2898_v25 = vpop.f32.mrf.mxu1  ;;  %v6795_v30 = vcombine.low %v9620_v13, %v9620_v13  ;;  %v3267_v53 = vmax.f32 %v2648_v35, 0.0  ;;  %v11977_v13 = vld [vmem:[#allocation157_spill] sm:$0xff] }
 0x29f   : > { %v2654_v44 = vadd.f32 %v2653_v45, %v9778_v42  ;;  %v2899_v28 = vadd.f32 %v2898_v25, %v9803_v59  ;;  %v3202_v43 = vmax.f32 %v2369_v50, 0.0  ;;  %v3237_v52 = vmax.f32 %v2893_v33, 0.0 }
 0x2a0   : > { %v3268_v9 = vmax.f32 %v2650_v58, 0.0  ;;  %v2655_v22 = vpop.f32.mrf.mxu0  ;;  %v2900_v49 = vpop.f32.mrf.mxu1  ;;  %v6800_v8 = vcombine.high %v10009_v34, %v10009_v34  ;;  %v2363_v35 = vadd.f32 %v11977_v13, %v9382_v41  ;;  %v3238_v45 = vmax.f32 %v2895_v46, 0.0 }
 0x2a1   : > { %v3283_v7 = vmax.f32 %v2654_v44, 0.0  ;;  %v3253_v3 = vmax.f32 %v2899_v28, 0.0  ;;  %v2656_v57 = vadd.f32 %v2655_v22, %v9868_v6  ;;  %v2901_v1 = vadd.f32 %v2900_v49, %v9879_v12  ;;  %v11981_v22 = vld [vmem:[#allocation158_spill] sm:$0xff]  ;;  %v11982_v49 = vld [vmem:[#allocation155_spill] sm:$0xff] }
 0x2a2   : > { %3984 = vmatmul.mubr.bf16.vlgmr.msra.gmra.mxu1 %v6795_v30  ;;  %v2659_v25 = vpop.f32.mrf.mxu0  ;;  %v2904_v50 = vpop.f32.mrf.mxu1  ;;  %v10023_v33 = vpack.c.bf16 %v3184_v17, %v3168_v21  ;;  %v10025_v58 = vpack.c.bf16 %v3218_v27, %v3202_v43  ;;  %v2357_v46 = vadd.f32 %v11982_v49, %v9382_v41  ;;  %v3186_v43 = vmax.f32 %v2363_v35, 0.0 }
 0x2a3   : > { %v10027_v56 = vpack.c.bf16 %v3283_v7, %v3267_v53  ;;  %v10029_v23 = vpack.c.bf16 %v3253_v3, %v3237_v52  ;;  %v3284_v44 = vmax.f32 %v2656_v57, 0.0  ;;  %v3254_v28 = vmax.f32 %v2901_v1, 0.0  ;;  %3995 = vmatpush1.bf16.xpose.msra.mxu0 %v11981_v22  ;;  %4034 = vmatpush1.bf16.xpose.msra.mxu1 %v9632_v2 }
 0x2a4   : > { %11978 = vst [vmem:[#allocation160_spill] sm:$0xff] %v10023_v33  ;;  %11979 = vst [vmem:[#allocation157_spill] sm:$0xff] %v10025_v58  ;;  %v2660_v30 = vadd.f32 %v2659_v25, %v9778_v42  ;;  %v2905_v21 = vadd.f32 %v2904_v50, %v9803_v59  ;;  %3996 = vmatprep.subr.bf16.mxu0 %v10023_v33  ;;  %4035 = vmatprep.subr.bf16.mxu1 %v10025_v58  ;;  %v2661_v17 = vpop.f32.mrf.mxu0  ;;  %v2906_v27 = vpop.f32.mrf.mxu1  ;;  %v3170_v49 = vmax.f32 %v2357_v46, 0.0 }
 0x2a5   : > { %11980 = vst [vmem:[#allocation226_spill] sm:$0xff] %v10027_v56  ;;  %v10039_v53 = vpack.c.bf16 %v3284_v44, %v3268_v9  ;;  %v10041_v57 = vpack.c.bf16 %v3254_v28, %v3238_v45  ;;  %v2662_v1 = vadd.f32 %v2661_v17, %v9868_v6  ;;  %4065 = vmatprep.mubr.bf16.mxu1 %v6800_v8 }
 0x2a6   : > { %v2907_v52 = vadd.f32 %v2906_v27, %v9879_v12  ;;  %v2665_v7 = vpop.f32.mrf.mxu0  ;;  %v2910_v3 = vpop.f32.mrf.mxu1  ;;  %v3299_v13 = vmax.f32 %v2660_v30, 0.0  ;;  %v3269_v33 = vmax.f32 %v2905_v21, 0.0  ;;  %v10049_v2 = vpack.c.bf16 %v3186_v43, %v3170_v49 }
 0x2a7   : > { %11983 = vst [vmem:[#allocation155_spill] sm:$0xff] %v10039_v53  ;;  %v2666_v25 = vadd.f32 %v2665_v7, %v9778_v42  ;;  %v2911_v50 = vadd.f32 %v2910_v3, %v9803_v59  ;;  %v3300_v22 = vmax.f32 %v2662_v1, 0.0  ;;  %v11987_v1 = vld [vmem:[#allocation153_spill] sm:$0xff] }
 0x2a8   : > { %v2667_v9 = vpop.f32.mrf.mxu0  ;;  %v2912_v44 = vpop.f32.mrf.mxu1  ;;  %v3270_v35 = vmax.f32 %v2907_v52, 0.0  ;;  %11984 = vst [vmem:[#allocation227_spill] sm:$0xff] %v10049_v2 }
 0x2a9   : > { %v3315_v45 = vmax.f32 %v2666_v25, 0.0  ;;  %v3285_v28 = vmax.f32 %v2911_v50, 0.0  ;;  %v2668_v17 = vadd.f32 %v2667_v9, %v9868_v6  ;;  %v2913_v8 = vadd.f32 %v2912_v44, %v9879_v12  ;;  %v11988_v50 = vld [vmem:[#allocation150_spill] sm:$0xff] }
 0x2aa   : > { %v2671_v27 = vpop.f32.mrf.mxu0  ;;  %v2916_v58 = vpop.f32.mrf.mxu1 }
 0x2ab   : > { %v10051_v30 = vpack.c.bf16 %v3315_v45, %v3299_v13  ;;  %v10053_v7 = vpack.c.bf16 %v3285_v28, %v3269_v33  ;;  %v3316_v46 = vmax.f32 %v2668_v17, 0.0  ;;  %v3286_v21 = vmax.f32 %v2913_v8, 0.0  ;;  %3997 = vmatpush1.bf16.xpose.msra.mxu0 %v11987_v1  ;;  %4036 = vmatpush1.bf16.xpose.msra.mxu1 %v9603_v31 }
 0x2ac   : > { %v2672_v3 = vadd.f32 %v2671_v27, %v9778_v42  ;;  %v2917_v25 = vadd.f32 %v2916_v58, %v9803_v59  ;;  %3998 = vmatprep.subr.bf16.mxu0 %v11988_v50  ;;  %4037 = vmatprep.subr.bf16.mxu1 %v10049_v2  ;;  %v2673_v43 = vpop.f32.mrf.mxu0  ;;  %v2918_v52 = vpop.f32.mrf.mxu1 }
 0x2ad   : > { %11985 = vst [vmem:[#allocation228_spill] sm:$0xff] %v10051_v30  ;;  %11986 = vst [vmem:[#allocation229_spill] sm:$0xff] %v10053_v7  ;;  %v10061_v13 = vpack.c.bf16 %v3316_v46, %v3300_v22  ;;  %v10063_v33 = vpack.c.bf16 %v3286_v21, %v3270_v35  ;;  %v2674_v49 = vadd.f32 %v2673_v43, %v9868_v6 }
 0x2ae   : > { %v2919_v9 = vadd.f32 %v2918_v52, %v9879_v12  ;;  %v2677_v44 = vpop.f32.mrf.mxu0  ;;  %v2922_v45 = vpop.f32.mrf.mxu1  ;;  %v3331_v28 = vmax.f32 %v2672_v3, 0.0  ;;  %v3301_v8 = vmax.f32 %v2917_v25, 0.0  ;;  %v11994_v25 = vld [vmem:[#allocation159_spill] sm:$0xff] }
 0x2af   : > { %11989 = vst [vmem:[#allocation230_spill] sm:$0xff] %v10061_v13  ;;  %11990 = vst [vmem:[#allocation231_spill] sm:$0xff] %v10063_v33  ;;  %v2678_v17 = vadd.f32 %v2677_v44, %v9778_v42  ;;  %v2923_v58 = vadd.f32 %v2922_v45, %v9803_v59  ;;  %v3332_v27 = vmax.f32 %v2674_v49, 0.0  ;;  %v11993_v45 = vld [vmem:[#allocation148_spill] sm:$0xff] }
 0x2b0   : > { %v2679_v50 = vpop.f32.mrf.mxu0  ;;  %v2924_v1 = vpop.f32.mrf.mxu1  ;;  %v3302_v21 = vmax.f32 %v2919_v9, 0.0 }
 0x2b1   : > { %v3347_v2 = vmax.f32 %v2678_v17, 0.0  ;;  %v3317_v22 = vmax.f32 %v2923_v58, 0.0  ;;  %v2680_v35 = vadd.f32 %v2679_v50, %v9868_v6  ;;  %v2925_v46 = vadd.f32 %v2924_v1, %v9879_v12  ;;  %v11995_v50 = vld [vmem:[#allocation146_spill] sm:$0xff]  ;;  %v11996_v1 = vld [vmem:[#allocation156_spill] sm:$0xff] }
 0x2b2   : > { %v2683_v43 = vpop.f32.mrf.mxu0  ;;  %v2928_v52 = vpop.f32.mrf.mxu1 }
 0x2b3   : > { %v10071_v31 = vpack.c.bf16 %v3347_v2, %v3331_v28  ;;  %v10073_v3 = vpack.c.bf16 %v3317_v22, %v3301_v8  ;;  %v3348_v44 = vmax.f32 %v2680_v35, 0.0  ;;  %v3318_v7 = vmax.f32 %v2925_v46, 0.0  ;;  %3999 = vmatpush1.bf16.xpose.msra.mxu0 %v11993_v45  ;;  %4038 = vmatpush1.bf16.xpose.msra.mxu1 %v11994_v25 }
 0x2b4   : > { %v2684_v49 = vadd.f32 %v2683_v43, %v9778_v42  ;;  %v2929_v17 = vadd.f32 %v2928_v52, %v9803_v59  ;;  %4000 = vmatprep.subr.bf16.mxu0 %v11995_v50  ;;  %4039 = vmatprep.subr.bf16.mxu1 %v11996_v1  ;;  %v2685_v9 = vpop.f32.mrf.mxu0  ;;  %v2930_v58 = vpop.f32.mrf.mxu1 }
 0x2b5   : > { %11991 = vst [vmem:[#allocation232_spill] sm:$0xff] %v10071_v31  ;;  %11992 = vst [vmem:[#allocation233_spill] sm:$0xff] %v10073_v3  ;;  %v10081_v2 = vpack.c.bf16 %v3348_v44, %v3332_v27  ;;  %v10083_v28 = vpack.c.bf16 %v3318_v7, %v3302_v21  ;;  %v2686_v8 = vadd.f32 %v2685_v9, %v9868_v6  ;;  %v12019_v31 = vld [vmem:[#allocation135_spill] sm:$0xff] }
 0x2b6   : > { %v2931_v22 = vadd.f32 %v2930_v58, %v9879_v12  ;;  %v2689_v35 = vpop.f32.mrf.mxu0  ;;  %v2934_v46 = vpop.f32.mrf.mxu1  ;;  %v3363_v45 = vmax.f32 %v2684_v49, 0.0  ;;  %v3333_v50 = vmax.f32 %v2929_v17, 0.0  ;;  %v12002_v17 = vld [vmem:[#allocation154_spill] sm:$0xff] }
 0x2b7   : > { %11997 = vst [vmem:[#allocation234_spill] sm:$0xff] %v10081_v2  ;;  %11998 = vst [vmem:[#allocation235_spill] sm:$0xff] %v10083_v28  ;;  %v2690_v43 = vadd.f32 %v2689_v35, %v9778_v42  ;;  %v2935_v52 = vadd.f32 %v2934_v46, %v9803_v59  ;;  %v3364_v25 = vmax.f32 %v2686_v8, 0.0  ;;  %v12001_v46 = vld [vmem:[#allocation144_spill] sm:$0xff] }
 0x2b8   : > { %v2691_v1 = vpop.f32.mrf.mxu0  ;;  %v2936_v33 = vpop.f32.mrf.mxu1  ;;  %v3334_v44 = vmax.f32 %v2931_v22, 0.0 }
 0x2b9   : > { %v3379_v3 = vmax.f32 %v2690_v43, 0.0  ;;  %v3349_v27 = vmax.f32 %v2935_v52, 0.0  ;;  %v2692_v7 = vadd.f32 %v2691_v1, %v9868_v6  ;;  %v2937_v21 = vadd.f32 %v2936_v33, %v9879_v12  ;;  %v12003_v1 = vld [vmem:[#allocation142_spill] sm:$0xff]  ;;  %v12004_v33 = vld [vmem:[#allocation151_spill] sm:$0xff] }
 0x2ba   : > { %v2695_v9 = vpop.f32.mrf.mxu0  ;;  %v2940_v58 = vpop.f32.mrf.mxu1 }
 0x2bb   : > { %v10091_v56 = vpack.c.bf16 %v3379_v3, %v3363_v45  ;;  %v10093_v49 = vpack.c.bf16 %v3349_v27, %v3333_v50  ;;  %v3380_v35 = vmax.f32 %v2692_v7, 0.0  ;;  %v3350_v28 = vmax.f32 %v2937_v21, 0.0  ;;  %4001 = vmatpush1.bf16.xpose.msra.mxu0 %v12001_v46  ;;  %4040 = vmatpush1.bf16.xpose.msra.mxu1 %v12002_v17 }
 0x2bc   : > { %v2696_v8 = vadd.f32 %v2695_v9, %v9778_v42  ;;  %v2941_v43 = vadd.f32 %v2940_v58, %v9803_v59  ;;  %4002 = vmatprep.subr.bf16.mxu0 %v12003_v1  ;;  %4041 = vmatprep.subr.bf16.mxu1 %v12004_v33  ;;  %v2697_v22 = vpop.f32.mrf.mxu0  ;;  %v2942_v52 = vpop.f32.mrf.mxu1 }
 0x2bd   : > { %11999 = vst [vmem:[#allocation236_spill] sm:$0xff] %v10091_v56  ;;  %12000 = vst [vmem:[#allocation237_spill] sm:$0xff] %v10093_v49  ;;  %v10101_v3 = vpack.c.bf16 %v3380_v35, %v3364_v25  ;;  %v10103_v45 = vpack.c.bf16 %v3350_v28, %v3334_v44  ;;  %v2698_v50 = vadd.f32 %v2697_v22, %v9868_v6 }
 0x2be   : > { %v2943_v27 = vadd.f32 %v2942_v52, %v9879_v12  ;;  %v2701_v7 = vpop.f32.mrf.mxu0  ;;  %v2946_v21 = vpop.f32.mrf.mxu1  ;;  %v3395_v46 = vmax.f32 %v2696_v8, 0.0  ;;  %v3365_v1 = vmax.f32 %v2941_v43, 0.0  ;;  %v12010_v43 = vld [vmem:[#allocation149_spill] sm:$0xff] }
 0x2bf   : > { %12005 = vst [vmem:[#allocation238_spill] sm:$0xff] %v10101_v3  ;;  %12006 = vst [vmem:[#allocation239_spill] sm:$0xff] %v10103_v45  ;;  %v2702_v9 = vadd.f32 %v2701_v7, %v9778_v42  ;;  %v2947_v58 = vadd.f32 %v2946_v21, %v9803_v59  ;;  %v3396_v17 = vmax.f32 %v2698_v50, 0.0  ;;  %v12009_v21 = vld [vmem:[#allocation140_spill] sm:$0xff] }
 0x2c0   : > { %v2703_v33 = vpop.f32.mrf.mxu0  ;;  %v2948_v53 = vpop.f32.mrf.mxu1  ;;  %v3366_v35 = vmax.f32 %v2943_v27, 0.0 }
 0x2c1   : > { %v3411_v49 = vmax.f32 %v2702_v9, 0.0  ;;  %v3381_v25 = vmax.f32 %v2947_v58, 0.0  ;;  %v2704_v28 = vadd.f32 %v2703_v33, %v9868_v6  ;;  %v2949_v44 = vadd.f32 %v2948_v53, %v9879_v12  ;;  %v12011_v33 = vld [vmem:[#allocation138_spill] sm:$0xff]  ;;  %v12012_v53 = vld [vmem:[#allocation147_spill] sm:$0xff] }
 0x2c2   : > { %v2707_v22 = vpop.f32.mrf.mxu0  ;;  %v2952_v52 = vpop.f32.mrf.mxu1 }
 0x2c3   : > { %v10111_v30 = vpack.c.bf16 %v3411_v49, %v3395_v46  ;;  %v10113_v8 = vpack.c.bf16 %v3381_v25, %v3365_v1  ;;  %v3412_v7 = vmax.f32 %v2704_v28, 0.0  ;;  %v3382_v45 = vmax.f32 %v2949_v44, 0.0  ;;  %4003 = vmatpush1.bf16.xpose.msra.mxu0 %v12009_v21  ;;  %4042 = vmatpush1.bf16.xpose.msra.mxu1 %v12010_v43 }
 0x2c4   : > { %v2708_v50 = vadd.f32 %v2707_v22, %v9778_v42  ;;  %v2953_v9 = vadd.f32 %v2952_v52, %v9803_v59  ;;  %4004 = vmatprep.subr.bf16.mxu0 %v12011_v33  ;;  %4043 = vmatprep.subr.bf16.mxu1 %v12012_v53  ;;  %v2709_v27 = vpop.f32.mrf.mxu0  ;;  %v2954_v58 = vpop.f32.mrf.mxu1 }
 0x2c5   : > { %12007 = vst [vmem:[#allocation240_spill] sm:$0xff] %v10111_v30  ;;  %12008 = vst [vmem:[#allocation241_spill] sm:$0xff] %v10113_v8  ;;  %v10121_v49 = vpack.c.bf16 %v3412_v7, %v3396_v17  ;;  %v10123_v46 = vpack.c.bf16 %v3382_v45, %v3366_v35  ;;  %v2710_v1 = vadd.f32 %v2709_v27, %v9868_v6 }
 0x2c6   : > { %v2955_v25 = vadd.f32 %v2954_v58, %v9879_v12  ;;  %v2713_v28 = vpop.f32.mrf.mxu0  ;;  %v2958_v44 = vpop.f32.mrf.mxu1  ;;  %v3427_v21 = vmax.f32 %v2708_v50, 0.0  ;;  %v3397_v33 = vmax.f32 %v2953_v9, 0.0  ;;  %v2220_v7 = vadd.f32 %v9759_v60, %v9332_v32 }
 0x2c7   : > { %12013 = vst [vmem:[#allocation242_spill] sm:$0xff] %v10121_v49  ;;  %12014 = vst [vmem:[#allocation243_spill] sm:$0xff] %v10123_v46  ;;  %v2714_v22 = vadd.f32 %v2713_v28, %v9778_v42  ;;  %v2959_v52 = vadd.f32 %v2958_v44, %v9803_v59  ;;  %v3428_v43 = vmax.f32 %v2710_v1, 0.0  ;;  %v2226_v50 = vadd.f32 %v9766_v4, %v9332_v32  ;;  %v12020_v4 = vld [vmem:[#allocation143_spill] sm:$0xff] }
 0x2c8   : > { %v2715_v53 = vpop.f32.mrf.mxu0  ;;  %v2960_v13 = vpop.f32.mrf.mxu1  ;;  %v3398_v27 = vmax.f32 %v2955_v25, 0.0 }
 0x2c9   : > { %v3443_v8 = vmax.f32 %v2714_v22, 0.0  ;;  %v3413_v17 = vmax.f32 %v2959_v52, 0.0  ;;  %v2716_v45 = vadd.f32 %v2715_v53, %v9868_v6  ;;  %v2961_v35 = vadd.f32 %v2960_v13, %v9879_v12  ;;  %v12017_v52 = vld [vmem:[#allocation136_spill] sm:$0xff]  ;;  %v12018_v53 = vld [vmem:[#allocation145_spill] sm:$0xff] }
 0x2ca   : > { %v2719_v58 = vpop.f32.mrf.mxu0  ;;  %v2964_v28 = vpop.f32.mrf.mxu1 }
 0x2cb   : > { %v10135_v44 = vpack.c.bf16 %v3443_v8, %v3427_v21  ;;  %v10137_v9 = vpack.c.bf16 %v3413_v17, %v3397_v33  ;;  %v3444_v1 = vmax.f32 %v2716_v45, 0.0  ;;  %v3414_v22 = vmax.f32 %v2961_v35, 0.0  ;;  %4005 = vmatpush1.bf16.xpose.msra.mxu0 %v12017_v52  ;;  %4044 = vmatpush1.bf16.xpose.msra.mxu1 %v12018_v53 }
 0x2cc   : > { %v2720_v13 = vadd.f32 %v2719_v58, %v9778_v42  ;;  %v2965_v60 = vadd.f32 %v2964_v28, %v9803_v59  ;;  %4006 = vmatprep.subr.bf16.mxu0 %v12019_v31  ;;  %4045 = vmatprep.subr.bf16.mxu1 %v12020_v4  ;;  %v2721_v25 = vpop.f32.mrf.mxu0  ;;  %v2966_v46 = vpop.f32.mrf.mxu1  ;;  %v3488_v17 = vmax.f32 %v2220_v7, 0.0  ;;  %v3504_v45 = vmax.f32 %v2226_v50, 0.0  ;;  %v12023_v4 = vld [vmem:[#allocation198_spill] sm:$0xff] }
 0x2cd   : > { %12015 = vst [vmem:[#allocation244_spill] sm:$0xff] %v10135_v44  ;;  %12016 = vst [vmem:[#allocation245_spill] sm:$0xff] %v10137_v9  ;;  %v10145_v8 = vpack.c.bf16 %v3444_v1, %v3428_v43  ;;  %v10147_v21 = vpack.c.bf16 %v3414_v22, %v3398_v27  ;;  %v2722_v33 = vadd.f32 %v2721_v25, %v9868_v6 }
 0x2ce   : > { %v2967_v35 = vadd.f32 %v2966_v46, %v9879_v12  ;;  %v2725_v52 = vpop.f32.mrf.mxu0  ;;  %v2970_v58 = vpop.f32.mrf.mxu1  ;;  %v3459_v53 = vmax.f32 %v2720_v13, 0.0  ;;  %v2208_v2 = vadd.f32 %v12023_v4, %v9332_v32  ;;  %v3429_v43 = vmax.f32 %v2965_v60, 0.0 }
 0x2cf   : > { %12021 = vst [vmem:[#allocation246_spill] sm:$0xff] %v10145_v8  ;;  %12022 = vst [vmem:[#allocation247_spill] sm:$0xff] %v10147_v21  ;;  %v2726_v28 = vadd.f32 %v2725_v52, %v9778_v42  ;;  %v2971_v31 = vadd.f32 %v2970_v58, %v9803_v59  ;;  %v3460_v1 = vmax.f32 %v2722_v33, 0.0  ;;  %v2214_v50 = vadd.f32 %v9746_v47, %v9332_v32  ;;  %v12029_v47 = vld [vmem:[#allocation207_spill] sm:$0xff] }
 0x2d0   : > { %v2727_v27 = vpop.f32.mrf.mxu0  ;;  %v2972_v22 = vpop.f32.mrf.mxu1  ;;  %v2483_v52 = vadd.f32 %v9796_v18, %v9382_v41  ;;  %v3430_v13 = vmax.f32 %v2967_v35, 0.0  ;;  %v10161_v4 = vpack.c.bf16 %v3504_v45, %v3488_v17  ;;  %v2477_v21 = vadd.f32 %v12029_v47, %v9382_v41  ;;  %v12030_v17 = vld [vmem:[#allocation139_spill] sm:$0xff] }
 0x2d1   : > { %v3475_v9 = vmax.f32 %v2726_v28, 0.0  ;;  %v3445_v25 = vmax.f32 %v2971_v31, 0.0  ;;  %v2728_v7 = vadd.f32 %v2727_v27, %v9868_v6  ;;  %v2973_v46 = vadd.f32 %v2972_v22, %v9879_v12  ;;  %v12027_v27 = vld [vmem:[#allocation133_spill] sm:$0xff] }
 0x2d2   : > { %v2731_v58 = vpop.f32.mrf.mxu0  ;;  %v2976_v56 = vpop.f32.mrf.mxu1  ;;  %12024 = vst [vmem:[#allocation198_spill] sm:$0xff] %v10161_v4  ;;  %v12028_v22 = vld [vmem:[#allocation141_spill] sm:$0xff] }
 0x2d3   : > { %v10163_v60 = vpack.c.bf16 %v3475_v9, %v3459_v53  ;;  %v10165_v33 = vpack.c.bf16 %v3445_v25, %v3429_v43  ;;  %v3476_v31 = vmax.f32 %v2728_v7, 0.0  ;;  %v3446_v28 = vmax.f32 %v2973_v46, 0.0  ;;  %4007 = vmatpush1.bf16.xpose.msra.mxu0 %v12027_v27  ;;  %4046 = vmatpush1.bf16.xpose.msra.mxu1 %v12028_v22 }
 0x2d4   : > { %v2732_v18 = vadd.f32 %v2731_v58, %v9778_v42  ;;  %v2977_v35 = vadd.f32 %v2976_v56, %v9803_v59  ;;  %4008 = vmatprep.subr.bf16.mxu0 %v10161_v4  ;;  %4047 = vmatprep.subr.bf16.mxu1 %v12030_v17  ;;  %v2733_v9 = vpop.f32.mrf.mxu0  ;;  %v2978_v53 = vpop.f32.mrf.mxu1  ;;  %v3456_v7 = vmax.f32 %v2208_v2, 0.0  ;;  %v3472_v46 = vmax.f32 %v2214_v50, 0.0  ;;  %v12033_v56 = vld [vmem:[#allocation192_spill] sm:$0xff] }
 0x2d5   : > { %12025 = vst [vmem:[#allocation248_spill] sm:$0xff] %v10163_v60  ;;  %12026 = vst [vmem:[#allocation249_spill] sm:$0xff] %v10165_v33  ;;  %v10175_v45 = vpack.c.bf16 %v3476_v31, %v3460_v1  ;;  %v10177_v43 = vpack.c.bf16 %v3446_v28, %v3430_v13  ;;  %v2734_v25 = vadd.f32 %v2733_v9, %v9868_v6  ;;  %v3506_v27 = vmax.f32 %v2483_v52, 0.0  ;;  %v12034_v13 = vld [vmem:[#allocation194_spill] sm:$0xff] }
 0x2d6   : > { %v2979_v47 = vadd.f32 %v2978_v53, %v9879_v12  ;;  %v2737_v58 = vpop.f32.mrf.mxu0  ;;  %v2982_v22 = vpop.f32.mrf.mxu1  ;;  %v2196_v4 = vadd.f32 %v12033_v56, %v9332_v32  ;;  %v3491_v3 = vmax.f32 %v2732_v18, 0.0  ;;  %v2202_v31 = vadd.f32 %v12034_v13, %v9332_v32  ;;  %v12035_v18 = vld [vmem:[#allocation204_spill] sm:$0xff] }
 0x2d7   : > { %12031 = vst [vmem:[#allocation207_spill] sm:$0xff] %v10175_v45  ;;  %12032 = vst [vmem:[#allocation250_spill] sm:$0xff] %v10177_v43  ;;  %v2738_v17 = vadd.f32 %v2737_v58, %v9778_v42  ;;  %v2983_v1 = vadd.f32 %v2982_v22, %v9803_v59  ;;  %v3490_v28 = vmax.f32 %v2477_v21, 0.0  ;;  %v3461_v9 = vmax.f32 %v2977_v35, 0.0 }
 0x2d8   : > { %v3492_v2 = vmax.f32 %v2734_v25, 0.0  ;;  %v2739_v50 = vpop.f32.mrf.mxu0  ;;  %v2984_v52 = vpop.f32.mrf.mxu1  ;;  %v2471_v56 = vadd.f32 %v12035_v18, %v9382_v41  ;;  %v3462_v42 = vmax.f32 %v2979_v47, 0.0  ;;  %v10191_v49 = vpack.c.bf16 %v3472_v46, %v3456_v7  ;;  %v12042_v18 = vld [vmem:[#allocation203_spill] sm:$0xff] }
 0x2d9   : > { %v3507_v33 = vmax.f32 %v2738_v17, 0.0  ;;  %v3477_v53 = vmax.f32 %v2983_v1, 0.0  ;;  %v2740_v30 = vadd.f32 %v2739_v50, %v9868_v6  ;;  %v2985_v43 = vadd.f32 %v2984_v52, %v9879_v12  ;;  %v12040_v1 = vld [vmem:[#allocation205_spill] sm:$0xff]  ;;  %v3770_v52 = vpop.permute.xlu0 %3769 }
 0x2da   : > { %v2988_v58 = vpop.f32.mrf.mxu1  ;;  %v3862_v22 = vpop.f32.mrf.mxu0  ;;  %12036 = vst [vmem:[#allocation192_spill] sm:$0xff] %v10191_v49  ;;  %v10193_v13 = vpack.c.bf16 %v3506_v27, %v3490_v28  ;;  %v12041_v50 = vld [vmem:[#allocation137_spill] sm:$0xff]  ;;  %v2465_v47 = vadd.f32 %v12042_v18, %v9382_v41  ;;  %v3440_v46 = vmax.f32 %v2202_v31, 0.0  ;;  %v3474_v28 = vmax.f32 %v2471_v56, 0.0  ;;  %v12047_v56 = vld [vmem:[#allocation200_spill] sm:$0xff] }
 0x2db   : > { %v10195_v21 = vpack.c.bf16 %v3507_v33, %v3491_v3  ;;  %v10197_v35 = vpack.c.bf16 %v3477_v53, %v3461_v9  ;;  %v3508_v17 = vmax.f32 %v2740_v30, 0.0  ;;  %v3478_v25 = vmax.f32 %v2985_v43, 0.0  ;;  %4009 = vmatpush2.bf16.xpose.msra.mxu0 %v12040_v1  ;;  %4048 = vmatpush1.bf16.xpose.msra.mxu1 %v12041_v50 }
 0x2dc   : > { %12037 = vst [vmem:[#allocation194_spill] sm:$0xff] %v10193_v13  ;;  %4010 = vmatprep.subr.bf16.mxu0 %v10191_v49  ;;  %4049 = vmatprep.subr.bf16.mxu1 %v10193_v13  ;;  %v2990_v27 = vpop.f32.mrf.mxu1  ;;  %v3864_v7 = vpop.f32.mrf.mxu0  ;;  %v2989_v30 = vadd.f32 %v2988_v58, %v9803_v59  ;;  %v3424_v43 = vmax.f32 %v2196_v4, 0.0  ;;  %v3863_v49 = vadd.f32 %v3862_v22, %v3770_v52  ;;  %v12045_v13 = vld [vmem:[#allocation186_spill] sm:$0xff] }
 0x2dd   : > { %12038 = vst [vmem:[#allocation204_spill] sm:$0xff] %v10195_v21  ;;  %12039 = vst [vmem:[#allocation251_spill] sm:$0xff] %v10197_v35  ;;  %v10205_v3 = vpack.c.bf16 %v3508_v17, %v3492_v2  ;;  %v10207_v33 = vpack.c.bf16 %v3478_v25, %v3462_v42  ;;  %v2991_v1 = vadd.f32 %v2990_v27, %v9879_v12  ;;  %v3458_v35 = vmax.f32 %v2465_v47, 0.0  ;;  %v12046_v42 = vld [vmem:[#allocation188_spill] sm:$0xff] }
 0x2de   : > { %v2994_v9 = vpop.f32.mrf.mxu1  ;;  %v3866_v53 = vpop.f32.mrf.mxu0  ;;  %v2184_v50 = vadd.f32 %v12045_v13, %v9332_v32  ;;  %v2190_v25 = vadd.f32 %v12046_v42, %v9332_v32  ;;  %v3493_v58 = vmax.f32 %v2989_v30, 0.0  ;;  %v3865_v27 = vadd.f32 %v3864_v7, %v3770_v52  ;;  %v12050_v42 = vld [vmem:[#allocation201_spill] sm:$0xff]  ;;  %v12051_v30 = vld [vmem:[#allocation199_spill] sm:$0xff] }
 0x2df   : > { %12043 = vst [vmem:[#allocation203_spill] sm:$0xff] %v10205_v3  ;;  %12044 = vst [vmem:[#allocation252_spill] sm:$0xff] %v10207_v33  ;;  %v2995_v18 = vadd.f32 %v2994_v9, %v9803_v59  ;;  %v2459_v53 = vadd.f32 %v12047_v56, %v9382_v41  ;;  %v10219_v59 = vpack.c.bf16 %v3440_v46, %v3424_v43  ;;  %v3494_v13 = vmax.f32 %v2991_v1, 0.0  ;;  %v12055_v56 = vld [vmem:[#allocation195_spill] sm:$0xff] }
 0x2e0   : > { %v2996_v2 = vpop.f32.mrf.mxu1  ;;  %v3867_v17 = vpop.f32.mrf.mxu0  ;;  %v10221_v22 = vpack.c.bf16 %v3474_v28, %v3458_v35  ;;  %v3392_v7 = vmax.f32 %v2184_v50, 0.0  ;;  %v3408_v43 = vmax.f32 %v2190_v25, 0.0  ;;  %v12058_v50 = vld [vmem:[#allocation206_spill] sm:$0xff]  ;;  %v12059_v25 = vld [vmem:[#allocation193_spill] sm:$0xff] }
 0x2e1   : > { %v3509_v4 = vmax.f32 %v2995_v18, 0.0  ;;  %v2997_v31 = vadd.f32 %v2996_v2, %v9879_v12  ;;  %12048 = vst [vmem:[#allocation186_spill] sm:$0xff] %v10219_v59  ;;  %v2453_v18 = vadd.f32 %v12051_v30, %v9382_v41  ;;  %v12053_v2 = vld [vmem:[#allocation180_spill] sm:$0xff]  ;;  %v2447_v30 = vadd.f32 %v12055_v56, %v9382_v41 }
 0x2e2   : > { %v3903_v44 = vpop.f32.mrf.mxu1 }
 0x2e3   : > { %v10223_v47 = vpack.c.bf16 %v3509_v4, %v3493_v58  ;;  %v3510_v9 = vmax.f32 %v2997_v31, 0.0  ;;  %v10225_v17 = vadd.f32 %v3903_v44, %v3863_v49  ;;  %4011 = vmatpush2.bf16.xpose.msra.mxu0 %v12050_v42  ;;  %4050 = vmatpush2.bf16.xpose.msra.mxu1 %v9805_v54  ;;  %v3442_v49 = vmax.f32 %v2459_v53, 0.0  ;;  %v12054_v4 = vld [vmem:[#allocation182_spill] sm:$0xff] }
 0x2e4   : > { %4012 = vmatprep.subr.bf16.mxu0 %v10219_v59  ;;  %4051 = vmatprep.subr.bf16.mxu1 %v10221_v22  ;;  %v3905_v52 = vpop.f32.mrf.mxu1  ;;  %v3426_v46 = vmax.f32 %v2453_v18, 0.0  ;;  %v2172_v58 = vadd.f32 %v12053_v2, %v9332_v32  ;;  %v2178_v31 = vadd.f32 %v12054_v4, %v9332_v32  ;;  %v10243_v59 = vpack.c.bf16 %v3408_v43, %v3392_v7  ;;  %v12060_v7 = vld [vmem:[#allocation174_spill] sm:$0xff] }
 0x2e5   : > { %12049 = vst [vmem:[#allocation188_spill] sm:$0xff] %v10223_v47  ;;  %v10233_v35 = vpack.c.bf16 %v3510_v9, %v3494_v13  ;;  %v10235_v1 = vadd.f32 %v3905_v52, %v3865_v27  ;;  %v12057_v27 = vld [vmem:[#allocation196_spill] sm:$0xff]  ;;  %v2441_v53 = vadd.f32 %v12059_v25, %v9382_v41  ;;  %v3410_v52 = vmax.f32 %v2447_v30, 0.0  ;;  %v12065_v25 = vld [vmem:[#allocation190_spill] sm:$0xff] }
 0x2e6   : > { %v3907_v44 = vpop.f32.mrf.mxu1  ;;  %12056 = vst [vmem:[#allocation201_spill] sm:$0xff] %v10243_v59  ;;  %v10245_v13 = vpack.c.bf16 %v3442_v49, %v3426_v46  ;;  %v3360_v9 = vmax.f32 %v2172_v58, 0.0  ;;  %v3376_v18 = vmax.f32 %v2178_v31, 0.0  ;;  %v2160_v43 = vadd.f32 %v12060_v7, %v9332_v32  ;;  %v12061_v49 = vld [vmem:[#allocation176_spill] sm:$0xff]  ;;  %v12067_v58 = vld [vmem:[#allocation187_spill] sm:$0xff] }
 0x2e7   : > { %12052 = vst [vmem:[#allocation200_spill] sm:$0xff] %v10233_v35  ;;  %v3394_v44 = vmax.f32 %v2441_v53, 0.0  ;;  %v2166_v46 = vadd.f32 %v12061_v49, %v9332_v32  ;;  %v2429_v31 = vadd.f32 %v12067_v58, %v9382_v41 }
 0x2e8   : > { %v3908_v28 = vpop.f32.mrf.mxu1  ;;  %v10259_v4 = vpack.c.bf16 %v3376_v18, %v3360_v9  ;;  %v3328_v30 = vmax.f32 %v2160_v43, 0.0  ;;  %v12068_v9 = vld [vmem:[#allocation168_spill] sm:$0xff]  ;;  %v12075_v43 = vld [vmem:[#allocation181_spill] sm:$0xff] }
 0x2e9   : > { %v12062_v28 = vld [vmem:[#allocation189_spill] sm:$0xff]  ;;  %v10261_v56 = vpack.c.bf16 %v3410_v52, %v3394_v44  ;;  %v3344_v53 = vmax.f32 %v2166_v46, 0.0  ;;  %v3362_v49 = vmax.f32 %v2429_v31, 0.0  ;;  %v2148_v18 = vadd.f32 %v12068_v9, %v9332_v32  ;;  %v12069_v52 = vld [vmem:[#allocation170_spill] sm:$0xff] }
 0x2ea   : > { %v2435_v2 = vadd.f32 %v12062_v28, %v9382_v41  ;;  %12063 = vst [vmem:[#allocation199_spill] sm:$0xff] %v10259_v4  ;;  %v2154_v44 = vadd.f32 %v12069_v52, %v9332_v32  ;;  %v12070_v28 = vld [vmem:[#allocation183_spill] sm:$0xff]  ;;  %v2417_v46 = vadd.f32 %v12075_v43, %v9382_v41 }
 0x2eb   : > { %4013 = vmatpush2.bf16.xpose.msra.mxu0 %v12057_v27  ;;  %4052 = vmatpush2.bf16.xpose.msra.mxu1 %v12058_v50  ;;  %12064 = vst [vmem:[#allocation180_spill] sm:$0xff] %v10261_v56 }
 0x2ec   : > { %4014 = vmatprep.subr.bf16.mxu0 %v10243_v59  ;;  %4053 = vmatprep.subr.bf16.mxu1 %v10245_v13  ;;  %v12066_v59 = vld [vmem:[#allocation202_spill] sm:$0xff]  ;;  %v3378_v7 = vmax.f32 %v2435_v2, 0.0  ;;  %v3296_v2 = vmax.f32 %v2148_v18, 0.0  ;;  %v3312_v31 = vmax.f32 %v2154_v44, 0.0  ;;  %v3330_v52 = vmax.f32 %v2417_v46, 0.0 }
 0x2ee   : > { %v10277_v58 = vpack.c.bf16 %v3378_v7, %v3362_v49  ;;  %v12077_v7 = vld [vmem:[#allocation165_spill] sm:$0xff] }
 0x2ef   : > { %v2142_v49 = vadd.f32 %v12077_v7, %v9332_v32  ;;  %v12084_v7 = vld [vmem:[#allocation172_spill] sm:$0xff] }
 0x2f0   : > { %12072 = vst [vmem:[#allocation195_spill] sm:$0xff] %v10277_v58 }
 0x2f3   : > { %4015 = vmatpush2.bf16.xpose.msra.mxu0 %v12065_v25  ;;  %4054 = vmatpush2.bf16.xpose.msra.mxu1 %v12066_v59  ;;  %v2423_v25 = vadd.f32 %v12070_v28, %v9382_v41  ;;  %v10275_v59 = vpack.c.bf16 %v3344_v53, %v3328_v30  ;;  %v12076_v30 = vld [vmem:[#allocation164_spill] sm:$0xff]  ;;  %v12078_v28 = vld [vmem:[#allocation177_spill] sm:$0xff] }
 0x2f4   : > { %4016 = vmatprep.subr.bf16.mxu0 %v10259_v4  ;;  %4055 = vmatprep.subr.bf16.mxu1 %v10261_v56  ;;  %v12073_v4 = vld [vmem:[#allocation184_spill] sm:$0xff]  ;;  %v12074_v56 = vld [vmem:[#allocation197_spill] sm:$0xff]  ;;  %v2136_v53 = vadd.f32 %v12076_v30, %v9332_v32  ;;  %v3280_v32 = vmax.f32 %v2142_v49, 0.0 }
 0x2f5   : > { %12071 = vst [vmem:[#allocation182_spill] sm:$0xff] %v10275_v59  ;;  %v3346_v9 = vmax.f32 %v2423_v25, 0.0  ;;  %v12082_v25 = vld [vmem:[#allocation175_spill] sm:$0xff] }
 0x2f6   : > { %v2405_v18 = vadd.f32 %v12082_v25, %v9382_v41  ;;  %v3264_v44 = vmax.f32 %v2136_v53, 0.0  ;;  %v12086_v25 = vld [vmem:[#allocation169_spill] sm:$0xff] }
 0x2f7   : > { %v10293_v43 = vpack.c.bf16 %v3346_v9, %v3330_v52 }
 0x2f8   : > { %v3298_v30 = vmax.f32 %v2405_v18, 0.0  ;;  %v10303_v9 = vpack.c.bf16 %v3280_v32, %v3264_v44  ;;  %v12087_v18 = vld [vmem:[#allocation166_spill] sm:$0xff]  ;;  %v12088_v44 = vld [vmem:[#allocation179_spill] sm:$0xff]  ;;  %v6797_v32 = vcombine.low %v9967_v26, %v9967_v26  ;;  %v6799_v26 = vcombine.low %v10009_v34, %v10009_v34 }
 0x2f9   : > { %v2590_v34 = vadd.f32 %v9854_v61, %v9868_v6 }
 0x2fb   : > { %4017 = vmatpush2.bf16.xpose.msra.mxu0 %v12073_v4  ;;  %4056 = vmatpush2.bf16.xpose.msra.mxu1 %v12074_v56  ;;  %v2411_v4 = vadd.f32 %v12078_v28, %v9382_v41  ;;  %v10291_v56 = vpack.c.bf16 %v3312_v31, %v3296_v2  ;;  %v12083_v2 = vld [vmem:[#allocation171_spill] sm:$0xff]  ;;  %v12085_v28 = vld [vmem:[#allocation185_spill] sm:$0xff] }
 0x2fc   : > { %4018 = vmatprep.subr.bf16.mxu0 %v10275_v59  ;;  %4057 = vmatprep.subr.bf16.mxu1 %v10277_v58  ;;  %v12080_v59 = vld [vmem:[#allocation178_spill] sm:$0xff]  ;;  %v12081_v58 = vld [vmem:[#allocation191_spill] sm:$0xff]  ;;  %v2399_v31 = vadd.f32 %v12083_v2, %v9382_v41 }
 0x2fd   : > { %12079 = vst [vmem:[#allocation196_spill] sm:$0xff] %v10291_v56  ;;  %v3314_v46 = vmax.f32 %v2411_v4, 0.0 }
 0x2fe   : > { %v3282_v4 = vmax.f32 %v2399_v31, 0.0  ;;  %v2596_v31 = vadd.f32 %v9861_v14, %v9868_v6 }
 0x2ff   : > { %v10305_v52 = vpack.c.bf16 %v3314_v46, %v3298_v30  ;;  %v12089_v46 = vld [vmem:[#allocation173_spill] sm:$0xff]  ;;  %v10337_v30 = vld [vmem:[%s11430_s3 + $0x38] sm:$0x77] }
 0x300   : > { %v6804_v2 = vcombine.high %v10337_v30, %v10337_v30 }
 0x303   : > { %4019 = vmatpush2.bf16.xpose.msra.mxu0 %v12080_v59  ;;  %4058 = vmatpush2.bf16.xpose.msra.mxu1 %v12081_v58 }
 0x304   : > { %4020 = vmatprep.subr.bf16.mxu0 %v10291_v56  ;;  %4059 = vmatprep.subr.bf16.mxu1 %v10293_v43  ;;  %v2393_v56 = vadd.f32 %v12086_v25, %v9382_v41  ;;  %v10324_v41 = vld [vmem:[%s11430_s3 + $0x30] sm:$0x77]  ;;  %v3108_v25 = vmax.f32 %v2590_v34, 0.0 }
 0x305   : > { %v12092_v34 = vld [vmem:[#allocation219_spill] sm:$0xff] }
 0x306   : > { %v3266_v53 = vmax.f32 %v2393_v56, 0.0  ;;  %v6802_v56 = vcombine.high %v10324_v41, %v10324_v41 }
 0x308   : > { %v10313_v49 = vpack.c.bf16 %v3282_v4, %v3266_v53  ;;  %v3124_v4 = vmax.f32 %v2596_v31, 0.0  ;;  %v2578_v53 = vadd.f32 %v9834_v5, %v9868_v6  ;;  %v2572_v5 = vadd.f32 %v9821_v15, %v9868_v6 }
 0x309   : > { %v2835_v31 = vadd.f32 %v12092_v34, %v9879_v12 }
 0x30a   : > { %v10357_v61 = vpack.c.bf16 %v3124_v4, %v3108_v25  ;;  %v3076_v14 = vmax.f32 %v2578_v53, 0.0  ;;  %v12093_v25 = vld [vmem:[#allocation223_spill] sm:$0xff]  ;;  %v3060_v4 = vmax.f32 %v2572_v5, 0.0 }
 0x30b   : > { %4021 = vmatpush2.bf16.xpose.msra.mxu0 %v12084_v7  ;;  %4060 = vmatpush2.bf16.xpose.msra.mxu1 %v12085_v28  ;;  %v3078_v15 = vmax.f32 %v2835_v31, 0.0 }
 0x30c   : > { %4022 = vmatprep.subr.bf16.mxu0 %v10303_v9  ;;  %4061 = vmatprep.subr.bf16.mxu1 %v10305_v52  ;;  %12090 = vst [vmem:[#allocation206_spill] sm:$0xff] %v10357_v61 }
 0x313   : > { %4023 = vmatpush2.bf16.xpose.msra.mxu0 %v12087_v18  ;;  %4062 = vmatpush2.bf16.xpose.msra.mxu1 %v12088_v44 }
 0x314   : > { %4063 = vmatprep.subr.bf16.mxu1 %v10313_v49  ;;  %4074 = vmatprep.subr.bf16.mxu0 %v10001_v62 }
 0x31a   : > { %4025 = vmatmul.mubr.bf16.vlgmr.msra.gmra.mxu0 %v6797_v32  ;;  %v2584_v32 = vadd.f32 %v9841_v16, %v9868_v6  ;;  %v2841_v16 = vadd.f32 %v9863_v11, %v9879_v12  ;;  %v12095_v11 = vld [vmem:[#allocation209_spill] sm:$0xff] }
 0x31b   : > { %4064 = vmatpush2.bf16.xpose.msra.mxu1 %v12089_v46  ;;  %4075 = vmatpush1.bf16.xpose.msra.mxu0 %v9988_v51 }
 0x31c   : > { %4076 = vmatprep.subr.bf16.mxu0 %v9959_v63  ;;  %4115 = vmatprep.subr.bf16.mxu1 %v10041_v57  ;;  %v3094_v53 = vmax.f32 %v2841_v16, 0.0 }
 0x31d   : > { %4106 = vmatprep.mubr.bf16.mxu0 %v6802_v56  ;;  %v3092_v56 = vmax.f32 %v2584_v32, 0.0  ;;  %v12094_v32 = vld [vmem:[#allocation208_spill] sm:$0xff] }
 0x31e   : > { %v10385_v34 = vpack.c.bf16 %v3094_v53, %v3078_v15 }
 0x322   : > { %4066 = vmatmul.mubr.bf16.vlgmr.msra.gmra.mxu1 %v6799_v26  ;;  %v2566_v26 = vadd.f32 %v9814_v29, %v9868_v6 }
 0x323   : > { %4077 = vmatpush1.bf16.xpose.msra.mxu0 %v9947_v10  ;;  %4116 = vmatpush1.bf16.xpose.msra.mxu1 %v10029_v23 }
 0x324   : > { %4078 = vmatprep.subr.bf16.mxu0 %v9925_v38  ;;  %4117 = vmatprep.subr.bf16.mxu1 %v10003_v36  ;;  %v3044_v29 = vmax.f32 %v2566_v26, 0.0  ;;  %v12100_v26 = vld [vmem:[#allocation215_spill] sm:$0xff] }
 0x325   : > { %4147 = vmatprep.mubr.bf16.mxu1 %v6804_v2  ;;  %v10367_v2 = vpack.c.bf16 %v3092_v56, %v3076_v14  ;;  %v2554_v14 = vadd.f32 %v12094_v32, %v9868_v6  ;;  %v2560_v56 = vadd.f32 %v12095_v11, %v9868_v6  ;;  %v2823_v5 = vadd.f32 %v12100_v26, %v9879_v12  ;;  %v12102_v32 = vld [vmem:[#allocation213_spill] sm:$0xff]  ;;  %v12104_v26 = vld [vmem:[#allocation211_spill] sm:$0xff] }
 0x326   : > { %v12103_v11 = vld [vmem:[#allocation221_spill] sm:$0xff] }
 0x327   : > { %12091 = vst [vmem:[#allocation193_spill] sm:$0xff] %v10367_v2  ;;  %v3012_v16 = vmax.f32 %v2554_v14, 0.0  ;;  %v3028_v6 = vmax.f32 %v2560_v56, 0.0 }
 0x32b   : > { %4079 = vmatpush1.bf16.xpose.msra.mxu0 %v9915_v37  ;;  %4118 = vmatpush1.bf16.xpose.msra.mxu1 %v9990_v0 }
 0x32c   : > { %4080 = vmatprep.subr.bf16.mxu0 %v9901_v55  ;;  %4119 = vmatprep.subr.bf16.mxu1 %v9961_v24 }
 0x333   : > { %4081 = vmatpush1.bf16.xpose.msra.mxu0 %v9891_v20  ;;  %4120 = vmatpush1.bf16.xpose.msra.mxu1 %v9949_v40 }
 0x334   : > { %4082 = vmatprep.subr.bf16.mxu0 %v10357_v61  ;;  %4121 = vmatprep.subr.bf16.mxu1 %v9927_v19  ;;  %v12097_v61 = vld [vmem:[#allocation216_spill] sm:$0xff] }
 0x33b   : > { %4083 = vmatpush1.bf16.xpose.msra.mxu0 %v9870_v39  ;;  %4122 = vmatpush1.bf16.xpose.msra.mxu1 %v9917_v48  ;;  %v10381_v39 = vpack.c.bf16 %v3060_v4, %v3044_v29  ;;  %v2829_v48 = vadd.f32 %v12097_v61, %v9879_v12  ;;  %v3046_v29 = vmax.f32 %v2823_v5, 0.0  ;;  %v10393_v4 = vpack.c.bf16 %v3028_v6, %v3012_v16  ;;  %v12101_v61 = vld [vmem:[#allocation212_spill] sm:$0xff]  ;;  %v12105_v5 = vld [vmem:[#allocation210_spill] sm:$0xff] }
 0x33c   : > { %4084 = vmatprep.subr.bf16.mxu0 %v10367_v2  ;;  %4123 = vmatprep.subr.bf16.mxu1 %v12093_v25  ;;  %v12098_v2 = vld [vmem:[#allocation217_spill] sm:$0xff]  ;;  %v12099_v25 = vld [vmem:[#allocation222_spill] sm:$0xff]  ;;  %v2817_v53 = vadd.f32 %v12101_v61, %v9879_v12 }
 0x33d   : > { %12096 = vst [vmem:[#allocation174_spill] sm:$0xff] %v10381_v39  ;;  %v3062_v31 = vmax.f32 %v2829_v48, 0.0  ;;  %v12106_v16 = vld [vmem:[#allocation218_spill] sm:$0xff] }
 0x33e   : > { %v3030_v48 = vmax.f32 %v2817_v53, 0.0 }
 0x33f   : > { %v10397_v15 = vpack.c.bf16 %v3062_v31, %v3046_v29 }
 0x343   : > { %4085 = vmatpush1.bf16.xpose.msra.mxu0 %v12098_v2  ;;  %4124 = vmatpush1.bf16.xpose.msra.mxu1 %v12099_v25 }
 0x344   : > { %4086 = vmatprep.subr.bf16.mxu0 %v10381_v39  ;;  %4125 = vmatprep.subr.bf16.mxu1 %v10385_v34  ;;  %v2811_v39 = vadd.f32 %v12104_v26, %v9879_v12  ;;  %v12107_v12 = vld [vmem:[#allocation214_spill] sm:$0xff] }
 0x346   : > { %v3014_v14 = vmax.f32 %v2811_v39, 0.0 }
 0x348   : > { %v10405_v56 = vpack.c.bf16 %v3030_v48, %v3014_v14 }
 0x34b   : > { %4087 = vmatpush1.bf16.xpose.msra.mxu0 %v12102_v32  ;;  %4126 = vmatpush1.bf16.xpose.msra.mxu1 %v12103_v11 }
 0x34c   : > { %4088 = vmatprep.subr.bf16.mxu0 %v10393_v4  ;;  %4127 = vmatprep.subr.bf16.mxu1 %v10397_v15 }
 0x353   : > { %4089 = vmatpush1.bf16.xpose.msra.mxu0 %v12105_v5  ;;  %4128 = vmatpush1.bf16.xpose.msra.mxu1 %v12106_v16 }
 0x354   : > { %4090 = vmatprep.subr.bf16.mxu0 %v10205_v3  ;;  %4129 = vmatprep.subr.bf16.mxu1 %v10405_v56 }
 0x35a   : > { %v3944_v6 = vpop.f32.mrf.mxu0 }
 0x35b   : > { %v3945_v31 = vadd.f32 %v3944_v6, %v10225_v17  ;;  %4091 = vmatpush2.bf16.xpose.msra.mxu0 %v10195_v21  ;;  %4130 = vmatpush1.bf16.xpose.msra.mxu1 %v12107_v12  ;;  %v12108_v21 = vld [vmem:[#allocation244_spill] sm:$0xff] }
 0x35c   : > { %v3946_v29 = vpop.f32.mrf.mxu0  ;;  %4092 = vmatprep.subr.bf16.mxu0 %v10175_v45  ;;  %4131 = vmatprep.subr.bf16.mxu1 %v10233_v35 }
 0x35d   : > { %v3947_v39 = vadd.f32 %v3946_v29, %v10235_v1  ;;  %v12109_v1 = vld [vmem:[#allocation251_spill] sm:$0xff]  ;;  %v12110_v29 = vld [vmem:[#allocation242_spill] sm:$0xff] }
 0x35e   : > { %v3948_v61 = vpop.f32.mrf.mxu0 }
 0x35f   : > { %v12112_v61 = vld [vmem:[#allocation240_spill] sm:$0xff] }
 0x360   : > { %v3949_v53 = vpop.f32.mrf.mxu0 }
 0x361   : > { %v12113_v53 = vld [vmem:[#allocation249_spill] sm:$0xff] }
 0x362   : > { %v3985_v26 = vpop.f32.mrf.mxu1 }
 0x363   : > { %v10417_v48 = vadd.f32 %v3985_v26, %v3945_v31  ;;  %4093 = vmatpush2.bf16.xpose.msra.mxu0 %v10163_v60  ;;  %4132 = vmatpush2.bf16.xpose.msra.mxu1 %v10223_v47  ;;  %v12111_v31 = vld [vmem:[#allocation250_spill] sm:$0xff] }
 0x364   : > { %v3987_v17 = vpop.f32.mrf.mxu1  ;;  %4094 = vmatprep.subr.bf16.mxu0 %v10145_v8  ;;  %4133 = vmatprep.subr.bf16.mxu1 %v10207_v33  ;;  %v12114_v26 = vld [vmem:[#allocation238_spill] sm:$0xff]  ;;  %v12115_v8 = vld [vmem:[#allocation247_spill] sm:$0xff] }
 0x365   : > { %v10423_v14 = vadd.f32 %v3987_v17, %v3947_v39  ;;  %v12116_v39 = vld [vmem:[#allocation236_spill] sm:$0xff]  ;;  %v12117_v17 = vld [vmem:[#allocation245_spill] sm:$0xff] }
 0x366   : > { %v3989_v6 = vpop.f32.mrf.mxu1 }
 0x367   : > { %v12119_v6 = vld [vmem:[#allocation243_spill] sm:$0xff] }
 0x368   : > { %v3990_v45 = vpop.f32.mrf.mxu1 }
 0x369   : > { %v12118_v45 = vld [vmem:[#allocation234_spill] sm:$0xff] }
 0x36b   : > { %4095 = vmatpush2.bf16.xpose.msra.mxu0 %v12108_v21  ;;  %4134 = vmatpush2.bf16.xpose.msra.mxu1 %v12109_v1  ;;  %v12120_v21 = vld [vmem:[#allocation232_spill] sm:$0xff] }
 0x36c   : > { %4096 = vmatprep.subr.bf16.mxu0 %v12110_v29  ;;  %4135 = vmatprep.subr.bf16.mxu1 %v12111_v31  ;;  %v12121_v29 = vld [vmem:[#allocation241_spill] sm:$0xff]  ;;  %v12122_v31 = vld [vmem:[#allocation230_spill] sm:$0xff] }
 0x373   : > { %4097 = vmatpush2.bf16.xpose.msra.mxu0 %v12112_v61  ;;  %4136 = vmatpush2.bf16.xpose.msra.mxu1 %v12113_v53  ;;  %v12123_v61 = vld [vmem:[#allocation239_spill] sm:$0xff]  ;;  %v12124_v53 = vld [vmem:[#allocation228_spill] sm:$0xff] }
 0x374   : > { %4098 = vmatprep.subr.bf16.mxu0 %v12114_v26  ;;  %4137 = vmatprep.subr.bf16.mxu1 %v12115_v8  ;;  %v12125_v26 = vld [vmem:[#allocation237_spill] sm:$0xff]  ;;  %v12126_v8 = vld [vmem:[#allocation155_spill] sm:$0xff] }
 0x37b   : > { %4099 = vmatpush2.bf16.xpose.msra.mxu0 %v12116_v39  ;;  %4138 = vmatpush2.bf16.xpose.msra.mxu1 %v12117_v17  ;;  %v12127_v39 = vld [vmem:[#allocation235_spill] sm:$0xff]  ;;  %v12128_v17 = vld [vmem:[#allocation226_spill] sm:$0xff] }
 0x37c   : > { %4100 = vmatprep.subr.bf16.mxu0 %v12118_v45  ;;  %4139 = vmatprep.subr.bf16.mxu1 %v12119_v6  ;;  %v12129_v45 = vld [vmem:[#allocation233_spill] sm:$0xff]  ;;  %v12130_v6 = vld [vmem:[#allocation231_spill] sm:$0xff] }
 0x383   : > { %4101 = vmatpush2.bf16.xpose.msra.mxu0 %v12120_v21  ;;  %4140 = vmatpush2.bf16.xpose.msra.mxu1 %v12121_v29  ;;  %v12131_v21 = vld [vmem:[#allocation35_spill] sm:$0xff] }
 0x384   : > { %4102 = vmatprep.subr.bf16.mxu0 %v12122_v31  ;;  %4141 = vmatprep.subr.bf16.mxu1 %v12123_v61  ;;  %v6801_v31 = vcombine.low %v10324_v41, %v10324_v41  ;;  %v12132_v61 = vld [vmem:[#allocation229_spill] sm:$0xff]  ;;  %v12139_v41 = vld [vmem:[#allocation36_spill] sm:$0xff] }
 0x38b   : > { %4103 = vmatpush2.bf16.xpose.msra.mxu0 %v12124_v53  ;;  %4142 = vmatpush2.bf16.xpose.msra.mxu1 %v12125_v26  ;;  %v12133_v53 = vld [vmem:[#allocation34_spill] sm:$0xff]  ;;  %v12134_v26 = vld [vmem:[#allocation31_spill] sm:$0xff] }
 0x38c   : > { %4104 = vmatprep.subr.bf16.mxu0 %v12126_v8  ;;  %4143 = vmatprep.subr.bf16.mxu1 %v12127_v39  ;;  %v12135_v8 = vld [vmem:[#allocation37_spill] sm:$0xff] }
 0x38d   : > { %v12195_v39 = vld [vmem:[#allocation41_spill] sm:$0xff] }
 0x393   : > { %4105 = vmatpush2.bf16.xpose.msra.mxu0 %v12128_v17  ;;  %4144 = vmatpush2.bf16.xpose.msra.mxu1 %v12129_v45  ;;  %v6803_v17 = vcombine.low %v10337_v30, %v10337_v30  ;;  %v12136_v45 = vld [vmem:[#allocation30_spill] sm:$0xff]  ;;  %v12145_v30 = vld [vmem:[#allocation29_spill] sm:$0xff] }
 0x394   : > { %4145 = vmatprep.subr.bf16.mxu1 %v12130_v6  ;;  %4178 = vmatprep.subr.bf16.mxu0 %v12131_v21  ;;  %v12137_v6 = vld [vmem:[#allocation27_spill] sm:$0xff]  ;;  %v12138_v21 = vld [vmem:[#allocation26_spill] sm:$0xff] }
 0x39a   : > { %4107 = vmatmul.mubr.bf16.vlgmr.msra.gmra.mxu0 %v6801_v31  ;;  %v12140_v31 = vld [vmem:[#allocation23_spill] sm:$0xff] }
 0x39b   : > { %4146 = vmatpush2.bf16.xpose.msra.mxu1 %v12132_v61  ;;  %4179 = vmatpush1.bf16.msra.mxu0 %v12133_v53  ;;  %v12141_v61 = vld [vmem:[#allocation33_spill] sm:$0xff]  ;;  %v12142_v53 = vld [vmem:[#allocation22_spill] sm:$0xff] }
 0x39c   : > { %4180 = vmatprep.subr.bf16.mxu0 %v12134_v26  ;;  %4219 = vmatprep.subr.bf16.mxu1 %v12135_v8  ;;  %v12143_v26 = vld [vmem:[#allocation32_spill] sm:$0xff]  ;;  %v12144_v8 = vld [vmem:[#allocation19_spill] sm:$0xff] }
 0x39f   : > { %4181 = vmatpush1.bf16.msra.mxu0 %v12136_v45  ;;  %v12146_v45 = vld [vmem:[#allocation18_spill] sm:$0xff] }
 0x3a0   : > { %4182 = vmatprep.subr.bf16.mxu0 %v12137_v6  ;;  %v12147_v6 = vld [vmem:[#allocation28_spill] sm:$0xff] }
 0x3a2   : > { %4148 = vmatmul.mubr.bf16.vlgmr.msra.gmra.mxu1 %v6803_v17  ;;  %v12148_v17 = vld [vmem:[#allocation15_spill] sm:$0xff] }
 0x3a3   : > { %4183 = vmatpush1.bf16.msra.mxu0 %v12138_v21  ;;  %4220 = vmatpush1.bf16.msra.mxu1 %v12139_v41  ;;  %v12149_v21 = vld [vmem:[#allocation25_spill] sm:$0xff]  ;;  %v12150_v41 = vld [vmem:[#allocation14_spill] sm:$0xff] }
 0x3a4   : > { %4184 = vmatprep.subr.bf16.mxu0 %v12140_v31  ;;  %4221 = vmatprep.subr.bf16.mxu1 %v12141_v61  ;;  %v12151_v31 = vld [vmem:[#allocation24_spill] sm:$0xff]  ;;  %v12152_v61 = vld [vmem:[#allocation11_spill] sm:$0xff] }
 0x3a7   : > { %4185 = vmatpush1.bf16.msra.mxu0 %v12142_v53  ;;  %4222 = vmatpush1.bf16.msra.mxu1 %v12143_v26  ;;  %v12153_v53 = vld [vmem:[#allocation21_spill] sm:$0xff]  ;;  %v12154_v26 = vld [vmem:[#allocation10_spill] sm:$0xff] }
 0x3a8   : > { %4186 = vmatprep.subr.bf16.mxu0 %v12144_v8  ;;  %4223 = vmatprep.subr.bf16.mxu1 %v12145_v30  ;;  %v12155_v8 = vld [vmem:[#allocation20_spill] sm:$0xff]  ;;  %v12156_v30 = vld [vmem:[#allocation7_spill] sm:$0xff] }
 0x3ab   : > { %4187 = vmatpush1.bf16.msra.mxu0 %v12146_v45  ;;  %4224 = vmatpush1.bf16.msra.mxu1 %v12147_v6  ;;  %v12157_v45 = vld [vmem:[#allocation17_spill] sm:$0xff]  ;;  %v12158_v6 = vld [vmem:[#allocation6_spill] sm:$0xff] }
 0x3ac   : > { %4188 = vmatprep.subr.bf16.mxu0 %v12148_v17  ;;  %4225 = vmatprep.subr.bf16.mxu1 %v12149_v21  ;;  %v12159_v17 = vld [vmem:[#allocation16_spill] sm:$0xff]  ;;  %v12160_v21 = vld [vmem:[#allocation66_spill] sm:$0xff] }
 0x3af   : > { %4189 = vmatpush1.bf16.msra.mxu0 %v12150_v41  ;;  %4226 = vmatpush1.bf16.msra.mxu1 %v12151_v31  ;;  %v12161_v41 = vld [vmem:[#allocation13_spill] sm:$0xff]  ;;  %v12162_v31 = vld [vmem:[#allocation64_spill] sm:$0xff] }
 0x3b0   : > { %4190 = vmatprep.subr.bf16.mxu0 %v12152_v61  ;;  %4227 = vmatprep.subr.bf16.mxu1 %v12153_v53  ;;  %v12163_v61 = vld [vmem:[#allocation12_spill] sm:$0xff]  ;;  %v12164_v53 = vld [vmem:[#allocation63_spill] sm:$0xff] }
 0x3b3   : > { %4191 = vmatpush1.bf16.msra.mxu0 %v12154_v26  ;;  %4228 = vmatpush1.bf16.msra.mxu1 %v12155_v8  ;;  %v12165_v26 = vld [vmem:[#allocation9_spill] sm:$0xff]  ;;  %v12166_v8 = vld [vmem:[#allocation62_spill] sm:$0xff] }
 0x3b4   : > { %4192 = vmatprep.subr.bf16.mxu0 %v12156_v30  ;;  %4229 = vmatprep.subr.bf16.mxu1 %v12157_v45  ;;  %v12167_v30 = vld [vmem:[#allocation8_spill] sm:$0xff]  ;;  %v12168_v45 = vld [vmem:[#allocation59_spill] sm:$0xff] }
 0x3b7   : > { %4193 = vmatpush1.bf16.msra.mxu0 %v12158_v6  ;;  %4230 = vmatpush1.bf16.msra.mxu1 %v12159_v17  ;;  %v12169_v6 = vld [vmem:[#allocation70_spill] sm:$0xff] }
 0x3b8   : > { %4194 = vmatprep.subr.bf16.mxu0 %v12160_v21  ;;  %4231 = vmatprep.subr.bf16.mxu1 %v12161_v41  ;;  %v12170_v17 = vld [vmem:[#allocation58_spill] sm:$0xff]  ;;  %v12171_v21 = vld [vmem:[#allocation68_spill] sm:$0xff]  ;;  %v12172_v41 = vld [vmem:[#allocation55_spill] sm:$0xff] }
 0x3bb   : > { %4195 = vmatpush2.bf16.msra.mxu0 %v12162_v31  ;;  %4232 = vmatpush1.bf16.msra.mxu1 %v12163_v61  ;;  %v12173_v31 = vld [vmem:[#allocation67_spill] sm:$0xff]  ;;  %v12174_v61 = vld [vmem:[#allocation54_spill] sm:$0xff] }
 0x3bc   : > { %4196 = vmatprep.subr.bf16.mxu0 %v12164_v53  ;;  %4233 = vmatprep.subr.bf16.mxu1 %v12165_v26  ;;  %v12175_v53 = vld [vmem:[#allocation65_spill] sm:$0xff]  ;;  %v12176_v26 = vld [vmem:[#allocation51_spill] sm:$0xff] }
 0x3bf   : > { %4197 = vmatpush2.bf16.msra.mxu0 %v12166_v8  ;;  %4234 = vmatpush1.bf16.msra.mxu1 %v12167_v30  ;;  %v12177_v8 = vld [vmem:[#allocation61_spill] sm:$0xff]  ;;  %v12178_v30 = vld [vmem:[#allocation50_spill] sm:$0xff] }
 0x3c0   : > { %4198 = vmatprep.subr.bf16.mxu0 %v12168_v45  ;;  %4235 = vmatprep.subr.bf16.mxu1 %v12169_v6  ;;  %v12179_v45 = vld [vmem:[#allocation60_spill] sm:$0xff]  ;;  %v12180_v6 = vld [vmem:[#allocation47_spill] sm:$0xff] }
 0x3c3   : > { %4199 = vmatpush2.bf16.msra.mxu0 %v12170_v17  ;;  %4236 = vmatpush2.bf16.msra.mxu1 %v12171_v21  ;;  %v12181_v17 = vld [vmem:[#allocation57_spill] sm:$0xff]  ;;  %v12182_v21 = vld [vmem:[#allocation46_spill] sm:$0xff] }
 0x3c4   : > { %4200 = vmatprep.subr.bf16.mxu0 %v12172_v41  ;;  %4237 = vmatprep.subr.bf16.mxu1 %v12173_v31  ;;  %v12183_v41 = vld [vmem:[#allocation56_spill] sm:$0xff]  ;;  %v12184_v31 = vld [vmem:[#allocation43_spill] sm:$0xff] }
 0x3c7   : > { %4201 = vmatpush2.bf16.msra.mxu0 %v12174_v61  ;;  %4238 = vmatpush2.bf16.msra.mxu1 %v12175_v53  ;;  %v12185_v61 = vld [vmem:[#allocation53_spill] sm:$0xff]  ;;  %v12186_v53 = vld [vmem:[#allocation42_spill] sm:$0xff] }
 0x3c8   : > { %4202 = vmatprep.subr.bf16.mxu0 %v12176_v26  ;;  %4239 = vmatprep.subr.bf16.mxu1 %v12177_v8  ;;  %v12187_v26 = vld [vmem:[#allocation52_spill] sm:$0xff]  ;;  %v12188_v8 = vld [vmem:[#allocation39_spill] sm:$0xff] }
 0x3cb   : > { %4203 = vmatpush2.bf16.msra.mxu0 %v12178_v30  ;;  %4240 = vmatpush2.bf16.msra.mxu1 %v12179_v45  ;;  %v12189_v30 = vld [vmem:[#allocation49_spill] sm:$0xff]  ;;  %v12190_v45 = vld [vmem:[#allocation38_spill] sm:$0xff] }
 0x3cc   : > { %4204 = vmatprep.subr.bf16.mxu0 %v12180_v6  ;;  %4241 = vmatprep.subr.bf16.mxu1 %v12181_v17  ;;  %v12191_v6 = vld [vmem:[#allocation48_spill] sm:$0xff]  ;;  %v12192_v17 = vld [vmem:[#allocation45_spill] sm:$0xff] }
 0x3cf   : > { %4205 = vmatpush2.bf16.msra.mxu0 %v12182_v21  ;;  %4242 = vmatpush2.bf16.msra.mxu1 %v12183_v41  ;;  %v12193_v21 = vld [vmem:[#allocation98_spill] sm:$0xff] }
 0x3d0   : > { %4206 = vmatprep.subr.bf16.mxu0 %v12184_v31  ;;  %4243 = vmatprep.subr.bf16.mxu1 %v12185_v61  ;;  %v12194_v61 = vld [vmem:[#allocation44_spill] sm:$0xff] }
 0x3d3   : > { %4207 = vmatpush2.bf16.msra.mxu0 %v12186_v53  ;;  %4244 = vmatpush2.bf16.msra.mxu1 %v12187_v26 }
 0x3d4   : > { %4208 = vmatprep.subr.bf16.mxu0 %v12188_v8  ;;  %4245 = vmatprep.subr.bf16.mxu1 %v12189_v30  ;;  %v12196_v30 = vld [vmem:[#allocation40_spill] sm:$0xff] }
 0x3d7   : > { %4209 = vmatpush2.bf16.msra.mxu0 %v12190_v45  ;;  %4246 = vmatpush2.bf16.msra.mxu1 %v12191_v6  ;;  %v12197_v45 = vld [vmem:[#allocation102_spill] sm:$0xff] }
 0x3d8   : > { %4247 = vmatprep.subr.bf16.mxu1 %v12192_v17  ;;  %4260 = vmatprep.subr.bf16.mxu0 %v12193_v21 }
 0x3da   : > { %v4026_v41 = vpop.f32.mrf.mxu0 }
 0x3db   : > { %v4027_v31 = vadd.f32 %v4026_v41, %v10417_v48  ;;  %4248 = vmatpush2.bf16.msra.mxu1 %v12194_v61 }
 0x3dc   : > { %v4028_v53 = vpop.f32.mrf.mxu0  ;;  %4249 = vmatprep.subr.bf16.mxu1 %v12195_v39 }
 0x3dd   : > { %v4029_v26 = vadd.f32 %v4028_v53, %v10423_v14 }
 0x3de   : > { %v4030_v8 = vpop.f32.mrf.mxu0 }
 0x3df   : > { %4250 = vmatpush2.bf16.msra.mxu1 %v12196_v30 }
 0x3e0   : > { %4301 = vmatprep.subr.bf16.mxu1 %v12197_v45  ;;  %v4031_v6 = vpop.f32.mrf.mxu0 }
 0x3e2   : > { %v4067_v29 = vpop.f32.mrf.mxu1 }
 0x3e3   : > { %v4068_v17 = vadd.f32 %v4067_v29, %v4027_v31 }
 0x3e4   : > { %v4069_v1 = vpop.f32.mrf.mxu1 }
 0x3e5   : > { %v4070_v21 = vadd.f32 %v4069_v1, %v4029_v26 }
 0x3e6   : > { %v4071_v60 = vpop.f32.mrf.mxu1 }
 0x3e8   : > { %v4072_v33 = vpop.f32.mrf.mxu1 }
 0x45a   : > { %v4108_v48 = vpop.f32.mrf.mxu0 }
 0x45b   : > { %v4109_v35 = vadd.f32 %v4108_v48, %v4068_v17 }
 0x45c   : > { %v4110_v41 = vpop.f32.mrf.mxu0 }
 0x45d   : > { %v4111_v3 = vadd.f32 %v4110_v41, %v4070_v21 }
 0x45e   : > { %v4112_v61 = vpop.f32.mrf.mxu0 }
 0x460   : > { %v4113_v47 = vpop.f32.mrf.mxu0 }
 0x462   : > { %v4149_v39 = vpop.f32.mrf.mxu1 }
 0x463   : > { %v4150_v14 = vadd.f32 %v4149_v39, %v4109_v35 }
 0x464   : > { %v4151_v53 = vpop.f32.mrf.mxu1 }
 0x465   : > { %v4152_v8 = vadd.f32 %v4151_v53, %v4111_v3  ;;  %v4157_v45 = vsel %vm4156_vm2, %v4150_v14, -inf }
 0x466   : > { %v4153_v30 = vpop.f32.mrf.mxu1 }
 0x467   : > { %v4158_v29 = vsel %vm4156_vm2, %v4152_v8, -inf  ;;  %v12198_v30 = vld [vmem:[#allocation96_spill] sm:$0xff] }
 0x468   : > { %v4154_v31 = vpop.f32.mrf.mxu1  ;;  %v4159_v1 = vmax.f32 %v4157_v45, %v4158_v29  ;;  %v12199_v45 = vld [vmem:[#allocation101_spill] sm:$0xff]  ;;  %v12200_v29 = vld [vmem:[#allocation94_spill] sm:$0xff] }
 0x469   : > { %v12201_v31 = vld [vmem:[#allocation99_spill] sm:$0xff] }
 0x46a   : > { %4160 = vmax.xlane.f32.xlu0 %v4159_v1  ;;  %v12202_v1 = vld [vmem:[#allocation92_spill] sm:$0xff] }
 0x4f3   : > { %v4161_v60 = vpop.xlane.xlu0 %4160 }
 0x4f4   : > { %v4162_v33 = vsub.f32 %v4150_v14, %v4161_v60  ;;  %v4163_v26 = vsub.f32 %v4152_v8, %v4161_v60  ;;  %v12203_v60 = vld [vmem:[#allocation97_spill] sm:$0xff] }
 0x4f6   : > { %v4164_v47 = vmul.f32 1.442695, %v4162_v33  ;;  %v4166_v6 = vmul.f32 1.442695, %v4163_v26  ;;  %v12204_v33 = vld [vmem:[#allocation90_spill] sm:$0xff]  ;;  %v12205_v26 = vld [vmem:[#allocation95_spill] sm:$0xff] }
 0x4f8   : > { %7665 = vpow2.f32 %v4164_v47  ;;  %v12206_v47 = vld [vmem:[#allocation88_spill] sm:$0xff] }
 0x4f9   : > { %7667 = vpow2.f32 %v4166_v6  ;;  %v12207_v6 = vld [vmem:[#allocation93_spill] sm:$0xff] }
 0x505   : > { %v7666_v35 = vpop.eup %7665 }
 0x506   : > { %v7668_v17 = vpop.eup %7667  ;;  %v4168_v3 = vsel %vm4156_vm2, %v7666_v35, 0.0 }
 0x507   : > { %v4169_v21 = vsel %vm4156_vm2, %v7668_v17, 0.0 }
 0x508   : > { %v4170_v48 = vadd.f32 %v4169_v21, %v4168_v3  ;;  %v12210_v3 = vld [vmem:[#allocation84_spill] sm:$0xff]  ;;  %v12211_v21 = vld [vmem:[#allocation89_spill] sm:$0xff] }
 0x50a   : > { %4171 = vadd.xlane.f32.xlu1 %v4170_v48  ;;  %v12212_v48 = vld [vmem:[#allocation82_spill] sm:$0xff] }
 0x593   : > { %v4172_v41 = vpop.xlane.xlu1 %4171 }
 0x594   : > { %7669 = vrcp.f32 %v4172_v41  ;;  %v12213_v41 = vld [vmem:[#allocation87_spill] sm:$0xff] }
 0x5a1   : > { %v7670_v61 = vpop.eup %7669 }
 0x5a2   : > { %v10529_v39 = vmul.f32 %v7670_v61, %v7666_v35  ;;  %v10531_v14 = vmul.f32 %v7670_v61, %v7668_v17  ;;  %v12208_v35 = vld [vmem:[#allocation86_spill] sm:$0xff]  ;;  %v12209_v17 = vld [vmem:[#allocation91_spill] sm:$0xff]  ;;  %v12214_v61 = vld [vmem:[#allocation80_spill] sm:$0xff] }
 0x5a4   : > { %5730 = vst [vmem:[%s404_s22] sm:$0x3f] %v10529_v39  ;;  %5731 = vst [vmem:[%s404_s22 + $0x8] sm:$0x3f] %v10531_v14  ;;  %v10537_v53 = vpack.c.bf16 %v10531_v14, %v10531_v14  ;;  %v10541_v8 = vpack.c.bf16 %v10529_v39, %v10529_v39  ;;  %7671 = vrsqrt.f32 %v10531_v14  ;;  %vm5625_vm3 = vcmp.eq.f32.partialorder %v10531_v14, inf  ;;  %s7744_s22 = scalar_lea.vmem %s11388_s13, 16 }
 0x5a5   : > { %vm5627_vm4 = vcmp.eq.f32.partialorder %v10531_v14, 0.0  ;;  %7673 = vrsqrt.f32 %v10529_v39  ;;  %vm5618_vm5 = vcmp.eq.f32.partialorder %v10529_v39, inf  ;;  %vm5620_vm6 = vcmp.eq.f32.partialorder %v10529_v39, 0.0  ;;  %p7745_p11 = scmp.ne.s32.totalorder %s11388_s13, %s7744_s22 }
 0x5a6   : > { %4210 = vmatprep.mubr.bf16.mxu0 %v10537_v53  ;;  %4251 = vmatprep.mubr.bf16.mxu1 %v10537_v53 }
 0x5a7   : > { %4211 = vmatmul.mubr.bf16.vlgmr.msra.gmra.mxu0 %v10541_v8  ;;  %4252 = vmatmul.mubr.bf16.vlgmr.msra.gmra.mxu1 %v10541_v8  ;;  %p7746_p12 = pnand %p7745_p11, %p7908_p5 }
 0x5a8   : > { %4261 = vmatpush1.bf16.msra.mxu0 %v12198_v30  ;;  %4302 = vmatpush1.bf16.msra.mxu1 %v12199_v45  ;;  %v12215_v30 = vld [vmem:[#allocation85_spill] sm:$0xff]  ;;  %v12216_v45 = vld [vmem:[#allocation78_spill] sm:$0xff] }
 0x5a9   : > { %4262 = vmatprep.subr.bf16.mxu0 %v12200_v29  ;;  %4292 = vmatprep.mubr.bf16.mxu0 %v10537_v53  ;;  %v12217_v29 = vld [vmem:[#allocation83_spill] sm:$0xff]  ;;  %p7747_p13 = pneg %p7746_p12 }
 0x5aa   : > { %4303 = vmatprep.subr.bf16.mxu1 %v12201_v31  ;;  %4333 = vmatprep.mubr.bf16.mxu1 %v10537_v53  ;;  %v12218_v31 = vld [vmem:[#allocation76_spill] sm:$0xff] }
 0x5ac   : > { %4263 = vmatpush1.bf16.msra.mxu0 %v12202_v1  ;;  %4304 = vmatpush1.bf16.msra.mxu1 %v12203_v60  ;;  %v12219_v1 = vld [vmem:[#allocation81_spill] sm:$0xff]  ;;  %v12220_v60 = vld [vmem:[#allocation74_spill] sm:$0xff] }
 0x5ad   : > { %4264 = vmatprep.subr.bf16.mxu0 %v12204_v33  ;;  %4305 = vmatprep.subr.bf16.mxu1 %v12205_v26  ;;  %v12221_v33 = vld [vmem:[#allocation79_spill] sm:$0xff]  ;;  %v12222_v26 = vld [vmem:[#allocation72_spill] sm:$0xff] }
 0x5b0   : > { %4265 = vmatpush1.bf16.msra.mxu0 %v12206_v47  ;;  %4306 = vmatpush1.bf16.msra.mxu1 %v12207_v6  ;;  %v12223_v47 = vld [vmem:[#allocation77_spill] sm:$0xff]  ;;  %v12224_v6 = vld [vmem:[#allocation71_spill] sm:$0xff] }
 0x5b1   : > { %4266 = vmatprep.subr.bf16.mxu0 %v12208_v35  ;;  %4307 = vmatprep.subr.bf16.mxu1 %v12209_v17  ;;  %v12225_v35 = vld [vmem:[#allocation75_spill] sm:$0xff]  ;;  %v12226_v17 = vld [vmem:[#allocation69_spill] sm:$0xff] }
 0x5b4   : > { %4267 = vmatpush1.bf16.msra.mxu0 %v12210_v3  ;;  %4308 = vmatpush1.bf16.msra.mxu1 %v12211_v21  ;;  %v12227_v3 = vld [vmem:[#allocation73_spill] sm:$0xff]  ;;  %v12228_v21 = vld [vmem:[#allocation130_spill] sm:$0xff] }
 0x5b5   : > { %4268 = vmatprep.subr.bf16.mxu0 %v12212_v48  ;;  %4309 = vmatprep.subr.bf16.mxu1 %v12213_v41  ;;  %v12229_v48 = vld [vmem:[#allocation134_spill] sm:$0xff]  ;;  %v12230_v41 = vld [vmem:[#allocation128_spill] sm:$0xff] }
 0x5b8   : > { %4269 = vmatpush1.bf16.msra.mxu0 %v12214_v61  ;;  %4310 = vmatpush1.bf16.msra.mxu1 %v12215_v30  ;;  %v12231_v61 = vld [vmem:[#allocation132_spill] sm:$0xff]  ;;  %v12232_v30 = vld [vmem:[#allocation126_spill] sm:$0xff] }
 0x5b9   : > { %4270 = vmatprep.subr.bf16.mxu0 %v12216_v45  ;;  %4311 = vmatprep.subr.bf16.mxu1 %v12217_v29  ;;  %v12233_v45 = vld [vmem:[#allocation131_spill] sm:$0xff]  ;;  %v12234_v29 = vld [vmem:[#allocation124_spill] sm:$0xff] }
 0x5bc   : > { %4271 = vmatpush1.bf16.msra.mxu0 %v12218_v31  ;;  %4312 = vmatpush1.bf16.msra.mxu1 %v12219_v1  ;;  %v12235_v31 = vld [vmem:[#allocation129_spill] sm:$0xff]  ;;  %v12236_v1 = vld [vmem:[#allocation122_spill] sm:$0xff] }
 0x5bd   : > { %4272 = vmatprep.subr.bf16.mxu0 %v12220_v60  ;;  %4313 = vmatprep.subr.bf16.mxu1 %v12221_v33  ;;  %v12237_v60 = vld [vmem:[#allocation127_spill] sm:$0xff]  ;;  %v12238_v33 = vld [vmem:[#allocation120_spill] sm:$0xff] }
 0x5c0   : > { %4273 = vmatpush1.bf16.msra.mxu0 %v12222_v26  ;;  %4314 = vmatpush1.bf16.msra.mxu1 %v12223_v47  ;;  %v12239_v26 = vld [vmem:[#allocation125_spill] sm:$0xff]  ;;  %v12240_v47 = vld [vmem:[#allocation118_spill] sm:$0xff] }
 0x5c1   : > { %4274 = vmatprep.subr.bf16.mxu0 %v12224_v6  ;;  %4315 = vmatprep.subr.bf16.mxu1 %v12225_v35  ;;  %v12241_v6 = vld [vmem:[#allocation123_spill] sm:$0xff]  ;;  %v12242_v35 = vld [vmem:[#allocation116_spill] sm:$0xff] }
 0x5c4   : > { %4275 = vmatpush1.bf16.msra.mxu0 %v12226_v17  ;;  %4316 = vmatpush1.bf16.msra.mxu1 %v12227_v3  ;;  %v12243_v17 = vld [vmem:[#allocation121_spill] sm:$0xff]  ;;  %v12244_v3 = vld [vmem:[#allocation114_spill] sm:$0xff] }
 0x5c5   : > { %4276 = vmatprep.subr.bf16.mxu0 %v12228_v21  ;;  %4317 = vmatprep.subr.bf16.mxu1 %v12229_v48  ;;  %v12245_v21 = vld [vmem:[#allocation119_spill] sm:$0xff]  ;;  %v12246_v48 = vld [vmem:[#allocation112_spill] sm:$0xff] }
 0x5c8   : > { %4277 = vmatpush2.bf16.msra.mxu0 %v12230_v41  ;;  %4318 = vmatpush2.bf16.msra.mxu1 %v12231_v61  ;;  %v12247_v41 = vld [vmem:[#allocation117_spill] sm:$0xff]  ;;  %v12248_v61 = vld [vmem:[#allocation110_spill] sm:$0xff] }
 0x5c9   : > { %4278 = vmatprep.subr.bf16.mxu0 %v12232_v30  ;;  %4319 = vmatprep.subr.bf16.mxu1 %v12233_v45  ;;  %v12249_v30 = vld [vmem:[#allocation115_spill] sm:$0xff]  ;;  %v12250_v45 = vld [vmem:[#allocation108_spill] sm:$0xff] }
 0x5cc   : > { %4279 = vmatpush2.bf16.msra.mxu0 %v12234_v29  ;;  %4320 = vmatpush2.bf16.msra.mxu1 %v12235_v31  ;;  %v12251_v29 = vld [vmem:[#allocation113_spill] sm:$0xff]  ;;  %v12252_v31 = vld [vmem:[#allocation106_spill] sm:$0xff] }
 0x5cd   : > { %4280 = vmatprep.subr.bf16.mxu0 %v12236_v1  ;;  %4321 = vmatprep.subr.bf16.mxu1 %v12237_v60  ;;  %v12253_v1 = vld [vmem:[#allocation111_spill] sm:$0xff]  ;;  %v12254_v60 = vld [vmem:[#allocation104_spill] sm:$0xff] }
 0x5d0   : > { %4281 = vmatpush2.bf16.msra.mxu0 %v12238_v33  ;;  %4322 = vmatpush2.bf16.msra.mxu1 %v12239_v26  ;;  %v12255_v33 = vld [vmem:[#allocation109_spill] sm:$0xff]  ;;  %v12256_v26 = vld [vmem:[#allocation103_spill] sm:$0xff] }
 0x5d1   : > { %4282 = vmatprep.subr.bf16.mxu0 %v12240_v47  ;;  %4323 = vmatprep.subr.bf16.mxu1 %v12241_v6  ;;  %v12257_v47 = vld [vmem:[#allocation107_spill] sm:$0xff]  ;;  %v12258_v6 = vld [vmem:[#allocation100_spill] sm:$0xff] }
 0x5d4   : > { %4283 = vmatpush2.bf16.msra.mxu0 %v12242_v35  ;;  %4324 = vmatpush2.bf16.msra.mxu1 %v12243_v17  ;;  %v12259_v35 = vld [vmem:[#allocation105_spill] sm:$0xff] }
 0x5d5   : > { %4284 = vmatprep.subr.bf16.mxu0 %v12244_v3  ;;  %4325 = vmatprep.subr.bf16.mxu1 %v12245_v21  ;;  %v12260_v17 = vld [vmem:[#allocation225_spill] sm:$0xff]  ;;  %v12262_v21 = vld [vmem:[#allocation162_spill] sm:$0xff] }
 0x5d6   : > { %v12261_v3 = vld [vmem:[#allocation161_spill] sm:$0xff] }
 0x5d8   : > { %4285 = vmatpush2.bf16.msra.mxu0 %v12246_v48  ;;  %4326 = vmatpush2.bf16.msra.mxu1 %v12247_v41  ;;  %v12263_v48 = vld [vmem:[#allocation167_spill] sm:$0xff]  ;;  %v12264_v41 = vld [vmem:[#allocation152_spill] sm:$0xff] }
 0x5d9   : > { %4286 = vmatprep.subr.bf16.mxu0 %v12248_v61  ;;  %4327 = vmatprep.subr.bf16.mxu1 %v12249_v30  ;;  %v12265_v61 = vld [vmem:[#allocation157_spill] sm:$0xff]  ;;  %v12266_v30 = vld [vmem:[#allocation158_spill] sm:$0xff] }
 0x5dc   : > { %4287 = vmatpush2.bf16.msra.mxu0 %v12250_v45  ;;  %4328 = vmatpush2.bf16.msra.mxu1 %v12251_v29  ;;  %v12267_v45 = vld [vmem:[#allocation163_spill] sm:$0xff]  ;;  %v12268_v29 = vld [vmem:[#allocation160_spill] sm:$0xff] }
 0x5dd   : > { %4288 = vmatprep.subr.bf16.mxu0 %v12252_v31  ;;  %4329 = vmatprep.subr.bf16.mxu1 %v12253_v1  ;;  %v12269_v31 = vld [vmem:[#allocation227_spill] sm:$0xff]  ;;  %v12270_v1 = vld [vmem:[#allocation153_spill] sm:$0xff] }
 0x5e0   : > { %4289 = vmatpush2.bf16.msra.mxu0 %v12254_v60  ;;  %4330 = vmatpush2.bf16.msra.mxu1 %v12255_v33  ;;  %v12271_v60 = vld [vmem:[#allocation159_spill] sm:$0xff]  ;;  %v12272_v33 = vld [vmem:[#allocation150_spill] sm:$0xff] }
 0x5e1   : > { %4290 = vmatprep.subr.bf16.mxu0 %v12256_v26  ;;  %4331 = vmatprep.subr.bf16.mxu1 %v12257_v47  ;;  %v12273_v26 = vld [vmem:[#allocation156_spill] sm:$0xff] }
 0x5e2   : > { %v12274_v47 = vld [vmem:[#allocation148_spill] sm:$0xff] }
 0x5e4   : > { %4291 = vmatpush2.bf16.msra.mxu0 %v12258_v6  ;;  %4332 = vmatpush2.bf16.msra.mxu1 %v12259_v35  ;;  %v12275_v6 = vld [vmem:[#allocation154_spill] sm:$0xff] }
 0x5e5   : > { %4342 = vmatprep.subr.bf16.mxu0 %v12260_v17  ;;  %4383 = vmatprep.subr.bf16.mxu1 %v12261_v3  ;;  %v12276_v35 = vld [vmem:[#allocation146_spill] sm:$0xff]  ;;  %v12277_v17 = vld [vmem:[#allocation151_spill] sm:$0xff]  ;;  %v12278_v3 = vld [vmem:[#allocation144_spill] sm:$0xff] }
 0x5e7   : > { %4293 = vmatmul.mubr.bf16.vlgmr.msra.gmra.mxu0 %v10541_v8  ;;  %4334 = vmatmul.mubr.bf16.vlgmr.msra.gmra.mxu1 %v10541_v8 }
 0x5e8   : > { %4343 = vmatpush1.bf16.msra.mxu0 %v12262_v21  ;;  %4374 = vmatprep.mubr.bf16.mxu0 %v10537_v53  ;;  %v12279_v21 = vld [vmem:[#allocation149_spill] sm:$0xff] }
 0x5e9   : > { %4384 = vmatpush1.bf16.msra.mxu1 %v12263_v48  ;;  %4415 = vmatprep.mubr.bf16.mxu1 %v10537_v53  ;;  %v12280_v48 = vld [vmem:[#allocation142_spill] sm:$0xff] }
 0x5ea   : > { %4344 = vmatprep.subr.bf16.mxu0 %v12264_v41  ;;  %4385 = vmatprep.subr.bf16.mxu1 %v12265_v61  ;;  %v12281_v41 = vld [vmem:[#allocation147_spill] sm:$0xff]  ;;  %v12282_v61 = vld [vmem:[#allocation140_spill] sm:$0xff] }
 0x5ec   : > { %4345 = vmatpush1.bf16.msra.mxu0 %v12266_v30  ;;  %v12283_v30 = vld [vmem:[#allocation145_spill] sm:$0xff] }
 0x5ed   : > { %4386 = vmatpush1.bf16.msra.mxu1 %v12267_v45  ;;  %4346 = vmatprep.subr.bf16.mxu0 %v12268_v29  ;;  %v12284_v45 = vld [vmem:[#allocation138_spill] sm:$0xff]  ;;  %v12285_v29 = vld [vmem:[#allocation143_spill] sm:$0xff] }
 0x5ee   : > { %4387 = vmatprep.subr.bf16.mxu1 %v12269_v31  ;;  %v12286_v31 = vld [vmem:[#allocation136_spill] sm:$0xff] }
 0x5f0   : > { %4347 = vmatpush1.bf16.msra.mxu0 %v12270_v1  ;;  %v12287_v1 = vld [vmem:[#allocation141_spill] sm:$0xff] }
 0x5f1   : > { %4388 = vmatpush1.bf16.msra.mxu1 %v12271_v60  ;;  %4348 = vmatprep.subr.bf16.mxu0 %v12272_v33  ;;  %v12288_v60 = vld [vmem:[#allocation135_spill] sm:$0xff] }
 0x5f2   : > { %4389 = vmatprep.subr.bf16.mxu1 %v12273_v26  ;;  %v12289_v33 = vld [vmem:[#allocation139_spill] sm:$0xff]  ;;  %v12290_v26 = vld [vmem:[#allocation133_spill] sm:$0xff] }
 0x5f4   : > { %4349 = vmatpush1.bf16.msra.mxu0 %v12274_v47  ;;  %v12291_v47 = vld [vmem:[#allocation137_spill] sm:$0xff] }
 0x5f5   : > { %4390 = vmatpush1.bf16.msra.mxu1 %v12275_v6  ;;  %4350 = vmatprep.subr.bf16.mxu0 %v12276_v35  ;;  %v12292_v6 = vld [vmem:[#allocation198_spill] sm:$0xff] }
 0x5f6   : > { %4391 = vmatprep.subr.bf16.mxu1 %v12277_v17  ;;  %v12293_v35 = vld [vmem:[#allocation194_spill] sm:$0xff]  ;;  %v12294_v17 = vld [vmem:[#allocation205_spill] sm:$0xff] }
 0x5f8   : > { %4351 = vmatpush1.bf16.msra.mxu0 %v12278_v3  ;;  %v12295_v3 = vld [vmem:[#allocation192_spill] sm:$0xff] }
 0x5f9   : > { %4392 = vmatpush1.bf16.msra.mxu1 %v12279_v21  ;;  %4352 = vmatprep.subr.bf16.mxu0 %v12280_v48  ;;  %v12296_v21 = vld [vmem:[#allocation186_spill] sm:$0xff] }
 0x5fa   : > { %4393 = vmatprep.subr.bf16.mxu1 %v12281_v41  ;;  %v12297_v48 = vld [vmem:[#allocation202_spill] sm:$0xff]  ;;  %v12298_v41 = vld [vmem:[#allocation201_spill] sm:$0xff] }
 0x5fc   : > { %4353 = vmatpush1.bf16.msra.mxu0 %v12282_v61  ;;  %v12299_v61 = vld [vmem:[#allocation180_spill] sm:$0xff] }
 0x5fd   : > { %4394 = vmatpush1.bf16.msra.mxu1 %v12283_v30  ;;  %4354 = vmatprep.subr.bf16.mxu0 %v12284_v45  ;;  %v12301_v30 = vld [vmem:[#allocation197_spill] sm:$0xff]  ;;  %v12343_v45 = vld [vmem:[#allocation226_spill] sm:$0xff] }
 0x5fe   : > { %4395 = vmatprep.subr.bf16.mxu1 %v12285_v29  ;;  %v7491_v29 = vld [vmem:[%s11432_s5 + $0x38] sm:$0xff]  }
 0x600   : > { %4355 = vmatpush1.bf16.msra.mxu0 %v12286_v31  ;;  %v12344_v31 = vld [vmem:[#allocation229_spill] sm:$0xff] }
 0x601   : > { %4396 = vmatpush1.bf16.msra.mxu1 %v12287_v1  ;;  %4356 = vmatprep.subr.bf16.mxu0 %v12288_v60  ;;  %v7492_v1 = vld [vmem:[%s11432_s5 + $0xb8] sm:$0xff]   ;;  %v7493_v60 = vld [vmem:[%s11432_s5 + $0x70] sm:$0xff]  }
 0x602   : > { %4397 = vmatprep.subr.bf16.mxu1 %v12289_v33  ;;  %v7494_v33 = vld [vmem:[%s11432_s5 + $0xf0] sm:$0xff]  }
 0x604   : > { %4357 = vmatpush1.bf16.msra.mxu0 %v12290_v26 }
 0x605   : > { %4398 = vmatpush1.bf16.msra.mxu1 %v12291_v47  ;;  %4358 = vmatprep.subr.bf16.mxu0 %v12292_v6  ;;  %v7495_v6 = vld [vmem:[%s11432_s5 + $0x30] sm:$0xff]  }
 0x606   : > { %4399 = vmatprep.subr.bf16.mxu1 %v12293_v35 }
 0x608   : > { %4359 = vmatpush2.bf16.msra.mxu0 %v12294_v17 }
 0x609   : > { %4400 = vmatpush2.bf16.msra.mxu1 %v9805_v54  ;;  %4360 = vmatprep.subr.bf16.mxu0 %v12295_v3  ;;  %v12300_v54 = vld [vmem:[#allocation190_spill] sm:$0xff] }
 0x60a   : > { %4401 = vmatprep.subr.bf16.mxu1 %v10221_v22  ;;  %v12302_v22 = vld [vmem:[#allocation199_spill] sm:$0xff] }
 0x60b   : > { %v7496_v3 = vld [vmem:[%s11432_s5 + $0xb0] sm:$0xff]  }
 0x60c   : > { %4361 = vmatpush2.bf16.msra.mxu0 %v12050_v42  ;;  %v12303_v42 = vld [vmem:[#allocation195_spill] sm:$0xff] }
 0x60d   : > { %4402 = vmatpush2.bf16.msra.mxu1 %v12058_v50  ;;  %4362 = vmatprep.subr.bf16.mxu0 %v12296_v21  ;;  %v12304_v50 = vld [vmem:[#allocation184_spill] sm:$0xff] }
 0x60e   : > { %4403 = vmatprep.subr.bf16.mxu1 %v10245_v13  ;;  %v12305_v13 = vld [vmem:[#allocation182_spill] sm:$0xff] }
 0x610   : > { %4363 = vmatpush2.bf16.msra.mxu0 %v12057_v27  ;;  %v12306_v27 = vld [vmem:[#allocation196_spill] sm:$0xff] }
 0x611   : > { %4404 = vmatpush2.bf16.msra.mxu1 %v12297_v48  ;;  %4364 = vmatprep.subr.bf16.mxu0 %v12298_v41  ;;  %v7498_v41 = vld [vmem:[%s11432_s5 + $0xe8] sm:$0xff]  }
 0x612   : > { %4405 = vmatprep.subr.bf16.mxu1 %v12299_v61 }
 0x614   : > { %4365 = vmatpush2.bf16.msra.mxu0 %v12300_v54 }
 0x615   : > { %4406 = vmatpush2.bf16.msra.mxu1 %v12301_v30  ;;  %4366 = vmatprep.subr.bf16.mxu0 %v12302_v22  ;;  %v7499_v30 = vld [vmem:[%s11432_s5 + $0x28] sm:$0xff]  }
 0x616   : > { %4407 = vmatprep.subr.bf16.mxu1 %v12303_v42 }
 0x618   : > { %4367 = vmatpush2.bf16.msra.mxu0 %v12304_v50  ;;  %v7500_v50 = vld [vmem:[%s11432_s5 + $0xa8] sm:$0xff]  }
 0x619   : > { %4408 = vmatpush2.bf16.msra.mxu1 %v12081_v58  ;;  %4368 = vmatprep.subr.bf16.mxu0 %v12305_v13  ;;  %v12323_v58 = vld [vmem:[#allocation244_spill] sm:$0xff] }
 0x61a   : > { %4409 = vmatprep.subr.bf16.mxu1 %v10293_v43  ;;  %v12324_v43 = vld [vmem:[#allocation249_spill] sm:$0xff] }
 0x61b   : > { %v7501_v13 = vld [vmem:[%s11432_s5 + $0x60] sm:$0xff]  }
 0x61c   : > { %4369 = vmatpush2.bf16.msra.mxu0 %v12080_v59  ;;  %v12322_v59 = vld [vmem:[#allocation250_spill] sm:$0xff] }
 0x61d   : > { %4410 = vmatpush2.bf16.msra.mxu1 %v12085_v28  ;;  %4370 = vmatprep.subr.bf16.mxu0 %v12306_v27  ;;  %v12328_v28 = vld [vmem:[#allocation245_spill] sm:$0xff] }
 0x61e   : > { %4411 = vmatprep.subr.bf16.mxu1 %v10305_v52  ;;  %v12326_v52 = vld [vmem:[#allocation247_spill] sm:$0xff]  ;;  %v7502_v27 = vld [vmem:[%s11432_s5 + $0xe0] sm:$0xff]  }
 0x620   : > { %4371 = vmatpush2.bf16.msra.mxu0 %v12084_v7  ;;  %v12327_v7 = vld [vmem:[#allocation240_spill] sm:$0xff] }
 0x621   : > { %4412 = vmatpush2.bf16.msra.mxu1 %v12088_v44  ;;  %4372 = vmatprep.subr.bf16.mxu0 %v10303_v9  ;;  %v12325_v9 = vld [vmem:[#allocation242_spill] sm:$0xff]  ;;  %v12331_v44 = vld [vmem:[#allocation236_spill] sm:$0xff] }
 0x622   : > { %4413 = vmatprep.subr.bf16.mxu1 %v10313_v49  ;;  %v12329_v49 = vld [vmem:[#allocation238_spill] sm:$0xff] }
 0x624   : > { %4373 = vmatpush2.bf16.msra.mxu0 %v12087_v18  ;;  %v12330_v18 = vld [vmem:[#allocation243_spill] sm:$0xff] }
 0x625   : > { %4414 = vmatpush2.bf16.msra.mxu1 %v12089_v46  ;;  %4424 = vmatprep.subr.bf16.mxu0 %v10001_v62  ;;  %v12319_v62 = vld [vmem:[#allocation248_spill] sm:$0xff]  ;;  %v12332_v46 = vld [vmem:[#allocation241_spill] sm:$0xff] }
 0x626   : > { %4465 = vmatprep.subr.bf16.mxu1 %v10041_v57  ;;  %v12321_v57 = vld [vmem:[#allocation246_spill] sm:$0xff] }
 0x627   : > { %4375 = vmatmul.mubr.bf16.vlgmr.msra.gmra.mxu0 %v10541_v8 }
 0x628   : > { %4416 = vmatmul.mubr.bf16.vlgmr.msra.gmra.mxu1 %v10541_v8  ;;  %4425 = vmatpush1.bf16.msra.mxu0 %v9988_v51  ;;  %v12308_v51 = vld [vmem:[#allocation206_spill] sm:$0xff] }
 0x629   : > { %4456 = vmatprep.mubr.bf16.mxu0 %v10537_v53  ;;  %4466 = vmatpush1.bf16.msra.mxu1 %v10029_v23  ;;  %v12307_v23 = vld [vmem:[#allocation224_spill] sm:$0xff] }
 0x62a   : > { %4497 = vmatprep.mubr.bf16.mxu1 %v10537_v53  ;;  %4426 = vmatprep.subr.bf16.mxu0 %v9959_v63  ;;  %v12317_v63 = vld [vmem:[#allocation207_spill] sm:$0xff] }
 0x62b   : > { %4467 = vmatprep.subr.bf16.mxu1 %v10003_v36  ;;  %v12320_v36 = vld [vmem:[#allocation251_spill] sm:$0xff] }
 0x62c   : > { %4427 = vmatpush1.bf16.msra.mxu0 %v9947_v10  ;;  %v12309_v10 = vld [vmem:[#allocation223_spill] sm:$0xff] }
 0x62d   : > { %4468 = vmatpush1.bf16.msra.mxu1 %v9990_v0  ;;  %4428 = vmatprep.subr.bf16.mxu0 %v9925_v38  ;;  %v12310_v0 = vld [vmem:[#allocation220_spill] sm:$0xff]  ;;  %v12311_v38 = vld [vmem:[#allocation193_spill] sm:$0xff] }
 0x62e   : > { %4469 = vmatprep.subr.bf16.mxu1 %v9961_v24  ;;  %v12318_v24 = vld [vmem:[#allocation252_spill] sm:$0xff] }
 0x62f   : > { %v7490_v53 = vld [vmem:[%s11432_s5 + $0xf8] sm:$0xff]  }
 0x630   : > { %4429 = vmatpush1.bf16.msra.mxu0 %v9915_v37  ;;  %v12314_v37 = vld [vmem:[#allocation200_spill] sm:$0xff] }
 0x631   : > { %4470 = vmatpush1.bf16.msra.mxu1 %v9949_v40  ;;  %4430 = vmatprep.subr.bf16.mxu0 %v9901_v55  ;;  %v12312_v55 = vld [vmem:[#allocation174_spill] sm:$0xff]  ;;  %v12316_v40 = vld [vmem:[#allocation188_spill] sm:$0xff] }
 0x632   : > { %4471 = vmatprep.subr.bf16.mxu1 %v9927_v19  ;;  %v12315_v19 = vld [vmem:[#allocation204_spill] sm:$0xff] }
 0x634   : > { %4431 = vmatpush1.bf16.msra.mxu0 %v9891_v20  ;;  %v12313_v20 = vld [vmem:[#allocation203_spill] sm:$0xff] }
 0x635   : > { %4472 = vmatpush1.bf16.msra.mxu1 %v12307_v23  ;;  %4432 = vmatprep.subr.bf16.mxu0 %v12308_v51  ;;  %v7503_v23 = vld [vmem:[%s11432_s5 + $0x20] sm:$0xff]  }
 0x636   : > { %4473 = vmatprep.subr.bf16.mxu1 %v12309_v10  ;;  %v7504_v51 = vld [vmem:[%s11432_s5 + $0xa0] sm:$0xff]   ;;  %v7505_v10 = vld [vmem:[%s11432_s5 + $0x58] sm:$0xff]  }
 0x638   : > { %4433 = vmatpush1.bf16.msra.mxu0 %v12310_v0  ;;  %v7506_v0 = vld [vmem:[%s11432_s5 + $0xd8] sm:$0xff]  }
 0x639   : > { %4474 = vmatpush1.bf16.msra.mxu1 %v12099_v25  ;;  %4434 = vmatprep.subr.bf16.mxu0 %v12311_v38  ;;  %v12334_v25 = vld [vmem:[#allocation239_spill] sm:$0xff] }
 0x63a   : > { %4475 = vmatprep.subr.bf16.mxu1 %v10385_v34  ;;  %v12335_v34 = vld [vmem:[#allocation232_spill] sm:$0xff] }
 0x63b   : > { %v7507_v38 = vld [vmem:[%s11432_s5 + $0x18] sm:$0xff]  }
 0x63c   : > { %4435 = vmatpush1.bf16.msra.mxu0 %v12098_v2  ;;  %v12333_v2 = vld [vmem:[#allocation234_spill] sm:$0xff] }
 0x63d   : > { %4476 = vmatpush1.bf16.msra.mxu1 %v12103_v11  ;;  %4436 = vmatprep.subr.bf16.mxu0 %v12312_v55  ;;  %v12339_v11 = vld [vmem:[#allocation228_spill] sm:$0xff] }
 0x63e   : > { %4477 = vmatprep.subr.bf16.mxu1 %v10397_v15  ;;  %v12337_v15 = vld [vmem:[#allocation230_spill] sm:$0xff]  ;;  %v7508_v55 = vld [vmem:[%s11432_s5 + $0x98] sm:$0xff]  }
 0x640   : > { %4437 = vmatpush1.bf16.msra.mxu0 %v12102_v32  ;;  %v12338_v32 = vld [vmem:[#allocation235_spill] sm:$0xff] }
 0x641   : > { %4478 = vmatpush1.bf16.msra.mxu1 %v12106_v16  ;;  %4438 = vmatprep.subr.bf16.mxu0 %v10393_v4  ;;  %v12336_v4 = vld [vmem:[#allocation237_spill] sm:$0xff]  ;;  %v7489_v16 = vld [vmem:[%s11432_s5 + $0x78] sm:$0xff]  }
 0x642   : > { %4479 = vmatprep.subr.bf16.mxu1 %v10405_v56  ;;  %v12340_v56 = vld [vmem:[#allocation233_spill] sm:$0xff] }
 0x644   : > { %4439 = vmatpush1.bf16.msra.mxu0 %v12105_v5  ;;  %v12341_v5 = vld [vmem:[#allocation155_spill] sm:$0xff] }
 0x645   : > { %4480 = vmatpush1.bf16.msra.mxu1 %v12107_v12  ;;  %4440 = vmatprep.subr.bf16.mxu0 %v12313_v20  ;;  %v12342_v12 = vld [vmem:[#allocation231_spill] sm:$0xff] }
 0x646   : > { %4481 = vmatprep.subr.bf16.mxu1 %v12314_v37  ;;  %v7509_v20 = vld [vmem:[%s11432_s5 + $0x50] sm:$0xff]  }
 0x647   : > { %v7510_v37 = vld [vmem:[%s11432_s5 + $0xd0] sm:$0xff]  }
 0x648   : > { %4441 = vmatpush2.bf16.msra.mxu0 %v12315_v19  ;;  %v7511_v19 = vld [vmem:[%s11432_s5 + $0x10] sm:$0xff]  }
 0x649   : > { %4482 = vmatpush2.bf16.msra.mxu1 %v12316_v40  ;;  %4442 = vmatprep.subr.bf16.mxu0 %v12317_v63  ;;  %v7512_v40 = vld [vmem:[%s11432_s5 + $0x90] sm:$0xff]   ;;  %v7513_v63 = vld [vmem:[%s11432_s5 + $0x48] sm:$0xff]  }
 0x64a   : > { %4483 = vmatprep.subr.bf16.mxu1 %v12318_v24  ;;  %v7514_v24 = vld [vmem:[%s11432_s5 + $0xc8] sm:$0xff]  }
 0x64c   : > { %4443 = vmatpush2.bf16.msra.mxu0 %v12319_v62  ;;  %v7515_v62 = vld [vmem:[%s11432_s5 + $0x8] sm:$0xff]  }
 0x64d   : > { %4484 = vmatpush2.bf16.msra.mxu1 %v12320_v36  ;;  %4444 = vmatprep.subr.bf16.mxu0 %v12321_v57  ;;  %v7516_v36 = vld [vmem:[%s11432_s5 + $0x88] sm:$0xff]   ;;  %v7517_v57 = vld [vmem:[%s11432_s5 + $0x40] sm:$0xff]  }
 0x64e   : > { %4485 = vmatprep.subr.bf16.mxu1 %v12322_v59  ;;  %v7518_v59 = vld [vmem:[%s11432_s5 + $0xc0] sm:$0xff]  }
 0x650   : > { %4445 = vmatpush2.bf16.msra.mxu0 %v12323_v58  ;;  %v7519_v58 = vld [vmem:[%s11432_s5] sm:$0xff]  }
 0x651   : > { %4486 = vmatpush2.bf16.msra.mxu1 %v12324_v43  ;;  %4446 = vmatprep.subr.bf16.mxu0 %v12325_v9  ;;  %v7520_v43 = vld [vmem:[%s11432_s5 + $0x80] sm:$0xff]   ;;  %v7521_v9 = vld [vmem:[%s11432_s5 + $0x178] sm:$0xff]  }
 0x652   : > { %4487 = vmatprep.subr.bf16.mxu1 %v12326_v52  ;;  %v7522_v52 = vld [vmem:[%s11432_s5 + $0x1f8] sm:$0xff]  }
 0x654   : > { %4447 = vmatpush2.bf16.msra.mxu0 %v12327_v7  ;;  %v7523_v7 = vld [vmem:[%s11432_s5 + $0x138] sm:$0xff]  }
 0x655   : > { %4488 = vmatpush2.bf16.msra.mxu1 %v12328_v28  ;;  %4448 = vmatprep.subr.bf16.mxu0 %v12329_v49  ;;  %v7524_v49 = vld [vmem:[%s11432_s5 + $0x1b8] sm:$0xff]  }
 0x656   : > { %4489 = vmatprep.subr.bf16.mxu1 %v12330_v18  ;;  %v7525_v18 = vld [vmem:[%s11432_s5 + $0x170] sm:$0xff]  }
 0x658   : > { %4449 = vmatpush2.bf16.msra.mxu0 %v12331_v44 }
 0x659   : > { %4490 = vmatpush2.bf16.msra.mxu1 %v12332_v46  ;;  %4450 = vmatprep.subr.bf16.mxu0 %v12333_v2  ;;  %v7526_v46 = vld [vmem:[%s11432_s5 + $0x1f0] sm:$0xff]  }
 0x65a   : > { %4491 = vmatprep.subr.bf16.mxu1 %v12334_v25  ;;  %v7527_v2 = vld [vmem:[%s11432_s5 + $0x130] sm:$0xff]  }
 0x65b   : > { %v7528_v25 = vld [vmem:[%s11432_s5 + $0x1b0] sm:$0xff]  }
 0x65c   : > { %4451 = vmatpush2.bf16.msra.mxu0 %v12335_v34  ;;  %v7529_v34 = vld [vmem:[%s11432_s5 + $0x168] sm:$0xff]  }
 0x65d   : > { %4492 = vmatpush2.bf16.msra.mxu1 %v12336_v4  ;;  %4452 = vmatprep.subr.bf16.mxu0 %v12337_v15  ;;  %v7530_v4 = vld [vmem:[%s11432_s5 + $0x1e8] sm:$0xff]  }
 0x65e   : > { %4493 = vmatprep.subr.bf16.mxu1 %v12338_v32  ;;  %v7531_v15 = vld [vmem:[%s11432_s5 + $0x128] sm:$0xff]  }
 0x65f   : > { %v7532_v32 = vld [vmem:[%s11432_s5 + $0x1a8] sm:$0xff]  }
 0x660   : > { %4453 = vmatpush2.bf16.msra.mxu0 %v12339_v11  ;;  %v7533_v11 = vld [vmem:[%s11432_s5 + $0x160] sm:$0xff]  }
 0x661   : > { %4494 = vmatpush2.bf16.msra.mxu1 %v12340_v56  ;;  %4454 = vmatprep.subr.bf16.mxu0 %v12341_v5  ;;  %v7534_v56 = vld [vmem:[%s11432_s5 + $0x1e0] sm:$0xff]  }
 0x662   : > { %4495 = vmatprep.subr.bf16.mxu1 %v12342_v12  ;;  %v7535_v5 = vld [vmem:[%s11432_s5 + $0x120] sm:$0xff]   ;;  %v7537_v12 = vld [vmem:[%s11432_s5 + $0x158] sm:$0xff]  }
 0x664   : > { %4455 = vmatpush2.bf16.msra.mxu0 %v12343_v45  ;;  %v7539_v45 = vld [vmem:[%s11432_s5 + $0x118] sm:$0xff]  }
 0x665   : > { %4496 = vmatpush2.bf16.msra.mxu1 %v12344_v31  ;;  %7068 = vmatprep.subr.bf16.mxu0 %v7489_v16  ;;  %v7536_v16 = vld [vmem:[%s11432_s5 + $0x1a0] sm:$0xff]   ;;  %v7541_v31 = vld [vmem:[%s11432_s5 + $0x150] sm:$0xff]  }
 0x666   : > { %7090 = vmatprep.subr.bf16.mxu1 %v7490_v53  ;;  %v7538_v53 = vld [vmem:[%s11432_s5 + $0x1d8] sm:$0xff]  }
 0x667   : > { %4457 = vmatmul.mubr.bf16.vlgmr.msra.gmra.mxu0 %v10541_v8  ;;  %v10766_v26 = vpop.f32.mrf.mxu0  ;;  %v10768_v47 = vpop.f32.mrf.mxu1 }
 0x668   : > { %4498 = vmatmul.mubr.bf16.vlgmr.msra.gmra.mxu1 %v10541_v8  ;;  %7069 = vmatpush3.bf16.msra.mxu0 %v7491_v29  ;;  %v7497_v8 = vld [vmem:[%s11432_s5 + $0x68] sm:$0xff]   ;;  %v4506_v28 = vpack.c.bf16 %v10766_v26, %v10766_v26  ;;  %v4508_v44 = vpack.c.bf16 %v10768_v47, %v10768_v47  ;;  %v7540_v29 = vld [vmem:[%s11432_s5 + $0x198] sm:$0xff]  }
 0x669   : > { %7091 = vmatpush3.bf16.msra.mxu1 %v7492_v1  ;;  %v4214_v35 = vpop.f32.mrf.mxu0  ;;  %v4255_v17 = vpop.f32.mrf.mxu1  ;;  %7070 = vmatprep.subr.bf16.mxu0 %v7493_v60  ;;  %v7542_v1 = vld [vmem:[%s11432_s5 + $0x1d0] sm:$0xff]   ;;  %v7545_v26 = vld [vmem:[%s11432_s5 + $0x148] sm:$0xff]  }
 0x66a   : > { %v4507_v21 = vpack.c.bf16 %v4214_v35, %v4214_v35  ;;  %v4509_v48 = vpack.c.bf16 %v4255_v17, %v4255_v17  ;;  %7092 = vmatprep.subr.bf16.mxu1 %v7494_v33  ;;  %v7543_v60 = vld [vmem:[%s11432_s5 + $0x110] sm:$0xff]   ;;  %v7546_v47 = vld [vmem:[%s11432_s5 + $0x1c8] sm:$0xff]   ;;  %v7549_v17 = vld [vmem:[%s11432_s5 + $0x140] sm:$0xff]  }
 0x66b   : > { %v4216_v61 = vpop.f32.mrf.mxu0  ;;  %v4257_v54 = vpop.f32.mrf.mxu1  ;;  %v7544_v33 = vld [vmem:[%s11432_s5 + $0x190] sm:$0xff]   ;;  %v7548_v35 = vld [vmem:[%s11432_s5 + $0x188] sm:$0xff]  }
 0x66c   : > { %7071 = vmatpush3.bf16.msra.mxu0 %v7495_v6  ;;  %5328 = vmatprep.mubr.bf16.mxu0 %v4507_v21  ;;  %v7547_v6 = vld [vmem:[%s11432_s5 + $0x108] sm:$0xff]   ;;  %v7551_v21 = vld [vmem:[%s11432_s5 + $0x100] sm:$0xff]  }
 0x66d   : > { %7093 = vmatpush3.bf16.msra.mxu1 %v7496_v3  ;;  %5368 = vmatprep.mubr.bf16.mxu1 %v4509_v48  ;;  %v4217_v22 = vpop.f32.mrf.mxu0  ;;  %v4258_v42 = vpop.f32.mrf.mxu1  ;;  %v7550_v3 = vld [vmem:[%s11432_s5 + $0x1c0] sm:$0xff]  }
 0x66e   : > { %7072 = vmatprep.subr.bf16.mxu0 %v7497_v8  ;;  %7094 = vmatprep.subr.bf16.mxu1 %v7498_v41  ;;  %v7552_v48 = vld [vmem:[%s11432_s5 + $0x180] sm:$0xff]   ;;  %v7553_v8 = vld [vmem:[%s11432_s5 + $0x278] sm:$0xff]  }
 0x66f   : > { %v7555_v41 = vld [vmem:[%s11432_s5 + $0x2f8] sm:$0xff]  }
 0x670   : > { %7073 = vmatpush3.bf16.msra.mxu0 %v7499_v30 }
 0x671   : > { %7095 = vmatpush3.bf16.msra.mxu1 %v7500_v50  ;;  %7074 = vmatprep.subr.bf16.mxu0 %v7501_v13  ;;  %v7554_v13 = vld [vmem:[%s11432_s5 + $0x238] sm:$0xff]  }
 0x672   : > { %7096 = vmatprep.subr.bf16.mxu1 %v7502_v27  ;;  %v7556_v27 = vld [vmem:[%s11432_s5 + $0x2b8] sm:$0xff]  }
 0x674   : > { %7075 = vmatpush3.bf16.msra.mxu0 %v7503_v23 }
 0x675   : > { %7097 = vmatpush3.bf16.msra.mxu1 %v7504_v51  ;;  %7076 = vmatprep.subr.bf16.mxu0 %v7505_v10 }
 0x676   : > { %7098 = vmatprep.subr.bf16.mxu1 %v7506_v0 }
 0x678   : > { %7077 = vmatpush3.bf16.msra.mxu0 %v7507_v38  ;;  %v7557_v38 = vld [vmem:[%s11432_s5 + $0x270] sm:$0xff]  }
 0x679   : > { %7099 = vmatpush3.bf16.msra.mxu1 %v7508_v55  ;;  %7078 = vmatprep.subr.bf16.mxu0 %v7509_v20  ;;  %v7559_v55 = vld [vmem:[%s11432_s5 + $0x2f0] sm:$0xff]  }
 0x67a   : > { %7100 = vmatprep.subr.bf16.mxu1 %v7510_v37 }
 0x67c   : > { %7079 = vmatpush3.bf16.msra.mxu0 %v7511_v19  ;;  %v7558_v19 = vld [vmem:[%s11432_s5 + $0x230] sm:$0xff]  }
 0x67d   : > { %7101 = vmatpush3.bf16.msra.mxu1 %v7512_v40  ;;  %7080 = vmatprep.subr.bf16.mxu0 %v7513_v63  ;;  %v7560_v40 = vld [vmem:[%s11432_s5 + $0x2b0] sm:$0xff]   ;;  %v7561_v63 = vld [vmem:[%s11432_s5 + $0x268] sm:$0xff]  }
 0x67e   : > { %7102 = vmatprep.subr.bf16.mxu1 %v7514_v24  ;;  %v7563_v24 = vld [vmem:[%s11432_s5 + $0x2e8] sm:$0xff]  }
 0x680   : > { %7081 = vmatpush3.bf16.msra.mxu0 %v7515_v62  ;;  %v7562_v62 = vld [vmem:[%s11432_s5 + $0x228] sm:$0xff]  }
 0x681   : > { %7103 = vmatpush3.bf16.msra.mxu1 %v7516_v36  ;;  %7082 = vmatprep.subr.bf16.mxu0 %v7517_v57  ;;  %v7564_v36 = vld [vmem:[%s11432_s5 + $0x2a8] sm:$0xff]   ;;  %v7565_v57 = vld [vmem:[%s11432_s5 + $0x260] sm:$0xff]  }
 0x682   : > { %7104 = vmatprep.subr.bf16.mxu1 %v7518_v59  ;;  %v7567_v59 = vld [vmem:[%s11432_s5 + $0x2e0] sm:$0xff]  }
 0x684   : > { %7083 = vmatpush3.bf16.msra.mxu0 %v7519_v58  ;;  %v7566_v58 = vld [vmem:[%s11432_s5 + $0x220] sm:$0xff]  }
 0x685   : > { %7105 = vmatpush3.bf16.msra.mxu1 %v7520_v43  ;;  %7112 = vmatprep.subr.bf16.mxu0 %v7521_v9  ;;  %v7568_v43 = vld [vmem:[%s11432_s5 + $0x2a0] sm:$0xff]   ;;  %v7569_v9 = vld [vmem:[%s11432_s5 + $0x258] sm:$0xff]  }
 0x686   : > { %7134 = vmatprep.subr.bf16.mxu1 %v7522_v52  ;;  %v7571_v52 = vld [vmem:[%s11432_s5 + $0x2d8] sm:$0xff]  }
 0x687   : > { %5329 = vmatmul.mubr.bf16.vlgmr.msra.gmra.mxu0 %v4506_v28  ;;  %v7572_v28 = vld [vmem:[%s11432_s5 + $0x298] sm:$0xff]  }
 0x688   : > { %5369 = vmatmul.mubr.bf16.vlgmr.msra.gmra.mxu1 %v4508_v44  ;;  %7113 = vmatpush3.bf16.msra.mxu0 %v7523_v7  ;;  %v7570_v7 = vld [vmem:[%s11432_s5 + $0x218] sm:$0xff]   ;;  %v7574_v44 = vld [vmem:[%s11432_s5 + $0x210] sm:$0xff]  }
 0x689   : > { %7135 = vmatpush3.bf16.msra.mxu1 %v7524_v49  ;;  %7114 = vmatprep.subr.bf16.mxu0 %v7525_v18  ;;  %v7573_v49 = vld [vmem:[%s11432_s5 + $0x250] sm:$0xff]  }
 0x68a   : > { %7136 = vmatprep.subr.bf16.mxu1 %v7526_v46  ;;  %v7575_v18 = vld [vmem:[%s11432_s5 + $0x2d0] sm:$0xff]  }
 0x68b   : > { %v7576_v46 = vld [vmem:[%s11432_s5 + $0x290] sm:$0xff]  }
 0x68c   : > { %7115 = vmatpush3.bf16.msra.mxu0 %v7527_v2  ;;  %v7577_v2 = vld [vmem:[%s11432_s5 + $0x248] sm:$0xff]  }
 0x68d   : > { %7137 = vmatpush3.bf16.msra.mxu1 %v7528_v25  ;;  %7116 = vmatprep.subr.bf16.mxu0 %v7529_v34  ;;  %v7579_v25 = vld [vmem:[%s11432_s5 + $0x2c8] sm:$0xff]  }
 0x68e   : > { %7138 = vmatprep.subr.bf16.mxu1 %v7530_v4  ;;  %v7578_v34 = vld [vmem:[%s11432_s5 + $0x208] sm:$0xff]  }
 0x68f   : > { %v7580_v4 = vld [vmem:[%s11432_s5 + $0x288] sm:$0xff]  }
 0x690   : > { %7117 = vmatpush3.bf16.msra.mxu0 %v7531_v15  ;;  %v7581_v15 = vld [vmem:[%s11432_s5 + $0x240] sm:$0xff]  }
 0x691   : > { %7139 = vmatpush3.bf16.msra.mxu1 %v7532_v32  ;;  %7118 = vmatprep.subr.bf16.mxu0 %v7533_v11  ;;  %v7583_v32 = vld [vmem:[%s11432_s5 + $0x2c0] sm:$0xff]  }
 0x692   : > { %7140 = vmatprep.subr.bf16.mxu1 %v7534_v56  ;;  %v7582_v11 = vld [vmem:[%s11432_s5 + $0x200] sm:$0xff]  }
 0x693   : > { %v7584_v56 = vld [vmem:[%s11432_s5 + $0x280] sm:$0xff]  }
 0x694   : > { %7119 = vmatpush3.bf16.msra.mxu0 %v7535_v5  ;;  %v7585_v5 = vld [vmem:[%s11432_s5 + $0x378] sm:$0xff]  }
 0x695   : > { %7141 = vmatpush3.bf16.msra.mxu1 %v7536_v16  ;;  %7120 = vmatprep.subr.bf16.mxu0 %v7537_v12  ;;  %v7601_v16 = vld [vmem:[%s11432_s5 + $0x3f8] sm:$0xff]  }
 0x696   : > { %7142 = vmatprep.subr.bf16.mxu1 %v7538_v53 }
 0x698   : > { %7121 = vmatpush3.bf16.msra.mxu0 %v7539_v45 }
 0x699   : > { %7143 = vmatpush3.bf16.msra.mxu1 %v7540_v29  ;;  %7122 = vmatprep.subr.bf16.mxu0 %v7541_v31 }
 0x69a   : > { %7144 = vmatprep.subr.bf16.mxu1 %v7542_v1  ;;  %v7586_v1 = vld [vmem:[%s11432_s5 + $0x338] sm:$0xff]  }
 0x69c   : > { %7123 = vmatpush3.bf16.msra.mxu0 %v7543_v60 }
 0x69d   : > { %7145 = vmatpush3.bf16.msra.mxu1 %v7544_v33  ;;  %7124 = vmatprep.subr.bf16.mxu0 %v7545_v26 }
 0x69e   : > { %7146 = vmatprep.subr.bf16.mxu1 %v7546_v47  ;;  %v7587_v47 = vld [vmem:[%s11432_s5 + $0x370] sm:$0xff]  }
 0x6a0   : > { %7125 = vmatpush3.bf16.msra.mxu0 %v7547_v6  ;;  %v7602_v6 = vld [vmem:[%s11432_s5 + $0x3b8] sm:$0xff]  }
 0x6a1   : > { %7147 = vmatpush3.bf16.msra.mxu1 %v7548_v35  ;;  %7126 = vmatprep.subr.bf16.mxu0 %v7549_v17 }
 0x6a2   : > { %7148 = vmatprep.subr.bf16.mxu1 %v7550_v3  ;;  %v7603_v3 = vld [vmem:[%s11432_s5 + $0x3f0] sm:$0xff]  }
 0x6a4   : > { %7127 = vmatpush3.bf16.msra.mxu0 %v7551_v21 }
 0x6a5   : > { %7149 = vmatpush3.bf16.msra.mxu1 %v7552_v48  ;;  %7156 = vmatprep.subr.bf16.mxu0 %v7553_v8  ;;  %v7588_v8 = vld [vmem:[%s11432_s5 + $0x330] sm:$0xff]  }
 0x6a6   : > { %7178 = vmatprep.subr.bf16.mxu1 %v7555_v41  ;;  %v7589_v41 = vld [vmem:[%s11432_s5 + $0x368] sm:$0xff]  }
 0x6a7   : > { %v4294_v61 = vpop.f32.mrf.mxu0  ;;  %v4335_v54 = vpop.f32.mrf.mxu1 }
 0x6a8   : > { %v4510_v23 = vpack.c.bf16 %v4294_v61, %v4294_v61  ;;  %v4512_v51 = vpack.c.bf16 %v4335_v54, %v4335_v54  ;;  %v7604_v61 = vld [vmem:[%s11432_s5 + $0x3b0] sm:$0xff]   ;;  %v7605_v54 = vld [vmem:[%s11432_s5 + $0x3e8] sm:$0xff]  }
 0x6a9   : > { %v4296_v30 = vpop.f32.mrf.mxu0  ;;  %v4337_v22 = vpop.f32.mrf.mxu1 }
 0x6aa   : > { %v4511_v42 = vpack.c.bf16 %v4296_v30, %v4296_v30  ;;  %v4513_v50 = vpack.c.bf16 %v4337_v22, %v4337_v22  ;;  %v7590_v30 = vld [vmem:[%s11432_s5 + $0x328] sm:$0xff]   ;;  %v7591_v22 = vld [vmem:[%s11432_s5 + $0x360] sm:$0xff]  }
 0x6ab   : > { %v4298_v10 = vpop.f32.mrf.mxu0  ;;  %v4339_v0 = vpop.f32.mrf.mxu1 }
 0x6ac   : > { %5408 = vmatprep.mubr.bf16.mxu0 %v4511_v42  ;;  %5448 = vmatprep.mubr.bf16.mxu1 %v4513_v50  ;;  %v7606_v42 = vld [vmem:[%s11432_s5 + $0x3a8] sm:$0xff]   ;;  %v7607_v50 = vld [vmem:[%s11432_s5 + $0x3e0] sm:$0xff]   ;;  %v7594_v10 = vld [vmem:[%s11432_s5 + $0x318] sm:$0xff]  }
 0x6ad   : > { %v4299_v20 = vpop.f32.mrf.mxu0  ;;  %v4340_v37 = vpop.f32.mrf.mxu1  ;;  %5409 = vmatmul.mubr.bf16.vlgmr.msra.gmra.mxu0 %v4510_v23  ;;  %5449 = vmatmul.mubr.bf16.vlgmr.msra.gmra.mxu1 %v4512_v51  ;;  %v7608_v23 = vld [vmem:[%s11432_s5 + $0x3a0] sm:$0xff]   ;;  %v7609_v51 = vld [vmem:[%s11432_s5 + $0x3d8] sm:$0xff]   ;;  %v7595_v0 = vld [vmem:[%s11432_s5 + $0x350] sm:$0xff]  }
 0x6ae   : > { %7157 = vmatpush3.bf16.msra.mxu0 %v7554_v13  ;;  %7179 = vmatpush3.bf16.msra.mxu1 %v7556_v27  ;;  %v7592_v13 = vld [vmem:[%s11432_s5 + $0x320] sm:$0xff]   ;;  %v7593_v27 = vld [vmem:[%s11432_s5 + $0x358] sm:$0xff]   ;;  %v7596_v20 = vld [vmem:[%s11432_s5 + $0x310] sm:$0xff]  }
 0x6af   : > { %7158 = vmatprep.subr.bf16.mxu0 %v7557_v38  ;;  %7180 = vmatprep.subr.bf16.mxu1 %v7559_v55  ;;  %v7610_v38 = vld [vmem:[%s11432_s5 + $0x398] sm:$0xff]   ;;  %v7611_v55 = vld [vmem:[%s11432_s5 + $0x3d0] sm:$0xff]   ;;  %v7597_v37 = vld [vmem:[%s11432_s5 + $0x348] sm:$0xff]  }
 0x6b2   : > { %7159 = vmatpush3.bf16.msra.mxu0 %v7558_v19  ;;  %7181 = vmatpush3.bf16.msra.mxu1 %v7560_v40  ;;  %v7612_v19 = vld [vmem:[%s11432_s5 + $0x390] sm:$0xff]   ;;  %v7672_v40 = vpop.eup %7671 }
 0x6b3   : > { %7160 = vmatprep.subr.bf16.mxu0 %v7561_v63  ;;  %7182 = vmatprep.subr.bf16.mxu1 %v7563_v24  ;;  %v7613_v63 = vld [vmem:[%s11432_s5 + $0x3c8] sm:$0xff]  }
 0x6b4   : > { %v7598_v24 = vld [vmem:[%s11432_s5 + $0x308] sm:$0xff]  }
 0x6b6   : > { %7161 = vmatpush3.bf16.msra.mxu0 %v7562_v62  ;;  %7183 = vmatpush3.bf16.msra.mxu1 %v7564_v36  ;;  %v7599_v62 = vld [vmem:[%s11432_s5 + $0x340] sm:$0xff]   ;;  %v5624_v36 = vmul.f32 %v7672_v40, %v10531_v14 }
 0x6b7   : > { %7162 = vmatprep.subr.bf16.mxu0 %v7565_v57  ;;  %7184 = vmatprep.subr.bf16.mxu1 %v7567_v59  ;;  %v7614_v57 = vld [vmem:[%s11432_s5 + $0x388] sm:$0xff]   ;;  %v7615_v59 = vld [vmem:[%s11432_s5 + $0x3c0] sm:$0xff]  }
 0x6ba   : > { %7163 = vmatpush3.bf16.msra.mxu0 %v7566_v58  ;;  %7185 = vmatpush3.bf16.msra.mxu1 %v7568_v43  ;;  %v7600_v58 = vld [vmem:[%s11432_s5 + $0x300] sm:$0xff]   ;;  %v5626_v43 = vsel %vm5625_vm3, %v10531_v14, %v5624_v36 }
 0x6bb   : > { %7164 = vmatprep.subr.bf16.mxu0 %v7569_v9  ;;  %7186 = vmatprep.subr.bf16.mxu1 %v7571_v52  ;;  %v7616_v9 = vld [vmem:[%s11432_s5 + $0x380] sm:$0xff]   ;;  %v5628_v52 = vand.u32 2147483648, %v10531_v14 }
 0x6be   : > { %7165 = vmatpush3.bf16.msra.mxu0 %v7570_v7  ;;  %7187 = vmatpush3.bf16.msra.mxu1 %v7572_v28  ;;  %v5629_v7 = vsel %vm5627_vm4, %v5628_v52, %v5626_v43  ;;  %v12345_v28 = vmov 0.0  }
 0x6bf   : > { %7166 = vmatprep.subr.bf16.mxu0 %v7573_v49  ;;  %7188 = vmatprep.subr.bf16.mxu1 %v7575_v18  ;;  %v7674_v49 = vpop.eup %7673 }
 0x6c0   : > { %v5617_v18 = vmul.f32 %v7674_v49, %v10529_v39 }
 0x6c2   : > { %7167 = vmatpush3.bf16.msra.mxu0 %v7574_v44  ;;  %7189 = vmatpush3.bf16.msra.mxu1 %v7576_v46  ;;  %v5619_v14 = vsel %vm5618_vm5, %v10529_v39, %v5617_v18 }
 0x6c3   : > { %7168 = vmatprep.subr.bf16.mxu0 %v7577_v2  ;;  %7190 = vmatprep.subr.bf16.mxu1 %v7579_v25 }
 0x6c6   : > { %7169 = vmatpush3.bf16.msra.mxu0 %v7578_v34  ;;  %7191 = vmatpush3.bf16.msra.mxu1 %v7580_v4 }
 0x6c7   : > { %7170 = vmatprep.subr.bf16.mxu0 %v7581_v15  ;;  %7192 = vmatprep.subr.bf16.mxu1 %v7583_v32 }
 0x6ca   : > { %7171 = vmatpush3.bf16.msra.mxu0 %v7582_v11  ;;  %7193 = vmatpush3.bf16.msra.mxu1 %v7584_v56  ;;  %v5621_v11 = vand.u32 2147483648, %v10529_v39  ;;  %v7619_v39 = vld [vmem:[%s11434_s7 + $0x30] sm:$0xff]  }
 0x6cb   : > { %7200 = vmatprep.subr.bf16.mxu0 %v7585_v5  ;;  %7222 = vmatprep.subr.bf16.mxu1 %v7601_v16 }
 0x6e7   : > { %v4376_v12 = vpop.f32.mrf.mxu0 }
 0x6e8   : > { %v4417_v53 = vpop.f32.mrf.mxu1  ;;  %v4514_v60 = vpack.c.bf16 %v4376_v12, %v4376_v12  ;;  %v5622_v12 = vsel %vm5620_vm6, %v5621_v11, %v5619_v14 }
 0x6e9   : > { %v4378_v45 = vpop.f32.mrf.mxu0  ;;  %v4516_v35 = vpack.c.bf16 %v4417_v53, %v4417_v53 }
 0x6ea   : > { %v4515_v29 = vpack.c.bf16 %v4378_v45, %v4378_v45  ;;  %v4419_v31 = vpop.f32.mrf.mxu1  ;;  %v7617_v45 = vld [vmem:[%s11434_s7 + $0x38] sm:$0xff]  }
 0x6eb   : > { %v4517_v33 = vpack.c.bf16 %v4419_v31, %v4419_v31  ;;  %v4380_v26 = vpop.f32.mrf.mxu0  ;;  %v7620_v31 = vld [vmem:[%s11434_s7 + $0x70] sm:$0xff]  }
 0x6ec   : > { %v4421_v17 = vpop.f32.mrf.mxu1  ;;  %5488 = vmatprep.mubr.bf16.mxu0 %v4515_v29  ;;  %v7618_v29 = vld [vmem:[%s11434_s7 + $0x78] sm:$0xff]   ;;  %v7624_v26 = vld [vmem:[%s11434_s7 + $0x60] sm:$0xff]  }
 0x6ed   : > { %5528 = vmatprep.mubr.bf16.mxu1 %v4517_v33  ;;  %v4381_v21 = vpop.f32.mrf.mxu0  ;;  %5489 = vmatmul.mubr.bf16.vlgmr.msra.gmra.mxu0 %v4514_v60  ;;  %v7622_v60 = vld [vmem:[%s11434_s7 + $0x68] sm:$0xff]   ;;  %v7623_v33 = vld [vmem:[%s11434_s7 + $0x20] sm:$0xff]  }
 0x6ee   : > { %v4422_v48 = vpop.f32.mrf.mxu1  ;;  %5529 = vmatmul.mubr.bf16.vlgmr.msra.gmra.mxu1 %v4516_v35  ;;  %7201 = vmatpush3.bf16.msra.mxu0 %v7586_v1  ;;  %v7621_v1 = vld [vmem:[%s11434_s7 + $0x28] sm:$0xff]   ;;  %v7627_v35 = vld [vmem:[%s11434_s7 + $0x10] sm:$0xff]   ;;  %v6805_v21 = vld [vmem:[%s11433_s6] ss:$0 sm:$0xff] }
 0x6ef   : > { %7202 = vmatprep.subr.bf16.mxu0 %v7587_v47  ;;  %7223 = vmatpush3.bf16.msra.mxu1 %v7602_v6  ;;  %v7625_v47 = vld [vmem:[%s11434_s7 + $0x18] sm:$0xff]  }
 0x6f0   : > { %7224 = vmatprep.subr.bf16.mxu1 %v7603_v3  ;;  %v7626_v6 = vld [vmem:[%s11434_s7 + $0x58] sm:$0xff]  }
 0x6f2   : > { %7203 = vmatpush3.bf16.msra.mxu0 %v7588_v8 }
 0x6f3   : > { %7204 = vmatprep.subr.bf16.mxu0 %v7589_v41  ;;  %7225 = vmatpush3.bf16.msra.mxu1 %v7604_v61 }
 0x6f4   : > { %7226 = vmatprep.subr.bf16.mxu1 %v7605_v54 }
 0x6f6   : > { %7205 = vmatpush3.bf16.msra.mxu0 %v7590_v30 }
 0x6f7   : > { %7206 = vmatprep.subr.bf16.mxu0 %v7591_v22  ;;  %7227 = vmatpush3.bf16.msra.mxu1 %v7606_v42 }
 0x6f8   : > { %7228 = vmatprep.subr.bf16.mxu1 %v7607_v50 }
 0x6fa   : > { %7207 = vmatpush3.bf16.msra.mxu0 %v7592_v13 }
 0x6fb   : > { %7208 = vmatprep.subr.bf16.mxu0 %v7593_v27  ;;  %7229 = vmatpush3.bf16.msra.mxu1 %v7608_v23 }
 0x6fc   : > { %7230 = vmatprep.subr.bf16.mxu1 %v7609_v51  ;;  %v7628_v51 = vld [vmem:[%s11434_s7 + $0x50] sm:$0xff]  }
 0x6fe   : > { %7209 = vmatpush3.bf16.msra.mxu0 %v7594_v10 }
 0x6ff   : > { %7210 = vmatprep.subr.bf16.mxu0 %v7595_v0  ;;  %7231 = vmatpush3.bf16.msra.mxu1 %v7610_v38 }
 0x700   : > { %7232 = vmatprep.subr.bf16.mxu1 %v7611_v55 }
 0x702   : > { %7211 = vmatpush3.bf16.msra.mxu0 %v7596_v20  ;;  %v7629_v20 = vld [vmem:[%s11434_s7 + $0x8] sm:$0xff]  }
 0x703   : > { %7212 = vmatprep.subr.bf16.mxu0 %v7597_v37  ;;  %7233 = vmatpush3.bf16.msra.mxu1 %v7612_v19 }
 0x704   : > { %7234 = vmatprep.subr.bf16.mxu1 %v7613_v63  ;;  %v7630_v63 = vld [vmem:[%s11434_s7 + $0x48] sm:$0xff]  }
 0x706   : > { %7213 = vmatpush3.bf16.msra.mxu0 %v7598_v24 }
 0x707   : > { %7214 = vmatprep.subr.bf16.mxu0 %v7599_v62  ;;  %7235 = vmatpush3.bf16.msra.mxu1 %v7614_v57  ;;  %v7631_v57 = vld [vmem:[%s11434_s7] sm:$0xff]  }
 0x708   : > { %7236 = vmatprep.subr.bf16.mxu1 %v7615_v59  ;;  %v7632_v59 = vld [vmem:[%s11434_s7 + $0x40] sm:$0xff]  }
 0x70a   : > { %7215 = vmatpush3.bf16.msra.mxu0 %v7600_v58 }
 0x70b   : > { %5660 = vmatprep.subr.mxu0 %v5629_v7  ;;  %7237 = vmatpush3.bf16.msra.mxu1 %v7616_v9 }
 0x70c   : > { %7298 = vmatprep.subr.bf16.mxu1 %v12345_v28 }
 0x727   : > { %v4458_v44 = vpop.f32.mrf.mxu0 }
 0x728   : > { %v4499_v46 = vpop.f32.mrf.mxu1  ;;  %v4518_v4 = vpack.c.bf16 %v4458_v44, %v4458_v44 }
 0x729   : > { %v4460_v2 = vpop.f32.mrf.mxu0  ;;  %v4520_v56 = vpack.c.bf16 %v4499_v46, %v4499_v46 }
 0x72a   : > { %v4519_v25 = vpack.c.bf16 %v4460_v2, %v4460_v2  ;;  %v4501_v34 = vpop.f32.mrf.mxu1 }
 0x72b   : > { %v4521_v15 = vpack.c.bf16 %v4501_v34, %v4501_v34  ;;  %v4462_v32 = vpop.f32.mrf.mxu0 }
 0x72c   : > { %v4503_v5 = vpop.f32.mrf.mxu1  ;;  %5568 = vmatprep.mubr.bf16.mxu0 %v4519_v25  ;;  %v12346_v25 = vlaneseq }
 0x72d   : > { %5608 = vmatprep.mubr.bf16.mxu1 %v4521_v15  ;;  %v4463_v16 = vpop.f32.mrf.mxu0  ;;  %5569 = vmatmul.mubr.bf16.vlgmr.msra.gmra.mxu0 %v4518_v4 }
 0x72e   : > { %v4504_v53 = vpop.f32.mrf.mxu1  ;;  %5609 = vmatmul.mubr.bf16.vlgmr.msra.gmra.mxu1 %v4520_v56  ;;  %5661 = vmatpush1.xpose.msra.mxu0 %v5622_v12  ;;  %v5703_v34 = vand.u32 127, %v12346_v25  ;;  %v12347_v16 = vld [vmem:[#allocation5_spill] sm:$0xff] }
 0x72f   : > { %5694 = vmatprep.mubr.f32.mxu0 %v5629_v7  ;;  %7318 = vmatprep.subr.bf16.mxu0 %v12345_v28 }
 0x730   : > { %7299 = vmatpush3.bf16.msra.mxu1 %v7617_v45  ;;  %7314 = vmatprep.mubr.msk.bf16.mxu1 %vm7808_vm7, %v12345_v28  ;;  %vm5704_vm8 = vcmp.eq.s32.totalorder %v12347_v16, %v5703_v34 }
 0x731   : > { %7300 = vmatprep.subr.bf16.mxu1 %v12345_v28 }
 0x734   : > { %7301 = vmatpush3.bf16.msra.mxu1 %v7619_v39 }
 0x735   : > { %5695 = vmatmul.mubr.f32.vlgmr.msra.gmra.mxu0 %v5622_v12  ;;  %7302 = vmatprep.subr.bf16.mxu1 %v12345_v28 }
 0x736   : > { %7319 = vmatpush3.bf16.msra.mxu0 %v7618_v29  ;;  %7334 = vmatprep.mubr.msk.bf16.mxu0 %vm7808_vm7, %v12345_v28 }
 0x737   : > { %7320 = vmatprep.subr.bf16.mxu0 %v12345_v28 }
 0x738   : > { %7303 = vmatpush3.bf16.msra.mxu1 %v7621_v1 }
 0x739   : > { %7304 = vmatprep.subr.bf16.mxu1 %v12345_v28 }
 0x73a   : > { %7321 = vmatpush3.bf16.msra.mxu0 %v7620_v31  ;;  %v6934_v31 = vsel %vm5704_vm8, 1.0, %v12345_v28 }
 0x73b   : > { %7322 = vmatprep.subr.bf16.mxu0 %v12345_v28 }
 0x73c   : > { %7305 = vmatpush3.bf16.msra.mxu1 %v7623_v33 }
 0x73d   : > { %7306 = vmatprep.subr.bf16.mxu1 %v12345_v28 }
 0x73e   : > { %7323 = vmatpush3.bf16.msra.mxu0 %v7622_v60 }
 0x73f   : > { %7324 = vmatprep.subr.bf16.mxu0 %v12345_v28 }
 0x740   : > { %7307 = vmatpush3.bf16.msra.mxu1 %v7625_v47 }
 0x741   : > { %7308 = vmatprep.subr.bf16.mxu1 %v12345_v28 }
 0x742   : > { %7325 = vmatpush3.bf16.msra.mxu0 %v7624_v26  ;;  %v7633_v26 = vld [vmem:[%s11434_s7 + $0xb8] sm:$0xff]  }
 0x743   : > { %7326 = vmatprep.subr.bf16.mxu0 %v12345_v28 }
 0x744   : > { %7309 = vmatpush3.bf16.msra.mxu1 %v7627_v35 }
 0x745   : > { %7310 = vmatprep.subr.bf16.mxu1 %v12345_v28 }
 0x746   : > { %7327 = vmatpush3.bf16.msra.mxu0 %v7626_v6 }
 0x747   : > { %v7084_v17 = vpop.f32.mrf.mxu0  ;;  %7328 = vmatprep.subr.bf16.mxu0 %v12345_v28 }
 0x748   : > { %v7106_v3 = vpop.f32.mrf.mxu1  ;;  %7311 = vmatpush3.bf16.msra.mxu1 %v7629_v20  ;;  %v7650_v20 = vld [vmem:[%s11434_s7 + $0x178] sm:$0xff]  }
 0x749   : > { %v7085_v48 = vpop.f32.mrf.mxu0  ;;  %7312 = vmatprep.subr.bf16.mxu1 %v12345_v28 }
 0x74a   : > { %v7086_v8 = vadd.f32 %v7085_v48, %v7084_v17  ;;  %v7107_v41 = vpop.f32.mrf.mxu1  ;;  %7329 = vmatpush3.bf16.msra.mxu0 %v7628_v51  ;;  %v7634_v17 = vld [vmem:[%s11434_s7 + $0xf8] sm:$0xff]   ;;  %v7635_v48 = vld [vmem:[%s11434_s7 + $0xb0] sm:$0xff]   ;;  %v7646_v51 = vld [vmem:[%s11434_s7 + $0xc8] sm:$0xff]  }
 0x74b   : > { %v7108_v61 = vadd.f32 %v7107_v41, %v7106_v3  ;;  %v7087_v54 = vpop.f32.mrf.mxu0  ;;  %7330 = vmatprep.subr.bf16.mxu0 %v12345_v28  ;;  %v7636_v41 = vld [vmem:[%s11434_s7 + $0xf0] sm:$0xff]  }
 0x74c   : > { %v5331_v30 = vadd.f32 %v7086_v8, %v6805_v21  ;;  %v7109_v22 = vpop.f32.mrf.mxu1  ;;  %7313 = vmatpush3.bf16.msra.mxu1 %v7631_v57  ;;  %v7638_v54 = vld [vmem:[%s11434_s7 + $0xe8] sm:$0xff]   ;;  %v7657_v57 = vld [vmem:[%s11434_s7 + $0x118] sm:$0xff]  }
 0x74d   : > { %v7088_v42 = vpop.f32.mrf.mxu0  ;;  %7338 = vmatprep.subr.bf16.mxu1 %v12345_v28  ;;  %v7640_v22 = vld [vmem:[%s11434_s7 + $0xe0] sm:$0xff]  }
 0x74e   : > { %v5371_v50 = vadd.f32 %v7108_v61, %v5331_v30  ;;  %v7110_v13 = vpop.f32.mrf.mxu1  ;;  %7331 = vmatpush3.bf16.msra.mxu0 %v7630_v63  ;;  %v7637_v61 = vld [vmem:[%s11434_s7 + $0xa8] sm:$0xff]   ;;  %v7639_v30 = vld [vmem:[%s11434_s7 + $0xa0] sm:$0xff]   ;;  %v7641_v42 = vld [vmem:[%s11434_s7 + $0x98] sm:$0xff]  }
 0x74f   : > { %7332 = vmatprep.subr.bf16.mxu0 %v12345_v28  ;;  %v7643_v13 = vld [vmem:[%s11434_s7 + $0x90] sm:$0xff]   ;;  %v7653_v63 = vld [vmem:[%s11434_s7 + $0x128] sm:$0xff]  }
 0x752   : > { %7333 = vmatpush3.bf16.msra.mxu0 %v7632_v59  ;;  %v7658_v59 = vld [vmem:[%s11434_s7 + $0x158] sm:$0xff]  }
 0x753   : > { %7358 = vmatprep.subr.bf16.mxu0 %v12345_v28 }
 0x76d   : > { %v7128_v27 = vpop.f32.mrf.mxu0  ;;  %v7150_v23 = vpop.f32.mrf.mxu1 }
 0x76f   : > { %v7129_v10 = vpop.f32.mrf.mxu0  ;;  %v7151_v0 = vpop.f32.mrf.mxu1 }
 0x770   : > { %v7130_v38 = vadd.f32 %v7129_v10, %v7128_v27  ;;  %v7152_v55 = vadd.f32 %v7151_v0, %v7150_v23  ;;  %v7644_v27 = vld [vmem:[%s11434_s7 + $0xd0] sm:$0xff]   ;;  %v7645_v23 = vld [vmem:[%s11434_s7 + $0x88] sm:$0xff]   ;;  %v7647_v10 = vld [vmem:[%s11434_s7 + $0x80] sm:$0xff]  }
 0x771   : > { %v7131_v37 = vpop.f32.mrf.mxu0  ;;  %v7153_v19 = vpop.f32.mrf.mxu1  ;;  %v7648_v0 = vld [vmem:[%s11434_s7 + $0xc0] sm:$0xff]  }
 0x772   : > { %v5411_v40 = vadd.f32 %v7130_v38, %v5371_v50  ;;  %v7642_v50 = vld [vmem:[%s11434_s7 + $0xd8] sm:$0xff]   ;;  %v7651_v19 = vld [vmem:[%s11434_s7 + $0x130] sm:$0xff]  }
 0x773   : > { %v7132_v24 = vpop.f32.mrf.mxu0  ;;  %v7154_v62 = vpop.f32.mrf.mxu1  ;;  %v7649_v38 = vld [vmem:[%s11434_s7 + $0x138] sm:$0xff]  }
 0x774   : > { %v5451_v36 = vadd.f32 %v7152_v55, %v5411_v40  ;;  %v7652_v40 = vld [vmem:[%s11434_s7 + $0x170] sm:$0xff]   ;;  %v7654_v24 = vld [vmem:[%s11434_s7 + $0x168] sm:$0xff]   ;;  %v7655_v62 = vld [vmem:[%s11434_s7 + $0x120] sm:$0xff]  }
 0x7ad   : > { %v7172_v58 = vpop.f32.mrf.mxu0 }
 0x7ae   : > { %v7194_v43 = vpop.f32.mrf.mxu1 }
 0x7af   : > { %v7173_v9 = vpop.f32.mrf.mxu0 }
 0x7b0   : > { %v7195_v52 = vpop.f32.mrf.mxu1  ;;  %v7174_v46 = vadd.f32 %v7173_v9, %v7172_v58  ;;  %v7659_v58 = vld [vmem:[%s11434_s7 + $0x110] sm:$0xff]   ;;  %v7661_v9 = vld [vmem:[%s11434_s7 + $0x108] sm:$0xff]  }
 0x7b1   : > { %v7175_v7 = vpop.f32.mrf.mxu0  ;;  %v7196_v4 = vadd.f32 %v7195_v52, %v7194_v43  ;;  %v7660_v43 = vld [vmem:[%s11434_s7 + $0x150] sm:$0xff]   ;;  %v7662_v52 = vld [vmem:[%s11434_s7 + $0x148] sm:$0xff]  }
 0x7b2   : > { %v7197_v49 = vpop.f32.mrf.mxu1  ;;  %v5491_v2 = vadd.f32 %v7174_v46, %v5451_v36  ;;  %v7656_v36 = vld [vmem:[%s11434_s7 + $0x160] sm:$0xff]  }
 0x7b3   : > { %v7176_v18 = vpop.f32.mrf.mxu0  ;;  %v7663_v7 = vld [vmem:[%s11434_s7 + $0x100] sm:$0xff]  }
 0x7b4   : > { %v7198_v44 = vpop.f32.mrf.mxu1  ;;  %v5531_v11 = vadd.f32 %v7196_v4, %v5491_v2  ;;  %v7664_v49 = vld [vmem:[%s11434_s7 + $0x140] sm:$0xff]  }
 0x7ed   : > { %v7216_v14 = vpop.f32.mrf.mxu0 }
 0x7ee   : > { %v7238_v15 = vpop.f32.mrf.mxu1 }
 0x7ef   : > { %v7217_v32 = vpop.f32.mrf.mxu0 }
 0x7f0   : > { %v7218_v56 = vadd.f32 %v7217_v32, %v7216_v14  ;;  %v7239_v5 = vpop.f32.mrf.mxu1 }
 0x7f1   : > { %v7219_v12 = vpop.f32.mrf.mxu0  ;;  %v7240_v45 = vadd.f32 %v7239_v5, %v7238_v15 }
 0x7f2   : > { %v5571_v53 = vadd.f32 %v7218_v56, %v5531_v11  ;;  %v7241_v29 = vpop.f32.mrf.mxu1 }
 0x7f3   : > { %v7220_v39 = vpop.f32.mrf.mxu0 }
 0x7f4   : > { %v5611_v1 = vadd.f32 %v7240_v45, %v5571_v53  ;;  %v7242_v60 = vpop.f32.mrf.mxu1 }
 0x7f5   : > { %v5696_v33 = vpop.f32.mrf.mxu0 }
 0x7f6   : > { %v11232_v47 = vpack.c.bf16 %v5611_v1, %v5611_v1  ;;  %v5707_v6 = vsub.f32 %v5696_v33, %v6934_v31 }
 0x7f7   : > { %v5698_v35 = vpop.f32.mrf.mxu0 }
 0x7f8   : > { %v11238_v3 = vshrl.u32 %v11232_v47, 16  ;;  %v5708_v21 = vmul.f32 %v5707_v6, %v5707_v6  ;;  %7315 = vmatmul.mubr.bf16.vlgmr.msra.gmra.mxu1 %v11232_v47  ;;  %v5966_v55 = vrot.slane %v11232_v47, 1  ;;  %v6182_v18 = vrot.slane %v11232_v47, 2 }
 0x7f9   : > { %7339 = vmatpush3.bf16.msra.mxu1 %v7633_v26  ;;  %7354 = vmatprep.mubr.msk.bf16.mxu1 %vm7808_vm7, %v12345_v28 }
 0x7fa   : > { %7335 = vmatmul.mubr.bf16.vlgmr.msra.gmra.mxu0 %v11238_v3  ;;  %v5710_v8 = vsel %vm5709_vm9, %v5708_v21, 0.0  ;;  %7340 = vmatprep.subr.bf16.mxu1 %v12345_v28  ;;  %v6074_v37 = vrot.slane %v11238_v3, 1  ;;  %v6290_v44 = vrot.slane %v11238_v3, 2 }
 0x7fb   : > { %7359 = vmatpush3.bf16.msra.mxu0 %v7634_v17  ;;  %5711 = vadd.xlane.f32.xlu1 %v5710_v8 }
 0x7fc   : > { %7360 = vmatprep.subr.bf16.mxu0 %v12345_v28  ;;  %7374 = vmatprep.mubr.msk.bf16.mxu0 %vm7808_vm7, %v12345_v28 }
 0x7fd   : > { %7341 = vmatpush3.bf16.msra.mxu1 %v7635_v48  ;;  %v682_v48 = vld [vmem:[%s11435_s8] sm:$0x1] }
 0x7fe   : > { %7342 = vmatprep.subr.bf16.mxu1 %v12345_v28 }
 0x7ff   : > { %7361 = vmatpush3.bf16.msra.mxu0 %v7636_v41 }
 0x800   : > { %7362 = vmatprep.subr.bf16.mxu0 %v12345_v28 }
 0x801   : > { %7343 = vmatpush3.bf16.msra.mxu1 %v7637_v61 }
 0x802   : > { %7344 = vmatprep.subr.bf16.mxu1 %v12345_v28 }
 0x803   : > { %7363 = vmatpush3.bf16.msra.mxu0 %v7638_v54 }
 0x804   : > { %7364 = vmatprep.subr.bf16.mxu0 %v12345_v28 }
 0x805   : > { %7345 = vmatpush3.bf16.msra.mxu1 %v7639_v30 }
 0x806   : > { %7346 = vmatprep.subr.bf16.mxu1 %v12345_v28 }
 0x807   : > { %7365 = vmatpush3.bf16.msra.mxu0 %v7640_v22 }
 0x808   : > { %7366 = vmatprep.subr.bf16.mxu0 %v12345_v28 }
 0x809   : > { %7347 = vmatpush3.bf16.msra.mxu1 %v7641_v42 }
 0x80a   : > { %7348 = vmatprep.subr.bf16.mxu1 %v12345_v28 }
 0x80b   : > { %7367 = vmatpush3.bf16.msra.mxu0 %v7642_v50 }
 0x80c   : > { %7368 = vmatprep.subr.bf16.mxu0 %v12345_v28 }
 0x80d   : > { %7349 = vmatpush3.bf16.msra.mxu1 %v7643_v13 }
 0x80e   : > { %7350 = vmatprep.subr.bf16.mxu1 %v12345_v28 }
 0x80f   : > { %7369 = vmatpush3.bf16.msra.mxu0 %v7644_v27 }
 0x810   : > { %7370 = vmatprep.subr.bf16.mxu0 %v12345_v28 }
 0x811   : > { %7351 = vmatpush3.bf16.msra.mxu1 %v7645_v23 }
 0x812   : > { %7352 = vmatprep.subr.bf16.mxu1 %v12345_v28 }
 0x813   : > { %7371 = vmatpush3.bf16.msra.mxu0 %v7646_v51 }
 0x814   : > { %7372 = vmatprep.subr.bf16.mxu0 %v12345_v28 }
 0x815   : > { %7353 = vmatpush3.bf16.msra.mxu1 %v7647_v10 }
 0x816   : > { %7378 = vmatprep.subr.bf16.mxu1 %v12345_v28 }
 0x817   : > { %7373 = vmatpush3.bf16.msra.mxu0 %v7648_v0 }
 0x818   : > { %7355 = vmatmul.mubr.bf16.vlgmr.msra.gmra.mxu1 %v5966_v55  ;;  %7398 = vmatprep.subr.bf16.mxu0 %v12345_v28 }
 0x819   : > { %7379 = vmatpush3.bf16.msra.mxu1 %v7649_v38  ;;  %7394 = vmatprep.mubr.msk.bf16.mxu1 %vm7808_vm7, %v12345_v28 }
 0x81a   : > { %7375 = vmatmul.mubr.bf16.vlgmr.msra.gmra.mxu0 %v6074_v37  ;;  %7380 = vmatprep.subr.bf16.mxu1 %v12345_v28 }
 0x81b   : > { %7399 = vmatpush3.bf16.msra.mxu0 %v7650_v20  ;;  %7414 = vmatprep.mubr.msk.bf16.mxu0 %vm7808_vm7, %v12345_v28 }
 0x81c   : > { %7400 = vmatprep.subr.bf16.mxu0 %v12345_v28 }
 0x81d   : > { %7381 = vmatpush3.bf16.msra.mxu1 %v7651_v19 }
 0x81e   : > { %7382 = vmatprep.subr.bf16.mxu1 %v12345_v28 }
 0x81f   : > { %7401 = vmatpush3.bf16.msra.mxu0 %v7652_v40 }
 0x820   : > { %7402 = vmatprep.subr.bf16.mxu0 %v12345_v28 }
 0x821   : > { %7383 = vmatpush3.bf16.msra.mxu1 %v7653_v63 }
 0x822   : > { %7384 = vmatprep.subr.bf16.mxu1 %v12345_v28 }
 0x823   : > { %7403 = vmatpush3.bf16.msra.mxu0 %v7654_v24 }
 0x824   : > { %7404 = vmatprep.subr.bf16.mxu0 %v12345_v28 }
 0x825   : > { %7385 = vmatpush3.bf16.msra.mxu1 %v7655_v62 }
 0x826   : > { %7386 = vmatprep.subr.bf16.mxu1 %v12345_v28 }
 0x827   : > { %7405 = vmatpush3.bf16.msra.mxu0 %v7656_v36 }
 0x828   : > { %7406 = vmatprep.subr.bf16.mxu0 %v12345_v28 }
 0x829   : > { %7387 = vmatpush3.bf16.msra.mxu1 %v7657_v57 }
 0x82a   : > { %7388 = vmatprep.subr.bf16.mxu1 %v12345_v28 }
 0x82b   : > { %7407 = vmatpush3.bf16.msra.mxu0 %v7658_v59 }
 0x82c   : > { %7408 = vmatprep.subr.bf16.mxu0 %v12345_v28 }
 0x82d   : > { %7389 = vmatpush3.bf16.msra.mxu1 %v7659_v58 }
 0x82e   : > { %7390 = vmatprep.subr.bf16.mxu1 %v12345_v28 }
 0x82f   : > { %7409 = vmatpush3.bf16.msra.mxu0 %v7660_v43 }
 0x830   : > { %7410 = vmatprep.subr.bf16.mxu0 %v12345_v28 }
 0x831   : > { %7391 = vmatpush3.bf16.msra.mxu1 %v7661_v9 }
 0x832   : > { %7392 = vmatprep.subr.bf16.mxu1 %v12345_v28 }
 0x833   : > { %7411 = vmatpush3.bf16.msra.mxu0 %v7662_v52 }
 0x834   : > { %7412 = vmatprep.subr.bf16.mxu0 %v12345_v28 }
 0x835   : > { %7393 = vmatpush3.bf16.msra.mxu1 %v7663_v7 }
 0x837   : > { %7413 = vmatpush3.bf16.msra.mxu0 %v7664_v49 }
 0x838   : > { %7395 = vmatmul.mubr.bf16.vlgmr.msra.gmra.mxu1 %v6182_v18 }
 0x83a   : > { %7415 = vmatmul.mubr.bf16.vlgmr.msra.gmra.mxu0 %v6290_v44 }
 0x884   : > { %v5712_v46 = vpop.xlane.xlu1 %5711 }
 0x885   : > { %v5713_v2 = vrot.slane %v5712_v46, 4 }
 0x887   : > { %v5714_v25 = vadd.f32 %v5713_v2, %v5712_v46 }
 0x889   : > { %v5715_v34 = vrot.slane %v5714_v25, 2 }
 0x88b   : > { %v5716_v14 = vadd.f32 %v5715_v34, %v5714_v25 }
 0x88d   : > { %v5717_v4 = vrot.slane %v5716_v14, 1 }
 0x88f   : > { %v5718_v15 = vadd.f32 %v5717_v4, %v5716_v14 }
 0x891   : > { %7420 = vpush %v5718_v15 }
 0x8b8   : > { %v5831_v32 = vpop.f32.mrf.mxu1 }
 0x8b9   : > { %v5837_v8 = vadd.f32 %v5831_v32, %v682_v48 }
 0x8ba   : > { %v7316_v11 = vpop.f32.mrf.mxu1  ;;  %v5941_v28 = vpop.f32.mrf.mxu0 }
 0x8bb   : > { %v5947_v41 = vadd.f32 %v5941_v28, %v5837_v8 }
 0x8bc   : > { %v5834_v56 = vpop.f32.mrf.mxu1  ;;  %v7336_v5 = vpop.f32.mrf.mxu0 }
 0x8be   : > { %v7317_v16 = vpop.f32.mrf.mxu1  ;;  %v5944_v12 = vpop.f32.mrf.mxu0 }
 0x8c0   : > { %v7337_v53 = vpop.f32.mrf.mxu0 }
 0x8c2   : > { %s7421_s0 = spop %7420 }
 0x8c3   : > { %v5720_v45 = vstv %s7421_s0 }
 0x8c4   : > { %7675 = vrsqrt.f32 %v5720_v45  ;;  %vm5723_vm10 = vcmp.eq.f32.partialorder %v5720_v45, inf  ;;  %v5726_v31 = vand.u32 2147483648, %v5720_v45  ;;  %vm5725_vm12 = vcmp.eq.f32.partialorder %v5720_v45, 0.0 }
 0x8d1   : > { %v7676_v29 = vpop.eup %7675 }
 0x8d2   : > { %v5722_v39 = vmul.f32 %v7676_v29, %v5720_v45 }
 0x8d4   : > { %v5724_v1 = vsel %vm5723_vm10, %v5720_v45, %v5722_v39 }
 0x8d5   : > { %v5727_v60 = vsel %vm5725_vm12, %v5726_v31, %v5724_v1 }
 0x8d6   : > { %5729 = vst.msk [vmem:[%s399_s12] sm:$0x1] %vm5728_vm11, %v5727_v60  ;;  %s7809_s12 = smov [#allocation2]  }
 0x8d7   : > { %s7748_s24 = sshll.u32 %s7809_s12, 4  ;;  %s7749_s24 = int_to_ptr.vmem [resolvable:$false] %s7748_s24 }
 0x8d8   : > { %v6050_v33 = vpop.f32.mrf.mxu1  ;;  %s7750_s25 = scalar_lea.vmem %s7749_s24, 32  ;;  %p7751_p0 = scmp.lt.s32.totalorder %s11388_s13, %s7749_s24 }
 0x8d9   : > { %v6056_v61 = vadd.f32 %v6050_v33, %v5947_v41  ;;  %p7752_p1 = scmp.lt.s32.totalorder %s7750_s25, %s7744_s22 }
 0x8da   : > { %v7356_v26 = vpop.f32.mrf.mxu1  ;;  %v6158_v47 = vpop.f32.mrf.mxu0 }
 0x8db   : > { %v6164_v54 = vadd.f32 %v6158_v47, %v6056_v61  ;;  %p7753_p2 = por %p7752_p1, %p7751_p0 }
 0x8dc   : > { %v6053_v6 = vpop.f32.mrf.mxu1  ;;  %v7376_v35 = vpop.f32.mrf.mxu0 }
 0x8dd   : > { %p7754_p3 = pnand %p7753_p2, %p7747_p13 }
 0x8de   : > { %v7357_v17 = vpop.f32.mrf.mxu1  ;;  %v6161_v3 = vpop.f32.mrf.mxu0 }
 0x8e0   : > { %v7377_v21 = vpop.f32.mrf.mxu0 }
 0x8f8   : > { %v6266_v30 = vpop.f32.mrf.mxu1 }
 0x8f9   : > { %v6272_v22 = vadd.f32 %v6266_v30, %v6164_v54 }
 0x8fa   : > { %v7396_v42 = vpop.f32.mrf.mxu1  ;;  %v6374_v50 = vpop.f32.mrf.mxu0 }
 0x8fb   : > { %v6380_v13 = vadd.f32 %v6374_v50, %v6272_v22 }
 0x8fc   : > { %v6269_v27 = vpop.f32.mrf.mxu1  ;;  %v7416_v23 = vpop.f32.mrf.mxu0 }
 0x8fd   : > { %6382 = vst.msk [vmem:[%s379_s30] sm:$0x1] %vm6381_vm13, %v6380_v13 }
 0x8fe   : > { %v7397_v51 = vpop.f32.mrf.mxu1  ;;  %v6377_v10 = vpop.f32.mrf.mxu0 }
 0x8ff   : > { %7757 = shalt.err (!%p7754_p3)
}
 0x900   : > { %s7758_s29 = scalar_lea.hbm %s11386_s15, 16  ;;  %s7762_s14 = scalar_lea.hbm %s11436_s9, 32 }
 0x901   : > { %p7759_p4 = scmp.ne.s32.totalorder %s11386_s15, %s7758_s29  ;;  %p7763_p9 = scmp.lt.s32.totalorder %s11386_s15, %s11436_s9 }
 0x902   : > { %p7764_p10 = scmp.lt.s32.totalorder %s7762_s14, %s7758_s29 }
 0x903   : > { %p7760_p7 = pnand %p7759_p4, %p7908_p5 }
 0x904   : > { %p7765_p11 = por %p7764_p10, %p7763_p9 }
 0x905   : > { %p7761_p8 = pneg %p7760_p7 }
 0x907   : > { %p7766_p12 = pnand %p7765_p11, %p7761_p8 }
 0x909   : > { %7769 = shalt.err (!%p7766_p12)
}
 0x90a   : > { %7422 = dma.vmem_to_hbm [thread:$0]  (%p7908_p5), %s11388_s13, 16, %s11386_s15, %s6384_s21   ;;  %v7417_v0 = vpop.f32.mrf.mxu0 }
 0x90b PF: > { %p7428_p13 = scmp.ge.s32.totalorder %s7804_s20, 2  ;;  %s6422_s22 = sand.u32 1, %s7792_s17  }
 0x90c   : > { %s6423_s24 = scalar_lea.sflag [#allocation3], %s6422_s22 }
 0x90d   : > { %p7425_p0 = pnand %p7428_p13, %p7912_p6 }
 0x90f   : > { %p7426_p1 = pneg %p7425_p0 }
 0x911   : > { %7787 = dma.done.wait (%p7426_p1), %s6423_s24, 16  }
 0x912   : > { %7789 = vsyncadd (%p7426_p1), %s6423_s24, 4294967280  ;;  %p22_p2 = scmp.ge.s32.totalorder %s7895_s23, 4   ;;  %s12348_s17 = smov %s7796_s18 }
 0x913   : > { %s12349_s18 = smov %s7800_s19  ;;  %s12350_s19 = smov %s7906_s26 }
 0x914   : > { %s12351_s20 = smov %s7895_s23  ;;  %24 = sbr.rel (!%p22_p2) target bundleno = 5 (0x5), region = 120 }
 0x919   :  { %6441 = vsyncpa [#allocation3], 1 }
 0x91a   :  { %6443 = vsyncpa [#allocation3 + $0x1], 1 }

</bundles_post_ra>
